<compile_context>
chip_gen: v6e
topology: v6e:2x2x1
jax: 0.10.0
libtpu: 0.0.40
codegen_flags: <defaults>
</compile_context>

<pallas_src>
import functools
import math

import jax
import jax.numpy as jnp
from jax import lax
from jax.experimental import pallas as pl
from jax.experimental.pallas import tpu as pltpu


# ----------------------------- Pallas kernel --------------------------------

def csp_rep_kernel(x_ref, w12_ref, b12_ref, wblk_ref, bblk_ref,
                   o_ref, pad_ref, cols_ref, *, num_blocks):
    """One batch element of CSPRepLayer, fully resident in VMEM.

    x_ref:    (1, H, W, Cin)          bf16 input tile (NHWC)
    w12_ref:  (Cin, 2*Ch)             bf16, [conv1 | conv2] 1x1 weights (BN-folded)
    b12_ref:  (1, 2*Ch)               f32 biases
    wblk_ref: (NB, 9*Ch, 2*Ch)        bf16, per-block fused [3x3-im2col | 1x1@center] weights
    bblk_ref: (NB, 1, 2*Ch)           f32 biases [b3 | b1]
    o_ref:    (1, H, W, Ch)           f32 output tile
    pad_ref:  (1, H+2, W+2, Ch)       f32 scratch: zero-padded activation
    cols_ref: (1, H, W, 9*Ch)         f32 scratch: im2col taps
    """
    _, H, W, Cin = x_ref.shape
    Ch2 = w12_ref.shape[1]
    Ch = Ch2 // 2
    M = H * W

    def silu(v):
        return v * jax.nn.sigmoid(v)

    x = x_ref[...].reshape(M, Cin)                                   # bf16

    # Fused conv1|conv2 (1x1 + BN + SiLU): one K=Cin matmul, 2*Ch-wide output
    # keeps the SiLU lane-dense (64 lanes instead of 2x32).
    y12 = silu(jnp.dot(x, w12_ref[...], preferred_element_type=jnp.float32)
               + b12_ref[...])                                       # (M, 2*Ch) f32
    y1 = y12[:, :Ch]
    y2 = y12[:, Ch:]

    # Zero the padded buffer ONCE; the interior is fully overwritten every block,
    # so only the 1-pixel border needs to stay zero.
    pad_ref[...] = jnp.zeros(pad_ref.shape, pad_ref.dtype)

    cur = y1                                                         # (M, Ch) f32
    for blk in range(num_blocks):
        pad_ref[:, 1:H + 1, 1:W + 1, :] = cur.reshape(1, H, W, Ch)

        # im2col: put the 9 taps side by side along the lane axis -> (M, 9*Ch).
        for dy in range(3):
            for dx in range(3):
                t = dy * 3 + dx
                cols_ref[:, :, :, t * Ch:(t + 1) * Ch] = \
                    pad_ref[:, dy:dy + H, dx:dx + W, :]

        cols = cols_ref[...].reshape(M, 9 * Ch).astype(jnp.bfloat16)

        # Single fused matmul (K = 9*Ch = 288): columns [0:Ch] are the 3x3 conv,
        # columns [Ch:2*Ch] are the 1x1 conv (its weight lives at the center tap).
        pre = jnp.dot(cols, wblk_ref[blk],
                      preferred_element_type=jnp.float32) + bblk_ref[blk]
        act = silu(pre)                                              # both branch SiLUs, 64 lanes
        cur = silu(act[:, :Ch] + act[:, Ch:])                        # RepVgg outer SiLU

    out = cur + y2                                                   # conv3 == Identity
    o_ref[...] = out.reshape(1, H, W, Ch).astype(o_ref.dtype)


def csp_rep_layer(x_nchw, kparams):
    x = jnp.transpose(x_nchw, (0, 2, 3, 1)).astype(jnp.bfloat16)     # -> NHWC, bf16
    N, H, W, Cin = x.shape
    Ch2 = kparams["w12"].shape[1]
    Ch = Ch2 // 2
    nb = kparams["wblk"].shape[0]

    out_nhwc = pl.pallas_call(
        functools.partial(csp_rep_kernel, num_blocks=nb),
        out_shape=jax.ShapeDtypeStruct((N, H, W, Ch), jnp.float32),
        grid=(N,),
        in_specs=[
            pl.BlockSpec((1, H, W, Cin), lambda n: (n, 0, 0, 0)),
            pl.BlockSpec((Cin, Ch2), lambda n: (0, 0)),
            pl.BlockSpec((1, Ch2), lambda n: (0, 0)),
            pl.BlockSpec((nb, 9 * Ch, Ch2), lambda n: (0, 0, 0)),
            pl.BlockSpec((nb, 1, Ch2), lambda n: (0, 0, 0)),
        ],
        out_specs=pl.BlockSpec((1, H, W, Ch), lambda n: (n, 0, 0, 0)),
        scratch_shapes=[
            pltpu.VMEM((1, H + 2, W + 2, Ch), jnp.float32),
            pltpu.VMEM((1, H, W, 9 * Ch), jnp.float32),
        ],
        compiler_params=pltpu.CompilerParams(
            dimension_semantics=("parallel",)),
    )(x, kparams["w12"], kparams["b12"], kparams["wblk"], kparams["bblk"])

    return jnp.transpose(out_nhwc, (0, 3, 1, 2))                     # -> NCHW, f32


# ----------------------- deterministic parameter setup -----------------------

def xavier_uniform(key, shape_oihw, gain):
    cout, cin, kh, kw = shape_oihw
    fan_in = cin * kh * kw
    fan_out = cout * kh * kw
    bound = gain * math.sqrt(6.0 / (fan_in + fan_out))
    return jax.random.uniform(key, shape_oihw, jnp.float32, -bound, bound)


def fold_bn(w_oihw, eps=1e-5):
    # Default BatchNorm2d stats: gamma=1, beta=0, running_mean=0, running_var=1.
    gamma = jnp.ones((w_oihw.shape[0],), jnp.float32)
    beta = jnp.zeros((w_oihw.shape[0],), jnp.float32)
    mean = jnp.zeros((w_oihw.shape[0],), jnp.float32)
    var = jnp.ones((w_oihw.shape[0],), jnp.float32)
    scale = gamma / jnp.sqrt(var + eps)
    w = w_oihw * scale[:, None, None, None]
    b = beta - mean * scale
    return w, b


def make_params(in_channels, out_channels, num_blocks=3, expansion=1.0):
    hidden = int(out_channels * expansion)
    assert hidden == out_channels, "conv3 path (hidden != out) not exercised here"
    gain = math.sqrt(2.0)  # calculate_gain('relu')
    keys = jax.random.split(jax.random.PRNGKey(0), 2 + 2 * num_blocks)

    w1, b1 = fold_bn(xavier_uniform(keys[0], (hidden, in_channels, 1, 1), gain))
    w2, b2 = fold_bn(xavier_uniform(keys[1], (hidden, in_channels, 1, 1), gain))

    rep3w, rep3b, rep1w, rep1b = [], [], [], []
    for i in range(num_blocks):
        w3, bb3 = fold_bn(xavier_uniform(keys[2 + 2 * i], (hidden, hidden, 3, 3), gain))
        w1x, bb1 = fold_bn(xavier_uniform(keys[3 + 2 * i], (hidden, hidden, 1, 1), gain))
        rep3w.append(jnp.transpose(w3, (2, 3, 1, 0)))         # OIHW -> HWIO
        rep3b.append(bb3[None, :])
        rep1w.append(jnp.transpose(w1x[:, :, 0, 0], (1, 0)))  # (Cout,Cin) -> (Cin,Cout)
        rep1b.append(bb1[None, :])

    return {
        "w1": jnp.transpose(w1[:, :, 0, 0], (1, 0)), "b1": b1[None, :],
        "w2": jnp.transpose(w2[:, :, 0, 0], (1, 0)), "b2": b2[None, :],
        "rep3w": jnp.stack(rep3w), "rep3b": jnp.stack(rep3b),
        "rep1w": jnp.stack(rep1w), "rep1b": jnp.stack(rep1b),
    }


def fuse_kernel_params(p):
    """Build the kernel-side fused (and bf16-cast) weights."""
    ch = p["w1"].shape[1]
    nb = p["rep3w"].shape[0]

    w12 = jnp.concatenate([p["w1"], p["w2"]], axis=1).astype(jnp.bfloat16)
    b12 = jnp.concatenate([p["b1"], p["b2"]], axis=1).astype(jnp.float32)

    wblks, bblks = [], []
    for blk in range(nb):
        w3_flat = p["rep3w"][blk].reshape(9 * ch, ch)          # rows = (dy*3+dx)*Ch + cin
        w1_pad = jnp.zeros((9 * ch, ch), jnp.float32)
        w1_pad = w1_pad.at[4 * ch:5 * ch, :].set(p["rep1w"][blk])   # center tap (dy=1,dx=1)
        wblks.append(jnp.concatenate([w3_flat, w1_pad], axis=1))
        bblks.append(jnp.concatenate([p["rep3b"][blk], p["rep1b"][blk]], axis=1))

    return {
        "w12": w12, "b12": b12,
        "wblk": jnp.stack(wblks).astype(jnp.bfloat16),
        "bblk": jnp.stack(bblks).astype(jnp.float32),
    }


# --------------------------- pure-JAX reference ------------------------------

def ref_forward(x_nchw, params, *, matmul_dtype=jnp.float32):
    """Reference. matmul_dtype=bf16 mirrors the kernel's precision policy
    (bf16 matmul operands, f32 accumulation, f32 elementwise)."""
    def silu(v):
        return v * jax.nn.sigmoid(v)

    def cast(a):
        return a.astype(matmul_dtype)

    x = jnp.transpose(x_nchw, (0, 2, 3, 1)).astype(jnp.float32)
    y1 = silu(jnp.einsum("nhwc,cd->nhwd", cast(x), cast(params["w1"]),
                         preferred_element_type=jnp.float32) + params["b1"][0])
    y2 = silu(jnp.einsum("nhwc,cd->nhwd", cast(x), cast(params["w2"]),
                         preferred_element_type=jnp.float32) + params["b2"][0])

    cur = y1
    for blk in range(params["rep3w"].shape[0]):
        a3 = lax.conv_general_dilated(
            cast(cur), cast(params["rep3w"][blk]), (1, 1), "SAME",
            dimension_numbers=("NHWC", "HWIO", "NHWC"),
            preferred_element_type=jnp.float32) + params["rep3b"][blk][0]
        a3 = silu(a3)
        a1 = silu(jnp.einsum("nhwc,cd->nhwd", cast(cur), cast(params["rep1w"][blk]),
                             preferred_element_type=jnp.float32)
                  + params["rep1b"][blk][0])
        cur = silu(a3 + a1)

    return jnp.transpose(cur + y2, (0, 3, 1, 2))


# ----------------------------------- main ------------------------------------

if __name__ == "__main__":
    N, Cin, H, W = 2, 8, 16, 16
    Cout, num_blocks = 32, 3

    params = make_params(Cin, Cout, num_blocks=num_blocks, expansion=1.0)
    kparams = fuse_kernel_params(params)
    x = jax.random.normal(jax.random.PRNGKey(0), (N, Cin, H, W), jnp.float32)  # NCHW

    out = csp_rep_layer(x, kparams)
    out = jax.block_until_ready(out)
    assert out.shape == (N, Cout, H, W), out.shape

    # Tight check vs. a reference using the same bf16-operand / f32-accumulate policy.
    ref_bf16 = ref_forward(x, params, matmul_dtype=jnp.bfloat16)
    err_bf16 = float(jnp.max(jnp.abs(out - ref_bf16)))
    assert jnp.allclose(out, ref_bf16, rtol=1e-2, atol=1e-2), err_bf16

    # Loose check vs. the full-f32 module semantics (bounds the bf16 precision loss).
    ref_f32 = ref_forward(x, params, matmul_dtype=jnp.float32)
    err_f32 = float(jnp.max(jnp.abs(out - ref_f32)))
    assert jnp.allclose(out, ref_f32, rtol=1e-1, atol=1e-1), err_f32

    print("KERNEL_OK")
</pallas_src>

<mosaic_0001>
module attributes {stable_mosaic.version = 11 : i64} {
  func.func @csp_rep_kernel(%arg0: i32, %arg1: memref<1x16x16x8xbf16, #tpu.memory_space<vmem>>, %arg2: memref<8x64xbf16, #tpu.memory_space<vmem>>, %arg3: memref<1x64xf32, #tpu.memory_space<vmem>>, %arg4: memref<3x288x64xbf16, #tpu.memory_space<vmem>>, %arg5: memref<3x1x64xf32, #tpu.memory_space<vmem>>, %arg6: memref<1x16x16x32xf32, #tpu.memory_space<vmem>>, %arg7: memref<1x18x18x32xf32, #tpu.memory_space<vmem>>, %arg8: memref<1x16x16x288xf32, #tpu.memory_space<vmem>>) attributes {dimension_semantics = [#tpu.dimension_semantics<parallel>], iteration_bounds = array<i64: 2>, scalar_prefetch = 0 : i64, scratch_operands = 2 : i64, tpu.core_type = #tpu.core_type<tc>, window_params = [{transform_indices = @transform_0, window_bounds = array<i64: 1, 16, 16, 8>}, {pipeline_mode = #tpu.pipeline_mode<synchronous>, transform_indices = @transform_1, window_bounds = array<i64: 8, 64>}, {pipeline_mode = #tpu.pipeline_mode<synchronous>, transform_indices = @transform_2, window_bounds = array<i64: 1, 64>}, {pipeline_mode = #tpu.pipeline_mode<synchronous>, transform_indices = @transform_3, window_bounds = array<i64: 3, 288, 64>}, {pipeline_mode = #tpu.pipeline_mode<synchronous>, transform_indices = @transform_4, window_bounds = array<i64: 3, 1, 64>}, {transform_indices = @transform_5, window_bounds = array<i64: 1, 16, 16, 32>}]} {
    %c0 = arith.constant 0 : index
    %c0_0 = arith.constant 0 : index
    %c0_1 = arith.constant 0 : index
    %c0_2 = arith.constant 0 : index
    %0 = vector.load %arg1[%c0, %c0_0, %c0_1, %c0_2] : memref<1x16x16x8xbf16, #tpu.memory_space<vmem>>, vector<1x16x16x8xbf16>
    %1 = vector.shape_cast %0 : vector<1x16x16x8xbf16> to vector<256x8xbf16>
    %c0_3 = arith.constant 0 : index
    %c0_4 = arith.constant 0 : index
    %2 = vector.load %arg2[%c0_3, %c0_4] : memref<8x64xbf16, #tpu.memory_space<vmem>>, vector<8x64xbf16>
    %cst = arith.constant dense<0.000000e+00> : vector<256x64xf32>
    %3 = tpu.matmul %1, %2, %cst {dimension_numbers = #tpu.dot_dimension_numbers<[1], [0], [0], [1], [0, 0, 1, 1], [], []>} : vector<256x8xbf16>, vector<8x64xbf16>, vector<256x64xf32> -> vector<256x64xf32>
    %c0_5 = arith.constant 0 : index
    %c0_6 = arith.constant 0 : index
    %4 = vector.load %arg3[%c0_5, %c0_6] : memref<1x64xf32, #tpu.memory_space<vmem>>, vector<1x64xf32>
    %5 = vector.broadcast %4 : vector<1x64xf32> to vector<256x64xf32>
    %6 = arith.addf %3, %5 : vector<256x64xf32>
    %7 = arith.negf %6 : vector<256x64xf32>
    %8 = math.exp %7 : vector<256x64xf32>
    %cst_7 = arith.constant 1.000000e+00 : f32
    %9 = vector.broadcast %cst_7 : f32 to vector<256x64xf32>
    %10 = arith.addf %9, %8 : vector<256x64xf32>
    %11 = arith.divf %9, %10 : vector<256x64xf32>
    %12 = arith.mulf %6, %11 : vector<256x64xf32>
    %13 = vector.extract_strided_slice %12 {offsets = [0, 0], sizes = [256, 32], strides = [1, 1]} : vector<256x64xf32> to vector<256x32xf32>
    %14 = vector.extract_strided_slice %12 {offsets = [0, 32], sizes = [256, 32], strides = [1, 1]} : vector<256x64xf32> to vector<256x32xf32>
    %cst_8 = arith.constant 0.000000e+00 : f32
    %15 = vector.broadcast %cst_8 : f32 to vector<1x18x18x32xf32>
    %c0_9 = arith.constant 0 : index
    %c0_10 = arith.constant 0 : index
    %c0_11 = arith.constant 0 : index
    %c0_12 = arith.constant 0 : index
    %16 = vector.load %arg7[%c0_9, %c0_10, %c0_11, %c0_12] : memref<1x18x18x32xf32, #tpu.memory_space<vmem>>, vector<1x18x18x32xf32>
    tpu.vector_store %arg7[%c0_9, %c0_10, %c0_11, %c0_12], %15 {strides = array<i32>} : memref<1x18x18x32xf32, #tpu.memory_space<vmem>>, vector<1x18x18x32xf32>,
    %17 = vector.shape_cast %13 : vector<256x32xf32> to vector<1x16x16x32xf32>
    %c0_13 = arith.constant 0 : index
    %c1 = arith.constant 1 : index
    %c1_14 = arith.constant 1 : index
    %c0_15 = arith.constant 0 : index
    %18 = vector.load %arg7[%c0_13, %c1, %c1_14, %c0_15] : memref<1x18x18x32xf32, #tpu.memory_space<vmem>>, vector<1x16x16x32xf32>
    tpu.vector_store %arg7[%c0_13, %c1, %c1_14, %c0_15], %17 {strides = array<i32>} : memref<1x18x18x32xf32, #tpu.memory_space<vmem>>, vector<1x16x16x32xf32>,
    %c0_16 = arith.constant 0 : index
    %c0_17 = arith.constant 0 : index
    %c0_18 = arith.constant 0 : index
    %c0_19 = arith.constant 0 : index
    %19 = vector.load %arg7[%c0_16, %c0_17, %c0_18, %c0_19] : memref<1x18x18x32xf32, #tpu.memory_space<vmem>>, vector<1x16x16x32xf32>
    %c0_20 = arith.constant 0 : index
    %c0_21 = arith.constant 0 : index
    %c0_22 = arith.constant 0 : index
    %c0_23 = arith.constant 0 : index
    %20 = vector.load %arg8[%c0_20, %c0_21, %c0_22, %c0_23] : memref<1x16x16x288xf32, #tpu.memory_space<vmem>>, vector<1x16x16x32xf32>
    tpu.vector_store %arg8[%c0_20, %c0_21, %c0_22, %c0_23], %19 {strides = array<i32>} : memref<1x16x16x288xf32, #tpu.memory_space<vmem>>, vector<1x16x16x32xf32>,
    %c0_24 = arith.constant 0 : index
    %c0_25 = arith.constant 0 : index
    %c1_26 = arith.constant 1 : index
    %c0_27 = arith.constant 0 : index
    %21 = vector.load %arg7[%c0_24, %c0_25, %c1_26, %c0_27] : memref<1x18x18x32xf32, #tpu.memory_space<vmem>>, vector<1x16x16x32xf32>
    %c0_28 = arith.constant 0 : index
    %c0_29 = arith.constant 0 : index
    %c0_30 = arith.constant 0 : index
    %c32 = arith.constant 32 : index
    %22 = vector.load %arg8[%c0_28, %c0_29, %c0_30, %c32] : memref<1x16x16x288xf32, #tpu.memory_space<vmem>>, vector<1x16x16x32xf32>
    tpu.vector_store %arg8[%c0_28, %c0_29, %c0_30, %c32], %21 {strides = array<i32>} : memref<1x16x16x288xf32, #tpu.memory_space<vmem>>, vector<1x16x16x32xf32>,
    %c0_31 = arith.constant 0 : index
    %c0_32 = arith.constant 0 : index
    %c2 = arith.constant 2 : index
    %c0_33 = arith.constant 0 : index
    %23 = vector.load %arg7[%c0_31, %c0_32, %c2, %c0_33] : memref<1x18x18x32xf32, #tpu.memory_space<vmem>>, vector<1x16x16x32xf32>
    %c0_34 = arith.constant 0 : index
    %c0_35 = arith.constant 0 : index
    %c0_36 = arith.constant 0 : index
    %c64 = arith.constant 64 : index
    %24 = vector.load %arg8[%c0_34, %c0_35, %c0_36, %c64] : memref<1x16x16x288xf32, #tpu.memory_space<vmem>>, vector<1x16x16x32xf32>
    tpu.vector_store %arg8[%c0_34, %c0_35, %c0_36, %c64], %23 {strides = array<i32>} : memref<1x16x16x288xf32, #tpu.memory_space<vmem>>, vector<1x16x16x32xf32>,
    %c0_37 = arith.constant 0 : index
    %c1_38 = arith.constant 1 : index
    %c0_39 = arith.constant 0 : index
    %c0_40 = arith.constant 0 : index
    %25 = vector.load %arg7[%c0_37, %c1_38, %c0_39, %c0_40] : memref<1x18x18x32xf32, #tpu.memory_space<vmem>>, vector<1x16x16x32xf32>
    %c0_41 = arith.constant 0 : index
    %c0_42 = arith.constant 0 : index
    %c0_43 = arith.constant 0 : index
    %c96 = arith.constant 96 : index
    %26 = vector.load %arg8[%c0_41, %c0_42, %c0_43, %c96] : memref<1x16x16x288xf32, #tpu.memory_space<vmem>>, vector<1x16x16x32xf32>
    tpu.vector_store %arg8[%c0_41, %c0_42, %c0_43, %c96], %25 {strides = array<i32>} : memref<1x16x16x288xf32, #tpu.memory_space<vmem>>, vector<1x16x16x32xf32>,
    %c0_44 = arith.constant 0 : index
    %c1_45 = arith.constant 1 : index
    %c1_46 = arith.constant 1 : index
    %c0_47 = arith.constant 0 : index
    %27 = vector.load %arg7[%c0_44, %c1_45, %c1_46, %c0_47] : memref<1x18x18x32xf32, #tpu.memory_space<vmem>>, vector<1x16x16x32xf32>
    %c0_48 = arith.constant 0 : index
    %c0_49 = arith.constant 0 : index
    %c0_50 = arith.constant 0 : index
    %c128 = arith.constant 128 : index
    %28 = vector.load %arg8[%c0_48, %c0_49, %c0_50, %c128] : memref<1x16x16x288xf32, #tpu.memory_space<vmem>>, vector<1x16x16x32xf32>
    tpu.vector_store %arg8[%c0_48, %c0_49, %c0_50, %c128], %27 {strides = array<i32>} : memref<1x16x16x288xf32, #tpu.memory_space<vmem>>, vector<1x16x16x32xf32>,
    %c0_51 = arith.constant 0 : index
    %c1_52 = arith.constant 1 : index
    %c2_53 = arith.constant 2 : index
    %c0_54 = arith.constant 0 : index
    %29 = vector.load %arg7[%c0_51, %c1_52, %c2_53, %c0_54] : memref<1x18x18x32xf32, #tpu.memory_space<vmem>>, vector<1x16x16x32xf32>
    %c0_55 = arith.constant 0 : index
    %c0_56 = arith.constant 0 : index
    %c0_57 = arith.constant 0 : index
    %c160 = arith.constant 160 : index
    %30 = vector.load %arg8[%c0_55, %c0_56, %c0_57, %c160] : memref<1x16x16x288xf32, #tpu.memory_space<vmem>>, vector<1x16x16x32xf32>
    tpu.vector_store %arg8[%c0_55, %c0_56, %c0_57, %c160], %29 {strides = array<i32>} : memref<1x16x16x288xf32, #tpu.memory_space<vmem>>, vector<1x16x16x32xf32>,
    %c0_58 = arith.constant 0 : index
    %c2_59 = arith.constant 2 : index
    %c0_60 = arith.constant 0 : index
    %c0_61 = arith.constant 0 : index
    %31 = vector.load %arg7[%c0_58, %c2_59, %c0_60, %c0_61] : memref<1x18x18x32xf32, #tpu.memory_space<vmem>>, vector<1x16x16x32xf32>
    %c0_62 = arith.constant 0 : index
    %c0_63 = arith.constant 0 : index
    %c0_64 = arith.constant 0 : index
    %c192 = arith.constant 192 : index
    %32 = vector.load %arg8[%c0_62, %c0_63, %c0_64, %c192] : memref<1x16x16x288xf32, #tpu.memory_space<vmem>>, vector<1x16x16x32xf32>
    tpu.vector_store %arg8[%c0_62, %c0_63, %c0_64, %c192], %31 {strides = array<i32>} : memref<1x16x16x288xf32, #tpu.memory_space<vmem>>, vector<1x16x16x32xf32>,
    %c0_65 = arith.constant 0 : index
    %c2_66 = arith.constant 2 : index
    %c1_67 = arith.constant 1 : index
    %c0_68 = arith.constant 0 : index
    %33 = vector.load %arg7[%c0_65, %c2_66, %c1_67, %c0_68] : memref<1x18x18x32xf32, #tpu.memory_space<vmem>>, vector<1x16x16x32xf32>
    %c0_69 = arith.constant 0 : index
    %c0_70 = arith.constant 0 : index
    %c0_71 = arith.constant 0 : index
    %c224 = arith.constant 224 : index
    %34 = vector.load %arg8[%c0_69, %c0_70, %c0_71, %c224] : memref<1x16x16x288xf32, #tpu.memory_space<vmem>>, vector<1x16x16x32xf32>
    tpu.vector_store %arg8[%c0_69, %c0_70, %c0_71, %c224], %33 {strides = array<i32>} : memref<1x16x16x288xf32, #tpu.memory_space<vmem>>, vector<1x16x16x32xf32>,
    %c0_72 = arith.constant 0 : index
    %c2_73 = arith.constant 2 : index
    %c2_74 = arith.constant 2 : index
    %c0_75 = arith.constant 0 : index
    %35 = vector.load %arg7[%c0_72, %c2_73, %c2_74, %c0_75] : memref<1x18x18x32xf32, #tpu.memory_space<vmem>>, vector<1x16x16x32xf32>
    %c0_76 = arith.constant 0 : index
    %c0_77 = arith.constant 0 : index
    %c0_78 = arith.constant 0 : index
    %c256 = arith.constant 256 : index
    %36 = vector.load %arg8[%c0_76, %c0_77, %c0_78, %c256] : memref<1x16x16x288xf32, #tpu.memory_space<vmem>>, vector<1x16x16x32xf32>
    tpu.vector_store %arg8[%c0_76, %c0_77, %c0_78, %c256], %35 {strides = array<i32>} : memref<1x16x16x288xf32, #tpu.memory_space<vmem>>, vector<1x16x16x32xf32>,
    %c0_79 = arith.constant 0 : index
    %c0_80 = arith.constant 0 : index
    %c0_81 = arith.constant 0 : index
    %c0_82 = arith.constant 0 : index
    %37 = vector.load %arg8[%c0_79, %c0_80, %c0_81, %c0_82] : memref<1x16x16x288xf32, #tpu.memory_space<vmem>>, vector<1x16x16x288xf32>
    %38 = vector.shape_cast %37 : vector<1x16x16x288xf32> to vector<256x288xf32>
    %39 = arith.truncf %38 : vector<256x288xf32> to vector<256x288xbf16>
    %c0_83 = arith.constant 0 : index
    %c0_84 = arith.constant 0 : index
    %c0_85 = arith.constant 0 : index
    %40 = vector.load %arg4[%c0_83, %c0_84, %c0_85] : memref<3x288x64xbf16, #tpu.memory_space<vmem>>, vector<1x288x64xbf16>
    %41 = vector.shape_cast %40 : vector<1x288x64xbf16> to vector<288x64xbf16>
    %cst_86 = arith.constant dense<0.000000e+00> : vector<256x64xf32>
    %42 = tpu.matmul %39, %41, %cst_86 {dimension_numbers = #tpu.dot_dimension_numbers<[1], [0], [0], [1], [0, 0, 1, 1], [], []>} : vector<256x288xbf16>, vector<288x64xbf16>, vector<256x64xf32> -> vector<256x64xf32>
    %c0_87 = arith.constant 0 : index
    %c0_88 = arith.constant 0 : index
    %c0_89 = arith.constant 0 : index
    %43 = vector.load %arg5[%c0_87, %c0_88, %c0_89] : memref<3x1x64xf32, #tpu.memory_space<vmem>>, vector<1x1x64xf32>
    %44 = vector.shape_cast %43 : vector<1x1x64xf32> to vector<1x64xf32>
    %45 = vector.broadcast %44 : vector<1x64xf32> to vector<256x64xf32>
    %46 = arith.addf %42, %45 : vector<256x64xf32>
    %47 = arith.negf %46 : vector<256x64xf32>
    %48 = math.exp %47 : vector<256x64xf32>
    %cst_90 = arith.constant 1.000000e+00 : f32
    %49 = vector.broadcast %cst_90 : f32 to vector<256x64xf32>
    %50 = arith.addf %49, %48 : vector<256x64xf32>
    %51 = arith.divf %49, %50 : vector<256x64xf32>
    %52 = arith.mulf %46, %51 : vector<256x64xf32>
    %53 = vector.extract_strided_slice %52 {offsets = [0, 0], sizes = [256, 32], strides = [1, 1]} : vector<256x64xf32> to vector<256x32xf32>
    %54 = vector.extract_strided_slice %52 {offsets = [0, 32], sizes = [256, 32], strides = [1, 1]} : vector<256x64xf32> to vector<256x32xf32>
    %55 = arith.addf %53, %54 : vector<256x32xf32>
    %56 = arith.negf %55 : vector<256x32xf32>
    %57 = math.exp %56 : vector<256x32xf32>
    %cst_91 = arith.constant 1.000000e+00 : f32
    %58 = vector.broadcast %cst_91 : f32 to vector<256x32xf32>
    %59 = arith.addf %58, %57 : vector<256x32xf32>
    %60 = arith.divf %58, %59 : vector<256x32xf32>
    %61 = arith.mulf %55, %60 : vector<256x32xf32>
    %62 = vector.shape_cast %61 : vector<256x32xf32> to vector<1x16x16x32xf32>
    %c0_92 = arith.constant 0 : index
    %c1_93 = arith.constant 1 : index
    %c1_94 = arith.constant 1 : index
    %c0_95 = arith.constant 0 : index
    %63 = vector.load %arg7[%c0_92, %c1_93, %c1_94, %c0_95] : memref<1x18x18x32xf32, #tpu.memory_space<vmem>>, vector<1x16x16x32xf32>
    tpu.vector_store %arg7[%c0_92, %c1_93, %c1_94, %c0_95], %62 {strides = array<i32>} : memref<1x18x18x32xf32, #tpu.memory_space<vmem>>, vector<1x16x16x32xf32>,
    %c0_96 = arith.constant 0 : index
    %c0_97 = arith.constant 0 : index
    %c0_98 = arith.constant 0 : index
    %c0_99 = arith.constant 0 : index
    %64 = vector.load %arg7[%c0_96, %c0_97, %c0_98, %c0_99] : memref<1x18x18x32xf32, #tpu.memory_space<vmem>>, vector<1x16x16x32xf32>
    %c0_100 = arith.constant 0 : index
    %c0_101 = arith.constant 0 : index
    %c0_102 = arith.constant 0 : index
    %c0_103 = arith.constant 0 : index
    %65 = vector.load %arg8[%c0_100, %c0_101, %c0_102, %c0_103] : memref<1x16x16x288xf32, #tpu.memory_space<vmem>>, vector<1x16x16x32xf32>
    tpu.vector_store %arg8[%c0_100, %c0_101, %c0_102, %c0_103], %64 {strides = array<i32>} : memref<1x16x16x288xf32, #tpu.memory_space<vmem>>, vector<1x16x16x32xf32>,
    %c0_104 = arith.constant 0 : index
    %c0_105 = arith.constant 0 : index
    %c1_106 = arith.constant 1 : index
    %c0_107 = arith.constant 0 : index
    %66 = vector.load %arg7[%c0_104, %c0_105, %c1_106, %c0_107] : memref<1x18x18x32xf32, #tpu.memory_space<vmem>>, vector<1x16x16x32xf32>
    %c0_108 = arith.constant 0 : index
    %c0_109 = arith.constant 0 : index
    %c0_110 = arith.constant 0 : index
    %c32_111 = arith.constant 32 : index
    %67 = vector.load %arg8[%c0_108, %c0_109, %c0_110, %c32_111] : memref<1x16x16x288xf32, #tpu.memory_space<vmem>>, vector<1x16x16x32xf32>
    tpu.vector_store %arg8[%c0_108, %c0_109, %c0_110, %c32_111], %66 {strides = array<i32>} : memref<1x16x16x288xf32, #tpu.memory_space<vmem>>, vector<1x16x16x32xf32>,
    %c0_112 = arith.constant 0 : index
    %c0_113 = arith.constant 0 : index
    %c2_114 = arith.constant 2 : index
    %c0_115 = arith.constant 0 : index
    %68 = vector.load %arg7[%c0_112, %c0_113, %c2_114, %c0_115] : memref<1x18x18x32xf32, #tpu.memory_space<vmem>>, vector<1x16x16x32xf32>
    %c0_116 = arith.constant 0 : index
    %c0_117 = arith.constant 0 : index
    %c0_118 = arith.constant 0 : index
    %c64_119 = arith.constant 64 : index
    %69 = vector.load %arg8[%c0_116, %c0_117, %c0_118, %c64_119] : memref<1x16x16x288xf32, #tpu.memory_space<vmem>>, vector<1x16x16x32xf32>
    tpu.vector_store %arg8[%c0_116, %c0_117, %c0_118, %c64_119], %68 {strides = array<i32>} : memref<1x16x16x288xf32, #tpu.memory_space<vmem>>, vector<1x16x16x32xf32>,
    %c0_120 = arith.constant 0 : index
    %c1_121 = arith.constant 1 : index
    %c0_122 = arith.constant 0 : index
    %c0_123 = arith.constant 0 : index
    %70 = vector.load %arg7[%c0_120, %c1_121, %c0_122, %c0_123] : memref<1x18x18x32xf32, #tpu.memory_space<vmem>>, vector<1x16x16x32xf32>
    %c0_124 = arith.constant 0 : index
    %c0_125 = arith.constant 0 : index
    %c0_126 = arith.constant 0 : index
    %c96_127 = arith.constant 96 : index
    %71 = vector.load %arg8[%c0_124, %c0_125, %c0_126, %c96_127] : memref<1x16x16x288xf32, #tpu.memory_space<vmem>>, vector<1x16x16x32xf32>
    tpu.vector_store %arg8[%c0_124, %c0_125, %c0_126, %c96_127], %70 {strides = array<i32>} : memref<1x16x16x288xf32, #tpu.memory_space<vmem>>, vector<1x16x16x32xf32>,
    %c0_128 = arith.constant 0 : index
    %c1_129 = arith.constant 1 : index
    %c1_130 = arith.constant 1 : index
    %c0_131 = arith.constant 0 : index
    %72 = vector.load %arg7[%c0_128, %c1_129, %c1_130, %c0_131] : memref<1x18x18x32xf32, #tpu.memory_space<vmem>>, vector<1x16x16x32xf32>
    %c0_132 = arith.constant 0 : index
    %c0_133 = arith.constant 0 : index
    %c0_134 = arith.constant 0 : index
    %c128_135 = arith.constant 128 : index
    %73 = vector.load %arg8[%c0_132, %c0_133, %c0_134, %c128_135] : memref<1x16x16x288xf32, #tpu.memory_space<vmem>>, vector<1x16x16x32xf32>
    tpu.vector_store %arg8[%c0_132, %c0_133, %c0_134, %c128_135], %72 {strides = array<i32>} : memref<1x16x16x288xf32, #tpu.memory_space<vmem>>, vector<1x16x16x32xf32>,
    %c0_136 = arith.constant 0 : index
    %c1_137 = arith.constant 1 : index
    %c2_138 = arith.constant 2 : index
    %c0_139 = arith.constant 0 : index
    %74 = vector.load %arg7[%c0_136, %c1_137, %c2_138, %c0_139] : memref<1x18x18x32xf32, #tpu.memory_space<vmem>>, vector<1x16x16x32xf32>
    %c0_140 = arith.constant 0 : index
    %c0_141 = arith.constant 0 : index
    %c0_142 = arith.constant 0 : index
    %c160_143 = arith.constant 160 : index
    %75 = vector.load %arg8[%c0_140, %c0_141, %c0_142, %c160_143] : memref<1x16x16x288xf32, #tpu.memory_space<vmem>>, vector<1x16x16x32xf32>
    tpu.vector_store %arg8[%c0_140, %c0_141, %c0_142, %c160_143], %74 {strides = array<i32>} : memref<1x16x16x288xf32, #tpu.memory_space<vmem>>, vector<1x16x16x32xf32>,
    %c0_144 = arith.constant 0 : index
    %c2_145 = arith.constant 2 : index
    %c0_146 = arith.constant 0 : index
    %c0_147 = arith.constant 0 : index
    %76 = vector.load %arg7[%c0_144, %c2_145, %c0_146, %c0_147] : memref<1x18x18x32xf32, #tpu.memory_space<vmem>>, vector<1x16x16x32xf32>
    %c0_148 = arith.constant 0 : index
    %c0_149 = arith.constant 0 : index
    %c0_150 = arith.constant 0 : index
    %c192_151 = arith.constant 192 : index
    %77 = vector.load %arg8[%c0_148, %c0_149, %c0_150, %c192_151] : memref<1x16x16x288xf32, #tpu.memory_space<vmem>>, vector<1x16x16x32xf32>
    tpu.vector_store %arg8[%c0_148, %c0_149, %c0_150, %c192_151], %76 {strides = array<i32>} : memref<1x16x16x288xf32, #tpu.memory_space<vmem>>, vector<1x16x16x32xf32>,
    %c0_152 = arith.constant 0 : index
    %c2_153 = arith.constant 2 : index
    %c1_154 = arith.constant 1 : index
    %c0_155 = arith.constant 0 : index
    %78 = vector.load %arg7[%c0_152, %c2_153, %c1_154, %c0_155] : memref<1x18x18x32xf32, #tpu.memory_space<vmem>>, vector<1x16x16x32xf32>
    %c0_156 = arith.constant 0 : index
    %c0_157 = arith.constant 0 : index
    %c0_158 = arith.constant 0 : index
    %c224_159 = arith.constant 224 : index
    %79 = vector.load %arg8[%c0_156, %c0_157, %c0_158, %c224_159] : memref<1x16x16x288xf32, #tpu.memory_space<vmem>>, vector<1x16x16x32xf32>
    tpu.vector_store %arg8[%c0_156, %c0_157, %c0_158, %c224_159], %78 {strides = array<i32>} : memref<1x16x16x288xf32, #tpu.memory_space<vmem>>, vector<1x16x16x32xf32>,
    %c0_160 = arith.constant 0 : index
    %c2_161 = arith.constant 2 : index
    %c2_162 = arith.constant 2 : index
    %c0_163 = arith.constant 0 : index
    %80 = vector.load %arg7[%c0_160, %c2_161, %c2_162, %c0_163] : memref<1x18x18x32xf32, #tpu.memory_space<vmem>>, vector<1x16x16x32xf32>
    %c0_164 = arith.constant 0 : index
    %c0_165 = arith.constant 0 : index
    %c0_166 = arith.constant 0 : index
    %c256_167 = arith.constant 256 : index
    %81 = vector.load %arg8[%c0_164, %c0_165, %c0_166, %c256_167] : memref<1x16x16x288xf32, #tpu.memory_space<vmem>>, vector<1x16x16x32xf32>
    tpu.vector_store %arg8[%c0_164, %c0_165, %c0_166, %c256_167], %80 {strides = array<i32>} : memref<1x16x16x288xf32, #tpu.memory_space<vmem>>, vector<1x16x16x32xf32>,
    %c0_168 = arith.constant 0 : index
    %c0_169 = arith.constant 0 : index
    %c0_170 = arith.constant 0 : index
    %c0_171 = arith.constant 0 : index
    %82 = vector.load %arg8[%c0_168, %c0_169, %c0_170, %c0_171] : memref<1x16x16x288xf32, #tpu.memory_space<vmem>>, vector<1x16x16x288xf32>
    %83 = vector.shape_cast %82 : vector<1x16x16x288xf32> to vector<256x288xf32>
    %84 = arith.truncf %83 : vector<256x288xf32> to vector<256x288xbf16>
    %c1_172 = arith.constant 1 : index
    %c0_173 = arith.constant 0 : index
    %c0_174 = arith.constant 0 : index
    %85 = vector.load %arg4[%c1_172, %c0_173, %c0_174] : memref<3x288x64xbf16, #tpu.memory_space<vmem>>, vector<1x288x64xbf16>
    %86 = vector.shape_cast %85 : vector<1x288x64xbf16> to vector<288x64xbf16>
    %cst_175 = arith.constant dense<0.000000e+00> : vector<256x64xf32>
    %87 = tpu.matmul %84, %86, %cst_175 {dimension_numbers = #tpu.dot_dimension_numbers<[1], [0], [0], [1], [0, 0, 1, 1], [], []>} : vector<256x288xbf16>, vector<288x64xbf16>, vector<256x64xf32> -> vector<256x64xf32>
    %c1_176 = arith.constant 1 : index
    %c0_177 = arith.constant 0 : index
    %c0_178 = arith.constant 0 : index
    %88 = vector.load %arg5[%c1_176, %c0_177, %c0_178] : memref<3x1x64xf32, #tpu.memory_space<vmem>>, vector<1x1x64xf32>
    %89 = vector.shape_cast %88 : vector<1x1x64xf32> to vector<1x64xf32>
    %90 = vector.broadcast %89 : vector<1x64xf32> to vector<256x64xf32>
    %91 = arith.addf %87, %90 : vector<256x64xf32>
    %92 = arith.negf %91 : vector<256x64xf32>
    %93 = math.exp %92 : vector<256x64xf32>
    %cst_179 = arith.constant 1.000000e+00 : f32
    %94 = vector.broadcast %cst_179 : f32 to vector<256x64xf32>
    %95 = arith.addf %94, %93 : vector<256x64xf32>
    %96 = arith.divf %94, %95 : vector<256x64xf32>
    %97 = arith.mulf %91, %96 : vector<256x64xf32>
    %98 = vector.extract_strided_slice %97 {offsets = [0, 0], sizes = [256, 32], strides = [1, 1]} : vector<256x64xf32> to vector<256x32xf32>
    %99 = vector.extract_strided_slice %97 {offsets = [0, 32], sizes = [256, 32], strides = [1, 1]} : vector<256x64xf32> to vector<256x32xf32>
    %100 = arith.addf %98, %99 : vector<256x32xf32>
    %101 = arith.negf %100 : vector<256x32xf32>
    %102 = math.exp %101 : vector<256x32xf32>
    %cst_180 = arith.constant 1.000000e+00 : f32
    %103 = vector.broadcast %cst_180 : f32 to vector<256x32xf32>
    %104 = arith.addf %103, %102 : vector<256x32xf32>
    %105 = arith.divf %103, %104 : vector<256x32xf32>
    %106 = arith.mulf %100, %105 : vector<256x32xf32>
    %107 = vector.shape_cast %106 : vector<256x32xf32> to vector<1x16x16x32xf32>
    %c0_181 = arith.constant 0 : index
    %c1_182 = arith.constant 1 : index
    %c1_183 = arith.constant 1 : index
    %c0_184 = arith.constant 0 : index
    %108 = vector.load %arg7[%c0_181, %c1_182, %c1_183, %c0_184] : memref<1x18x18x32xf32, #tpu.memory_space<vmem>>, vector<1x16x16x32xf32>
    tpu.vector_store %arg7[%c0_181, %c1_182, %c1_183, %c0_184], %107 {strides = array<i32>} : memref<1x18x18x32xf32, #tpu.memory_space<vmem>>, vector<1x16x16x32xf32>,
    %c0_185 = arith.constant 0 : index
    %c0_186 = arith.constant 0 : index
    %c0_187 = arith.constant 0 : index
    %c0_188 = arith.constant 0 : index
    %109 = vector.load %arg7[%c0_185, %c0_186, %c0_187, %c0_188] : memref<1x18x18x32xf32, #tpu.memory_space<vmem>>, vector<1x16x16x32xf32>
    %c0_189 = arith.constant 0 : index
    %c0_190 = arith.constant 0 : index
    %c0_191 = arith.constant 0 : index
    %c0_192 = arith.constant 0 : index
    %110 = vector.load %arg8[%c0_189, %c0_190, %c0_191, %c0_192] : memref<1x16x16x288xf32, #tpu.memory_space<vmem>>, vector<1x16x16x32xf32>
    tpu.vector_store %arg8[%c0_189, %c0_190, %c0_191, %c0_192], %109 {strides = array<i32>} : memref<1x16x16x288xf32, #tpu.memory_space<vmem>>, vector<1x16x16x32xf32>,
    %c0_193 = arith.constant 0 : index
    %c0_194 = arith.constant 0 : index
    %c1_195 = arith.constant 1 : index
    %c0_196 = arith.constant 0 : index
    %111 = vector.load %arg7[%c0_193, %c0_194, %c1_195, %c0_196] : memref<1x18x18x32xf32, #tpu.memory_space<vmem>>, vector<1x16x16x32xf32>
    %c0_197 = arith.constant 0 : index
    %c0_198 = arith.constant 0 : index
    %c0_199 = arith.constant 0 : index
    %c32_200 = arith.constant 32 : index
    %112 = vector.load %arg8[%c0_197, %c0_198, %c0_199, %c32_200] : memref<1x16x16x288xf32, #tpu.memory_space<vmem>>, vector<1x16x16x32xf32>
    tpu.vector_store %arg8[%c0_197, %c0_198, %c0_199, %c32_200], %111 {strides = array<i32>} : memref<1x16x16x288xf32, #tpu.memory_space<vmem>>, vector<1x16x16x32xf32>,
    %c0_201 = arith.constant 0 : index
    %c0_202 = arith.constant 0 : index
    %c2_203 = arith.constant 2 : index
    %c0_204 = arith.constant 0 : index
    %113 = vector.load %arg7[%c0_201, %c0_202, %c2_203, %c0_204] : memref<1x18x18x32xf32, #tpu.memory_space<vmem>>, vector<1x16x16x32xf32>
    %c0_205 = arith.constant 0 : index
    %c0_206 = arith.constant 0 : index
    %c0_207 = arith.constant 0 : index
    %c64_208 = arith.constant 64 : index
    %114 = vector.load %arg8[%c0_205, %c0_206, %c0_207, %c64_208] : memref<1x16x16x288xf32, #tpu.memory_space<vmem>>, vector<1x16x16x32xf32>
    tpu.vector_store %arg8[%c0_205, %c0_206, %c0_207, %c64_208], %113 {strides = array<i32>} : memref<1x16x16x288xf32, #tpu.memory_space<vmem>>, vector<1x16x16x32xf32>,
    %c0_209 = arith.constant 0 : index
    %c1_210 = arith.constant 1 : index
    %c0_211 = arith.constant 0 : index
    %c0_212 = arith.constant 0 : index
    %115 = vector.load %arg7[%c0_209, %c1_210, %c0_211, %c0_212] : memref<1x18x18x32xf32, #tpu.memory_space<vmem>>, vector<1x16x16x32xf32>
    %c0_213 = arith.constant 0 : index
    %c0_214 = arith.constant 0 : index
    %c0_215 = arith.constant 0 : index
    %c96_216 = arith.constant 96 : index
    %116 = vector.load %arg8[%c0_213, %c0_214, %c0_215, %c96_216] : memref<1x16x16x288xf32, #tpu.memory_space<vmem>>, vector<1x16x16x32xf32>
    tpu.vector_store %arg8[%c0_213, %c0_214, %c0_215, %c96_216], %115 {strides = array<i32>} : memref<1x16x16x288xf32, #tpu.memory_space<vmem>>, vector<1x16x16x32xf32>,
    %c0_217 = arith.constant 0 : index
    %c1_218 = arith.constant 1 : index
    %c1_219 = arith.constant 1 : index
    %c0_220 = arith.constant 0 : index
    %117 = vector.load %arg7[%c0_217, %c1_218, %c1_219, %c0_220] : memref<1x18x18x32xf32, #tpu.memory_space<vmem>>, vector<1x16x16x32xf32>
    %c0_221 = arith.constant 0 : index
    %c0_222 = arith.constant 0 : index
    %c0_223 = arith.constant 0 : index
    %c128_224 = arith.constant 128 : index
    %118 = vector.load %arg8[%c0_221, %c0_222, %c0_223, %c128_224] : memref<1x16x16x288xf32, #tpu.memory_space<vmem>>, vector<1x16x16x32xf32>
    tpu.vector_store %arg8[%c0_221, %c0_222, %c0_223, %c128_224], %117 {strides = array<i32>} : memref<1x16x16x288xf32, #tpu.memory_space<vmem>>, vector<1x16x16x32xf32>,
    %c0_225 = arith.constant 0 : index
    %c1_226 = arith.constant 1 : index
    %c2_227 = arith.constant 2 : index
    %c0_228 = arith.constant 0 : index
    %119 = vector.load %arg7[%c0_225, %c1_226, %c2_227, %c0_228] : memref<1x18x18x32xf32, #tpu.memory_space<vmem>>, vector<1x16x16x32xf32>
    %c0_229 = arith.constant 0 : index
    %c0_230 = arith.constant 0 : index
    %c0_231 = arith.constant 0 : index
    %c160_232 = arith.constant 160 : index
    %120 = vector.load %arg8[%c0_229, %c0_230, %c0_231, %c160_232] : memref<1x16x16x288xf32, #tpu.memory_space<vmem>>, vector<1x16x16x32xf32>
    tpu.vector_store %arg8[%c0_229, %c0_230, %c0_231, %c160_232], %119 {strides = array<i32>} : memref<1x16x16x288xf32, #tpu.memory_space<vmem>>, vector<1x16x16x32xf32>,
    %c0_233 = arith.constant 0 : index
    %c2_234 = arith.constant 2 : index
    %c0_235 = arith.constant 0 : index
    %c0_236 = arith.constant 0 : index
    %121 = vector.load %arg7[%c0_233, %c2_234, %c0_235, %c0_236] : memref<1x18x18x32xf32, #tpu.memory_space<vmem>>, vector<1x16x16x32xf32>
    %c0_237 = arith.constant 0 : index
    %c0_238 = arith.constant 0 : index
    %c0_239 = arith.constant 0 : index
    %c192_240 = arith.constant 192 : index
    %122 = vector.load %arg8[%c0_237, %c0_238, %c0_239, %c192_240] : memref<1x16x16x288xf32, #tpu.memory_space<vmem>>, vector<1x16x16x32xf32>
    tpu.vector_store %arg8[%c0_237, %c0_238, %c0_239, %c192_240], %121 {strides = array<i32>} : memref<1x16x16x288xf32, #tpu.memory_space<vmem>>, vector<1x16x16x32xf32>,
    %c0_241 = arith.constant 0 : index
    %c2_242 = arith.constant 2 : index
    %c1_243 = arith.constant 1 : index
    %c0_244 = arith.constant 0 : index
    %123 = vector.load %arg7[%c0_241, %c2_242, %c1_243, %c0_244] : memref<1x18x18x32xf32, #tpu.memory_space<vmem>>, vector<1x16x16x32xf32>
    %c0_245 = arith.constant 0 : index
    %c0_246 = arith.constant 0 : index
    %c0_247 = arith.constant 0 : index
    %c224_248 = arith.constant 224 : index
    %124 = vector.load %arg8[%c0_245, %c0_246, %c0_247, %c224_248] : memref<1x16x16x288xf32, #tpu.memory_space<vmem>>, vector<1x16x16x32xf32>
    tpu.vector_store %arg8[%c0_245, %c0_246, %c0_247, %c224_248], %123 {strides = array<i32>} : memref<1x16x16x288xf32, #tpu.memory_space<vmem>>, vector<1x16x16x32xf32>,
    %c0_249 = arith.constant 0 : index
    %c2_250 = arith.constant 2 : index
    %c2_251 = arith.constant 2 : index
    %c0_252 = arith.constant 0 : index
    %125 = vector.load %arg7[%c0_249, %c2_250, %c2_251, %c0_252] : memref<1x18x18x32xf32, #tpu.memory_space<vmem>>, vector<1x16x16x32xf32>
    %c0_253 = arith.constant 0 : index
    %c0_254 = arith.constant 0 : index
    %c0_255 = arith.constant 0 : index
    %c256_256 = arith.constant 256 : index
    %126 = vector.load %arg8[%c0_253, %c0_254, %c0_255, %c256_256] : memref<1x16x16x288xf32, #tpu.memory_space<vmem>>, vector<1x16x16x32xf32>
    tpu.vector_store %arg8[%c0_253, %c0_254, %c0_255, %c256_256], %125 {strides = array<i32>} : memref<1x16x16x288xf32, #tpu.memory_space<vmem>>, vector<1x16x16x32xf32>,
    %c0_257 = arith.constant 0 : index
    %c0_258 = arith.constant 0 : index
    %c0_259 = arith.constant 0 : index
    %c0_260 = arith.constant 0 : index
    %127 = vector.load %arg8[%c0_257, %c0_258, %c0_259, %c0_260] : memref<1x16x16x288xf32, #tpu.memory_space<vmem>>, vector<1x16x16x288xf32>
    %128 = vector.shape_cast %127 : vector<1x16x16x288xf32> to vector<256x288xf32>
    %129 = arith.truncf %128 : vector<256x288xf32> to vector<256x288xbf16>
    %c2_261 = arith.constant 2 : index
    %c0_262 = arith.constant 0 : index
    %c0_263 = arith.constant 0 : index
    %130 = vector.load %arg4[%c2_261, %c0_262, %c0_263] : memref<3x288x64xbf16, #tpu.memory_space<vmem>>, vector<1x288x64xbf16>
    %131 = vector.shape_cast %130 : vector<1x288x64xbf16> to vector<288x64xbf16>
    %cst_264 = arith.constant dense<0.000000e+00> : vector<256x64xf32>
    %132 = tpu.matmul %129, %131, %cst_264 {dimension_numbers = #tpu.dot_dimension_numbers<[1], [0], [0], [1], [0, 0, 1, 1], [], []>} : vector<256x288xbf16>, vector<288x64xbf16>, vector<256x64xf32> -> vector<256x64xf32>
    %c2_265 = arith.constant 2 : index
    %c0_266 = arith.constant 0 : index
    %c0_267 = arith.constant 0 : index
    %133 = vector.load %arg5[%c2_265, %c0_266, %c0_267] : memref<3x1x64xf32, #tpu.memory_space<vmem>>, vector<1x1x64xf32>
    %134 = vector.shape_cast %133 : vector<1x1x64xf32> to vector<1x64xf32>
    %135 = vector.broadcast %134 : vector<1x64xf32> to vector<256x64xf32>
    %136 = arith.addf %132, %135 : vector<256x64xf32>
    %137 = arith.negf %136 : vector<256x64xf32>
    %138 = math.exp %137 : vector<256x64xf32>
    %cst_268 = arith.constant 1.000000e+00 : f32
    %139 = vector.broadcast %cst_268 : f32 to vector<256x64xf32>
    %140 = arith.addf %139, %138 : vector<256x64xf32>
    %141 = arith.divf %139, %140 : vector<256x64xf32>
    %142 = arith.mulf %136, %141 : vector<256x64xf32>
    %143 = vector.extract_strided_slice %142 {offsets = [0, 0], sizes = [256, 32], strides = [1, 1]} : vector<256x64xf32> to vector<256x32xf32>
    %144 = vector.extract_strided_slice %142 {offsets = [0, 32], sizes = [256, 32], strides = [1, 1]} : vector<256x64xf32> to vector<256x32xf32>
    %145 = arith.addf %143, %144 : vector<256x32xf32>
    %146 = arith.negf %145 : vector<256x32xf32>
    %147 = math.exp %146 : vector<256x32xf32>
    %cst_269 = arith.constant 1.000000e+00 : f32
    %148 = vector.broadcast %cst_269 : f32 to vector<256x32xf32>
    %149 = arith.addf %148, %147 : vector<256x32xf32>
    %150 = arith.divf %148, %149 : vector<256x32xf32>
    %151 = arith.mulf %145, %150 : vector<256x32xf32>
    %152 = arith.addf %151, %14 : vector<256x32xf32>
    %153 = vector.shape_cast %152 : vector<256x32xf32> to vector<1x16x16x32xf32>
    %c0_270 = arith.constant 0 : index
    %c0_271 = arith.constant 0 : index
    %c0_272 = arith.constant 0 : index
    %c0_273 = arith.constant 0 : index
    %154 = vector.load %arg6[%c0_270, %c0_271, %c0_272, %c0_273] : memref<1x16x16x32xf32, #tpu.memory_space<vmem>>, vector<1x16x16x32xf32>
    tpu.vector_store %arg6[%c0_270, %c0_271, %c0_272, %c0_273], %153 {strides = array<i32>} : memref<1x16x16x32xf32, #tpu.memory_space<vmem>>, vector<1x16x16x32xf32>,
    return
  }
  func.func @transform_0(%arg0: i32) -> (i32, i32, i32, i32) {
    %c0_i32 = arith.constant 0 : i32
    %c0_i32_0 = arith.constant 0 : i32
    %c0_i32_1 = arith.constant 0 : i32
    %c0_i32_2 = arith.constant 0 : i32
    return %arg0, %c0_i32, %c0_i32_0, %c0_i32_1 : i32, i32, i32, i32
  }
  func.func @transform_1(%arg0: i32) -> (i32, i32) {
    %c0_i32 = arith.constant 0 : i32
    %c0_i32_0 = arith.constant 0 : i32
    %c0_i32_1 = arith.constant 0 : i32
    return %c0_i32, %c0_i32_0 : i32, i32
  }
  func.func @transform_2(%arg0: i32) -> (i32, i32) {
    %c0_i32 = arith.constant 0 : i32
    %c0_i32_0 = arith.constant 0 : i32
    %c0_i32_1 = arith.constant 0 : i32
    return %c0_i32, %c0_i32_0 : i32, i32
  }
  func.func @transform_3(%arg0: i32) -> (i32, i32, i32) {
    %c0_i32 = arith.constant 0 : i32
    %c0_i32_0 = arith.constant 0 : i32
    %c0_i32_1 = arith.constant 0 : i32
    %c0_i32_2 = arith.constant 0 : i32
    return %c0_i32, %c0_i32_0, %c0_i32_1 : i32, i32, i32
  }
  func.func @transform_4(%arg0: i32) -> (i32, i32, i32) {
    %c0_i32 = arith.constant 0 : i32
    %c0_i32_0 = arith.constant 0 : i32
    %c0_i32_1 = arith.constant 0 : i32
    %c0_i32_2 = arith.constant 0 : i32
    return %c0_i32, %c0_i32_0, %c0_i32_1 : i32, i32, i32
  }
  func.func @transform_5(%arg0: i32) -> (i32, i32, i32, i32) {
    %c0_i32 = arith.constant 0 : i32
    %c0_i32_0 = arith.constant 0 : i32
    %c0_i32_1 = arith.constant 0 : i32
    %c0_i32_2 = arith.constant 0 : i32
    return %arg0, %c0_i32, %c0_i32_0, %c0_i32_1 : i32, i32, i32, i32
  }
}

</mosaic_0001>

<bundles_post_ra>
// kernel: tpu_custom_call.1
= control target key start
LH: loop header
LB: loop body
LE: loop exit
PB: predicated region body
PF: predicated region fallthrough
CT: control target
= control target key end

     0   :  { %10 = vsyncpa [#allocation5], 0  ;;  %s16248_s0 = inlined_call_operand.vmem [shape: bf16[2,16,16,8], index: 0, kind: input, shape index: {}]   ;;  %s16249_s1 = inlined_call_operand.vmem [shape: bf16[8,64], index: 1, kind: input, shape index: {}]   ;;  %s16250_s2 = inlined_call_operand.vmem [shape: f32[1,64], index: 2, kind: input, shape index: {}]   ;;  %s16251_s3 = inlined_call_operand.vmem [shape: bf16[3,288,64], index: 3, kind: input, shape index: {}]   ;;  %s16252_s4 = inlined_call_operand.vmem [shape: f32[3,1,64], index: 4, kind: input, shape index: {}]   ;;  %s16253_s5 = inlined_call_operand.hbm [shape: f32[2,16,16,32], index: 5, kind: output, shape index: {}]  }
   0x1   :  { %12 = vsyncpa [#allocation5 + $0x1], 0  ;;  %s11192_s18 = smov 0   ;;  %s11194_s19 = smov 0  }
   0x2   :  { %s11196_s20 = smov 0   ;;  %s11198_s21 = smov 0  }
   0x3 LB: > { %s11213_s22 = sadd.s32 4294967295, %s11153_s21   ;;  %s9062_s23 = sadd.s32 4294967294, %s11153_s21   ;;  %s11153_s21 = sphi %s11198_s21, %s16435_s21   ;;  %s11149_s20 = sphi %s11196_s20, %s16434_s20   ;;  %s11145_s19 = sphi %s11194_s19, %s16433_s19   ;;  %s11141_s18 = sphi %s11192_s18, %s16432_s18  }
   0x4   : > { %s11217_s24 = sadd.s32 1, %s11153_s21   ;;  %s135_s25 = sadd.s32 1, %s11149_s20 }
   0x5   : > { %s132_s26 = ssub.s32 %s11153_s21, %s11217_s24  ;;  %p145_p0 = scmp.ne.s32.totalorder %s11149_s20, %s11145_s19 }
   0x6   : > { %p133_p1 = scmp.eq.s32.totalorder %s132_s26, 0  ;;  %p146_p2 = scmp.eq.s32.totalorder %s11213_s22, 1 }
   0x7   : > { %p151_p3 = scmp.ne.s32.totalorder %s11145_s19, %s11141_s18  ;;  %p152_p4 = scmp.eq.s32.totalorder %s9062_s23, 1 }
   0x8   : > { %s11228_s27 = scalar_select %p133_p1, %s11149_s20, %s135_s25  }
   0x9   : > { %p11230_p5 = por %p146_p2, %p145_p0  ;;  %p11234_p6 = por %p152_p4, %p151_p3 }
   0xa   : > { %p9065_p7 = scmp.ge.s32.totalorder %s11153_s21, 1  ;;  %p190_p8 = scmp.lt.s32.totalorder %s11153_s21, 3 }
   0xc   : > { %p191_p9 = pnand %p9065_p7, %p190_p8 }
   0xe   : > { %194 = sbr.rel (%p191_p9) target bundleno = 2642 (0xa52), region = 40 }
  0x13   : > { %v256_v0 = vld [vmem:[%s16249_s1] sm:$0xf]  ;;  %vm393_vm0 = vcmask 1043456   ;;  %p218_p10 = scmp.lt.s32.totalorder %s11213_s22, 1  ;;  %vm344_vm1 = vcmask 64512   ;;  %vm782_vm2 = vcmask 261120  }
  0x14   : > { %10077 = vmatprep.subr.msk.bf16.mxu0 %vm393_vm0, %v256_v0  ;;  %v395_v1 = vsel %vm393_vm0, %v256_v0, 0  ;;  %v11155_v14 = vmov 0.0   ;;  %vm785_vm3 = vcmask 254976   ;;  %s11156_s12 = smov 32   ;;  %s11157_s13 = smov 64   ;;  %vm1095_vm4 = vcmask 523520  }
  0x15   : > { %9920 = vmatpush3.bf16.msra.mxu0 %v395_v1  ;;  %s219_s7 = scalar_select %p218_p10, %s11213_s22, 1  ;;  %790 = vst.msk [vmem:[#allocation2 + $0x30] sm:$0xff] %vm782_vm2, %v11155_v14  ;;  %791 = vst.msk [vmem:[#allocation2 + $0x38] sm:$0xff] %vm782_vm2, %v11155_v14  ;;  %v11343_v23 = vld [vmem:[%s16250_s2] ss:$0 sm:$0xff]  ;;  %vm1288_vm5 = vcmask 785920  }
  0x16   : > { %783 = vst.msk [vmem:[#allocation2] sm:$0xff] %vm782_vm2, %v11155_v14  ;;  %784 = vst.msk [vmem:[#allocation2 + $0x8] sm:$0xff] %vm782_vm2, %v11155_v14  ;;  %s11158_s16 = smov 96   ;;  %vm1481_vm6 = vcmask 1048320   ;;  %s11159_s14 = smov [#allocation4]  }
  0x17   : > { %s9510_s8 = sshll.u32 %s219_s7, 7  ;;  %787 = vst.msk [vmem:[#allocation2 + $0x18] sm:$0xff] %vm782_vm2, %v11155_v14  ;;  %788 = vst.msk [vmem:[#allocation2 + $0x20] sm:$0xff] %vm782_vm2, %v11155_v14  ;;  %s11097_s15 = sshll.u32 %s11159_s14, 4  ;;  %s11098_s15 = int_to_ptr.vmem [resolvable:$false] %s11097_s15 }
  0x18   : > { %s11248_s11 = scalar_lea.vmem %s16248_s0, %s9510_s8  ;;  %793 = vst.msk [vmem:[#allocation2 + $0x48] sm:$0xff] %vm782_vm2, %v11155_v14  ;;  %794 = vst.msk [vmem:[#allocation2 + $0x50] sm:$0xff] %vm782_vm2, %v11155_v14  ;;  %s11099_s17 = scalar_lea.vmem %s11098_s15, 8192 }
  0x19   : > { %v10123_v2 = vld [vmem:[%s11248_s11] sm:$0xff]   ;;  %v10124_v3 = vld [vmem:[%s11248_s11 + $0x8] sm:$0xff]   ;;  %v10125_v4 = vld [vmem:[%s11248_s11 + $0x10] sm:$0xff]   ;;  %796 = vst.msk [vmem:[#allocation2 + $0x60] sm:$0xff] %vm782_vm2, %v11155_v14 }
  0x1a   : > { %9921 = vmatprep.mubr.msk.bf16.mxu0 %vm344_vm1, %v10123_v2  ;;  %v10126_v5 = vld [vmem:[%s11248_s11 + $0x18] sm:$0xff]   ;;  %v10127_v6 = vld [vmem:[%s11248_s11 + $0x20] sm:$0xff]   ;;  %v10128_v7 = vld [vmem:[%s11248_s11 + $0x28] sm:$0xff]   ;;  %797 = vst.msk [vmem:[#allocation2 + $0x68] sm:$0xff] %vm782_vm2, %v11155_v14 }
  0x1b   : > { %9922 = vmatmul.mubr.msk.bf16.vlgmr.msra.gmra.mxu0 %vm344_vm1, %v10124_v3  ;;  %v10129_v8 = vld [vmem:[%s11248_s11 + $0x30] sm:$0xff]   ;;  %v10130_v9 = vld [vmem:[%s11248_s11 + $0x38] sm:$0xff]   ;;  %v10131_v10 = vld [vmem:[%s11248_s11 + $0x40] sm:$0xff]   ;;  %799 = vst.msk [vmem:[#allocation2 + $0x78] sm:$0xff] %vm782_vm2, %v11155_v14 }
  0x1c   : > { %9925 = vmatprep.mubr.msk.bf16.mxu0 %vm344_vm1, %v10125_v4  ;;  %v10132_v11 = vld [vmem:[%s11248_s11 + $0x48] sm:$0xff]   ;;  %v10133_v12 = vld [vmem:[%s11248_s11 + $0x50] sm:$0xff]   ;;  %v10134_v13 = vld [vmem:[%s11248_s11 + $0x58] sm:$0xff]   ;;  %800 = vst.msk [vmem:[#allocation2 + $0x80] sm:$0xff] %vm782_vm2, %v11155_v14 }
  0x1d   : > { %802 = vst.msk [vmem:[#allocation2 + $0x90] sm:$0xff] %vm782_vm2, %v11155_v14  ;;  %803 = vst.msk [vmem:[#allocation2 + $0x98] sm:$0xff] %vm782_vm2, %v11155_v14  ;;  %v935_v15 = vld [vmem:[#allocation2 + $0x1] sm:$0xff]  ;;  %v10137_v21 = vld [vmem:[%s11248_s11 + $0x70] sm:$0xff]  }
  0x1e   : > { %805 = vst.msk [vmem:[#allocation2 + $0xa8] sm:$0xff] %vm782_vm2, %v11155_v14  ;;  %806 = vst.msk [vmem:[#allocation2 + $0xb0] sm:$0xff] %vm782_vm2, %v11155_v14  ;;  %999 = vrot.lane.b32.xlu0 %v935_v15, %s11156_s12  ;;  %v1128_v17 = vld [vmem:[#allocation2 + $0x2] sm:$0xff]  ;;  %v10138_v22 = vld [vmem:[%s11248_s11 + $0x78] sm:$0xff]  }
  0x1f   : > { %808 = vst.msk [vmem:[#allocation2 + $0xc0] sm:$0xff] %vm782_vm2, %v11155_v14  ;;  %809 = vst.msk [vmem:[#allocation2 + $0xc8] sm:$0xff] %vm782_vm2, %v11155_v14  ;;  %1192 = vrot.lane.b32.xlu1 %v1128_v17, %s11157_s13  ;;  %v10135_v19 = vld [vmem:[%s11248_s11 + $0x60] sm:$0xff]   ;;  %v10136_v20 = vld [vmem:[%s11248_s11 + $0x68] sm:$0xff]  }
  0x20   : > { %811 = vst.msk [vmem:[#allocation2 + $0xd8] sm:$0xff] %vm782_vm2, %v11155_v14  ;;  %812 = vst.msk [vmem:[#allocation2 + $0xe0] sm:$0xff] %vm782_vm2, %v11155_v14  ;;  %v871_v50 = vld [vmem:[#allocation2] sm:$0xff]  ;;  %v872_v62 = vld [vmem:[#allocation2 + $0x8] sm:$0xff] }
  0x21   : > { %814 = vst.msk [vmem:[#allocation2 + $0xf0] sm:$0xff] %vm782_vm2, %v11155_v14  ;;  %815 = vst.msk [vmem:[#allocation2 + $0xf8] sm:$0xff] %vm782_vm2, %v11155_v14 }
  0x22   : > { %817 = vst.msk [vmem:[#allocation2 + $0x108] sm:$0xff] %vm782_vm2, %v11155_v14  ;;  %818 = vst.msk [vmem:[#allocation2 + $0x110] sm:$0xff] %vm782_vm2, %v11155_v14 }
  0x23   : > { %9926 = vmatmul.mubr.msk.bf16.gmra.mxu0 %vm344_vm1, %v10126_v5  ;;  %820 = vst.msk [vmem:[#allocation2 + $0x120] sm:$0xff] %vm782_vm2, %v11155_v14  ;;  %821 = vst.msk [vmem:[#allocation2 + $0x128] sm:$0xff] %vm782_vm2, %v11155_v14 }
  0x24   : > { %9929 = vmatprep.mubr.msk.bf16.mxu0 %vm344_vm1, %v10127_v6  ;;  %823 = vst.msk [vmem:[#allocation2 + $0x138] sm:$0xff] %vm782_vm2, %v11155_v14  ;;  %824 = vst.msk [vmem:[#allocation2 + $0x140] sm:$0xff] %vm782_vm2, %v11155_v14 }
  0x25   : > { %826 = vst.msk [vmem:[#allocation2 + $0x150] sm:$0xff] %vm782_vm2, %v11155_v14  ;;  %827 = vst.msk [vmem:[#allocation2 + $0x158] sm:$0xff] %vm782_vm2, %v11155_v14 }
  0x26   : > { %829 = vst.msk [vmem:[#allocation2 + $0x168] sm:$0xff] %vm782_vm2, %v11155_v14  ;;  %830 = vst.msk [vmem:[#allocation2 + $0x170] sm:$0xff] %vm782_vm2, %v11155_v14 }
  0x27   : > { %832 = vst.msk [vmem:[#allocation2 + $0x180] sm:$0xff] %vm782_vm2, %v11155_v14  ;;  %833 = vst.msk [vmem:[#allocation2 + $0x188] sm:$0xff] %vm782_vm2, %v11155_v14 }
  0x28   : > { %835 = vst.msk [vmem:[#allocation2 + $0x198] sm:$0xff] %vm782_vm2, %v11155_v14  ;;  %836 = vst.msk [vmem:[#allocation2 + $0x1a0] sm:$0xff] %vm782_vm2, %v11155_v14 }
  0x29   : > { %792 = vst.msk [vmem:[#allocation2 + $0x40] sm:$0x3] %vm785_vm3, %v11155_v14  ;;  %786 = vst.msk [vmem:[#allocation2 + $0x10] sm:$0x3] %vm785_vm3, %v11155_v14 }
  0x2a   : > { %789 = vst.msk [vmem:[#allocation2 + $0x28] sm:$0x3] %vm785_vm3, %v11155_v14  ;;  %795 = vst.msk [vmem:[#allocation2 + $0x58] sm:$0x3] %vm785_vm3, %v11155_v14 }
  0x2b   : > { %9930 = vmatmul.mubr.msk.bf16.gmra.mxu0 %vm344_vm1, %v10128_v7  ;;  %798 = vst.msk [vmem:[#allocation2 + $0x70] sm:$0x3] %vm785_vm3, %v11155_v14  ;;  %801 = vst.msk [vmem:[#allocation2 + $0x88] sm:$0x3] %vm785_vm3, %v11155_v14 }
  0x2c   : > { %9933 = vmatprep.mubr.msk.bf16.mxu0 %vm344_vm1, %v10129_v8  ;;  %804 = vst.msk [vmem:[#allocation2 + $0xa0] sm:$0x3] %vm785_vm3, %v11155_v14  ;;  %807 = vst.msk [vmem:[#allocation2 + $0xb8] sm:$0x3] %vm785_vm3, %v11155_v14 }
  0x2d   : > { %810 = vst.msk [vmem:[#allocation2 + $0xd0] sm:$0x3] %vm785_vm3, %v11155_v14  ;;  %813 = vst.msk [vmem:[#allocation2 + $0xe8] sm:$0x3] %vm785_vm3, %v11155_v14 }
  0x2e   : > { %816 = vst.msk [vmem:[#allocation2 + $0x100] sm:$0x3] %vm785_vm3, %v11155_v14  ;;  %819 = vst.msk [vmem:[#allocation2 + $0x118] sm:$0x3] %vm785_vm3, %v11155_v14 }
  0x2f   : > { %822 = vst.msk [vmem:[#allocation2 + $0x130] sm:$0x3] %vm785_vm3, %v11155_v14  ;;  %825 = vst.msk [vmem:[#allocation2 + $0x148] sm:$0x3] %vm785_vm3, %v11155_v14 }
  0x30   : > { %828 = vst.msk [vmem:[#allocation2 + $0x160] sm:$0x3] %vm785_vm3, %v11155_v14  ;;  %831 = vst.msk [vmem:[#allocation2 + $0x178] sm:$0x3] %vm785_vm3, %v11155_v14  ;;  %v936_v16 = vld [vmem:[#allocation2 + $0x9] sm:$0xff] }
  0x31   : > { %834 = vst.msk [vmem:[#allocation2 + $0x190] sm:$0x3] %vm785_vm3, %v11155_v14  ;;  %837 = vst.msk [vmem:[#allocation2 + $0x1a8] sm:$0x3] %vm785_vm3, %v11155_v14  ;;  %1001 = vrot.lane.b32.xlu0 %v936_v16, %s11156_s12  ;;  %v1129_v18 = vld [vmem:[#allocation2 + $0xa] sm:$0xff] }
  0x32   : > { %903 = vst.msk [vmem:[#allocation3] sm:$0xff] %vm782_vm2, %v871_v50  ;;  %904 = vst.msk [vmem:[#allocation3 + $0x18] sm:$0xff] %vm782_vm2, %v872_v62 }
  0x33   : > { %9934 = vmatmul.mubr.msk.bf16.gmra.mxu0 %vm344_vm1, %v10130_v9 }
  0x34   : > { %9937 = vmatprep.mubr.msk.bf16.mxu0 %vm344_vm1, %v10131_v10 }
  0x35   : > { %1194 = vrot.lane.b32.xlu0 %v1129_v18, %s11157_s13 }
  0x3b   : > { %9938 = vmatmul.mubr.msk.bf16.gmra.mxu0 %vm344_vm1, %v10132_v11 }
  0x3c   : > { %9941 = vmatprep.mubr.msk.bf16.mxu0 %vm344_vm1, %v10133_v12 }
  0x43   : > { %9942 = vmatmul.mubr.msk.bf16.gmra.mxu0 %vm344_vm1, %v10134_v13 }
  0x44   : > { %9945 = vmatprep.mubr.msk.bf16.mxu0 %vm344_vm1, %v10135_v19 }
  0x4b   : > { %9946 = vmatmul.mubr.msk.bf16.gmra.mxu0 %vm344_vm1, %v10136_v20 }
  0x4c   : > { %9949 = vmatprep.mubr.msk.bf16.mxu0 %vm344_vm1, %v10137_v21 }
  0x53   : > { %9950 = vmatmul.mubr.msk.bf16.gmra.mxu0 %vm344_vm1, %v10138_v22 }
  0x90   : > { %v1000_v56 = vpop.permute.xlu0 %999 }
  0x91   : > { %1096 = vst.msk [vmem:[#allocation3] sm:$0xff] %vm1095_vm4, %v1000_v56  ;;  %v1193_v15 = vpop.permute.xlu1 %1192 }
  0x92   : > { %1289 = vst.msk [vmem:[#allocation3] sm:$0xff] %vm1288_vm5, %v1193_v15 }
  0xa3   : > { %v1002_v4 = vpop.permute.xlu0 %1001 }
  0xa4   : > { %1097 = vst.msk [vmem:[#allocation3 + $0x18] sm:$0xff] %vm1095_vm4, %v1002_v4 }
  0xa7   : > { %v1195_v16 = vpop.permute.xlu0 %1194 }
  0xa8   : > { %1290 = vst.msk [vmem:[#allocation3 + $0x18] sm:$0xff] %vm1288_vm5, %v1195_v16 }
  0xdb   : > { %v9923_v24 = vpop.f32.mrf.mxu0 }
  0xdc   : > { %v11346_v25 = vadd.f32 %v9923_v24, %v11343_v23 }
  0xdd   : > { %v431_v26 = vpop.f32.mrf.mxu0 }
  0xde   : > { %v9104_v27 = vmul.f32 -1.442695, %v11346_v25  ;;  %v11350_v28 = vadd.f32 %v11343_v23, %v431_v26 }
  0xdf   : > { %v9924_v29 = vpop.f32.mrf.mxu0 }
  0xe0   : > { %10193 = vpow2.f32 %v9104_v27  ;;  %v9102_v30 = vmul.f32 -1.442695, %v11350_v28  ;;  %v11354_v31 = vadd.f32 %v9924_v29, %v11343_v23 }
  0xe1   : > { %v434_v32 = vpop.f32.mrf.mxu0 }
  0xe2   : > { %10195 = vpow2.f32 %v9102_v30  ;;  %v9105_v33 = vmul.f32 -1.442695, %v11354_v31  ;;  %v11358_v34 = vadd.f32 %v11343_v23, %v434_v32 }
  0xe3   : > { %v9927_v35 = vpop.f32.mrf.mxu0 }
  0xe4   : > { %10197 = vpow2.f32 %v9105_v33  ;;  %v9103_v36 = vmul.f32 -1.442695, %v11358_v34  ;;  %v11362_v37 = vadd.f32 %v9927_v35, %v11343_v23 }
  0xe5   : > { %v447_v38 = vpop.f32.mrf.mxu0 }
  0xe6   : > { %10199 = vpow2.f32 %v9103_v36  ;;  %v9108_v39 = vmul.f32 -1.442695, %v11362_v37  ;;  %v11366_v40 = vadd.f32 %v11343_v23, %v447_v38 }
  0xe7   : > { %v9928_v41 = vpop.f32.mrf.mxu0 }
  0xe8   : > { %10201 = vpow2.f32 %v9108_v39  ;;  %v9106_v42 = vmul.f32 -1.442695, %v11366_v40  ;;  %v11370_v43 = vadd.f32 %v9928_v41, %v11343_v23 }
  0xe9   : > { %v450_v44 = vpop.f32.mrf.mxu0 }
  0xea   : > { %10203 = vpow2.f32 %v9106_v42  ;;  %v9109_v45 = vmul.f32 -1.442695, %v11370_v43  ;;  %v11374_v46 = vadd.f32 %v11343_v23, %v450_v44 }
  0xeb   : > { %v9931_v47 = vpop.f32.mrf.mxu0 }
  0xec   : > { %10205 = vpow2.f32 %v9109_v45  ;;  %v9107_v48 = vmul.f32 -1.442695, %v11374_v46  ;;  %v11378_v49 = vadd.f32 %v9931_v47, %v11343_v23 }
  0xed   : > { %v10194_v51 = vpop.eup %10193  ;;  %v463_v52 = vpop.f32.mrf.mxu0 }
  0xee   : > { %v656_v53 = vadd.f32 1.0, %v10194_v51  ;;  %10207 = vpow2.f32 %v9107_v48  ;;  %v9112_v54 = vmul.f32 -1.442695, %v11378_v49  ;;  %v11383_v55 = vadd.f32 %v11343_v23, %v463_v52 }
  0xef   : > { %v10196_v57 = vpop.eup %10195  ;;  %v9932_v58 = vpop.f32.mrf.mxu0 }
  0xf0   : > { %10209 = vrcp.f32 %v656_v53  ;;  %v654_v59 = vadd.f32 1.0, %v10196_v57  ;;  %v9110_v60 = vmul.f32 -1.442695, %v11383_v55  ;;  %v11388_v61 = vadd.f32 %v9932_v58, %v11343_v23 }
  0xf1   : > { %v10198_v63 = vpop.eup %10197  ;;  %10211 = vpow2.f32 %v9112_v54  ;;  %v466_v0 = vpop.f32.mrf.mxu0 }
  0xf2   : > { %10213 = vrcp.f32 %v654_v59  ;;  %v657_v1 = vadd.f32 1.0, %v10198_v63  ;;  %v9113_v2 = vmul.f32 -1.442695, %v11388_v61  ;;  %v11393_v3 = vadd.f32 %v11343_v23, %v466_v0 }
  0xf3   : > { %v10200_v5 = vpop.eup %10199  ;;  %10215 = vpow2.f32 %v9110_v60  ;;  %v9935_v6 = vpop.f32.mrf.mxu0 }
  0xf4   : > { %10217 = vrcp.f32 %v657_v1  ;;  %v655_v7 = vadd.f32 1.0, %v10200_v5  ;;  %v9111_v8 = vmul.f32 -1.442695, %v11393_v3  ;;  %v11398_v9 = vadd.f32 %v9935_v6, %v11343_v23 }
  0xf5   : > { %v10202_v10 = vpop.eup %10201  ;;  %10219 = vpow2.f32 %v9113_v2  ;;  %v479_v11 = vpop.f32.mrf.mxu0 }
  0xf6   : > { %10221 = vrcp.f32 %v655_v7  ;;  %v660_v12 = vadd.f32 1.0, %v10202_v10  ;;  %v9116_v13 = vmul.f32 -1.442695, %v11398_v9  ;;  %v11402_v14 = vadd.f32 %v11343_v23, %v479_v11 }
  0xf7   : > { %v10204_v17 = vpop.eup %10203  ;;  %10223 = vpow2.f32 %v9111_v8  ;;  %v9936_v18 = vpop.f32.mrf.mxu0 }
  0xf8   : > { %10225 = vrcp.f32 %v660_v12  ;;  %v658_v19 = vadd.f32 1.0, %v10204_v17  ;;  %v9114_v20 = vmul.f32 -1.442695, %v11402_v14  ;;  %v11408_v21 = vadd.f32 %v9936_v18, %v11343_v23 }
  0xf9   : > { %v10206_v22 = vpop.eup %10205  ;;  %10227 = vpow2.f32 %v9116_v13  ;;  %v482_v24 = vpop.f32.mrf.mxu0 }
  0xfa   : > { %10229 = vrcp.f32 %v658_v19  ;;  %v661_v26 = vadd.f32 1.0, %v10206_v22  ;;  %v9117_v27 = vmul.f32 -1.442695, %v11408_v21  ;;  %v11412_v29 = vadd.f32 %v11343_v23, %v482_v24 }
  0xfb   : > { %v10208_v30 = vpop.eup %10207  ;;  %10231 = vpow2.f32 %v9114_v20  ;;  %v9939_v32 = vpop.f32.mrf.mxu0 }
  0xfc   : > { %10233 = vrcp.f32 %v661_v26  ;;  %v659_v33 = vadd.f32 1.0, %v10208_v30  ;;  %v9115_v35 = vmul.f32 -1.442695, %v11412_v29  ;;  %v11416_v36 = vadd.f32 %v9939_v32, %v11343_v23  ;;  %v10139_v30 = vld [vmem:[%s16251_s3 + $0x78] sm:$0xff]  }
  0xfd   : > { %v10210_v38 = vpop.eup %10209  ;;  %10235 = vpow2.f32 %v9117_v27  ;;  %v495_v39 = vpop.f32.mrf.mxu0  ;;  %v10140_v32 = vld [vmem:[%s16251_s3 + $0x38] sm:$0xff]   ;;  %9529 = vmatprep.subr.bf16.mxu0 %v10139_v30  ;;  %10061 = vmatprep.subr.bf16.mxu1 %v10139_v30 }
  0xfe   : > { %v10212_v41 = vpop.eup %10211  ;;  %v11419_v42 = vmul.f32 %v10210_v38, %v11346_v25  ;;  %10237 = vrcp.f32 %v659_v33  ;;  %v9120_v44 = vmul.f32 -1.442695, %v11416_v36  ;;  %v11423_v45 = vadd.f32 %v11343_v23, %v495_v39  ;;  %9530 = vmatpush3.bf16.msra.mxu0 %v10140_v32  ;;  %10069 = vmatpush3.bf16.msra.mxu1 %v10140_v32 }
  0xff   : > { %v10214_v47 = vpop.eup %10213  ;;  %v664_v48 = vadd.f32 1.0, %v10212_v41  ;;  %10239 = vpow2.f32 %v9115_v35  ;;  %v9940_v50 = vpop.f32.mrf.mxu0 }
 0x100   : > { %16318 = vst [vmem:[#allocation7_spill] sm:$0xff] %v11419_v42  ;;  %v10216_v51 = vpop.eup %10215  ;;  %841 = vst.msk [vmem:[#allocation2 + $0x31] sm:$0xff] %vm782_vm2, %v11419_v42  ;;  %v11428_v52 = vmul.f32 %v10214_v47, %v11350_v28  ;;  %10241 = vpow2.f32 %v9120_v44  ;;  %v9118_v25 = vmul.f32 -1.442695, %v11423_v45  ;;  %v11432_v53 = vadd.f32 %v9940_v50, %v11343_v23  ;;  %v10156_v42 = vld [vmem:[%s16251_s3 + $0x80] sm:$0xff]  }
 0x101   : > { %v10218_v54 = vpop.eup %10217  ;;  %10243 = vrcp.f32 %v664_v48  ;;  %v662_v56 = vadd.f32 1.0, %v10216_v51  ;;  %v498_v57 = vpop.f32.mrf.mxu0  ;;  %v10141_v51 = vld [vmem:[%s16251_s3 + $0x70] sm:$0xff]  }
 0x102   : > { %16319 = vst [vmem:[#allocation8_spill] sm:$0xff] %v11428_v52  ;;  %v10220_v58 = vpop.eup %10219  ;;  %839 = vst.msk [vmem:[#allocation2 + $0x19] sm:$0xff] %vm782_vm2, %v11428_v52  ;;  %v11437_v59 = vmul.f32 %v10218_v54, %v11354_v31  ;;  %10245 = vpow2.f32 %v9118_v25  ;;  %v9121_v28 = vmul.f32 -1.442695, %v11432_v53  ;;  %v11441_v60 = vadd.f32 %v11343_v23, %v498_v57  ;;  %v10142_v54 = vld [vmem:[%s16251_s3 + $0x30] sm:$0xff]   ;;  %9531 = vmatprep.subr.bf16.mxu0 %v10141_v51 }
 0x103   : > { %v10222_v62 = vpop.eup %10221  ;;  %10247 = vrcp.f32 %v662_v56  ;;  %v665_v63 = vadd.f32 1.0, %v10220_v58  ;;  %10062 = vmatprep.subr.bf16.mxu1 %v10141_v51  ;;  %9532 = vmatpush3.bf16.msra.mxu0 %v10142_v54 }
 0x104   : > { %16320 = vst [vmem:[#allocation9_spill] sm:$0xff] %v11437_v59  ;;  %v10224_v0 = vpop.eup %10223  ;;  %842 = vst.msk [vmem:[#allocation2 + $0x39] sm:$0xff] %vm782_vm2, %v11437_v59  ;;  %v11446_v1 = vmul.f32 %v10222_v62, %v11358_v34  ;;  %10249 = vpow2.f32 %v9121_v28  ;;  %v9119_v31 = vmul.f32 -1.442695, %v11441_v60  ;;  %10070 = vmatpush3.bf16.msra.mxu1 %v10142_v54 }
 0x105   : > { %v10226_v2 = vpop.eup %10225  ;;  %10251 = vrcp.f32 %v665_v63  ;;  %v663_v4 = vadd.f32 1.0, %v10224_v0 }
 0x106   : > { %16321 = vst [vmem:[#allocation10_spill] sm:$0xff] %v11446_v1  ;;  %v10228_v5 = vpop.eup %10227  ;;  %840 = vst.msk [vmem:[#allocation2 + $0x21] sm:$0xff] %vm782_vm2, %v11446_v1  ;;  %v11452_v6 = vmul.f32 %v10226_v2, %v11362_v37  ;;  %10253 = vpow2.f32 %v9119_v31 }
 0x107   : > { %v10230_v7 = vpop.eup %10229  ;;  %v1771_v8 = vld [vmem:[#allocation2 + $0x30] sm:$0xff]  ;;  %10255 = vrcp.f32 %v663_v4  ;;  %v668_v34 = vadd.f32 1.0, %v10228_v5 }
 0x108   : > { %16322 = vst [vmem:[#allocation11_spill] sm:$0xff] %v11452_v6  ;;  %v939_v10 = vld [vmem:[#allocation2 + $0x31] sm:$0xff]  ;;  %v10232_v11 = vpop.eup %10231  ;;  %845 = vst.msk [vmem:[#allocation2 + $0x61] sm:$0xff] %vm782_vm2, %v11452_v6  ;;  %v11457_v12 = vmul.f32 %v10230_v7, %v11366_v40  ;;  %1835 = vrot.lane.b32.xlu1 %v1771_v8, %s11157_s13 }
 0x109   : > { %1007 = vrot.lane.b32.xlu0 %v939_v10, %s11156_s12  ;;  %907 = vst.msk [vmem:[#allocation3 + $0x60] sm:$0xff] %vm782_vm2, %v1771_v8  ;;  %1548 = vst.msk [vmem:[#allocation3 + $0x38] sm:$0xff] %vm782_vm2, %v939_v10  ;;  %v10234_v37 = vpop.eup %10233  ;;  %v11463_v13 = vld [vmem:[#allocation2 + $0x19] sm:$0xff]  ;;  %10257 = vrcp.f32 %v668_v34  ;;  %v666_v16 = vadd.f32 1.0, %v10232_v11 }
 0x10a   : > { %16323 = vst [vmem:[#allocation12_spill] sm:$0xff] %v11457_v12  ;;  %v11465_v15 = vld [vmem:[#allocation2 + $0x18] sm:$0xff]  ;;  %v10236_v17 = vpop.eup %10235  ;;  %843 = vst.msk [vmem:[#allocation2 + $0x49] sm:$0xff] %vm782_vm2, %v11457_v12  ;;  %v11470_v40 = vmul.f32 %v10234_v37, %v11370_v43 }
 0x10b   : > { %905 = vst.msk [vmem:[#allocation3 + $0x30] sm:$0xff] %vm782_vm2, %v11465_v15  ;;  %1546 = vst.msk [vmem:[#allocation3 + $0x8] sm:$0xff] %vm782_vm2, %v11463_v13  ;;  %v10238_v18 = vpop.eup %10237  ;;  %v11476_v19 = vld [vmem:[#allocation2 + $0x32] sm:$0xff]  ;;  %v11478_v20 = vld [vmem:[#allocation2 + $0x3a] sm:$0xff]  ;;  %10259 = vrcp.f32 %v666_v16  ;;  %v669_v24 = vadd.f32 1.0, %v10236_v17 }
 0x10c   : > { %16324 = vst [vmem:[#allocation13_spill] sm:$0xff] %v11470_v40  ;;  %v11480_v22 = vld [vmem:[#allocation2 + $0x38] sm:$0xff]  ;;  %v10240_v26 = vpop.eup %10239  ;;  %2187 = vst.msk [vmem:[#allocation3 + $0x10] sm:$0xff] %vm782_vm2, %v11476_v19  ;;  %v11489_v43 = vmul.f32 %v10238_v18, %v11374_v46  ;;  %2027 = vrot.lane.b32.xlu1 %v939_v10, %s11158_s16  ;;  %v10144_v10 = vld [vmem:[%s16251_s3 + $0x28] sm:$0xff]  }
 0x10d   : > { %2188 = vst.msk [vmem:[#allocation3 + $0x28] sm:$0xff] %vm782_vm2, %v11478_v20  ;;  %846 = vst.msk [vmem:[#allocation2 + $0x69] sm:$0xff] %vm782_vm2, %v11470_v40  ;;  %1837 = vrot.lane.b32.xlu0 %v11480_v22, %s11157_s13  ;;  %v11494_v27 = vld [vmem:[#allocation2 + $0x39] sm:$0xff]  ;;  %v10242_v46 = vpop.eup %10241  ;;  %v11506_v35 = vld [vmem:[#allocation2 + $0x21] sm:$0xff]  ;;  %10261 = vrcp.f32 %v669_v24  ;;  %v667_v38 = vadd.f32 1.0, %v10240_v26 }
 0x10e   : > { %16325 = vst [vmem:[#allocation14_spill] sm:$0xff] %v11489_v43  ;;  %908 = vst.msk [vmem:[#allocation3 + $0x78] sm:$0xff] %vm782_vm2, %v11480_v22  ;;  %v11504_v33 = vld [vmem:[#allocation2 + $0x20] sm:$0xff]  ;;  %v10244_v39 = vpop.eup %10243  ;;  %v672_v41 = vadd.f32 1.0, %v10242_v46 }
 0x10f   : > { %1549 = vst.msk [vmem:[#allocation3 + $0x50] sm:$0xff] %vm782_vm2, %v11494_v27  ;;  %844 = vst.msk [vmem:[#allocation2 + $0x51] sm:$0xff] %vm782_vm2, %v11489_v43  ;;  %v10246_v44 = vpop.eup %10245  ;;  %v11517_v47 = vmul.f32 %v10244_v39, %v11378_v49  ;;  %v11519_v48 = vld [vmem:[#allocation2 + $0x61] sm:$0xff]  ;;  %10263 = vrcp.f32 %v667_v38 }
 0x110   : > { %1547 = vst.msk [vmem:[#allocation3 + $0x20] sm:$0xff] %vm782_vm2, %v11506_v35  ;;  %906 = vst.msk [vmem:[#allocation3 + $0x48] sm:$0xff] %vm782_vm2, %v11504_v33  ;;  %v11521_v50 = vld [vmem:[#allocation2 + $0x60] sm:$0xff]  ;;  %v10248_v25 = vpop.eup %10247  ;;  %1389 = vrot.lane.b32.xlu1 %v1771_v8, %s11158_s16  ;;  %10265 = vrcp.f32 %v672_v41  ;;  %v670_v49 = vadd.f32 1.0, %v10246_v44  ;;  %v10143_v8 = vld [vmem:[%s16251_s3 + $0x68] sm:$0xff]  }
 0x111   : > { %16326 = vst [vmem:[#allocation15_spill] sm:$0xff] %v11517_v47  ;;  %2029 = vrot.lane.b32.xlu0 %v11494_v27, %s11158_s16  ;;  %911 = vst.msk [vmem:[#allocation3 + $0xc0] sm:$0xff] %vm782_vm2, %v11521_v50  ;;  %v10250_v56 = vpop.eup %10249  ;;  %v11539_v57 = vmul.f32 %v10248_v25, %v11383_v55  ;;  %v11541_v58 = vld [vmem:[#allocation2 + $0x48] sm:$0xff]  ;;  %9533 = vmatprep.subr.bf16.mxu0 %v10143_v8  ;;  %v10145_v18 = vld [vmem:[%s16251_s3 + $0x60] sm:$0xff]  }
 0x112   : > { %1552 = vst.msk [vmem:[#allocation3 + $0x98] sm:$0xff] %vm782_vm2, %v11519_v48  ;;  %849 = vst.msk [vmem:[#allocation2 + $0x91] sm:$0xff] %vm782_vm2, %v11517_v47  ;;  %v1518_v28 = vld [vmem:[#allocation2 + $0x49] sm:$0xff]  ;;  %v10252_v62 = vpop.eup %10251  ;;  %10267 = vrcp.f32 %v670_v49  ;;  %v673_v63 = vadd.f32 1.0, %v10250_v56  ;;  %10063 = vmatprep.subr.bf16.mxu1 %v10143_v8  ;;  %9534 = vmatpush3.bf16.msra.mxu0 %v10144_v10 }
 0x113   : > { %16327 = vst [vmem:[#allocation16_spill] sm:$0xff] %v11539_v57  ;;  %909 = vst.msk [vmem:[#allocation3 + $0x90] sm:$0xff] %vm782_vm2, %v11541_v58  ;;  %v10254_v0 = vpop.eup %10253  ;;  %v11553_v55 = vmul.f32 %v10252_v62, %v11388_v61  ;;  %10071 = vmatpush3.bf16.msra.mxu1 %v10144_v10  ;;  %9535 = vmatprep.subr.bf16.mxu0 %v10145_v18  ;;  %v10150_v8 = vld [vmem:[%s16251_s3 + $0x10] sm:$0xff]  }
 0x114   : > { %1550 = vst.msk [vmem:[#allocation3 + $0x68] sm:$0xff] %vm782_vm2, %v1518_v28  ;;  %v11546_v31 = vld [vmem:[#allocation2 + $0x62] sm:$0xff]  ;;  %v11548_v2 = vld [vmem:[#allocation2 + $0x6a] sm:$0xff]  ;;  %847 = vst.msk [vmem:[#allocation2 + $0x79] sm:$0xff] %vm782_vm2, %v11539_v57  ;;  %v10256_v5 = vpop.eup %10255  ;;  %1003 = vrot.lane.b32.xlu1 %v11463_v13, %s11156_s12  ;;  %10269 = vrcp.f32 %v673_v63  ;;  %v671_v61 = vadd.f32 1.0, %v10254_v0  ;;  %10064 = vmatprep.subr.bf16.mxu1 %v10145_v18 }
 0x115   : > { %16328 = vst [vmem:[#allocation17_spill] sm:$0xff] %v11553_v55  ;;  %v11555_v4 = vld [vmem:[#allocation2 + $0x68] sm:$0xff]  ;;  %2191 = vst.msk [vmem:[#allocation3 + $0x70] sm:$0xff] %vm782_vm2, %v11546_v31  ;;  %1648 = vrot.lane.b32.xlu0 %v11478_v20, %s11156_s12  ;;  %v11582_v37 = vmul.f32 %v10256_v5, %v11393_v3 }
 0x116   : > { %2192 = vst.msk [vmem:[#allocation3 + $0x88] sm:$0xff] %vm782_vm2, %v11548_v2  ;;  %v11565_v7 = vld [vmem:[#allocation2 + $0x69] sm:$0xff]  ;;  %912 = vst.msk [vmem:[#allocation3 + $0xd8] sm:$0xff] %vm782_vm2, %v11555_v4  ;;  %v11577_v11 = vld [vmem:[#allocation2 + $0x52] sm:$0xff]  ;;  %v10258_v16 = vpop.eup %10257  ;;  %10271 = vrcp.f32 %v671_v61 }
 0x117   : > { %v11575_v34 = vld [vmem:[#allocation2 + $0x4a] sm:$0xff]  ;;  %850 = vst.msk [vmem:[#allocation2 + $0x99] sm:$0xff] %vm782_vm2, %v11553_v55  ;;  %16329 = vst [vmem:[#allocation18_spill] sm:$0xff] %v11582_v37  ;;  %v11599_v3 = vmul.f32 %v10258_v16, %v11398_v9  ;;  %v10146_v9 = vld [vmem:[%s16251_s3 + $0x20] sm:$0xff]  }
 0x118   : > { %v11584_v13 = vld [vmem:[#allocation2 + $0x50] sm:$0xff]  ;;  %1553 = vst.msk [vmem:[#allocation3 + $0xb0] sm:$0xff] %vm782_vm2, %v11565_v7  ;;  %2189 = vst.msk [vmem:[#allocation3 + $0x40] sm:$0xff] %vm782_vm2, %v11575_v34  ;;  %v10260_v24 = vpop.eup %10259  ;;  %1385 = vrot.lane.b32.xlu1 %v11465_v15, %s11158_s16  ;;  %9536 = vmatpush3.bf16.msra.mxu0 %v10146_v9 }
 0x119   : > { %2190 = vst.msk [vmem:[#allocation3 + $0x58] sm:$0xff] %vm782_vm2, %v11577_v11  ;;  %v11592_v17 = vld [vmem:[#allocation2 + $0x51] sm:$0xff]  ;;  %910 = vst.msk [vmem:[#allocation3 + $0xa8] sm:$0xff] %vm782_vm2, %v11584_v13  ;;  %1391 = vrot.lane.b32.xlu0 %v11480_v22, %s11158_s16  ;;  %v11618_v30 = vmul.f32 %v10260_v24, %v11402_v14  ;;  %10072 = vmatpush3.bf16.msra.mxu1 %v10146_v9 }
 0x11a   : > { %848 = vst.msk [vmem:[#allocation2 + $0x81] sm:$0xff] %vm782_vm2, %v11582_v37  ;;  %16330 = vst [vmem:[#allocation19_spill] sm:$0xff] %v11599_v3  ;;  %v11610_v26 = vld [vmem:[#allocation2 + $0x90] sm:$0xff]  ;;  %v10262_v32 = vpop.eup %10261  ;;  %v10147_v14 = vld [vmem:[%s16251_s3 + $0x58] sm:$0xff]  }
 0x11b   : > { %1551 = vst.msk [vmem:[#allocation3 + $0x80] sm:$0xff] %vm782_vm2, %v11592_v17  ;;  %853 = vst.msk [vmem:[#allocation2 + $0xc1] sm:$0xff] %vm782_vm2, %v11599_v3  ;;  %v1524_v22 = vld [vmem:[#allocation2 + $0x91] sm:$0xff]  ;;  %v1522_v46 = vld [vmem:[#allocation2 + $0x79] sm:$0xff]  ;;  %v11628_v38 = vmul.f32 %v10262_v32, %v11408_v21  ;;  %v9943_v21 = vpop.f32.mrf.mxu0  ;;  %9537 = vmatprep.subr.bf16.mxu0 %v10147_v14  ;;  %10065 = vmatprep.subr.bf16.mxu1 %v10147_v14 }
 0x11c   : > { %16331 = vst [vmem:[#allocation20_spill] sm:$0xff] %v11618_v30  ;;  %915 = vst.msk [vmem:[#allocation3 + $0x120] sm:$0xff] %vm782_vm2, %v11610_v26  ;;  %v11622_v15 = vld [vmem:[#allocation2 + $0x78] sm:$0xff]  ;;  %v10264_v39 = vpop.eup %10263  ;;  %1009 = vrot.lane.b32.xlu1 %v11494_v27, %s11156_s12  ;;  %v11654_v49 = vadd.f32 %v9943_v21, %v11343_v23 }
 0x11d   : > { %1556 = vst.msk [vmem:[#allocation3 + $0xf8] sm:$0xff] %vm782_vm2, %v1524_v22  ;;  %851 = vst.msk [vmem:[#allocation2 + $0xa9] sm:$0xff] %vm782_vm2, %v11618_v30  ;;  %1202 = vrot.lane.b32.xlu0 %v11478_v20, %s11157_s13  ;;  %v10266_v51 = vpop.eup %10265  ;;  %v11651_v25 = vmul.f32 %v10264_v39, %v11412_v29  ;;  %v10148_v20 = vld [vmem:[%s16251_s3 + $0x18] sm:$0xff]   ;;  %v511_v56 = vpop.f32.mrf.mxu0  ;;  %v11666_v29 = vld [vmem:[#allocation2 + $0x22] sm:$0xff] }
 0x11e   : > { %16332 = vst [vmem:[#allocation21_spill] sm:$0xff] %v11628_v38  ;;  %913 = vst.msk [vmem:[#allocation3 + $0xf0] sm:$0xff] %vm782_vm2, %v11622_v15  ;;  %v11636_v41 = vld [vmem:[#allocation2 + $0x92] sm:$0xff]  ;;  %v11638_v44 = vld [vmem:[#allocation2 + $0x9a] sm:$0xff]  ;;  %v11662_v54 = vmul.f32 %v10266_v51, %v11416_v36  ;;  %v9124_v63 = vmul.f32 -1.442695, %v11654_v49  ;;  %v11674_v0 = vadd.f32 %v11343_v23, %v511_v56  ;;  %9538 = vmatpush3.bf16.msra.mxu0 %v10148_v20  ;;  %10073 = vmatpush3.bf16.msra.mxu1 %v10148_v20 }
 0x11f   : > { %1554 = vst.msk [vmem:[#allocation3 + $0xc8] sm:$0xff] %vm782_vm2, %v1522_v46  ;;  %2195 = vst.msk [vmem:[#allocation3 + $0xd0] sm:$0xff] %vm782_vm2, %v11636_v41  ;;  %v10268_v28 = vpop.eup %10267  ;;  %v10149_v36 = vld [vmem:[%s16251_s3 + $0x50] sm:$0xff]   ;;  %v9944_v61 = vpop.f32.mrf.mxu0  ;;  %v1525_v24 = vld [vmem:[#allocation2 + $0x99] sm:$0xff] }
 0x120   : > { %2196 = vst.msk [vmem:[#allocation3 + $0xe8] sm:$0xff] %vm782_vm2, %v11638_v44  ;;  %854 = vst.msk [vmem:[#allocation2 + $0xc9] sm:$0xff] %vm782_vm2, %v11628_v38  ;;  %1646 = vrot.lane.b32.xlu1 %v11476_v19, %s11156_s12  ;;  %v11686_v5 = vmul.f32 %v10268_v28, %v11423_v45  ;;  %10273 = vpow2.f32 %v9124_v63  ;;  %v9122_v16 = vmul.f32 -1.442695, %v11674_v0  ;;  %v11695_v18 = vadd.f32 %v9944_v61, %v11343_v23  ;;  %v884_v45 = vld [vmem:[#allocation2 + $0x98] sm:$0xff]  ;;  %v10153_v61 = vld [vmem:[%s16251_s3 + $0x40] sm:$0xff]  }
 0x121   : > { %16333 = vst [vmem:[#allocation22_spill] sm:$0xff] %v11651_v25  ;;  %v11659_v27 = vld [vmem:[#allocation2 + $0x7a] sm:$0xff]  ;;  %16334 = vst [vmem:[#allocation23_spill] sm:$0xff] %v11662_v54  ;;  %v11670_v62 = vld [vmem:[#allocation2 + $0x82] sm:$0xff]  ;;  %1644 = vrot.lane.b32.xlu0 %v11666_v29, %s11156_s12  ;;  %v10270_v10 = vpop.eup %10269  ;;  %9539 = vmatprep.subr.bf16.mxu0 %v10149_v36  ;;  %v514_v46 = vpop.f32.mrf.mxu0 }
 0x122   : > { %2193 = vst.msk [vmem:[#allocation3 + $0xa0] sm:$0xff] %vm782_vm2, %v11659_v27  ;;  %852 = vst.msk [vmem:[#allocation2 + $0xb1] sm:$0xff] %vm782_vm2, %v11651_v25  ;;  %10066 = vmatprep.subr.bf16.mxu1 %v10149_v36  ;;  %v1523_v9 = vld [vmem:[#allocation2 + $0x81] sm:$0xff]  ;;  %v11700_v22 = vmul.f32 %v10270_v10, %v11432_v53  ;;  %10275 = vpow2.f32 %v9122_v16  ;;  %v9125_v21 = vmul.f32 -1.442695, %v11695_v18  ;;  %v11709_v51 = vadd.f32 %v11343_v23, %v514_v46 }
 0x123   : > { %857 = vst.msk [vmem:[#allocation2 + $0xf1] sm:$0xff] %vm782_vm2, %v11662_v54  ;;  %16335 = vst [vmem:[#allocation24_spill] sm:$0xff] %v11686_v5  ;;  %v882_v14 = vld [vmem:[#allocation2 + $0x80] sm:$0xff]  ;;  %v10272_v39 = vpop.eup %10271  ;;  %9540 = vmatpush3.bf16.msra.mxu0 %v10150_v8  ;;  %v10151_v53 = vld [vmem:[%s16251_s3 + $0x48] sm:$0xff]   ;;  %10074 = vmatpush3.bf16.msra.mxu1 %v10150_v8 }
 0x124   : > { %2194 = vst.msk [vmem:[#allocation3 + $0xb8] sm:$0xff] %vm782_vm2, %v11670_v62  ;;  %855 = vst.msk [vmem:[#allocation2 + $0xd9] sm:$0xff] %vm782_vm2, %v11686_v5  ;;  %v11702_v32 = vld [vmem:[#allocation2 + $0xa8] sm:$0xff]  ;;  %v887_v20 = vld [vmem:[#allocation2 + $0xc0] sm:$0xff]  ;;  %1200 = vrot.lane.b32.xlu1 %v11476_v19, %s11157_s13  ;;  %v11728_v36 = vmul.f32 %v10272_v39, %v11441_v60  ;;  %10277 = vpow2.f32 %v9125_v21  ;;  %v9123_v19 = vmul.f32 -1.442695, %v11709_v51  ;;  %9541 = vmatprep.subr.bf16.mxu0 %v10151_v53 }
 0x125   : > { %16336 = vst [vmem:[#allocation25_spill] sm:$0xff] %v11700_v22  ;;  %1557 = vst.msk [vmem:[#allocation3 + $0x110] sm:$0xff] %vm782_vm2, %v1525_v24  ;;  %v1528_v56 = vld [vmem:[#allocation2 + $0xc1] sm:$0xff]  ;;  %1387 = vrot.lane.b32.xlu0 %v11504_v33, %s11158_s16  ;;  %10067 = vmatprep.subr.bf16.mxu1 %v10151_v53 }
 0x126   : > { %916 = vst.msk [vmem:[#allocation3 + $0x138] sm:$0xff] %vm782_vm2, %v884_v45  ;;  %1555 = vst.msk [vmem:[#allocation3 + $0xe0] sm:$0xff] %vm782_vm2, %v1523_v9  ;;  %v10152_v33 = vld [vmem:[%s16251_s3 + $0x8] sm:$0xff]   ;;  %10279 = vpow2.f32 %v9123_v19  ;;  %v10154_v16 = vld [vmem:[%s16251_s3] sm:$0xff]  }
 0x127   : > { %914 = vst.msk [vmem:[#allocation3 + $0x108] sm:$0xff] %vm782_vm2, %v882_v14  ;;  %917 = vst.msk [vmem:[#allocation3 + $0x150] sm:$0xff] %vm782_vm2, %v11702_v32  ;;  %v11721_v28 = vld [vmem:[#allocation2 + $0xc2] sm:$0xff]  ;;  %v11723_v63 = vld [vmem:[#allocation2 + $0xca] sm:$0xff]  ;;  %9542 = vmatpush3.bf16.msra.mxu0 %v10152_v33  ;;  %10075 = vmatpush3.bf16.msra.mxu1 %v10152_v33 }
 0x128   : > { %858 = vst.msk [vmem:[#allocation2 + $0xf9] sm:$0xff] %vm782_vm2, %v11700_v22  ;;  %16337 = vst [vmem:[#allocation26_spill] sm:$0xff] %v11728_v36  ;;  %1005 = vrot.lane.b32.xlu1 %v11506_v35, %s11156_s12  ;;  %v1578_v24 = vld [vmem:[#allocation2 + $0x1a] sm:$0xff]  ;;  %9543 = vmatprep.subr.bf16.mxu0 %v10153_v61  ;;  %v888_v46 = vld [vmem:[#allocation2 + $0xc8] sm:$0xff] }
 0x129   : > { %919 = vst.msk [vmem:[#allocation3 + $0x180] sm:$0xff] %vm782_vm2, %v887_v20  ;;  %1560 = vst.msk [vmem:[#allocation3 + $0x158] sm:$0xff] %vm782_vm2, %v1528_v56  ;;  %v11740_v60 = vld [vmem:[#allocation2 + $0xaa] sm:$0xff]  ;;  %v11751_v10 = vld [vmem:[#allocation2 + $0xb2] sm:$0xff]  ;;  %1198 = vrot.lane.b32.xlu0 %v11666_v29, %s11157_s13  ;;  %10068 = vmatprep.subr.bf16.mxu1 %v10153_v61 }
 0x12a   : > { %2199 = vst.msk [vmem:[#allocation3 + $0x130] sm:$0xff] %vm782_vm2, %v11721_v28  ;;  %2200 = vst.msk [vmem:[#allocation3 + $0x148] sm:$0xff] %vm782_vm2, %v11723_v63  ;;  %v11749_v8 = vld [vmem:[#allocation2 + $0xb1] sm:$0xff]  ;;  %v1529_v29 = vld [vmem:[#allocation2 + $0xc9] sm:$0xff] }
 0x12b   : > { %856 = vst.msk [vmem:[#allocation2 + $0xe1] sm:$0xff] %vm782_vm2, %v11728_v36  ;;  %2197 = vst.msk [vmem:[#allocation3 + $0x100] sm:$0xff] %vm782_vm2, %v11740_v60  ;;  %v11764_v45 = vld [vmem:[#allocation2 + $0xf0] sm:$0xff]  ;;  %v11766_v9 = vld [vmem:[#allocation2 + $0xd8] sm:$0xff]  ;;  %9544 = vmatpush3.bf16.msra.mxu0 %v10154_v16  ;;  %10076 = vmatpush3.bf16.msra.mxu1 %v10154_v16 }
 0x12c   : > { %2198 = vst.msk [vmem:[#allocation3 + $0x118] sm:$0xff] %vm782_vm2, %v11751_v10  ;;  %1559 = vst.msk [vmem:[#allocation3 + $0x140] sm:$0xff] %vm782_vm2, %v11749_v8  ;;  %v11777_v39 = vld [vmem:[%s16251_s3 + $0x88] sm:$0xff]   ;;  %1642 = vrot.lane.b32.xlu1 %v1578_v24, %s11156_s12  ;;  %v1532_v54 = vld [vmem:[#allocation2 + $0xf1] sm:$0xff] }
 0x12d   : > { %923 = vst.msk [vmem:[#allocation3 + $0x1e0] sm:$0xff] %vm782_vm2, %v11764_v45  ;;  %1561 = vst.msk [vmem:[#allocation3 + $0x170] sm:$0xff] %vm782_vm2, %v1529_v29  ;;  %1015 = vrot.lane.b32.xlu0 %v11519_v48, %s11156_s12  ;;  %9953 = vmatprep.subr.bf16.mxu0 %v11777_v39  ;;  %v10274_v19 = vpop.eup %10273  ;;  %v941_v16 = vld [vmem:[#allocation2 + $0x49] sm:$0xff] }
 0x12e   : > { %920 = vst.msk [vmem:[#allocation3 + $0x198] sm:$0xff] %vm782_vm2, %v888_v46  ;;  %921 = vst.msk [vmem:[#allocation3 + $0x1b0] sm:$0xff] %vm782_vm2, %v11766_v9  ;;  %v676_v29 = vadd.f32 1.0, %v10274_v19  ;;  %v886_v46 = vld [vmem:[#allocation2 + $0xb0] sm:$0xff]  ;;  %v1530_v19 = vld [vmem:[#allocation2 + $0xd9] sm:$0xff] }
 0x12f   : > { %v11770_v35 = vld [vmem:[#allocation2 + $0xf2] sm:$0xff]  ;;  %v11772_v14 = vld [vmem:[#allocation2 + $0xfa] sm:$0xff]  ;;  %918 = vst.msk [vmem:[#allocation3 + $0x168] sm:$0xff] %vm782_vm2, %v886_v46  ;;  %v1526_v22 = vld [vmem:[#allocation2 + $0xa9] sm:$0xff] }
 0x130   : > { %2203 = vst.msk [vmem:[#allocation3 + $0x190] sm:$0xff] %vm782_vm2, %v11770_v35  ;;  %2204 = vst.msk [vmem:[#allocation3 + $0x1a8] sm:$0xff] %vm782_vm2, %v11772_v14  ;;  %v11790_v21 = vld [vmem:[#allocation2 + $0xf8] sm:$0xff]  ;;  %1196 = vrot.lane.b32.xlu1 %v1578_v24, %s11157_s13  ;;  %10281 = vrcp.f32 %v676_v29 }
 0x131   : > { %v11793_v20 = vld [vmem:[#allocation2 + $0xf9] sm:$0xff]  ;;  %924 = vst.msk [vmem:[#allocation3 + $0x1f8] sm:$0xff] %vm782_vm2, %v11790_v21  ;;  %1011 = vrot.lane.b32.xlu0 %v941_v16, %s11156_s12  ;;  %1558 = vst.msk [vmem:[#allocation3 + $0x128] sm:$0xff] %vm782_vm2, %v1526_v22 }
 0x132   : > { %v2169_v53 = vld [vmem:[#allocation2 + $0xda] sm:$0xff]  ;;  %v11795_v56 = vld [vmem:[#allocation2 + $0xe2] sm:$0xff]  ;;  %1565 = vst.msk [vmem:[#allocation3 + $0x1d0] sm:$0xff] %vm782_vm2, %v11793_v20  ;;  %1564 = vst.msk [vmem:[#allocation3 + $0x1b8] sm:$0xff] %vm782_vm2, %v1532_v54 }
 0x133   : > { %2201 = vst.msk [vmem:[#allocation3 + $0x160] sm:$0xff] %vm782_vm2, %v2169_v53  ;;  %2202 = vst.msk [vmem:[#allocation3 + $0x178] sm:$0xff] %vm782_vm2, %v11795_v56  ;;  %v11802_v33 = vld [vmem:[#allocation2 + $0xe0] sm:$0xff]  ;;  %v10276_v53 = vpop.eup %10275 }
 0x134   : > { %v11804_v61 = vld [vmem:[#allocation2 + $0xe1] sm:$0xff]  ;;  %922 = vst.msk [vmem:[#allocation3 + $0x1c8] sm:$0xff] %vm782_vm2, %v11802_v33  ;;  %v674_v36 = vadd.f32 1.0, %v10276_v53  ;;  %v10278_v5 = vpop.eup %10277  ;;  %1562 = vst.msk [vmem:[#allocation3 + $0x188] sm:$0xff] %vm782_vm2, %v1530_v19  ;;  %1843 = vrot.lane.b32.xlu1 %v11521_v50, %s11157_s13 }
 0x135   : > { %1563 = vst.msk [vmem:[#allocation3 + $0x1a0] sm:$0xff] %vm782_vm2, %v11804_v61  ;;  %v677_v38 = vadd.f32 1.0, %v10278_v5  ;;  %v10280_v3 = vpop.eup %10279  ;;  %1845 = vrot.lane.b32.xlu0 %v11555_v4, %s11157_s13 }
 0x136   : > { %10283 = vrcp.f32 %v674_v36  ;;  %v675_v24 = vadd.f32 1.0, %v10280_v3 }
 0x137   : > { %10285 = vrcp.f32 %v677_v38 }
 0x138   : > { %10287 = vrcp.f32 %v675_v24  ;;  %2035 = vrot.lane.b32.xlu1 %v11519_v48, %s11158_s16 }
 0x139   : > { %2037 = vrot.lane.b32.xlu0 %v11565_v7, %s11158_s16 }
 0x13c   : > { %1397 = vrot.lane.b32.xlu1 %v11521_v50, %s11158_s16 }
 0x13d   : > { %1656 = vrot.lane.b32.xlu0 %v11548_v2, %s11156_s12  ;;  %v10282_v54 = vpop.eup %10281 }
 0x13e   : > { %v11831_v5 = vmul.f32 %v10282_v54, %v11654_v49  ;;  %v9947_v49 = vpop.f32.mrf.mxu0 }
 0x140   : > { %16338 = vst [vmem:[#allocation27_spill] sm:$0xff] %v11831_v5  ;;  %1839 = vrot.lane.b32.xlu1 %v11541_v58, %s11157_s13  ;;  %861 = vst.msk [vmem:[#allocation2 + $0x121] sm:$0xff] %vm782_vm2, %v11831_v5 }
 0x141   : > { %1399 = vrot.lane.b32.xlu0 %v11555_v4, %s11158_s16 }
 0x143   : > { %v10284_v22 = vpop.eup %10283 }
 0x144   : > { %v11840_v48 = vmul.f32 %v10284_v22, %v11674_v0  ;;  %v10286_v3 = vpop.eup %10285  ;;  %2031 = vrot.lane.b32.xlu1 %v941_v16, %s11158_s16  ;;  %v527_v0 = vpop.f32.mrf.mxu0 }
 0x145   : > { %v11845_v50 = vmul.f32 %v10286_v3, %v11695_v18  ;;  %v10288_v38 = vpop.eup %10287  ;;  %1210 = vrot.lane.b32.xlu0 %v11548_v2, %s11157_s13  ;;  %v11862_v2 = vadd.f32 %v9947_v49, %v11343_v23  ;;  %v11866_v36 = vadd.f32 %v11343_v23, %v527_v0 }
 0x146   : > { %16339 = vst [vmem:[#allocation28_spill] sm:$0xff] %v11840_v48  ;;  %859 = vst.msk [vmem:[#allocation2 + $0x109] sm:$0xff] %vm782_vm2, %v11840_v48  ;;  %v11853_v4 = vmul.f32 %v10288_v38, %v11709_v51  ;;  %v9948_v29 = vpop.f32.mrf.mxu0 }
 0x147   : > { %16340 = vst [vmem:[#allocation29_spill] sm:$0xff] %v11845_v50  ;;  %862 = vst.msk [vmem:[#allocation2 + $0x129] sm:$0xff] %vm782_vm2, %v11845_v50  ;;  %v9128_v18 = vmul.f32 -1.442695, %v11862_v2  ;;  %v11884_v53 = vadd.f32 %v9948_v29, %v11343_v23  ;;  %v11905_v3 = vld [vmem:[#allocation2 + $0x120] sm:$0xff]  ;;  %v947_v29 = vld [vmem:[#allocation2 + $0x91] sm:$0xff] }
 0x148   : > { %16341 = vst [vmem:[#allocation30_spill] sm:$0xff] %v11853_v4  ;;  %860 = vst.msk [vmem:[#allocation2 + $0x111] sm:$0xff] %vm782_vm2, %v11853_v4  ;;  %1393 = vrot.lane.b32.xlu1 %v11541_v58, %s11158_s16  ;;  %v9126_v58 = vmul.f32 -1.442695, %v11866_v36  ;;  %v11907_v38 = vld [vmem:[#allocation2 + $0x121] sm:$0xff]  ;;  %v1780_v4 = vld [vmem:[#allocation2 + $0x98] sm:$0xff] }
 0x149   : > { %1841 = vrot.lane.b32.xlu0 %v11584_v13, %s11157_s13  ;;  %10289 = vpow2.f32 %v9128_v18  ;;  %v9129_v19 = vmul.f32 -1.442695, %v11884_v53  ;;  %927 = vst.msk [vmem:[#allocation3 + $0x240] sm:$0xff] %vm782_vm2, %v11905_v3  ;;  %1568 = vst.msk [vmem:[#allocation3 + $0x218] sm:$0xff] %vm782_vm2, %v11907_v38 }
 0x14a   : > { %10291 = vpow2.f32 %v9126_v58 }
 0x14b   : > { %10293 = vpow2.f32 %v9129_v19 }
 0x14c   : > { %1017 = vrot.lane.b32.xlu1 %v11565_v7, %s11156_s12  ;;  %v530_v7 = vpop.f32.mrf.mxu0 }
 0x14d   : > { %2033 = vrot.lane.b32.xlu0 %v11592_v17, %s11158_s16  ;;  %v11894_v24 = vadd.f32 %v11343_v23, %v530_v7  ;;  %v11909_v23 = vld [vmem:[#allocation2 + $0x109] sm:$0xff] }
 0x14e   : > { %v11872_v51 = vld [vmem:[#allocation2 + $0x122] sm:$0xff]  ;;  %v11874_v16 = vld [vmem:[#allocation2 + $0x12a] sm:$0xff]  ;;  %1566 = vst.msk [vmem:[#allocation3 + $0x1e8] sm:$0xff] %vm782_vm2, %v11909_v23 }
 0x14f   : > { %2207 = vst.msk [vmem:[#allocation3 + $0x1f0] sm:$0xff] %vm782_vm2, %v11872_v51  ;;  %2208 = vst.msk [vmem:[#allocation3 + $0x208] sm:$0xff] %vm782_vm2, %v11874_v16  ;;  %v11881_v46 = vld [vmem:[#allocation2 + $0x10a] sm:$0xff]  ;;  %v11896_v54 = vld [vmem:[#allocation2 + $0x112] sm:$0xff]  ;;  %v9127_v22 = vmul.f32 -1.442695, %v11894_v24 }
 0x150   : > { %2205 = vst.msk [vmem:[#allocation3 + $0x1c0] sm:$0xff] %vm782_vm2, %v11881_v46  ;;  %1654 = vrot.lane.b32.xlu1 %v11546_v31, %s11156_s12  ;;  %2206 = vst.msk [vmem:[#allocation3 + $0x1d8] sm:$0xff] %vm782_vm2, %v11896_v54  ;;  %v11911_v49 = vld [vmem:[#allocation2 + $0x128] sm:$0xff]  ;;  %v11935_v58 = vld [vmem:[#allocation2 + $0x111] sm:$0xff] }
 0x151   : > { %1652 = vrot.lane.b32.xlu0 %v11577_v11, %s11156_s12  ;;  %10295 = vpow2.f32 %v9127_v22  ;;  %v11913_v0 = vld [vmem:[#allocation2 + $0x129] sm:$0xff]  ;;  %928 = vst.msk [vmem:[#allocation3 + $0x258] sm:$0xff] %vm782_vm2, %v11911_v49  ;;  %1567 = vst.msk [vmem:[#allocation3 + $0x200] sm:$0xff] %vm782_vm2, %v11935_v58  ;;  %v945_v22 = vld [vmem:[#allocation2 + $0x79] sm:$0xff] }
 0x152   : > { %v11915_v18 = vld [vmem:[#allocation2 + $0x108] sm:$0xff]  ;;  %1569 = vst.msk [vmem:[#allocation3 + $0x230] sm:$0xff] %vm782_vm2, %v11913_v0 }
 0x153   : > { %925 = vst.msk [vmem:[#allocation3 + $0x210] sm:$0xff] %vm782_vm2, %v11915_v18 }
 0x154   : > { %1208 = vrot.lane.b32.xlu1 %v11546_v31, %s11157_s13  ;;  %v11927_v31 = vld [vmem:[#allocation2 + $0x110] sm:$0xff] }
 0x155   : > { %1395 = vrot.lane.b32.xlu0 %v11584_v13, %s11158_s16  ;;  %926 = vst.msk [vmem:[#allocation3 + $0x228] sm:$0xff] %vm782_vm2, %v11927_v31 }
 0x156   : > { %v10290_v13 = vpop.eup %10289 }
 0x158   : > { %1013 = vrot.lane.b32.xlu1 %v11592_v17, %s11156_s12  ;;  %v10292_v17 = vpop.eup %10291 }
 0x159   : > { %1206 = vrot.lane.b32.xlu0 %v11577_v11, %s11157_s13  ;;  %v680_v11 = vadd.f32 1.0, %v10290_v13  ;;  %v678_v7 = vadd.f32 1.0, %v10292_v17  ;;  %v10294_v19 = vpop.eup %10293  ;;  %v1972_v17 = vld [vmem:[#allocation2 + $0x99] sm:$0xff] }
 0x15a   : > { %v681_v13 = vadd.f32 1.0, %v10294_v19 }
 0x15b   : > { %10297 = vrcp.f32 %v680_v11  ;;  %v9951_v11 = vpop.f32.mrf.mxu0 }
 0x15c   : > { %1650 = vrot.lane.b32.xlu1 %v11575_v34, %s11156_s12  ;;  %10299 = vrcp.f32 %v678_v7  ;;  %v11089_v7 = vld [vmem:[%s16250_s2] ss:$0 sm:$0xff] }
 0x15d   : > { %1023 = vrot.lane.b32.xlu0 %v947_v29, %s11156_s12  ;;  %10301 = vrcp.f32 %v681_v13  ;;  %v11953_v48 = vadd.f32 %v11089_v7, %v9951_v11 }
 0x15e   : > { %v10296_v50 = vpop.eup %10295 }
 0x15f   : > { %v679_v5 = vadd.f32 1.0, %v10296_v50  ;;  %v9132_v19 = vmul.f32 -1.442695, %v11953_v48 }
 0x160   : > { %1204 = vrot.lane.b32.xlu1 %v11575_v34, %s11157_s13  ;;  %v543_v34 = vpop.f32.mrf.mxu0 }
 0x161   : > { %1019 = vrot.lane.b32.xlu0 %v945_v22, %s11156_s12  ;;  %10303 = vrcp.f32 %v679_v5  ;;  %v11958_v13 = vadd.f32 %v11089_v7, %v543_v34 }
 0x162   : > { %v9952_v25 = vpop.f32.mrf.mxu0  ;;  %10305 = vpow2.f32 %v9132_v19 }
 0x163   : > { %v9130_v55 = vmul.f32 -1.442695, %v11958_v13  ;;  %v11964_v11 = vadd.f32 %v11089_v7, %v9952_v25 }
 0x164   : > { %1851 = vrot.lane.b32.xlu1 %v11610_v26, %s11157_s13 }
 0x165   : > { %1853 = vrot.lane.b32.xlu0 %v1780_v4, %s11157_s13  ;;  %10307 = vpow2.f32 %v9130_v55  ;;  %v9133_v34 = vmul.f32 -1.442695, %v11964_v11 }
 0x167   : > { %10309 = vpow2.f32 %v9133_v34 }
 0x168   : > { %2043 = vrot.lane.b32.xlu1 %v947_v29, %s11158_s16  ;;  %v10298_v50 = vpop.eup %10297 }
 0x169   : > { %2045 = vrot.lane.b32.xlu0 %v1972_v17, %s11158_s16  ;;  %v11961_v5 = vmul.f32 %v10298_v50, %v11862_v2  ;;  %v10300_v30 = vpop.eup %10299  ;;  %v546_v2 = vpop.f32.mrf.mxu0 }
 0x16a   : > { %v11973_v29 = vmul.f32 %v10300_v30, %v11866_v36  ;;  %v11976_v50 = vadd.f32 %v11089_v7, %v546_v2  ;;  %v10302_v25 = vpop.eup %10301 }
 0x16b   : > { %16342 = vst [vmem:[#allocation31_spill] sm:$0xff] %v11961_v5  ;;  %865 = vst.msk [vmem:[#allocation2 + $0x151] sm:$0xff] %vm782_vm2, %v11961_v5 }
 0x16c   : > { %1405 = vrot.lane.b32.xlu1 %v11610_v26, %s11158_s16  ;;  %16343 = vst [vmem:[#allocation32_spill] sm:$0xff] %v11973_v29  ;;  %863 = vst.msk [vmem:[#allocation2 + $0x139] sm:$0xff] %vm782_vm2, %v11973_v29  ;;  %v9131_v19 = vmul.f32 -1.442695, %v11976_v50  ;;  %v11985_v26 = vmul.f32 %v10302_v25, %v11884_v53 }
 0x16d   : > { %1664 = vrot.lane.b32.xlu0 %v11638_v44, %s11156_s12 }
 0x16e   : > { %16344 = vst [vmem:[#allocation33_spill] sm:$0xff] %v11985_v26  ;;  %v10304_v55 = vpop.eup %10303  ;;  %10311 = vpow2.f32 %v9131_v19  ;;  %866 = vst.msk [vmem:[#allocation2 + $0x159] sm:$0xff] %vm782_vm2, %v11985_v26 }
 0x16f   : > { %v11990_v30 = vmul.f32 %v10304_v55, %v11894_v24  ;;  %v10306_v36 = vpop.eup %10305 }
 0x170   : > { %1847 = vrot.lane.b32.xlu1 %v11622_v15, %s11157_s13  ;;  %v684_v24 = vadd.f32 1.0, %v10306_v36 }
 0x171   : > { %1407 = vrot.lane.b32.xlu0 %v1780_v4, %s11158_s16  ;;  %16345 = vst [vmem:[#allocation34_spill] sm:$0xff] %v11990_v30  ;;  %864 = vst.msk [vmem:[#allocation2 + $0x141] sm:$0xff] %vm782_vm2, %v11990_v30  ;;  %v1778_v4 = vld [vmem:[#allocation2 + $0x80] sm:$0xff] }
 0x172   : > { %v10308_v2 = vpop.eup %10307  ;;  %10313 = vrcp.f32 %v684_v24  ;;  %v12037_v29 = vld [vmem:[#allocation2 + $0x151] sm:$0xff] }
 0x173   : > { %v12033_v5 = vld [vmem:[#allocation2 + $0x139] sm:$0xff]  ;;  %1572 = vst.msk [vmem:[#allocation3 + $0x278] sm:$0xff] %vm782_vm2, %v12037_v29 }
 0x174   : > { %2039 = vrot.lane.b32.xlu1 %v945_v22, %s11158_s16  ;;  %v1970_v22 = vld [vmem:[#allocation2 + $0x81] sm:$0xff]  ;;  %v10310_v19 = vpop.eup %10309  ;;  %1570 = vst.msk [vmem:[#allocation3 + $0x248] sm:$0xff] %vm782_vm2, %v12033_v5 }
 0x175   : > { %1218 = vrot.lane.b32.xlu0 %v11638_v44, %s11157_s13  ;;  %v12000_v53 = vld [vmem:[#allocation2 + $0x152] sm:$0xff]  ;;  %v12002_v7 = vld [vmem:[#allocation2 + $0x15a] sm:$0xff]  ;;  %v685_v36 = vadd.f32 1.0, %v10310_v19 }
 0x176   : > { %2211 = vst.msk [vmem:[#allocation3 + $0x250] sm:$0xff] %vm782_vm2, %v12000_v53  ;;  %2212 = vst.msk [vmem:[#allocation3 + $0x268] sm:$0xff] %vm782_vm2, %v12002_v7  ;;  %v12031_v19 = vld [vmem:[#allocation2 + $0x138] sm:$0xff] }
 0x177   : > { %929 = vst.msk [vmem:[#allocation3 + $0x270] sm:$0xff] %vm782_vm2, %v12031_v19  ;;  %v900_v47 = vld [vmem:[#allocation2 + $0x158] sm:$0xff] }
 0x178   : > { %1401 = vrot.lane.b32.xlu1 %v11622_v15, %s11158_s16  ;;  %v12011_v25 = vld [vmem:[#allocation2 + $0x13a] sm:$0xff]  ;;  %v682_v15 = vadd.f32 1.0, %v10308_v2  ;;  %v12017_v55 = vld [vmem:[#allocation2 + $0x142] sm:$0xff]  ;;  %932 = vst.msk [vmem:[#allocation3 + $0x2b8] sm:$0xff] %vm782_vm2, %v900_v47 }
 0x179   : > { %1849 = vrot.lane.b32.xlu0 %v1778_v4, %s11157_s13  ;;  %2209 = vst.msk [vmem:[#allocation3 + $0x220] sm:$0xff] %vm782_vm2, %v12011_v25  ;;  %2210 = vst.msk [vmem:[#allocation3 + $0x238] sm:$0xff] %vm782_vm2, %v12017_v55  ;;  %v12035_v30 = vld [vmem:[#allocation2 + $0x140] sm:$0xff] }
 0x17a   : > { %v12004_v34 = vpop.permute.xlu1 %1835  ;;  %10315 = vrcp.f32 %v682_v15  ;;  %930 = vst.msk [vmem:[#allocation3 + $0x288] sm:$0xff] %vm782_vm2, %v12035_v30  ;;  %v951_v47 = vld [vmem:[#allocation2 + $0xc1] sm:$0xff] }
 0x17b   : > { %v1008_v44 = vpop.permute.xlu0 %1007  ;;  %10317 = vrcp.f32 %v685_v36  ;;  %v12046_v36 = vld [vmem:[#allocation2 + $0x141] sm:$0xff] }
 0x17c   : > { %1100 = vst.msk [vmem:[#allocation3 + $0x60] sm:$0xff] %vm1095_vm4, %v1008_v44  ;;  %1025 = vrot.lane.b32.xlu1 %v1972_v17, %s11156_s12  ;;  %v10312_v44 = vpop.eup %10311 }
 0x17d   : > { %2041 = vrot.lane.b32.xlu0 %v1970_v22, %s11158_s16  ;;  %v683_v2 = vadd.f32 1.0, %v10312_v44  ;;  %v12052_v44 = vld [vmem:[#allocation2 + $0x159] sm:$0xff]  ;;  %1571 = vst.msk [vmem:[#allocation3 + $0x260] sm:$0xff] %vm782_vm2, %v12046_v36 }
 0x17e   : > { %v12021_v26 = vpop.permute.xlu1 %2027  ;;  %1573 = vst.msk [vmem:[#allocation3 + $0x290] sm:$0xff] %vm782_vm2, %v12052_v44 }
 0x17f   : > { %v12023_v24 = vpop.permute.xlu0 %1837  ;;  %10319 = vrcp.f32 %v683_v2  ;;  %v899_v2 = vld [vmem:[#allocation2 + $0x150] sm:$0xff] }
 0x180   : > { %1662 = vrot.lane.b32.xlu1 %v11636_v41, %s11156_s12  ;;  %931 = vst.msk [vmem:[#allocation3 + $0x2a0] sm:$0xff] %vm782_vm2, %v899_v2 }
 0x181   : > { %1660 = vrot.lane.b32.xlu0 %v11670_v62, %s11156_s12 }
 0x182   : > { %v12029_v17 = vpop.permute.xlu1 %1389 }
 0x183   : > { %v2030_v15 = vpop.permute.xlu0 %2029 }
 0x184   : > { %1216 = vrot.lane.b32.xlu1 %v11636_v41, %s11157_s13  ;;  %v10314_v41 = vpop.eup %10313 }
 0x185   : > { %1403 = vrot.lane.b32.xlu0 %v1778_v4, %s11158_s16  ;;  %v12066_v57 = vmul.f32 %v10314_v41, %v11953_v48  ;;  %v1784_v41 = vld [vmem:[#allocation2 + $0xc8] sm:$0xff] }
 0x186   : > { %v1004_v4 = vpop.permute.xlu1 %1003 }
 0x187   : > { %v1649_v37 = vpop.permute.xlu0 %1648  ;;  %1098 = vst.msk [vmem:[#allocation3 + $0x30] sm:$0xff] %vm1095_vm4, %v1004_v4  ;;  %16346 = vst [vmem:[#allocation35_spill] sm:$0xff] %v12066_v57  ;;  %v10316_v40 = vpop.eup %10315  ;;  %v12083_v4 = vld [vmem:[#allocation2 + $0xa9] sm:$0xff] }
 0x188   : > { %1741 = vst.msk [vmem:[#allocation3 + $0x50] sm:$0xff] %vm1095_vm4, %v1649_v37  ;;  %1021 = vrot.lane.b32.xlu1 %v1970_v22, %s11156_s12  ;;  %v12072_v37 = vmul.f32 %v10316_v40, %v11958_v13  ;;  %v10318_v2 = vpop.eup %10317 }
 0x189   : > { %1214 = vrot.lane.b32.xlu0 %v11670_v62, %s11157_s13  ;;  %869 = vst.msk [vmem:[#allocation2 + $0x181] sm:$0xff] %vm782_vm2, %v12066_v57  ;;  %v12080_v62 = vmul.f32 %v10318_v2, %v11964_v11  ;;  %v2221_v57 = vld [vmem:[#allocation3 + $0x10] sm:$0xff] }
 0x18a   : > { %v1386_v43 = vpop.permute.xlu1 %1385  ;;  %16347 = vst [vmem:[#allocation36_spill] sm:$0xff] %v12072_v37  ;;  %867 = vst.msk [vmem:[#allocation2 + $0x169] sm:$0xff] %vm782_vm2, %v12072_v37 }
 0x18b   : > { %v1392_v6 = vpop.permute.xlu0 %1391  ;;  %1482 = vst.msk [vmem:[#allocation3] sm:$0xff] %vm1481_vm6, %v1386_v43  ;;  %16348 = vst [vmem:[#allocation37_spill] sm:$0xff] %v12080_v62 }
 0x18c   : > { %1658 = vrot.lane.b32.xlu1 %v11659_v27, %s11156_s12  ;;  %v10320_v43 = vpop.eup %10319  ;;  %870 = vst.msk [vmem:[#allocation2 + $0x189] sm:$0xff] %vm782_vm2, %v12080_v62 }
 0x18d   : > { %1031 = vrot.lane.b32.xlu0 %v951_v47, %s11156_s12  ;;  %v12088_v40 = vmul.f32 %v10320_v43, %v11976_v50  ;;  %v1783_v50 = vld [vmem:[#allocation2 + $0xc0] sm:$0xff] }
 0x18e   : > { %v1010_v22 = vpop.permute.xlu1 %1009 }
 0x18f   : > { %v1203_v48 = vpop.permute.xlu0 %1202  ;;  %1101 = vst.msk [vmem:[#allocation3 + $0x78] sm:$0xff] %vm1095_vm4, %v1010_v22  ;;  %16349 = vst [vmem:[#allocation38_spill] sm:$0xff] %v12088_v40  ;;  %v1976_v22 = vld [vmem:[#allocation2 + $0xc9] sm:$0xff] }
 0x190   : > { %1294 = vst.msk [vmem:[#allocation3 + $0x78] sm:$0xff] %vm1288_vm5, %v1203_v48  ;;  %1212 = vrot.lane.b32.xlu1 %v11659_v27, %s11157_s13 }
 0x191   : > { %1027 = vrot.lane.b32.xlu0 %v12083_v4, %s11156_s12  ;;  %868 = vst.msk [vmem:[#allocation2 + $0x171] sm:$0xff] %vm782_vm2, %v12088_v40  ;;  %v2224_v40 = vld [vmem:[#allocation3 + $0x28] sm:$0xff] }
 0x192   : > { %v1647_v11 = vpop.permute.xlu1 %1646  ;;  %v2219_v12 = vld [vmem:[#allocation3] sm:$0xff] }
 0x193   : > { %v1645_v13 = vpop.permute.xlu0 %1644  ;;  %1740 = vst.msk [vmem:[#allocation3 + $0x38] sm:$0xff] %vm1095_vm4, %v1647_v11  ;;  %v12104_v43 = vld [vmem:[#allocation2 + $0x182] sm:$0xff]  ;;  %v12106_v48 = vld [vmem:[#allocation2 + $0x18a] sm:$0xff] }
 0x194   : > { %1739 = vst.msk [vmem:[#allocation3 + $0x20] sm:$0xff] %vm1095_vm4, %v1645_v13  ;;  %1859 = vrot.lane.b32.xlu1 %v1783_v50, %s11157_s13 }
 0x195   : > { %1932 = vst.msk [vmem:[#allocation3 + $0x20] sm:$0xff] %vm1288_vm5, %v12023_v24  ;;  %1861 = vrot.lane.b32.xlu0 %v1784_v41, %s11157_s13 }
 0x196   : > { %2124 = vst.msk [vmem:[#allocation3 + $0x20] sm:$0xff] %vm1481_vm6, %v2030_v15  ;;  %v1201_v2 = vpop.permute.xlu1 %1200 }
 0x197   : > { %v1388_v27 = vpop.permute.xlu0 %1387  ;;  %1293 = vst.msk [vmem:[#allocation3 + $0x60] sm:$0xff] %vm1288_vm5, %v1201_v2  ;;  %v12137_v2 = vld [vmem:[#allocation2 + $0x168] sm:$0xff] }
 0x198   : > { %1483 = vst.msk [vmem:[#allocation3 + $0x18] sm:$0xff] %vm1481_vm6, %v1388_v27  ;;  %2051 = vrot.lane.b32.xlu1 %v951_v47, %s11158_s16  ;;  %v12116_v24 = vld [vmem:[#allocation2 + $0x16a] sm:$0xff]  ;;  %v12120_v11 = vld [vmem:[#allocation2 + $0x172] sm:$0xff] }
 0x199   : > { %2215 = vst.msk [vmem:[#allocation3 + $0x2b0] sm:$0xff] %vm782_vm2, %v12104_v43  ;;  %2216 = vst.msk [vmem:[#allocation3 + $0x2c8] sm:$0xff] %vm782_vm2, %v12106_v48  ;;  %2053 = vrot.lane.b32.xlu0 %v1976_v22, %s11158_s16 }
 0x19a   : > { %2213 = vst.msk [vmem:[#allocation3 + $0x280] sm:$0xff] %vm782_vm2, %v12116_v24  ;;  %v1006_v13 = vpop.permute.xlu1 %1005  ;;  %2214 = vst.msk [vmem:[#allocation3 + $0x298] sm:$0xff] %vm782_vm2, %v12120_v11 }
 0x19b   : > { %v1199_v15 = vpop.permute.xlu0 %1198  ;;  %1099 = vst.msk [vmem:[#allocation3 + $0x48] sm:$0xff] %vm1095_vm4, %v1006_v13  ;;  %v12147_v13 = vld [vmem:[#allocation2 + $0x181] sm:$0xff] }
 0x19c   : > { %1292 = vst.msk [vmem:[#allocation3 + $0x48] sm:$0xff] %vm1288_vm5, %v1199_v15  ;;  %1413 = vrot.lane.b32.xlu1 %v1783_v50, %s11158_s16  ;;  %v12139_v15 = vld [vmem:[#allocation2 + $0x169] sm:$0xff] }
 0x19d   : > { %1672 = vrot.lane.b32.xlu0 %v11723_v63, %s11156_s12  ;;  %1485 = vst.msk [vmem:[#allocation3 + $0x48] sm:$0xff] %vm1481_vm6, %v1392_v6  ;;  %v12141_v50 = vld [vmem:[#allocation2 + $0x170] sm:$0xff] }
 0x19e   : > { %v1643_v27 = vpop.permute.xlu1 %1642  ;;  %v12145_v6 = vld [vmem:[#allocation2 + $0x171] sm:$0xff]  ;;  %1574 = vst.msk [vmem:[#allocation3 + $0x2a8] sm:$0xff] %vm782_vm2, %v12139_v15  ;;  %933 = vst.msk [vmem:[#allocation3 + $0x2d0] sm:$0xff] %vm782_vm2, %v12137_v2 }
 0x19f   : > { %v1016_v47 = vpop.permute.xlu0 %1015  ;;  %1738 = vst.msk [vmem:[#allocation3 + $0x8] sm:$0xff] %vm1095_vm4, %v1643_v27  ;;  %v2222_v62 = vld [vmem:[#allocation3 + $0x18] sm:$0xff] }
 0x1a0   : > { %1104 = vst.msk [vmem:[#allocation3 + $0xc0] sm:$0xff] %vm1095_vm4, %v1016_v47  ;;  %1855 = vrot.lane.b32.xlu1 %v11702_v32, %s11157_s13  ;;  %v2315_v59 = vpack.c.bf16 %v2222_v62, %v2219_v12  ;;  %v2227_v12 = vld [vmem:[#allocation3 + $0x40] sm:$0xff]  ;;  %v2230_v62 = vld [vmem:[#allocation3 + $0x58] sm:$0xff] }
 0x1a1   : > { %1931 = vst.msk [vmem:[#allocation3 + $0x8] sm:$0xff] %vm1288_vm5, %v12004_v34  ;;  %1415 = vrot.lane.b32.xlu0 %v1784_v41, %s11158_s16 }
 0x1a2   : > { %2123 = vst.msk [vmem:[#allocation3 + $0x8] sm:$0xff] %vm1481_vm6, %v12021_v26  ;;  %v1197_v41 = vpop.permute.xlu1 %1196  ;;  %v12161_v26 = vld [vmem:[#allocation2 + $0x189] sm:$0xff] }
 0x1a3   : > { %934 = vst.msk [vmem:[#allocation3 + $0x2e8] sm:$0xff] %vm782_vm2, %v12141_v50  ;;  %v1012_v34 = vpop.permute.xlu0 %1011  ;;  %1575 = vst.msk [vmem:[#allocation3 + $0x2c0] sm:$0xff] %vm782_vm2, %v12145_v6 }
 0x1a4   : > { %1576 = vst.msk [vmem:[#allocation3 + $0x2d8] sm:$0xff] %vm782_vm2, %v12147_v13  ;;  %2047 = vrot.lane.b32.xlu1 %v12083_v4, %s11158_s16  ;;  %1577 = vst.msk [vmem:[#allocation3 + $0x2f0] sm:$0xff] %vm782_vm2, %v12161_v26 }
 0x1a5   : > { %1102 = vst.msk [vmem:[#allocation3 + $0x90] sm:$0xff] %vm1095_vm4, %v1012_v34  ;;  %1226 = vrot.lane.b32.xlu0 %v11723_v63, %s11157_s13  ;;  %v1782_v34 = vld [vmem:[#allocation2 + $0xb0] sm:$0xff] }
 0x1a6   : > { %1291 = vst.msk [vmem:[#allocation3 + $0x30] sm:$0xff] %vm1288_vm5, %v1197_v41  ;;  %v12173_v27 = vpop.permute.xlu1 %1843  ;;  %v2223_v41 = vld [vmem:[#allocation3 + $0x20] sm:$0xff] }
 0x1a7   : > { %1484 = vst.msk [vmem:[#allocation3 + $0x30] sm:$0xff] %vm1481_vm6, %v12029_v17  ;;  %v12171_v47 = vpop.permute.xlu0 %1845 }
 0x1a8   : > { %1409 = vrot.lane.b32.xlu1 %v11702_v32, %s11158_s16  ;;  %v2317_v32 = vpack.c.bf16 %v2224_v40, %v2221_v57  ;;  %v2233_v57 = vld [vmem:[#allocation3 + $0x70] sm:$0xff] }
 0x1a9   : > { %1857 = vrot.lane.b32.xlu0 %v1782_v34, %s11157_s13  ;;  %v2220_v17 = vld [vmem:[#allocation3 + $0x8] sm:$0xff] }
 0x1aa   : > { %v2316_v63 = vpack.c.bf16 %v2223_v41, %v2220_v17  ;;  %v12180_v37 = vpop.permute.xlu1 %2035 }
 0x1ab   : > { %v12178_v4 = vpop.permute.xlu0 %2037 }
 0x1ac   : > { %2594 = vmatprep.mubr.bf16.mxu0 %v2316_v63  ;;  %1033 = vrot.lane.b32.xlu1 %v1976_v22, %s11156_s12  ;;  %v2320_v22 = vpack.c.bf16 %v2230_v62, %v2227_v12  ;;  %v2245_v12 = vld [vmem:[#allocation3 + $0xd0] sm:$0xff]  ;;  %v2248_v62 = vld [vmem:[#allocation3 + $0xe8] sm:$0xff] }
 0x1ad   : > { %2049 = vrot.lane.b32.xlu0 %v11749_v8, %s11158_s16  ;;  %2595 = vmatmul.mubr.bf16.vlgmr.msra.gmra.mxu0 %v2315_v59  ;;  %v2236_v59 = vld [vmem:[#allocation3 + $0x88] sm:$0xff] }
 0x1ae   : > { %9954 = vmatpush3.bf16.msra.mxu0 %v11777_v39  ;;  %9957 = vmatprep.mubr.msk.bf16.mxu0 %vm782_vm2, %v2317_v32  ;;  %v12190_v41 = vpop.permute.xlu1 %1397  ;;  %v2323_v63 = vpack.c.bf16 %v2236_v59, %v2233_v57  ;;  %v955_v59 = vld [vmem:[#allocation2 + $0xf1] sm:$0xff] }
 0x1af   : > { %v1657_v17 = vpop.permute.xlu0 %1656  ;;  %9955 = vmatprep.subr.bf16.mxu0 %v10156_v42 }
 0x1b0   : > { %1745 = vst.msk [vmem:[#allocation3 + $0xb0] sm:$0xff] %vm1095_vm4, %v1657_v17  ;;  %1670 = vrot.lane.b32.xlu1 %v11721_v28, %s11156_s12 }
 0x1b1   : > { %1668 = vrot.lane.b32.xlu0 %v11751_v10, %s11156_s12 }
 0x1b2   : > { %9956 = vmatpush3.bf16.msra.mxu0 %v10156_v42  ;;  %v1840_v40 = vpop.permute.xlu1 %1839  ;;  %v2239_v42 = vld [vmem:[#allocation3 + $0xa0] sm:$0xff] }
 0x1b3   : > { %v12197_v39 = vpop.permute.xlu0 %1399  ;;  %1933 = vst.msk [vmem:[#allocation3 + $0x38] sm:$0xff] %vm1288_vm5, %v1840_v40 }
 0x1b4   : > { %1224 = vrot.lane.b32.xlu1 %v11721_v28, %s11157_s13 }
 0x1b5   : > { %1411 = vrot.lane.b32.xlu0 %v1782_v34, %s11158_s16  ;;  %9958 = vmatmul.mubr.msk.bf16.vlgmr.msra.gmra.mxu0 %vm782_vm2, %v2320_v22  ;;  %v2242_v34 = vld [vmem:[#allocation3 + $0xb8] sm:$0xff] }
 0x1b6   : > { %9961 = vmatprep.mubr.msk.bf16.mxu0 %vm782_vm2, %v2323_v63  ;;  %v2032_v17 = vpop.permute.xlu1 %2031  ;;  %v2326_v40 = vpack.c.bf16 %v2242_v34, %v2239_v42  ;;  %v12219_v63 = vld [vmem:[#allocation2 + $0xd9] sm:$0xff]  ;;  %v2254_v42 = vld [vmem:[#allocation3 + $0x118] sm:$0xff] }
 0x1b7   : > { %v1211_v32 = vpop.permute.xlu0 %1210  ;;  %2125 = vst.msk [vmem:[#allocation3 + $0x38] sm:$0xff] %vm1481_vm6, %v2032_v17  ;;  %v2251_v17 = vld [vmem:[#allocation3 + $0x100] sm:$0xff]  ;;  %v2257_v34 = vld [vmem:[#allocation3 + $0x130] sm:$0xff] }
 0x1b8   : > { %1029 = vrot.lane.b32.xlu1 %v11749_v8, %s11156_s12 }
 0x1b9   : > { %1222 = vrot.lane.b32.xlu0 %v11751_v10, %s11157_s13  ;;  %v2329_v10 = vpack.c.bf16 %v2248_v62, %v2245_v12  ;;  %v2260_v12 = vld [vmem:[#allocation3 + $0x148] sm:$0xff] }
 0x1ba   : > { %v1394_v57 = vpop.permute.xlu1 %1393 }
 0x1bb   : > { %v1842_v28 = vpop.permute.xlu0 %1841  ;;  %1486 = vst.msk [vmem:[#allocation3 + $0x60] sm:$0xff] %vm1481_vm6, %v1394_v57  ;;  %v2332_v57 = vpack.c.bf16 %v2254_v42, %v2251_v17  ;;  %v2228_v17 = vld [vmem:[#allocation3 + $0x48] sm:$0xff]  ;;  %v2263_v42 = vld [vmem:[#allocation3 + $0x160] sm:$0xff] }
 0x1bc   : > { %1934 = vst.msk [vmem:[#allocation3 + $0x50] sm:$0xff] %vm1288_vm5, %v1842_v28  ;;  %1666 = vrot.lane.b32.xlu1 %v11740_v60, %s11156_s12 }
 0x1bd   : > { %1039 = vrot.lane.b32.xlu0 %v955_v59, %s11156_s12  ;;  %9962 = vmatmul.mubr.msk.bf16.gmra.mxu0 %vm782_vm2, %v2326_v40 }
 0x1be   : > { %9965 = vmatprep.mubr.msk.bf16.mxu0 %vm782_vm2, %v2329_v10  ;;  %v1018_v22 = vpop.permute.xlu1 %1017 }
 0x1bf   : > { %v2034_v8 = vpop.permute.xlu0 %2033  ;;  %1105 = vst.msk [vmem:[#allocation3 + $0xd8] sm:$0xff] %vm1095_vm4, %v1018_v22 }
 0x1c0   : > { %2126 = vst.msk [vmem:[#allocation3 + $0x50] sm:$0xff] %vm1481_vm6, %v2034_v8  ;;  %1220 = vrot.lane.b32.xlu1 %v11740_v60, %s11157_s13  ;;  %v2335_v60 = vpack.c.bf16 %v2260_v12, %v2257_v34  ;;  %v2226_v8 = vld [vmem:[#allocation3 + $0x38] sm:$0xff]  ;;  %v2269_v12 = vld [vmem:[#allocation3 + $0x190] sm:$0xff] }
 0x1c1   : > { %1298 = vst.msk [vmem:[#allocation3 + $0xd8] sm:$0xff] %vm1288_vm5, %v1211_v32  ;;  %1035 = vrot.lane.b32.xlu0 %v12219_v63, %s11156_s12  ;;  %v2225_v32 = vld [vmem:[#allocation3 + $0x30] sm:$0xff]  ;;  %v2266_v34 = vld [vmem:[#allocation3 + $0x178] sm:$0xff] }
 0x1c2   : > { %v1655_v28 = vpop.permute.xlu1 %1654 }
 0x1c3   : > { %v1653_v62 = vpop.permute.xlu0 %1652  ;;  %1744 = vst.msk [vmem:[#allocation3 + $0x98] sm:$0xff] %vm1095_vm4, %v1655_v28 }
 0x1c4   : > { %1743 = vst.msk [vmem:[#allocation3 + $0x80] sm:$0xff] %vm1095_vm4, %v1653_v62  ;;  %1867 = vrot.lane.b32.xlu1 %v11764_v45, %s11157_s13  ;;  %v2272_v62 = vld [vmem:[#allocation3 + $0x1a8] sm:$0xff] }
 0x1c5   : > { %1936 = vst.msk [vmem:[#allocation3 + $0x80] sm:$0xff] %vm1288_vm5, %v12171_v47  ;;  %1869 = vrot.lane.b32.xlu0 %v11790_v21, %s11157_s13  ;;  %9966 = vmatmul.mubr.msk.bf16.gmra.mxu0 %vm782_vm2, %v2332_v57 }
 0x1c6   : > { %2128 = vst.msk [vmem:[#allocation3 + $0x80] sm:$0xff] %vm1481_vm6, %v12178_v4  ;;  %9969 = vmatprep.mubr.msk.bf16.mxu0 %vm782_vm2, %v2335_v60  ;;  %v1209_v10 = vpop.permute.xlu1 %1208  ;;  %v2318_v4 = vpack.c.bf16 %v2228_v17, %v2225_v32  ;;  %v2338_v60 = vpack.c.bf16 %v2266_v34, %v2263_v42  ;;  %v2290_v42 = vld [vmem:[#allocation3 + $0x238] sm:$0xff]  ;;  %v2293_v34 = vld [vmem:[#allocation3 + $0x250] sm:$0xff] }
 0x1c7   : > { %v1396_v40 = vpop.permute.xlu0 %1395  ;;  %v2229_v22 = vld [vmem:[#allocation3 + $0x50] sm:$0xff]  ;;  %1297 = vst.msk [vmem:[#allocation3 + $0xc0] sm:$0xff] %vm1288_vm5, %v1209_v10  ;;  %v2275_v10 = vld [vmem:[#allocation3 + $0x1c0] sm:$0xff] }
 0x1c8   : > { %1487 = vst.msk [vmem:[#allocation3 + $0x78] sm:$0xff] %vm1481_vm6, %v1396_v40  ;;  %v2319_v47 = vpack.c.bf16 %v2229_v22, %v2226_v8  ;;  %2059 = vrot.lane.b32.xlu1 %v955_v59, %s11158_s16  ;;  %v2341_v59 = vpack.c.bf16 %v2272_v62, %v2269_v12  ;;  %v2278_v8 = vld [vmem:[#allocation3 + $0x1d8] sm:$0xff]  ;;  %v2281_v22 = vld [vmem:[#allocation3 + $0x1f0] sm:$0xff]  ;;  %v2296_v12 = vld [vmem:[#allocation3 + $0x268] sm:$0xff] }
 0x1c9   : > { %2061 = vrot.lane.b32.xlu0 %v11793_v20, %s11158_s16 }
 0x1ca   : > { %2602 = vmatprep.mubr.bf16.mxu1 %v2319_v47  ;;  %v1014_v57 = vpop.permute.xlu1 %1013  ;;  %v2284_v47 = vld [vmem:[#allocation3 + $0x208] sm:$0xff] }
 0x1cb   : > { %v1207_v28 = vpop.permute.xlu0 %1206  ;;  %2603 = vmatmul.mubr.bf16.vlgmr.msra.gmra.mxu1 %v2318_v4  ;;  %1103 = vst.msk [vmem:[#allocation3 + $0xa8] sm:$0xff] %vm1095_vm4, %v1014_v57  ;;  %v2347_v4 = vpack.c.bf16 %v2284_v47, %v2281_v22  ;;  %v2302_v22 = vld [vmem:[#allocation3 + $0x298] sm:$0xff]  ;;  %v2305_v47 = vld [vmem:[#allocation3 + $0x2b0] sm:$0xff] }
 0x1cc   : > { %1296 = vst.msk [vmem:[#allocation3 + $0xa8] sm:$0xff] %vm1288_vm5, %v1207_v28  ;;  %1421 = vrot.lane.b32.xlu1 %v11764_v45, %s11158_s16  ;;  %v2344_v45 = vpack.c.bf16 %v2278_v8, %v2275_v10  ;;  %v2299_v8 = vld [vmem:[#allocation3 + $0x280] sm:$0xff] }
 0x1cd   : > { %1680 = vrot.lane.b32.xlu0 %v11772_v14, %s11156_s12  ;;  %1489 = vst.msk [vmem:[#allocation3 + $0xa8] sm:$0xff] %vm1481_vm6, %v12197_v39  ;;  %9970 = vmatmul.mubr.msk.bf16.gmra.mxu0 %vm782_vm2, %v2338_v60 }
 0x1ce   : > { %9973 = vmatprep.mubr.msk.bf16.mxu0 %vm782_vm2, %v2341_v59  ;;  %v1651_v40 = vpop.permute.xlu1 %1650  ;;  %v2231_v59 = vld [vmem:[#allocation3 + $0x60] sm:$0xff] }
 0x1cf   : > { %v1024_v32 = vpop.permute.xlu0 %1023  ;;  %1742 = vst.msk [vmem:[#allocation3 + $0x68] sm:$0xff] %vm1095_vm4, %v1651_v40 }
 0x1d0   : > { %1108 = vst.msk [vmem:[#allocation3 + $0x120] sm:$0xff] %vm1095_vm4, %v1024_v32  ;;  %1863 = vrot.lane.b32.xlu1 %v11766_v9, %s11157_s13  ;;  %v2353_v32 = vpack.c.bf16 %v2296_v12, %v2293_v34 }
 0x1d1   : > { %1935 = vst.msk [vmem:[#allocation3 + $0x68] sm:$0xff] %vm1288_vm5, %v12173_v27  ;;  %1423 = vrot.lane.b32.xlu0 %v11790_v21, %s11158_s16  ;;  %v2287_v27 = vld [vmem:[#allocation3 + $0x220] sm:$0xff] }
 0x1d2   : > { %2127 = vst.msk [vmem:[#allocation3 + $0x68] sm:$0xff] %vm1481_vm6, %v12180_v37  ;;  %v1205_v17 = vpop.permute.xlu1 %1204  ;;  %v2350_v28 = vpack.c.bf16 %v2290_v42, %v2287_v27 }
 0x1d3   : > { %v1020_v39 = vpop.permute.xlu0 %1019  ;;  %1295 = vst.msk [vmem:[#allocation3 + $0x90] sm:$0xff] %vm1288_vm5, %v1205_v17 }
 0x1d4   : > { %1106 = vst.msk [vmem:[#allocation3 + $0xf0] sm:$0xff] %vm1095_vm4, %v1020_v39  ;;  %2055 = vrot.lane.b32.xlu1 %v12219_v63, %s11158_s16  ;;  %v2234_v63 = vld [vmem:[#allocation3 + $0x78] sm:$0xff] }
 0x1d5   : > { %1488 = vst.msk [vmem:[#allocation3 + $0x90] sm:$0xff] %vm1481_vm6, %v12190_v41  ;;  %1234 = vrot.lane.b32.xlu0 %v11772_v14, %s11157_s13  ;;  %9974 = vmatmul.mubr.msk.bf16.gmra.mxu0 %vm782_vm2, %v2344_v45  ;;  %v2235_v41 = vld [vmem:[#allocation3 + $0x80] sm:$0xff]  ;;  %v2321_v40 = vpack.c.bf16 %v2234_v63, %v2231_v59  ;;  %v2308_v45 = vld [vmem:[#allocation3 + $0x2c8] sm:$0xff] }
 0x1d6   : > { %v12274_v37 = vpop.permute.xlu1 %1851  ;;  %9977 = vmatprep.mubr.msk.bf16.mxu0 %vm782_vm2, %v2347_v4  ;;  %v2359_v4 = vpack.c.bf16 %v2308_v45, %v2305_v47 }
 0x1d7   : > { %v12272_v21 = vpop.permute.xlu0 %1853 }
 0x1d8   : > { %1417 = vrot.lane.b32.xlu1 %v11766_v9, %s11158_s16 }
 0x1d9   : > { %1865 = vrot.lane.b32.xlu0 %v11802_v33, %s11157_s13  ;;  %v2232_v14 = vld [vmem:[#allocation3 + $0x68] sm:$0xff] }
 0x1da   : > { %v2322_v62 = vpack.c.bf16 %v2235_v41, %v2232_v14  ;;  %v12281_v60 = vpop.permute.xlu1 %2043 }
 0x1db   : > { %v2046_v57 = vpop.permute.xlu0 %2045 }
 0x1dc   : > { %2610 = vmatprep.mubr.bf16.mxu1 %v2322_v62  ;;  %1041 = vrot.lane.b32.xlu1 %v11793_v20, %s11156_s12  ;;  %v2356_v20 = vpack.c.bf16 %v2302_v22, %v2299_v8  ;;  %v2237_v41 = vld [vmem:[#allocation3 + $0x90] sm:$0xff] }
 0x1dd   : > { %2057 = vrot.lane.b32.xlu0 %v11804_v61, %s11158_s16  ;;  %2611 = vmatmul.mubr.bf16.gmra.mxu1 %v2321_v40  ;;  %v2240_v40 = vld [vmem:[#allocation3 + $0xa8] sm:$0xff] }
 0x1de   : > { %9978 = vmatmul.mubr.msk.bf16.gmra.mxu0 %vm782_vm2, %v2350_v28  ;;  %v12288_v10 = vpop.permute.xlu1 %1405 }
 0x1df   : > { %v1665_v9 = vpop.permute.xlu0 %1664  ;;  %9981 = vmatprep.mubr.msk.bf16.mxu0 %vm782_vm2, %v2353_v32 }
 0x1e0   : > { %1749 = vst.msk [vmem:[#allocation3 + $0x110] sm:$0xff] %vm1095_vm4, %v1665_v9  ;;  %1678 = vrot.lane.b32.xlu1 %v11770_v35, %s11156_s12 }
 0x1e1   : > { %1676 = vrot.lane.b32.xlu0 %v11795_v56, %s11156_s12 }
 0x1e2   : > { %v1848_v17 = vpop.permute.xlu1 %1847 }
 0x1e3   : > { %v1408_v39 = vpop.permute.xlu0 %1407  ;;  %1937 = vst.msk [vmem:[#allocation3 + $0x98] sm:$0xff] %vm1288_vm5, %v1848_v17 }
 0x1e4   : > { %1232 = vrot.lane.b32.xlu1 %v11770_v35, %s11157_s13  ;;  %v1594_v35 = vld [vmem:[#allocation2 + $0xda] sm:$0xff] }
 0x1e5   : > { %1419 = vrot.lane.b32.xlu0 %v11802_v33, %s11158_s16 }
 0x1e6   : > { %9982 = vmatmul.mubr.msk.bf16.gmra.mxu0 %vm782_vm2, %v2356_v20  ;;  %v2040_v42 = vpop.permute.xlu1 %2039 }
 0x1e7   : > { %v1219_v27 = vpop.permute.xlu0 %1218  ;;  %9985 = vmatprep.mubr.msk.bf16.mxu0 %vm782_vm2, %v2359_v4  ;;  %2129 = vst.msk [vmem:[#allocation3 + $0x98] sm:$0xff] %vm1481_vm6, %v2040_v42 }
 0x1e8   : > { %1037 = vrot.lane.b32.xlu1 %v11804_v61, %s11156_s12 }
 0x1e9   : > { %1230 = vrot.lane.b32.xlu0 %v11795_v56, %s11157_s13 }
 0x1ea   : > { %v1402_v12 = vpop.permute.xlu1 %1401 }
 0x1eb   : > { %v1850_v34 = vpop.permute.xlu0 %1849  ;;  %1490 = vst.msk [vmem:[#allocation3 + $0xc0] sm:$0xff] %vm1481_vm6, %v1402_v12 }
 0x1ec   : > { %1938 = vst.msk [vmem:[#allocation3 + $0xb0] sm:$0xff] %vm1288_vm5, %v1850_v34  ;;  %1674 = vrot.lane.b32.xlu1 %v1594_v35, %s11156_s12 }
 0x1ed   : > { %1429 = vrot.lane.b32.xlu0 %v11905_v3, %s11158_s16 }
 0x1ee   : > { %v1026_v14 = vpop.permute.xlu1 %1025  ;;  %v2238_v28 = vld [vmem:[#allocation3 + $0x98] sm:$0xff] }
 0x1ef   : > { %v2042_v33 = vpop.permute.xlu0 %2041  ;;  %1109 = vst.msk [vmem:[#allocation3 + $0x138] sm:$0xff] %vm1095_vm4, %v1026_v14 }
 0x1f0   : > { %2130 = vst.msk [vmem:[#allocation3 + $0xb0] sm:$0xff] %vm1481_vm6, %v2042_v33  ;;  %1228 = vrot.lane.b32.xlu1 %v1594_v35, %s11157_s13 }
 0x1f1   : > { %1302 = vst.msk [vmem:[#allocation3 + $0x138] sm:$0xff] %vm1288_vm5, %v1219_v27  ;;  %1047 = vrot.lane.b32.xlu0 %v11907_v38, %s11156_s12 }
 0x1f2   : > { %v1663_v61 = vpop.permute.xlu1 %1662  ;;  %v2243_v17 = vld [vmem:[#allocation3 + $0xc0] sm:$0xff] }
 0x1f3   : > { %v1661_v56 = vpop.permute.xlu0 %1660  ;;  %1748 = vst.msk [vmem:[#allocation3 + $0xf8] sm:$0xff] %vm1095_vm4, %v1663_v61 }
 0x1f4   : > { %1747 = vst.msk [vmem:[#allocation3 + $0xe0] sm:$0xff] %vm1095_vm4, %v1661_v56  ;;  %1875 = vrot.lane.b32.xlu1 %v11905_v3, %s11157_s13  ;;  %v2324_v3 = vpack.c.bf16 %v2240_v40, %v2237_v41 }
 0x1f5   : > { %1940 = vst.msk [vmem:[#allocation3 + $0xe0] sm:$0xff] %vm1288_vm5, %v12272_v21  ;;  %1043 = vrot.lane.b32.xlu0 %v11909_v23, %s11156_s12 }
 0x1f6   : > { %2132 = vst.msk [vmem:[#allocation3 + $0xe0] sm:$0xff] %vm1481_vm6, %v2046_v57  ;;  %v1217_v62 = vpop.permute.xlu1 %1216 }
 0x1f7   : > { %v1404_v63 = vpop.permute.xlu0 %1403  ;;  %v2241_v59 = vld [vmem:[#allocation3 + $0xb0] sm:$0xff]  ;;  %1301 = vst.msk [vmem:[#allocation3 + $0x120] sm:$0xff] %vm1288_vm5, %v1217_v62 }
 0x1f8   : > { %1491 = vst.msk [vmem:[#allocation3 + $0xd8] sm:$0xff] %vm1481_vm6, %v1404_v63  ;;  %v2325_v32 = vpack.c.bf16 %v2241_v59, %v2238_v28  ;;  %2067 = vrot.lane.b32.xlu1 %v11907_v38, %s11158_s16 }
 0x1f9   : > { %1877 = vrot.lane.b32.xlu0 %v11911_v49, %s11157_s13 }
 0x1fa   : > { %2618 = vmatprep.mubr.bf16.mxu1 %v2325_v32  ;;  %v1022_v57 = vpop.permute.xlu1 %1021 }
 0x1fb   : > { %v1215_v21 = vpop.permute.xlu0 %1214  ;;  %2619 = vmatmul.mubr.bf16.gmra.mxu1 %v2324_v3  ;;  %1107 = vst.msk [vmem:[#allocation3 + $0x108] sm:$0xff] %vm1095_vm4, %v1022_v57 }
 0x1fc   : > { %1300 = vst.msk [vmem:[#allocation3 + $0x108] sm:$0xff] %vm1288_vm5, %v1215_v21  ;;  %1871 = vrot.lane.b32.xlu1 %v11915_v18, %s11157_s13 }
 0x1fd   : > { %2069 = vrot.lane.b32.xlu0 %v11913_v0, %s11158_s16  ;;  %1493 = vst.msk [vmem:[#allocation3 + $0x108] sm:$0xff] %vm1481_vm6, %v1408_v39  ;;  %v2247_v47 = vld [vmem:[#allocation3 + $0xe0] sm:$0xff] }
 0x1fe   : > { %v1659_v8 = vpop.permute.xlu1 %1658 }
 0x1ff   : > { %v1032_v9 = vpop.permute.xlu0 %1031  ;;  %1746 = vst.msk [vmem:[#allocation3 + $0xc8] sm:$0xff] %vm1095_vm4, %v1659_v8  ;;  %v2246_v45 = vld [vmem:[#allocation3 + $0xd8] sm:$0xff] }
 0x200   : > { %1112 = vst.msk [vmem:[#allocation3 + $0x180] sm:$0xff] %vm1095_vm4, %v1032_v9  ;;  %2063 = vrot.lane.b32.xlu1 %v11909_v23, %s11158_s16  ;;  %v2327_v4 = vpack.c.bf16 %v2246_v45, %v2243_v17 }
 0x201   : > { %1939 = vst.msk [vmem:[#allocation3 + $0xc8] sm:$0xff] %vm1288_vm5, %v12274_v37  ;;  %1688 = vrot.lane.b32.xlu0 %v11874_v16, %s11156_s12 }
 0x202   : > { %2131 = vst.msk [vmem:[#allocation3 + $0xc8] sm:$0xff] %vm1481_vm6, %v12281_v60  ;;  %v1213_v22 = vpop.permute.xlu1 %1212 }
 0x203   : > { %v1028_v38 = vpop.permute.xlu0 %1027  ;;  %1299 = vst.msk [vmem:[#allocation3 + $0xf0] sm:$0xff] %vm1288_vm5, %v1213_v22 }
 0x204   : > { %1110 = vst.msk [vmem:[#allocation3 + $0x150] sm:$0xff] %vm1095_vm4, %v1028_v38  ;;  %1425 = vrot.lane.b32.xlu1 %v11915_v18, %s11158_s16  ;;  %v2252_v62 = vld [vmem:[#allocation3 + $0x108] sm:$0xff] }
 0x205   : > { %1492 = vst.msk [vmem:[#allocation3 + $0xf0] sm:$0xff] %vm1481_vm6, %v12288_v10  ;;  %1240 = vrot.lane.b32.xlu0 %v11872_v51, %s11157_s13 }
 0x206   : > { %v12359_v23 = vpop.permute.xlu1 %1859 }
 0x207   : > { %v1862_v37 = vpop.permute.xlu0 %1861 }
 0x208   : > { %1686 = vrot.lane.b32.xlu1 %v11872_v51, %s11156_s12 }
 0x209   : > { %1873 = vrot.lane.b32.xlu0 %v11927_v31, %s11157_s13  ;;  %v2244_v60 = vld [vmem:[#allocation3 + $0xc8] sm:$0xff] }
 0x20a   : > { %v2328_v20 = vpack.c.bf16 %v2247_v47, %v2244_v60  ;;  %v12365_v39 = vpop.permute.xlu1 %2051 }
 0x20b   : > { %v2054_v10 = vpop.permute.xlu0 %2053 }
 0x20c   : > { %2626 = vmatprep.mubr.bf16.mxu1 %v2328_v20  ;;  %1431 = vrot.lane.b32.xlu1 %v11911_v49, %s11158_s16  ;;  %v2249_v14 = vld [vmem:[#allocation3 + $0xf0] sm:$0xff] }
 0x20d   : > { %2065 = vrot.lane.b32.xlu0 %v11935_v58, %s11158_s16  ;;  %2627 = vmatmul.mubr.bf16.gmra.mxu1 %v2327_v4  ;;  %v2330_v28 = vpack.c.bf16 %v2252_v62, %v2249_v14  ;;  %v12539_v62 = vld [vmem:[#allocation2 + $0x198] sm:$0xff] }
 0x20e   : > { %v12371_v27 = vpop.permute.xlu1 %1413 }
 0x20f   : > { %v1673_v18 = vpop.permute.xlu0 %1672 }
 0x210   : > { %1753 = vst.msk [vmem:[#allocation3 + $0x170] sm:$0xff] %vm1095_vm4, %v1673_v18  ;;  %1049 = vrot.lane.b32.xlu1 %v11913_v0, %s11156_s12 }
 0x211   : > { %1684 = vrot.lane.b32.xlu0 %v11896_v54, %s11156_s12 }
 0x212   : > { %v1856_v42 = vpop.permute.xlu1 %1855 }
 0x213   : > { %v1416_v51 = vpop.permute.xlu0 %1415  ;;  %1941 = vst.msk [vmem:[#allocation3 + $0xf8] sm:$0xff] %vm1288_vm5, %v1856_v42 }
 0x214   : > { %1242 = vrot.lane.b32.xlu1 %v11874_v16, %s11157_s13 }
 0x215   : > { %1427 = vrot.lane.b32.xlu0 %v11927_v31, %s11158_s16  ;;  %v12390_v31 = vld [vmem:[#allocation2 + $0x150] sm:$0xff] }
 0x216   : > { %v2048_v34 = vpop.permute.xlu1 %2047 }
 0x217   : > { %v1227_v49 = vpop.permute.xlu0 %1226  ;;  %2133 = vst.msk [vmem:[#allocation3 + $0xf8] sm:$0xff] %vm1481_vm6, %v2048_v34 }
 0x218   : > { %1682 = vrot.lane.b32.xlu1 %v11881_v46, %s11156_s12 }
 0x219   : > { %1236 = vrot.lane.b32.xlu0 %v11881_v46, %s11157_s13 }
 0x21a   : > { %v1410_v12 = vpop.permute.xlu1 %1409 }
 0x21b   : > { %v1858_v0 = vpop.permute.xlu0 %1857  ;;  %1494 = vst.msk [vmem:[#allocation3 + $0x120] sm:$0xff] %vm1481_vm6, %v1410_v12 }
 0x21c   : > { %1942 = vst.msk [vmem:[#allocation3 + $0x110] sm:$0xff] %vm1288_vm5, %v1858_v0  ;;  %1045 = vrot.lane.b32.xlu1 %v11935_v58, %s11156_s12  ;;  %v12405_v58 = vld [vmem:[#allocation2 + $0x158] sm:$0xff] }
 0x21d   : > { %1883 = vrot.lane.b32.xlu0 %v12390_v31, %s11157_s13 }
 0x21e   : > { %v1034_v35 = vpop.permute.xlu1 %1033  ;;  %v2250_v61 = vld [vmem:[#allocation3 + $0xf8] sm:$0xff] }
 0x21f   : > { %v2050_v16 = vpop.permute.xlu0 %2049  ;;  %1113 = vst.msk [vmem:[#allocation3 + $0x198] sm:$0xff] %vm1095_vm4, %v1034_v35 }
 0x220   : > { %2134 = vst.msk [vmem:[#allocation3 + $0x110] sm:$0xff] %vm1481_vm6, %v2050_v16  ;;  %1238 = vrot.lane.b32.xlu1 %v11896_v54, %s11157_s13 }
 0x221   : > { %1306 = vst.msk [vmem:[#allocation3 + $0x198] sm:$0xff] %vm1288_vm5, %v1227_v49  ;;  %1879 = vrot.lane.b32.xlu0 %v12031_v19, %s11157_s13 }
 0x222   : > { %v1671_v33 = vpop.permute.xlu1 %1670  ;;  %v2255_v47 = vld [vmem:[#allocation3 + $0x120] sm:$0xff] }
 0x223   : > { %v1669_v46 = vpop.permute.xlu0 %1668  ;;  %1752 = vst.msk [vmem:[#allocation3 + $0x158] sm:$0xff] %vm1095_vm4, %v1671_v33  ;;  %v12503_v33 = vld [vmem:[#allocation2 + $0x188] sm:$0xff] }
 0x224   : > { %1751 = vst.msk [vmem:[#allocation3 + $0x140] sm:$0xff] %vm1095_vm4, %v1669_v46  ;;  %1885 = vrot.lane.b32.xlu1 %v12405_v58, %s11157_s13 }
 0x225   : > { %1944 = vst.msk [vmem:[#allocation3 + $0x140] sm:$0xff] %vm1288_vm5, %v1862_v37  ;;  %2071 = vrot.lane.b32.xlu0 %v12033_v5, %s11158_s16 }
 0x226   : > { %2136 = vst.msk [vmem:[#allocation3 + $0x140] sm:$0xff] %vm1481_vm6, %v2054_v10  ;;  %v1225_v56 = vpop.permute.xlu1 %1224 }
 0x227   : > { %v1412_v54 = vpop.permute.xlu0 %1411  ;;  %v2253_v41 = vld [vmem:[#allocation3 + $0x110] sm:$0xff]  ;;  %1305 = vst.msk [vmem:[#allocation3 + $0x180] sm:$0xff] %vm1288_vm5, %v1225_v56 }
 0x228   : > { %1495 = vst.msk [vmem:[#allocation3 + $0x138] sm:$0xff] %vm1481_vm6, %v1412_v54  ;;  %v2331_v63 = vpack.c.bf16 %v2253_v41, %v2250_v61  ;;  %1881 = vrot.lane.b32.xlu1 %v12035_v30, %s11157_s13 }
 0x229   : > { %1690 = vrot.lane.b32.xlu0 %v12011_v25, %s11156_s12 }
 0x22a   : > { %2634 = vmatprep.mubr.bf16.mxu1 %v2331_v63  ;;  %v1030_v32 = vpop.permute.xlu1 %1029 }
 0x22b   : > { %v1223_v59 = vpop.permute.xlu0 %1222  ;;  %2635 = vmatmul.mubr.bf16.gmra.mxu1 %v2330_v28  ;;  %1111 = vst.msk [vmem:[#allocation3 + $0x168] sm:$0xff] %vm1095_vm4, %v1030_v32 }
 0x22c   : > { %1304 = vst.msk [vmem:[#allocation3 + $0x168] sm:$0xff] %vm1288_vm5, %v1223_v59  ;;  %2073 = vrot.lane.b32.xlu1 %v12046_v36, %s11158_s16 }
 0x22d   : > { %2075 = vrot.lane.b32.xlu0 %v12037_v29, %s11158_s16  ;;  %1497 = vst.msk [vmem:[#allocation3 + $0x168] sm:$0xff] %vm1481_vm6, %v1416_v51  ;;  %v2259_v38 = vld [vmem:[#allocation3 + $0x140] sm:$0xff]  ;;  %v12488_v51 = vld [vmem:[#allocation2 + $0x180] sm:$0xff] }
 0x22e   : > { %v1667_v3 = vpop.permute.xlu1 %1666 }
 0x22f   : > { %v1040_v40 = vpop.permute.xlu0 %1039  ;;  %1750 = vst.msk [vmem:[#allocation3 + $0x128] sm:$0xff] %vm1095_vm4, %v1667_v3  ;;  %v2258_v22 = vld [vmem:[#allocation3 + $0x138] sm:$0xff] }
 0x230   : > { %1116 = vst.msk [vmem:[#allocation3 + $0x1e0] sm:$0xff] %vm1095_vm4, %v1040_v40  ;;  %1692 = vrot.lane.b32.xlu1 %v12017_v55, %s11156_s12  ;;  %v2333_v45 = vpack.c.bf16 %v2258_v22, %v2255_v47 }
 0x231   : > { %1943 = vst.msk [vmem:[#allocation3 + $0x128] sm:$0xff] %vm1288_vm5, %v12359_v23  ;;  %1433 = vrot.lane.b32.xlu0 %v12031_v19, %s11158_s16 }
 0x232   : > { %2135 = vst.msk [vmem:[#allocation3 + $0x128] sm:$0xff] %vm1481_vm6, %v12365_v39  ;;  %v1221_v57 = vpop.permute.xlu1 %1220 }
 0x233   : > { %v1036_v21 = vpop.permute.xlu0 %1035  ;;  %1303 = vst.msk [vmem:[#allocation3 + $0x150] sm:$0xff] %vm1288_vm5, %v1221_v57 }
 0x234   : > { %1114 = vst.msk [vmem:[#allocation3 + $0x1b0] sm:$0xff] %vm1095_vm4, %v1036_v21  ;;  %2077 = vrot.lane.b32.xlu1 %v12052_v44, %s11158_s16 }
 0x235   : > { %1496 = vst.msk [vmem:[#allocation3 + $0x150] sm:$0xff] %vm1481_vm6, %v12371_v27  ;;  %1694 = vrot.lane.b32.xlu0 %v12000_v53, %s11156_s12 }
 0x236   : > { %v12444_v9 = vpop.permute.xlu1 %1867 }
 0x237   : > { %v1870_v19 = vpop.permute.xlu0 %1869 }
 0x238   : > { %1435 = vrot.lane.b32.xlu1 %v12035_v30, %s11158_s16 }
 0x239   : > { %1051 = vrot.lane.b32.xlu0 %v12033_v5, %s11156_s12  ;;  %v2256_v8 = vld [vmem:[#allocation3 + $0x128] sm:$0xff] }
 0x23a   : > { %v2334_v37 = vpack.c.bf16 %v2259_v38, %v2256_v8  ;;  %v12450_v60 = vpop.permute.xlu1 %2059  ;;  %v12559_v8 = vld [vmem:[#allocation2 + $0x1a0] sm:$0xff] }
 0x23b   : > { %v2062_v23 = vpop.permute.xlu0 %2061 }
 0x23c   : > { %2642 = vmatprep.mubr.bf16.mxu1 %v2334_v37  ;;  %1696 = vrot.lane.b32.xlu1 %v12002_v7, %s11156_s12 }
 0x23d   : > { %1887 = vrot.lane.b32.xlu0 %v12137_v2, %s11157_s13  ;;  %2643 = vmatmul.mubr.bf16.gmra.mxu1 %v2333_v45 }
 0x23e   : > { %v12456_v20 = vpop.permute.xlu1 %1421 }
 0x23f   : > { %v1681_v5 = vpop.permute.xlu0 %1680 }
 0x240   : > { %1757 = vst.msk [vmem:[#allocation3 + $0x1d0] sm:$0xff] %vm1095_vm4, %v1681_v5  ;;  %1053 = vrot.lane.b32.xlu1 %v12046_v36, %s11156_s12 }
 0x241   : > { %1244 = vrot.lane.b32.xlu0 %v12011_v25, %s11157_s13 }
 0x242   : > { %v1864_v10 = vpop.permute.xlu1 %1863 }
 0x243   : > { %v1424_v30 = vpop.permute.xlu0 %1423  ;;  %1945 = vst.msk [vmem:[#allocation3 + $0x158] sm:$0xff] %vm1288_vm5, %v1864_v10  ;;  %v12585_v10 = vld [vmem:[#allocation2 + $0x1a1] sm:$0xff] }
 0x244   : > { %1889 = vrot.lane.b32.xlu1 %v12141_v50, %s11157_s13 }
 0x245   : > { %2079 = vrot.lane.b32.xlu0 %v12139_v15, %s11158_s16 }
 0x246   : > { %v2056_v17 = vpop.permute.xlu1 %2055 }
 0x247   : > { %v1235_v39 = vpop.permute.xlu0 %1234  ;;  %2137 = vst.msk [vmem:[#allocation3 + $0x158] sm:$0xff] %vm1481_vm6, %v2056_v17 }
 0x248   : > { %1246 = vrot.lane.b32.xlu1 %v12017_v55, %s11157_s13 }
 0x249   : > { %1437 = vrot.lane.b32.xlu0 %v12390_v31, %s11158_s16  ;;  %v2264_v31 = vld [vmem:[#allocation3 + $0x168] sm:$0xff] }
 0x24a   : > { %v1418_v36 = vpop.permute.xlu1 %1417 }
 0x24b   : > { %v1866_v25 = vpop.permute.xlu0 %1865  ;;  %1498 = vst.msk [vmem:[#allocation3 + $0x180] sm:$0xff] %vm1481_vm6, %v1418_v36 }
 0x24c   : > { %1946 = vst.msk [vmem:[#allocation3 + $0x170] sm:$0xff] %vm1288_vm5, %v1866_v25  ;;  %2081 = vrot.lane.b32.xlu1 %v12145_v6, %s11158_s16 }
 0x24d   : > { %1698 = vrot.lane.b32.xlu0 %v12116_v24, %s11156_s12 }
 0x24e   : > { %v1042_v18 = vpop.permute.xlu1 %1041  ;;  %v2262_v34 = vld [vmem:[#allocation3 + $0x158] sm:$0xff] }
 0x24f   : > { %v2058_v4 = vpop.permute.xlu0 %2057  ;;  %1117 = vst.msk [vmem:[#allocation3 + $0x1f8] sm:$0xff] %vm1095_vm4, %v1042_v18 }
 0x250   : > { %2138 = vst.msk [vmem:[#allocation3 + $0x170] sm:$0xff] %vm1481_vm6, %v2058_v4  ;;  %1439 = vrot.lane.b32.xlu1 %v12405_v58, %s11158_s16  ;;  %v2186_v58 = vld [vmem:[#allocation2 + $0x1a2] sm:$0xff] }
 0x251   : > { %1310 = vst.msk [vmem:[#allocation3 + $0x1f8] sm:$0xff] %vm1288_vm5, %v1235_v39  ;;  %1055 = vrot.lane.b32.xlu0 %v12037_v29, %s11156_s12  ;;  %v2261_v29 = vld [vmem:[#allocation3 + $0x150] sm:$0xff] }
 0x252   : > { %v1679_v27 = vpop.permute.xlu1 %1678  ;;  %v2336_v16 = vpack.c.bf16 %v2264_v31, %v2261_v29  ;;  %2218 = vst.msk [vmem:[#allocation3 + $0x2f8] sm:$0xff] %vm782_vm2, %v2186_v58  ;;  %v2267_v32 = vld [vmem:[#allocation3 + $0x180] sm:$0xff]  ;;  %v3588_v39 = vld [vmem:[#allocation2 + $0x1] sm:$0xff] }
 0x253   : > { %v1677_v55 = vpop.permute.xlu0 %1676  ;;  %1756 = vst.msk [vmem:[#allocation3 + $0x1b8] sm:$0xff] %vm1095_vm4, %v1679_v27 }
 0x254   : > { %1755 = vst.msk [vmem:[#allocation3 + $0x1a0] sm:$0xff] %vm1095_vm4, %v1677_v55  ;;  %1700 = vrot.lane.b32.xlu1 %v12120_v11, %s11156_s12 }
 0x255   : > { %1948 = vst.msk [vmem:[#allocation3 + $0x1a0] sm:$0xff] %vm1288_vm5, %v1870_v19  ;;  %1891 = vrot.lane.b32.xlu0 %v12488_v51, %s11157_s13 }
 0x256   : > { %2140 = vst.msk [vmem:[#allocation3 + $0x1a0] sm:$0xff] %vm1481_vm6, %v2062_v23  ;;  %v1233_v49 = vpop.permute.xlu1 %1232 }
 0x257   : > { %v1420_v42 = vpop.permute.xlu0 %1419  ;;  %v2265_v0 = vld [vmem:[#allocation3 + $0x170] sm:$0xff]  ;;  %1309 = vst.msk [vmem:[#allocation3 + $0x1e0] sm:$0xff] %vm1288_vm5, %v1233_v49 }
 0x258   : > { %1499 = vst.msk [vmem:[#allocation3 + $0x198] sm:$0xff] %vm1481_vm6, %v1420_v42  ;;  %v2337_v12 = vpack.c.bf16 %v2265_v0, %v2262_v34  ;;  %1057 = vrot.lane.b32.xlu1 %v12052_v44, %s11156_s12  ;;  %v3589_v42 = vld [vmem:[#allocation2 + $0x9] sm:$0xff] }
 0x259   : > { %1248 = vrot.lane.b32.xlu0 %v12000_v53, %s11157_s13  ;;  %v2314_v28 = vld [vmem:[#allocation3 + $0x2f8] sm:$0xff] }
 0x25a   : > { %2650 = vmatprep.mubr.bf16.mxu1 %v2337_v12  ;;  %v1038_v46 = vpop.permute.xlu1 %1037  ;;  %4867 = vst.msk [vmem:[#allocation3 + $0x2f8] sm:$0xff] %vm782_vm2, %v2186_v58  ;;  %v3780_v0 = vld [vmem:[#allocation2 + $0x2] sm:$0xff] }
 0x25b   : > { %v1231_v35 = vpop.permute.xlu0 %1230  ;;  %2651 = vmatmul.mubr.bf16.gmra.mxu1 %v2336_v16  ;;  %1115 = vst.msk [vmem:[#allocation3 + $0x1c8] sm:$0xff] %vm1095_vm4, %v1038_v46 }
 0x25c   : > { %1308 = vst.msk [vmem:[#allocation3 + $0x1c8] sm:$0xff] %vm1288_vm5, %v1231_v35  ;;  %1893 = vrot.lane.b32.xlu1 %v12503_v33, %s11157_s13 }
 0x25d   : > { %2083 = vrot.lane.b32.xlu0 %v12147_v13, %s11158_s16  ;;  %1501 = vst.msk [vmem:[#allocation3 + $0x1c8] sm:$0xff] %vm1481_vm6, %v1424_v30  ;;  %v2185_v13 = vld [vmem:[#allocation2 + $0x19a] sm:$0xff]  ;;  %v2271_v61 = vld [vmem:[#allocation3 + $0x1a0] sm:$0xff] }
 0x25e   : > { %v1675_v44 = vpop.permute.xlu1 %1674  ;;  %2217 = vst.msk [vmem:[#allocation3 + $0x2e0] sm:$0xff] %vm782_vm2, %v2185_v13 }
 0x25f   : > { %v12511_v53 = vpop.permute.xlu0 %1429  ;;  %1754 = vst.msk [vmem:[#allocation3 + $0x188] sm:$0xff] %vm1095_vm4, %v1675_v44  ;;  %v2270_v41 = vld [vmem:[#allocation3 + $0x198] sm:$0xff] }
 0x260   : > { %1947 = vst.msk [vmem:[#allocation3 + $0x188] sm:$0xff] %vm1288_vm5, %v12444_v9  ;;  %1250 = vrot.lane.b32.xlu1 %v12002_v7, %s11157_s13  ;;  %v12557_v9 = vld [vmem:[#allocation2 + $0x199] sm:$0xff] }
 0x261   : > { %1441 = vrot.lane.b32.xlu0 %v12137_v2, %s11158_s16  ;;  %2139 = vst.msk [vmem:[#allocation3 + $0x188] sm:$0xff] %vm1481_vm6, %v12450_v60 }
 0x262   : > { %v1229_v54 = vpop.permute.xlu1 %1228 }
 0x263   : > { %v1048_v14 = vpop.permute.xlu0 %1047  ;;  %1307 = vst.msk [vmem:[#allocation3 + $0x1b0] sm:$0xff] %vm1288_vm5, %v1229_v54 }
 0x264   : > { %1120 = vst.msk [vmem:[#allocation3 + $0x240] sm:$0xff] %vm1095_vm4, %v1048_v14  ;;  %2085 = vrot.lane.b32.xlu1 %v12161_v26, %s11158_s16  ;;  %v2276_v44 = vld [vmem:[#allocation3 + $0x1c8] sm:$0xff] }
 0x265   : > { %1500 = vst.msk [vmem:[#allocation3 + $0x1b0] sm:$0xff] %vm1481_vm6, %v12456_v20  ;;  %1702 = vrot.lane.b32.xlu0 %v12104_v43, %s11156_s12  ;;  %v2311_v43 = vld [vmem:[#allocation3 + $0x2e0] sm:$0xff] }
 0x266   : > { %v12532_v2 = vpop.permute.xlu1 %1875  ;;  %v2362_v40 = vpack.c.bf16 %v2314_v28, %v2311_v43  ;;  %4866 = vst.msk [vmem:[#allocation3 + $0x2e0] sm:$0xff] %vm782_vm2, %v2185_v13 }
 0x267   : > { %v1044_v7 = vpop.permute.xlu0 %1043 }
 0x268   : > { %1118 = vst.msk [vmem:[#allocation3 + $0x210] sm:$0xff] %vm1095_vm4, %v1044_v7  ;;  %1443 = vrot.lane.b32.xlu1 %v12141_v50, %s11158_s16  ;;  %v2268_v56 = vld [vmem:[#allocation3 + $0x188] sm:$0xff]  ;;  %9986 = vmatmul.mubr.msk.bf16.gmra.mxu0 %vm782_vm2, %v2362_v40 }
 0x269   : > { %1059 = vrot.lane.b32.xlu0 %v12139_v15, %s11156_s12  ;;  %v2340_v63 = vpack.c.bf16 %v2271_v61, %v2268_v56  ;;  %v2339_v15 = vpack.c.bf16 %v2270_v41, %v2267_v32 }
 0x26a   : > { %v12543_v59 = vpop.permute.xlu1 %2067 }
 0x26b   : > { %v12541_v26 = vpop.permute.xlu0 %1877  ;;  %2658 = vmatprep.mubr.bf16.mxu1 %v2340_v63 }
 0x26c   : > { %1704 = vrot.lane.b32.xlu1 %v12106_v48, %s11156_s12  ;;  %2659 = vmatmul.mubr.bf16.gmra.mxu1 %v2339_v15  ;;  %v2273_v12 = vld [vmem:[#allocation3 + $0x1b0] sm:$0xff] }
 0x26d   : > { %1895 = vrot.lane.b32.xlu0 %v12539_v62, %s11157_s13  ;;  %v9545_v50 = vpop.f32.mrf.mxu0  ;;  %v2342_v13 = vpack.c.bf16 %v2276_v44, %v2273_v12 }
 0x26e   : > { %v1872_v21 = vpop.permute.xlu1 %1871 }
 0x26f   : > { %v2070_v3 = vpop.permute.xlu0 %2069  ;;  %v9546_v57 = vpop.f32.mrf.mxu0  ;;  %1949 = vst.msk [vmem:[#allocation3 + $0x1b8] sm:$0xff] %vm1288_vm5, %v1872_v21 }
 0x270   : > { %1061 = vrot.lane.b32.xlu1 %v12145_v6, %s11156_s12  ;;  %v9547_v48 = vadd.f32 %v9546_v57, %v9545_v50 }
 0x271   : > { %1252 = vrot.lane.b32.xlu0 %v12116_v24, %s11157_s13  ;;  %v9548_v19 = vpop.f32.mrf.mxu0  ;;  %v12566_v24 = vld [vmem:[%s16252_s4] ss:$0 sm:$0xff] }
 0x272   : > { %v2064_v22 = vpop.permute.xlu1 %2063  ;;  %v2597_v47 = vadd.f32 %v9547_v48, %v12566_v24  ;;  %v3524_v48 = vld [vmem:[#allocation2] sm:$0xff] }
 0x273   : > { %v1689_v38 = vpop.permute.xlu0 %1688  ;;  %v9549_v37 = vpop.f32.mrf.mxu0  ;;  %2141 = vst.msk [vmem:[#allocation3 + $0x1b8] sm:$0xff] %vm1481_vm6, %v2064_v22 }
 0x274   : > { %1761 = vst.msk [vmem:[#allocation3 + $0x230] sm:$0xff] %vm1095_vm4, %v1689_v38  ;;  %1897 = vrot.lane.b32.xlu1 %v12559_v8, %s11157_s13  ;;  %v9550_v23 = vadd.f32 %v9549_v37, %v9548_v19  ;;  %v3525_v38 = vld [vmem:[#allocation2 + $0x8] sm:$0xff] }
 0x275   : > { %2087 = vrot.lane.b32.xlu0 %v12557_v9, %s11158_s16  ;;  %v12572_v6 = vpop.f32.mrf.mxu0  ;;  %3556 = vst.msk [vmem:[#allocation3] sm:$0xff] %vm782_vm2, %v3524_v48  ;;  %3557 = vst.msk [vmem:[#allocation3 + $0x18] sm:$0xff] %vm782_vm2, %v3525_v38 }
 0x276   : > { %v1426_v45 = vpop.permute.xlu1 %1425  ;;  %v2600_v36 = vadd.f32 %v9550_v23, %v12566_v24 }
 0x277   : > { %v1241_v60 = vpop.permute.xlu0 %1240  ;;  %v2757_v5 = vpop.f32.mrf.mxu0  ;;  %1502 = vst.msk [vmem:[#allocation3 + $0x1e0] sm:$0xff] %vm1481_vm6, %v1426_v45 }
 0x278   : > { %1313 = vst.msk [vmem:[#allocation3 + $0x240] sm:$0xff] %vm1288_vm5, %v1241_v60  ;;  %v12577_v20 = vadd.f32 %v2757_v5, %v2597_v47  ;;  %1254 = vrot.lane.b32.xlu1 %v12120_v11, %s11157_s13  ;;  %v12596_v11 = vld [vmem:[#allocation2 + $0xa] sm:$0xff] }
 0x279   : > { %1445 = vrot.lane.b32.xlu0 %v12488_v51, %s11158_s16  ;;  %v12583_v30 = vpop.f32.mrf.mxu0 }
 0x27a   : > { %v9169_v17 = vmul.f32 -1.442695, %v12577_v20  ;;  %v1687_v4 = vpop.permute.xlu1 %1686  ;;  %v2274_v35 = vld [vmem:[#allocation3 + $0x1b8] sm:$0xff] }
 0x27b   : > { %v1874_v25 = vpop.permute.xlu0 %1873  ;;  %v2760_v18 = vpop.f32.mrf.mxu0  ;;  %1760 = vst.msk [vmem:[#allocation3 + $0x218] sm:$0xff] %vm1095_vm4, %v1687_v4 }
 0x27c   : > { %1950 = vst.msk [vmem:[#allocation3 + $0x1d0] sm:$0xff] %vm1288_vm5, %v1874_v25  ;;  %10321 = vpow2.f32 %v9169_v17  ;;  %v12591_v55 = vadd.f32 %v2760_v18, %v2600_v36  ;;  %2089 = vrot.lane.b32.xlu1 %v12585_v10, %s11158_s16 }
 0x27d   : > { %3652 = vrot.lane.b32.xlu0 %v3588_v39, %s11156_s12 }
 0x27e   : > { %v9170_v27 = vmul.f32 -1.442695, %v12591_v55  ;;  %v12599_v29 = vpop.permute.xlu1 %1431  ;;  %v2279_v37 = vld [vmem:[#allocation3 + $0x1e0] sm:$0xff] }
 0x27f   : > { %v2066_v51 = vpop.permute.xlu0 %2065 }
 0x280   : > { %2142 = vst.msk [vmem:[#allocation3 + $0x1d0] sm:$0xff] %vm1481_vm6, %v2066_v51  ;;  %10323 = vpow2.f32 %v9170_v27  ;;  %1447 = vrot.lane.b32.xlu1 %v12503_v33, %s11158_s16 }
 0x281   : > { %3846 = vrot.lane.b32.xlu0 %v12596_v11, %s11157_s13 }
 0x282   : > { %v1050_v34 = vpop.permute.xlu1 %1049 }
 0x283   : > { %v1685_v49 = vpop.permute.xlu0 %1684  ;;  %1121 = vst.msk [vmem:[#allocation3 + $0x258] sm:$0xff] %vm1095_vm4, %v1050_v34 }
 0x284   : > { %1759 = vst.msk [vmem:[#allocation3 + $0x200] sm:$0xff] %vm1095_vm4, %v1685_v49  ;;  %3654 = vrot.lane.b32.xlu1 %v3589_v42, %s11156_s12 }
 0x285   : > { %1952 = vst.msk [vmem:[#allocation3 + $0x200] sm:$0xff] %vm1288_vm5, %v12541_v26  ;;  %4544 = vrot.lane.b32.xlu0 %v12539_v62, %s11157_s13 }
 0x286   : > { %2144 = vst.msk [vmem:[#allocation3 + $0x200] sm:$0xff] %vm1481_vm6, %v2070_v3  ;;  %v1243_v16 = vpop.permute.xlu1 %1242 }
 0x287   : > { %v1428_v31 = vpop.permute.xlu0 %1427  ;;  %v2277_v46 = vld [vmem:[#allocation3 + $0x1d0] sm:$0xff]  ;;  %1314 = vst.msk [vmem:[#allocation3 + $0x258] sm:$0xff] %vm1288_vm5, %v1243_v16 }
 0x288   : > { %1503 = vst.msk [vmem:[#allocation3 + $0x1f8] sm:$0xff] %vm1481_vm6, %v1428_v31  ;;  %v2343_v33 = vpack.c.bf16 %v2277_v46, %v2274_v35  ;;  %3844 = vrot.lane.b32.xlu1 %v3780_v0, %s11157_s13 }
 0x289   : > { %4736 = vrot.lane.b32.xlu0 %v12557_v9, %s11158_s16  ;;  %v10322_v58 = vpop.eup %10321 }
 0x28a   : > { %2666 = vmatprep.mubr.bf16.mxu1 %v2343_v33  ;;  %v2980_v14 = vadd.f32 1.0, %v10322_v58  ;;  %v1683_v7 = vpop.permute.xlu1 %1682 }
 0x28b   : > { %v1237_v54 = vpop.permute.xlu0 %1236  ;;  %2667 = vmatmul.mubr.bf16.gmra.mxu1 %v2342_v13  ;;  %1758 = vst.msk [vmem:[#allocation3 + $0x1e8] sm:$0xff] %vm1095_vm4, %v1683_v7  ;;  %v9551_v56 = vpop.f32.mrf.mxu1 }
 0x28c   : > { %1311 = vst.msk [vmem:[#allocation3 + $0x210] sm:$0xff] %vm1288_vm5, %v1237_v54  ;;  %10325 = vrcp.f32 %v2980_v14  ;;  %1951 = vst.msk [vmem:[#allocation3 + $0x1e8] sm:$0xff] %vm1288_vm5, %v12532_v2  ;;  %4546 = vrot.lane.b32.xlu1 %v12559_v8, %s11157_s13 }
 0x28d   : > { %1504 = vst.msk [vmem:[#allocation3 + $0x210] sm:$0xff] %vm1481_vm6, %v12511_v53  ;;  %6303 = vrot.lane.b32.xlu0 %v3588_v39, %s11156_s12  ;;  %v10324_v61 = vpop.eup %10323  ;;  %2143 = vst.msk [vmem:[#allocation3 + $0x1e8] sm:$0xff] %vm1481_vm6, %v12543_v59  ;;  %v9552_v41 = vpop.f32.mrf.mxu1  ;;  %v2283_v3 = vld [vmem:[#allocation3 + $0x200] sm:$0xff] }
 0x28e   : > { %v2981_v63 = vadd.f32 1.0, %v10324_v61  ;;  %v9553_v43 = vadd.f32 %v9552_v41, %v9551_v56  ;;  %v1046_v26 = vpop.permute.xlu1 %1045  ;;  %v12659_v39 = vpop.f32.mrf.mxu0 }
 0x28f   : > { %v1884_v28 = vpop.permute.xlu0 %1883  ;;  %1119 = vst.msk [vmem:[#allocation3 + $0x228] sm:$0xff] %vm1095_vm4, %v1046_v26  ;;  %v9554_v53 = vpop.f32.mrf.mxu1  ;;  %v2282_v21 = vld [vmem:[#allocation3 + $0x1f8] sm:$0xff] }
 0x290   : > { %10327 = vrcp.f32 %v2981_v63  ;;  %v2605_v2 = vadd.f32 %v9553_v43, %v12566_v24  ;;  %4738 = vrot.lane.b32.xlu1 %v12585_v10, %s11158_s16  ;;  %v2345_v47 = vpack.c.bf16 %v2282_v21, %v2279_v37  ;;  %v2773_v18 = vpop.f32.mrf.mxu0 }
 0x291   : > { %6495 = vrot.lane.b32.xlu0 %v3780_v0, %s11157_s13  ;;  %v9555_v32 = vpop.f32.mrf.mxu1 }
 0x292   : > { %v12636_v40 = vadd.f32 %v12572_v6, %v2605_v2  ;;  %v9556_v59 = vadd.f32 %v9555_v32, %v9554_v53  ;;  %v1239_v50 = vpop.permute.xlu1 %1238 }
 0x293   : > { %v1880_v15 = vpop.permute.xlu0 %1879  ;;  %1312 = vst.msk [vmem:[#allocation3 + $0x228] sm:$0xff] %vm1288_vm5, %v1239_v50 }
 0x294   : > { %1953 = vst.msk [vmem:[#allocation3 + $0x218] sm:$0xff] %vm1288_vm5, %v1880_v15  ;;  %v9171_v57 = vmul.f32 -1.442695, %v12636_v40  ;;  %v2608_v19 = vadd.f32 %v9556_v59, %v12566_v24  ;;  %6305 = vrot.lane.b32.xlu1 %v3589_v42, %s11156_s12  ;;  %v2280_v9 = vld [vmem:[#allocation3 + $0x1e8] sm:$0xff]  ;;  %v2285_v56 = vld [vmem:[#allocation3 + $0x210] sm:$0xff] }
 0x295   : > { %1505 = vst.msk [vmem:[#allocation3 + $0x228] sm:$0xff] %vm1481_vm6, %v12599_v29  ;;  %7195 = vrot.lane.b32.xlu0 %v12539_v62, %s11157_s13  ;;  %v2346_v22 = vpack.c.bf16 %v2283_v3, %v2280_v9 }
 0x296   : > { %10329 = vpow2.f32 %v9171_v57  ;;  %v12650_v6 = vadd.f32 %v12583_v30, %v2608_v19  ;;  %v1886_v60 = vpop.permute.xlu1 %1885 }
 0x297   : > { %v2072_v23 = vpop.permute.xlu0 %2071  ;;  %2674 = vmatprep.mubr.bf16.mxu1 %v2346_v22 }
 0x298   : > { %2145 = vst.msk [vmem:[#allocation3 + $0x218] sm:$0xff] %vm1481_vm6, %v2072_v23  ;;  %v9172_v62 = vmul.f32 -1.442695, %v12650_v6  ;;  %6497 = vrot.lane.b32.xlu1 %v12596_v11, %s11157_s13  ;;  %2675 = vmatmul.mubr.bf16.gmra.mxu1 %v2345_v47 }
 0x299   : > { %v10326_v45 = vpop.eup %10325 }
 0x29a   : > { %v12657_v5 = vmul.f32 %v10326_v45, %v12577_v20  ;;  %10331 = vpow2.f32 %v9172_v62  ;;  %v1882_v30 = vpop.permute.xlu1 %1881 }
 0x29b   : > { %v1691_v10 = vpop.permute.xlu0 %1690  ;;  %1954 = vst.msk [vmem:[#allocation3 + $0x230] sm:$0xff] %vm1288_vm5, %v1882_v30 }
 0x29c   : > { %1762 = vst.msk [vmem:[#allocation3 + $0x248] sm:$0xff] %vm1095_vm4, %v1691_v10  ;;  %3140 = vrot.lane.b32.xlu0 %v12657_v5, %s11158_s16  ;;  %7197 = vrot.lane.b32.xlu1 %v12559_v8, %s11157_s13  ;;  %v2288_v16 = vld [vmem:[#allocation3 + $0x228] sm:$0xff] }
 0x29d   : > { %1955 = vst.msk [vmem:[#allocation3 + $0x248] sm:$0xff] %vm1288_vm5, %v1884_v28  ;;  %v10328_v17 = vpop.eup %10327  ;;  %v9557_v20 = vpop.f32.mrf.mxu1  ;;  %v2348_v63 = vpack.c.bf16 %v2288_v16, %v2285_v56 }
 0x29e   : > { %v12669_v25 = vmul.f32 %v10328_v17, %v12591_v55  ;;  %v2074_v4 = vpop.permute.xlu1 %2073  ;;  %v12676_v55 = vpop.f32.mrf.mxu0 }
 0x29f   : > { %v2076_v36 = vpop.permute.xlu0 %2075  ;;  %2146 = vst.msk [vmem:[#allocation3 + $0x230] sm:$0xff] %vm1481_vm6, %v2074_v4  ;;  %v9558_v11 = vpop.f32.mrf.mxu1  ;;  %v2286_v13 = vld [vmem:[#allocation3 + $0x218] sm:$0xff] }
 0x2a0   : > { %2147 = vst.msk [vmem:[#allocation3 + $0x248] sm:$0xff] %vm1481_vm6, %v2076_v36  ;;  %v9559_v27 = vadd.f32 %v9558_v11, %v9557_v20  ;;  %3142 = vrot.lane.b32.xlu1 %v12669_v25, %s11158_s16  ;;  %v2776_v54 = vpop.f32.mrf.mxu0 }
 0x2a1   : > { %v9560_v51 = vpop.f32.mrf.mxu1 }
 0x2a2   : > { %v2613_v8 = vadd.f32 %v9559_v27, %v12566_v24  ;;  %v1693_v42 = vpop.permute.xlu1 %1692 }
 0x2a3   : > { %v1434_v29 = vpop.permute.xlu0 %1433  ;;  %v10330_v49 = vpop.eup %10329  ;;  %1763 = vst.msk [vmem:[#allocation3 + $0x260] sm:$0xff] %vm1095_vm4, %v1693_v42 }
 0x2a4   : > { %1506 = vst.msk [vmem:[#allocation3 + $0x240] sm:$0xff] %vm1481_vm6, %v1434_v29  ;;  %v9561_v34 = vpop.f32.mrf.mxu1  ;;  %v2982_v0 = vadd.f32 1.0, %v10330_v49  ;;  %v12680_v12 = vadd.f32 %v2773_v18, %v2613_v8 }
 0x2a5   : > { %1956 = vst.msk [vmem:[#allocation3 + $0x260] sm:$0xff] %vm1288_vm5, %v1886_v60  ;;  %v9562_v31 = vadd.f32 %v9561_v34, %v9560_v51 }
 0x2a6   : > { %10333 = vrcp.f32 %v2982_v0  ;;  %v9173_v35 = vmul.f32 -1.442695, %v12680_v12  ;;  %v2078_v44 = vpop.permute.xlu1 %2077  ;;  %v2289_v58 = vld [vmem:[#allocation3 + $0x230] sm:$0xff] }
 0x2a7   : > { %v2616_v46 = vadd.f32 %v9562_v31, %v12566_v24  ;;  %v1695_v33 = vpop.permute.xlu0 %1694  ;;  %v10332_v14 = vpop.eup %10331  ;;  %2148 = vst.msk [vmem:[#allocation3 + $0x260] sm:$0xff] %vm1481_vm6, %v2078_v44  ;;  %v2349_v7 = vpack.c.bf16 %v2289_v58, %v2286_v13  ;;  %v2292_v32 = vld [vmem:[#allocation3 + $0x248] sm:$0xff] }
 0x2a8   : > { %1764 = vst.msk [vmem:[#allocation3 + $0x278] sm:$0xff] %vm1095_vm4, %v1695_v33  ;;  %v2983_v61 = vadd.f32 1.0, %v10332_v14  ;;  %10335 = vpow2.f32 %v9173_v35 }
 0x2a9   : > { %v12687_v41 = vadd.f32 %v2776_v54, %v2616_v46  ;;  %2682 = vmatprep.mubr.bf16.mxu1 %v2349_v7  ;;  %v12734_v7 = vpop.f32.mrf.mxu0 }
 0x2aa   : > { %10337 = vrcp.f32 %v2983_v61  ;;  %v1436_v26 = vpop.permute.xlu1 %1435  ;;  %2683 = vmatmul.mubr.bf16.gmra.mxu1 %v2348_v63 }
 0x2ab   : > { %v9174_v43 = vmul.f32 -1.442695, %v12687_v41  ;;  %v1052_v28 = vpop.permute.xlu0 %1051  ;;  %1507 = vst.msk [vmem:[#allocation3 + $0x258] sm:$0xff] %vm1481_vm6, %v1436_v26  ;;  %v2291_v21 = vld [vmem:[#allocation3 + $0x240] sm:$0xff] }
 0x2ac   : > { %1122 = vst.msk [vmem:[#allocation3 + $0x270] sm:$0xff] %vm1095_vm4, %v1052_v28  ;;  %v2789_v28 = vpop.f32.mrf.mxu0 }
 0x2ad   : > { %10339 = vpow2.f32 %v9174_v43 }
 0x2ae   : > { %v1697_v2 = vpop.permute.xlu1 %1696  ;;  %v2295_v59 = vld [vmem:[#allocation3 + $0x260] sm:$0xff] }
 0x2af   : > { %v1888_v53 = vpop.permute.xlu0 %1887  ;;  %1765 = vst.msk [vmem:[#allocation3 + $0x290] sm:$0xff] %vm1095_vm4, %v1697_v2  ;;  %v2352_v15 = vpack.c.bf16 %v2295_v59, %v2292_v32 }
 0x2b0   : > { %1957 = vst.msk [vmem:[#allocation3 + $0x278] sm:$0xff] %vm1288_vm5, %v1888_v53 }
 0x2b1   : > { %2690 = vmatprep.mubr.bf16.mxu1 %v2352_v15 }
 0x2b2   : > { %v1054_v3 = vpop.permute.xlu1 %1053  ;;  %v2294_v57 = vld [vmem:[#allocation3 + $0x258] sm:$0xff] }
 0x2b3   : > { %v1245_v50 = vpop.permute.xlu0 %1244  ;;  %v10334_v19 = vpop.eup %10333  ;;  %1123 = vst.msk [vmem:[#allocation3 + $0x288] sm:$0xff] %vm1095_vm4, %v1054_v3  ;;  %v2351_v9 = vpack.c.bf16 %v2294_v57, %v2291_v21 }
 0x2b4   : > { %1315 = vst.msk [vmem:[#allocation3 + $0x270] sm:$0xff] %vm1288_vm5, %v1245_v50  ;;  %v12697_v48 = vmul.f32 %v10334_v19, %v12636_v40  ;;  %v12743_v50 = vpop.f32.mrf.mxu0 }
 0x2b5   : > { %v10336_v38 = vpop.eup %10335  ;;  %2691 = vmatmul.mubr.bf16.gmra.mxu1 %v2351_v9 }
 0x2b6   : > { %v2984_v22 = vadd.f32 1.0, %v10336_v38  ;;  %3144 = vrot.lane.b32.xlu0 %v12697_v48, %s11158_s16  ;;  %v1890_v23 = vpop.permute.xlu1 %1889 }
 0x2b7   : > { %v2080_v37 = vpop.permute.xlu0 %2079  ;;  %v10338_v60 = vpop.eup %10337  ;;  %1958 = vst.msk [vmem:[#allocation3 + $0x290] sm:$0xff] %vm1288_vm5, %v1890_v23 }
 0x2b8   : > { %2149 = vst.msk [vmem:[#allocation3 + $0x278] sm:$0xff] %vm1481_vm6, %v2080_v37  ;;  %10341 = vrcp.f32 %v2984_v22  ;;  %v12704_v47 = vmul.f32 %v10338_v60, %v12650_v6  ;;  %v2792_v60 = vpop.f32.mrf.mxu0 }
 0x2ba   : > { %v10340_v62 = vpop.eup %10339  ;;  %3146 = vrot.lane.b32.xlu1 %v12704_v47, %s11158_s16  ;;  %v1247_v10 = vpop.permute.xlu1 %1246 }
 0x2bb   : > { %v2985_v40 = vadd.f32 1.0, %v10340_v62  ;;  %v1438_v45 = vpop.permute.xlu0 %1437  ;;  %1316 = vst.msk [vmem:[#allocation3 + $0x288] sm:$0xff] %vm1288_vm5, %v1247_v10  ;;  %v9563_v30 = vpop.f32.mrf.mxu1 }
 0x2bc   : > { %1508 = vst.msk [vmem:[#allocation3 + $0x270] sm:$0xff] %vm1481_vm6, %v1438_v45 }
 0x2bd   : > { %10343 = vrcp.f32 %v2985_v40  ;;  %v9564_v17 = vpop.f32.mrf.mxu1 }
 0x2be   : > { %v9565_v20 = vadd.f32 %v9564_v17, %v9563_v30  ;;  %v2082_v4 = vpop.permute.xlu1 %2081 }
 0x2bf   : > { %v1699_v36 = vpop.permute.xlu0 %1698  ;;  %2150 = vst.msk [vmem:[#allocation3 + $0x290] sm:$0xff] %vm1481_vm6, %v2082_v4  ;;  %v9566_v6 = vpop.f32.mrf.mxu1  ;;  %v2298_v35 = vld [vmem:[#allocation3 + $0x278] sm:$0xff] }
 0x2c0   : > { %1766 = vst.msk [vmem:[#allocation3 + $0x2a8] sm:$0xff] %vm1095_vm4, %v1699_v36  ;;  %v2621_v18 = vadd.f32 %v9565_v20, %v12566_v24 }
 0x2c1   : > { %v9567_v11 = vpop.f32.mrf.mxu1 }
 0x2c2   : > { %v12714_v27 = vadd.f32 %v12659_v39, %v2621_v18  ;;  %v9568_v51 = vadd.f32 %v9567_v11, %v9566_v6  ;;  %v1440_v29 = vpop.permute.xlu1 %1439 }
 0x2c3   : > { %v1056_v8 = vpop.permute.xlu0 %1055  ;;  %1509 = vst.msk [vmem:[#allocation3 + $0x288] sm:$0xff] %vm1481_vm6, %v1440_v29  ;;  %v2297_v14 = vld [vmem:[#allocation3 + $0x270] sm:$0xff] }
 0x2c4   : > { %1124 = vst.msk [vmem:[#allocation3 + $0x2a0] sm:$0xff] %vm1095_vm4, %v1056_v8  ;;  %v9175_v42 = vmul.f32 -1.442695, %v12714_v27  ;;  %v2624_v49 = vadd.f32 %v9568_v51, %v12566_v24 }
 0x2c5   : > { %v10342_v34 = vpop.eup %10341 }
 0x2c6   : > { %v12721_v0 = vmul.f32 %v10342_v34, %v12680_v12  ;;  %10345 = vpow2.f32 %v9175_v42  ;;  %v12724_v31 = vadd.f32 %v12676_v55, %v2624_v49  ;;  %v1701_v16 = vpop.permute.xlu1 %1700  ;;  %v2301_v46 = vld [vmem:[#allocation3 + $0x290] sm:$0xff] }
 0x2c7   : > { %v1892_v39 = vpop.permute.xlu0 %1891  ;;  %1767 = vst.msk [vmem:[#allocation3 + $0x2c0] sm:$0xff] %vm1095_vm4, %v1701_v16  ;;  %v2355_v33 = vpack.c.bf16 %v2301_v46, %v2298_v35 }
 0x2c8   : > { %1959 = vst.msk [vmem:[#allocation3 + $0x2a8] sm:$0xff] %vm1288_vm5, %v1892_v39  ;;  %v9176_v44 = vmul.f32 -1.442695, %v12724_v31  ;;  %3148 = vrot.lane.b32.xlu0 %v12721_v0, %s11158_s16 }
 0x2c9   : > { %2698 = vmatprep.mubr.bf16.mxu1 %v2355_v33 }
 0x2ca   : > { %v10344_v12 = vpop.eup %10343  ;;  %10347 = vpow2.f32 %v9176_v44  ;;  %v1058_v55 = vpop.permute.xlu1 %1057  ;;  %v2300_v54 = vld [vmem:[#allocation3 + $0x288] sm:$0xff] }
 0x2cb   : > { %v1249_v13 = vpop.permute.xlu0 %1248  ;;  %v12732_v58 = vmul.f32 %v10344_v12, %v12687_v41  ;;  %1125 = vst.msk [vmem:[#allocation3 + $0x2b8] sm:$0xff] %vm1095_vm4, %v1058_v55  ;;  %v2354_v56 = vpack.c.bf16 %v2300_v54, %v2297_v14  ;;  %v10157_v54 = vld [vmem:[%s16251_s3 + $0x118] sm:$0xff]  }
 0x2cc   : > { %1317 = vst.msk [vmem:[#allocation3 + $0x2a0] sm:$0xff] %vm1288_vm5, %v1249_v13  ;;  %9989 = vmatprep.subr.bf16.mxu1 %v10157_v54 }
 0x2cd   : > { %3150 = vrot.lane.b32.xlu1 %v12732_v58, %s11158_s16  ;;  %v9569_v61 = vpop.f32.mrf.mxu1  ;;  %2699 = vmatmul.mubr.bf16.gmra.mxu1 %v2354_v56 }
 0x2ce   : > { %v1894_v43 = vpop.permute.xlu1 %1893  ;;  %9990 = vmatpush3.bf16.msra.mxu1 %v10157_v54 }
 0x2cf   : > { %v2084_v63 = vpop.permute.xlu0 %2083  ;;  %1960 = vst.msk [vmem:[#allocation3 + $0x2c0] sm:$0xff] %vm1288_vm5, %v1894_v43  ;;  %v9570_v41 = vpop.f32.mrf.mxu1 }
 0x2d0   : > { %2151 = vst.msk [vmem:[#allocation3 + $0x2a8] sm:$0xff] %vm1481_vm6, %v2084_v63  ;;  %v9571_v26 = vadd.f32 %v9570_v41, %v9569_v61  ;;  %v10158_v41 = vld [vmem:[%s16251_s3 + $0x110] sm:$0xff]  }
 0x2d1   : > { %v9572_v53 = vpop.f32.mrf.mxu1  ;;  %9991 = vmatprep.subr.bf16.mxu1 %v10158_v41 }
 0x2d2   : > { %v2629_v2 = vadd.f32 %v9571_v26, %v12566_v24  ;;  %v1251_v59 = vpop.permute.xlu1 %1250  ;;  %9992 = vmatpush3.bf16.msra.mxu1 %v10158_v41 }
 0x2d3   : > { %v1442_v32 = vpop.permute.xlu0 %1441  ;;  %v10346_v15 = vpop.eup %10345  ;;  %1318 = vst.msk [vmem:[#allocation3 + $0x2b8] sm:$0xff] %vm1288_vm5, %v1251_v59 }
 0x2d4   : > { %1510 = vst.msk [vmem:[#allocation3 + $0x2a0] sm:$0xff] %vm1481_vm6, %v1442_v32  ;;  %v9573_v3 = vpop.f32.mrf.mxu1  ;;  %v2986_v21 = vadd.f32 1.0, %v10346_v15  ;;  %v12747_v57 = vadd.f32 %v2789_v28, %v2629_v2 }
 0x2d5   : > { %v9574_v19 = vadd.f32 %v9573_v3, %v9572_v53 }
 0x2d6   : > { %10349 = vrcp.f32 %v2986_v21  ;;  %v9177_v9 = vmul.f32 -1.442695, %v12747_v57  ;;  %v2086_v37 = vpop.permute.xlu1 %2085 }
 0x2d7   : > { %v2632_v38 = vadd.f32 %v9574_v19, %v12566_v24  ;;  %v1703_v22 = vpop.permute.xlu0 %1702  ;;  %v10348_v23 = vpop.eup %10347  ;;  %2152 = vst.msk [vmem:[#allocation3 + $0x2c0] sm:$0xff] %vm1481_vm6, %v2086_v37  ;;  %v2304_v36 = vld [vmem:[#allocation3 + $0x2a8] sm:$0xff] }
 0x2d8   : > { %1768 = vst.msk [vmem:[#allocation3 + $0x2d8] sm:$0xff] %vm1095_vm4, %v1703_v22  ;;  %v2987_v62 = vadd.f32 1.0, %v10348_v23  ;;  %10351 = vpow2.f32 %v9177_v9 }
 0x2d9   : > { %v12753_v40 = vadd.f32 %v2792_v60, %v2632_v38 }
 0x2da   : > { %10353 = vrcp.f32 %v2987_v62  ;;  %v1444_v30 = vpop.permute.xlu1 %1443 }
 0x2db   : > { %v9178_v45 = vmul.f32 -1.442695, %v12753_v40  ;;  %v1060_v10 = vpop.permute.xlu0 %1059  ;;  %1511 = vst.msk [vmem:[#allocation3 + $0x2b8] sm:$0xff] %vm1481_vm6, %v1444_v30  ;;  %v2303_v51 = vld [vmem:[#allocation3 + $0x2a0] sm:$0xff]  ;;  %v12809_v30 = vpop.f32.mrf.mxu0 }
 0x2dc   : > { %1126 = vst.msk [vmem:[#allocation3 + $0x2d0] sm:$0xff] %vm1095_vm4, %v1060_v10 }
 0x2dd   : > { %10355 = vpow2.f32 %v9178_v45 }
 0x2de   : > { %v1705_v20 = vpop.permute.xlu1 %1704  ;;  %v2307_v4 = vld [vmem:[#allocation3 + $0x2c0] sm:$0xff] }
 0x2df   : > { %v1896_v17 = vpop.permute.xlu0 %1895  ;;  %1769 = vst.msk [vmem:[#allocation3 + $0x2f0] sm:$0xff] %vm1095_vm4, %v1705_v20  ;;  %v2358_v6 = vpack.c.bf16 %v2307_v4, %v2304_v36 }
 0x2e0   : > { %1961 = vst.msk [vmem:[#allocation3 + $0x2d8] sm:$0xff] %vm1288_vm5, %v1896_v17 }
 0x2e1   : > { %2706 = vmatprep.mubr.bf16.mxu1 %v2358_v6 }
 0x2e2   : > { %v1062_v11 = vpop.permute.xlu1 %1061  ;;  %v2306_v8 = vld [vmem:[#allocation3 + $0x2b8] sm:$0xff] }
 0x2e3   : > { %v1253_v18 = vpop.permute.xlu0 %1252  ;;  %v10350_v29 = vpop.eup %10349  ;;  %1127 = vst.msk [vmem:[#allocation3 + $0x2e8] sm:$0xff] %vm1095_vm4, %v1062_v11  ;;  %v2357_v42 = vpack.c.bf16 %v2306_v8, %v2303_v51 }
 0x2e4   : > { %1319 = vst.msk [vmem:[#allocation3 + $0x2d0] sm:$0xff] %vm1288_vm5, %v1253_v18  ;;  %v12763_v49 = vmul.f32 %v10350_v29, %v12714_v27 }
 0x2e5   : > { %v10352_v34 = vpop.eup %10351  ;;  %2707 = vmatmul.mubr.bf16.gmra.mxu1 %v2357_v42 }
 0x2e6   : > { %v2988_v39 = vadd.f32 1.0, %v10352_v34  ;;  %3152 = vrot.lane.b32.xlu0 %v12763_v49, %s11158_s16  ;;  %v1898_v35 = vpop.permute.xlu1 %1897 }
 0x2e7   : > { %v2088_v16 = vpop.permute.xlu0 %2087  ;;  %v10354_v46 = vpop.eup %10353  ;;  %1962 = vst.msk [vmem:[#allocation3 + $0x2f0] sm:$0xff] %vm1288_vm5, %v1898_v35 }
 0x2e8   : > { %2153 = vst.msk [vmem:[#allocation3 + $0x2d8] sm:$0xff] %vm1481_vm6, %v2088_v16  ;;  %10357 = vrcp.f32 %v2988_v39  ;;  %v12770_v33 = vmul.f32 %v10354_v46, %v12724_v31 }
 0x2ea   : > { %v10356_v44 = vpop.eup %10355  ;;  %3154 = vrot.lane.b32.xlu1 %v12770_v33, %s11158_s16  ;;  %v1255_v13 = vpop.permute.xlu1 %1254 }
 0x2eb   : > { %v2989_v27 = vadd.f32 1.0, %v10356_v44  ;;  %v1446_v12 = vpop.permute.xlu0 %1445  ;;  %1320 = vst.msk [vmem:[#allocation3 + $0x2e8] sm:$0xff] %vm1288_vm5, %v1255_v13  ;;  %v9575_v55 = vpop.f32.mrf.mxu1 }
 0x2ec   : > { %1512 = vst.msk [vmem:[#allocation3 + $0x2d0] sm:$0xff] %vm1481_vm6, %v1446_v12 }
 0x2ed   : > { %10359 = vrcp.f32 %v2989_v27  ;;  %v9576_v14 = vpop.f32.mrf.mxu1 }
 0x2ee   : > { %v9577_v31 = vadd.f32 %v9576_v14, %v9575_v55  ;;  %v2090_v56 = vpop.permute.xlu1 %2089 }
 0x2ef   : > { %v3653_v61 = vpop.permute.xlu0 %3652  ;;  %2154 = vst.msk [vmem:[#allocation3 + $0x2f0] sm:$0xff] %vm1481_vm6, %v2090_v56  ;;  %v9578_v63 = vpop.f32.mrf.mxu1  ;;  %v2310_v3 = vld [vmem:[#allocation3 + $0x2d8] sm:$0xff] }
 0x2f0   : > { %3748 = vst.msk [vmem:[#allocation3] sm:$0xff] %vm1095_vm4, %v3653_v61  ;;  %v2637_v43 = vadd.f32 %v9577_v31, %v12566_v24 }
 0x2f1   : > { %v9579_v28 = vpop.f32.mrf.mxu1 }
 0x2f2   : > { %v12786_v26 = vadd.f32 %v12734_v7, %v2637_v43  ;;  %v9580_v53 = vadd.f32 %v9579_v28, %v9578_v63  ;;  %v1448_v2 = vpop.permute.xlu1 %1447 }
 0x2f3   : > { %v3847_v32 = vpop.permute.xlu0 %3846  ;;  %1513 = vst.msk [vmem:[#allocation3 + $0x2e8] sm:$0xff] %vm1481_vm6, %v1448_v2  ;;  %v2309_v45 = vld [vmem:[#allocation3 + $0x2d0] sm:$0xff] }
 0x2f4   : > { %v9179_v59 = vmul.f32 -1.442695, %v12786_v26  ;;  %v2640_v15 = vadd.f32 %v9580_v53, %v12566_v24 }
 0x2f5   : > { %v10358_v21 = vpop.eup %10357 }
 0x2f6   : > { %v12792_v19 = vmul.f32 %v10358_v21, %v12747_v57  ;;  %10361 = vpow2.f32 %v9179_v59  ;;  %v12795_v7 = vadd.f32 %v12743_v50, %v2640_v15  ;;  %v3655_v9 = vpop.permute.xlu1 %3654  ;;  %v2313_v22 = vld [vmem:[#allocation3 + $0x2f0] sm:$0xff] }
 0x2f7   : > { %v12797_v38 = vpop.permute.xlu0 %4544  ;;  %3749 = vst.msk [vmem:[#allocation3 + $0x18] sm:$0xff] %vm1095_vm4, %v3655_v9  ;;  %v2361_v37 = vpack.c.bf16 %v2313_v22, %v2310_v3 }
 0x2f8   : > { %16350 = vst [vmem:[#allocation39_spill] sm:$0xff] %v12797_v38  ;;  %v9180_v23 = vmul.f32 -1.442695, %v12795_v7  ;;  %3941 = vst.msk [vmem:[#allocation3 + $0x18] sm:$0xff] %vm1288_vm5, %v3847_v32  ;;  %3156 = vrot.lane.b32.xlu0 %v12792_v19, %s11158_s16 }
 0x2f9   : > { %2714 = vmatprep.mubr.bf16.mxu1 %v2361_v37 }
 0x2fa   : > { %v10360_v57 = vpop.eup %10359  ;;  %10363 = vpow2.f32 %v9180_v23  ;;  %v3845_v60 = vpop.permute.xlu1 %3844  ;;  %v2312_v10 = vld [vmem:[#allocation3 + $0x2e8] sm:$0xff] }
 0x2fb   : > { %v12805_v50 = vmul.f32 %v10360_v57, %v12753_v40  ;;  %v12807_v62 = vpop.permute.xlu0 %4736  ;;  %3940 = vst.msk [vmem:[#allocation3] sm:$0xff] %vm1288_vm5, %v3845_v60  ;;  %v2360_v17 = vpack.c.bf16 %v2312_v10, %v2309_v45  ;;  %v2805_v40 = vpop.f32.mrf.mxu0 }
 0x2fc   : > { %16351 = vst [vmem:[#allocation40_spill] sm:$0xff] %v12807_v62 }
 0x2fd   : > { %3158 = vrot.lane.b32.xlu1 %v12805_v50, %s11158_s16  ;;  %v9581_v20 = vpop.f32.mrf.mxu1  ;;  %2715 = vmatmul.mubr.bf16.gmra.mxu1 %v2360_v17  ;;  %v9972_v34 = vpop.f32.mrf.mxu0 }
 0x2fe   : > { %v12814_v36 = vpop.permute.xlu1 %4546 }
 0x2ff   : > { %16352 = vst [vmem:[#allocation41_spill] sm:$0xff] %v12814_v36  ;;  %v12816_v4 = vpop.permute.xlu0 %6303  ;;  %v9582_v6 = vpop.f32.mrf.mxu1 }
 0x300   : > { %16353 = vst [vmem:[#allocation42_spill] sm:$0xff] %v12816_v4  ;;  %v9583_v18 = vadd.f32 %v9582_v6, %v9581_v20  ;;  %v2808_v55 = vpop.f32.mrf.mxu0 }
 0x301   : > { %v9584_v11 = vpop.f32.mrf.mxu1 }
 0x302   : > { %v2645_v51 = vadd.f32 %v9583_v18, %v12566_v24  ;;  %v12819_v8 = vpop.permute.xlu1 %4738 }
 0x303   : > { %16354 = vst [vmem:[#allocation43_spill] sm:$0xff] %v12819_v8  ;;  %v12821_v29 = vpop.permute.xlu0 %6495  ;;  %v10362_v42 = vpop.eup %10361 }
 0x304   : > { %16355 = vst [vmem:[#allocation44_spill] sm:$0xff] %v12821_v29  ;;  %v9585_v39 = vpop.f32.mrf.mxu1  ;;  %v2990_v16 = vadd.f32 1.0, %v10362_v42  ;;  %v2806_v35 = vadd.f32 %v2805_v40, %v2645_v51 }
 0x305   : > { %v9586_v46 = vadd.f32 %v9585_v39, %v9584_v11 }
 0x306   : > { %10365 = vrcp.f32 %v2990_v16  ;;  %v9181_v44 = vmul.f32 -1.442695, %v2806_v35  ;;  %v12824_v12 = vpop.permute.xlu1 %6305 }
 0x307   : > { %v2648_v27 = vadd.f32 %v9586_v46, %v12566_v24  ;;  %16356 = vst [vmem:[#allocation45_spill] sm:$0xff] %v12824_v12  ;;  %v10364_v13 = vpop.eup %10363  ;;  %v12826_v31 = vpop.permute.xlu0 %7195 }
 0x308   : > { %v2991_v14 = vadd.f32 1.0, %v10364_v13  ;;  %10367 = vpow2.f32 %v9181_v44  ;;  %16357 = vst [vmem:[#allocation46_spill] sm:$0xff] %v12826_v31  ;;  %v12865_v13 = vpop.f32.mrf.mxu0 }
 0x309   : > { %v2809_v54 = vadd.f32 %v2808_v55, %v2648_v27 }
 0x30a   : > { %10369 = vrcp.f32 %v2991_v14  ;;  %v12828_v61 = vpop.permute.xlu1 %6497 }
 0x30b   : > { %v9182_v56 = vmul.f32 -1.442695, %v2809_v54  ;;  %16358 = vst [vmem:[#allocation47_spill] sm:$0xff] %v12828_v61 }
 0x30d   : > { %10371 = vpow2.f32 %v9182_v56  ;;  %v2821_v56 = vpop.f32.mrf.mxu0 }
 0x30e   : > { %v3141_v63 = vpop.permute.xlu0 %3140  ;;  %v12830_v43 = vpop.permute.xlu1 %7197 }
 0x30f   : > { %16359 = vst [vmem:[#allocation48_spill] sm:$0xff] %v12830_v43  ;;  %v3236_v28 = vadd.f32 %v3141_v63, %v12657_v5 }
 0x311   : > { %v9201_v41 = vmul.f32 -1.442695, %v3236_v28 }
 0x312   : > { %v3143_v53 = vpop.permute.xlu1 %3142 }
 0x313   : > { %v10366_v2 = vpop.eup %10365  ;;  %10373 = vpow2.f32 %v9201_v41  ;;  %v12834_v32 = vadd.f32 %v3143_v53, %v12669_v25 }
 0x314   : > { %v12837_v59 = vmul.f32 %v10366_v2, %v12786_v26 }
 0x315   : > { %v10368_v15 = vpop.eup %10367  ;;  %v9202_v3 = vmul.f32 -1.442695, %v12834_v32 }
 0x316   : > { %v2992_v21 = vadd.f32 1.0, %v10368_v15  ;;  %3160 = vrot.lane.b32.xlu0 %v12837_v59, %s11158_s16 }
 0x317   : > { %v10370_v9 = vpop.eup %10369  ;;  %10375 = vpow2.f32 %v9202_v3 }
 0x318   : > { %10377 = vrcp.f32 %v2992_v21  ;;  %v12843_v5 = vmul.f32 %v10370_v9, %v12795_v7  ;;  %v12875_v21 = vpop.f32.mrf.mxu0 }
 0x31a   : > { %v10372_v22 = vpop.eup %10371  ;;  %3162 = vrot.lane.b32.xlu1 %v12843_v5, %s11158_s16 }
 0x31b   : > { %v2993_v37 = vadd.f32 1.0, %v10372_v22  ;;  %v9587_v25 = vpop.f32.mrf.mxu1 }
 0x31d   : > { %10379 = vrcp.f32 %v2993_v37  ;;  %v9588_v26 = vpop.f32.mrf.mxu1 }
 0x31e   : > { %v9589_v23 = vadd.f32 %v9588_v26, %v9587_v25 }
 0x31f   : > { %v9590_v57 = vpop.f32.mrf.mxu1 }
 0x320   : > { %v2653_v60 = vadd.f32 %v9589_v23, %v12566_v24  ;;  %v10374_v45 = vpop.eup %10373 }
 0x321   : > { %v9591_v10 = vpop.f32.mrf.mxu1  ;;  %v3364_v17 = vadd.f32 1.0, %v10374_v45 }
 0x322   : > { %v12849_v20 = vadd.f32 %v12809_v30, %v2653_v60  ;;  %v9592_v7 = vadd.f32 %v9591_v10, %v9590_v57  ;;  %v2824_v60 = vpop.f32.mrf.mxu0 }
 0x323   : > { %10381 = vrcp.f32 %v3364_v17 }
 0x324   : > { %v9183_v40 = vmul.f32 -1.442695, %v12849_v20  ;;  %v2656_v6 = vadd.f32 %v9592_v7, %v12566_v24  ;;  %v10376_v18 = vpop.eup %10375 }
 0x325   : > { %v10378_v11 = vpop.eup %10377  ;;  %v3365_v51 = vadd.f32 1.0, %v10376_v18 }
 0x326   : > { %10383 = vpow2.f32 %v9183_v40  ;;  %v12853_v42 = vadd.f32 %v9972_v34, %v2656_v6  ;;  %v12855_v39 = vmul.f32 %v10378_v11, %v2806_v35 }
 0x327   : > { %10385 = vrcp.f32 %v3365_v51 }
 0x328   : > { %v9184_v16 = vmul.f32 -1.442695, %v12853_v42  ;;  %3164 = vrot.lane.b32.xlu0 %v12855_v39, %s11158_s16  ;;  %v3145_v30 = vpop.permute.xlu0 %3144 }
 0x329   : > { %v12861_v44 = vadd.f32 %v3145_v30, %v12697_v48 }
 0x32a   : > { %v10380_v46 = vpop.eup %10379  ;;  %10387 = vpow2.f32 %v9184_v16 }
 0x32b   : > { %v12863_v27 = vmul.f32 %v10380_v46, %v2809_v54  ;;  %v9203_v34 = vmul.f32 -1.442695, %v12861_v44 }
 0x32c   : > { %v3147_v35 = vpop.permute.xlu1 %3146  ;;  %v9593_v14 = vpop.f32.mrf.mxu1 }
 0x32d   : > { %3166 = vrot.lane.b32.xlu1 %v12863_v27, %s11158_s16  ;;  %10389 = vpow2.f32 %v9203_v34  ;;  %v12871_v55 = vadd.f32 %v3147_v35, %v12704_v47 }
 0x32e   : > { %v9594_v48 = vpop.f32.mrf.mxu1 }
 0x32f   : > { %v9204_v63 = vmul.f32 -1.442695, %v12871_v55  ;;  %v9595_v54 = vadd.f32 %v9594_v48, %v9593_v14 }
 0x330   : > { %v10382_v41 = vpop.eup %10381  ;;  %v9596_v2 = vpop.f32.mrf.mxu1 }
 0x331   : > { %v3460_v53 = vmul.f32 %v10382_v41, %v3236_v28  ;;  %10391 = vpow2.f32 %v9204_v63  ;;  %v2661_v3 = vadd.f32 %v9595_v54, %v12566_v24 }
 0x332   : > { %v9597_v47 = vpop.f32.mrf.mxu1 }
 0x333   : > { %v10384_v15 = vpop.eup %10383  ;;  %3492 = vst.msk [vmem:[#allocation2 + $0x19] sm:$0xff] %vm782_vm2, %v3460_v53  ;;  %v12878_v37 = vadd.f32 %v2821_v56, %v2661_v3  ;;  %v9598_v25 = vadd.f32 %v9597_v47, %v9596_v2 }
 0x334   : > { %v2994_v9 = vadd.f32 1.0, %v10384_v15  ;;  %v10386_v22 = vpop.eup %10385 }
 0x335   : > { %v3461_v26 = vmul.f32 %v10386_v22, %v12834_v32  ;;  %v9185_v28 = vmul.f32 -1.442695, %v12878_v37  ;;  %v2664_v57 = vadd.f32 %v9598_v25, %v12566_v24 }
 0x336   : > { %10393 = vrcp.f32 %v2994_v9 }
 0x337   : > { %v10388_v23 = vpop.eup %10387  ;;  %3493 = vst.msk [vmem:[#allocation2 + $0x21] sm:$0xff] %vm782_vm2, %v3461_v26  ;;  %10395 = vpow2.f32 %v9185_v28  ;;  %v12884_v10 = vadd.f32 %v2824_v60, %v2664_v57 }
 0x338   : > { %v2995_v45 = vadd.f32 1.0, %v10388_v23  ;;  %v12927_v23 = vld [vmem:[%s16252_s4] ss:$0 sm:$0xff] }
 0x339   : > { %v9186_v7 = vmul.f32 -1.442695, %v12884_v10 }
 0x33a   : > { %10397 = vrcp.f32 %v2995_v45  ;;  %v10390_v17 = vpop.eup %10389  ;;  %v3149_v40 = vpop.permute.xlu0 %3148  ;;  %v12887_v6 = vld [vmem:[#allocation2 + $0x19] sm:$0xff] }
 0x33b   : > { %v12889_v32 = vld [vmem:[#allocation2 + $0x18] sm:$0xff]  ;;  %v3366_v18 = vadd.f32 1.0, %v10390_v17  ;;  %v12892_v11 = vadd.f32 %v3149_v40, %v12721_v0  ;;  %4196 = vst.msk [vmem:[#allocation3 + $0x8] sm:$0xff] %vm782_vm2, %v12887_v6  ;;  %10399 = vpow2.f32 %v9186_v7 }
 0x33c   : > { %3558 = vst.msk [vmem:[#allocation3 + $0x30] sm:$0xff] %vm782_vm2, %v12889_v32 }
 0x33d   : > { %10401 = vrcp.f32 %v3366_v18  ;;  %v9205_v24 = vmul.f32 -1.442695, %v12892_v11 }
 0x33e   : > { %v10392_v51 = vpop.eup %10391  ;;  %v12899_v30 = vld [vmem:[#allocation2 + $0x20] sm:$0xff] }
 0x33f   : > { %v3151_v16 = vpop.permute.xlu1 %3150  ;;  %v12901_v46 = vld [vmem:[#allocation2 + $0x21] sm:$0xff]  ;;  %v3367_v34 = vadd.f32 1.0, %v10392_v51  ;;  %10403 = vpow2.f32 %v9205_v24  ;;  %3559 = vst.msk [vmem:[#allocation3 + $0x48] sm:$0xff] %vm782_vm2, %v12899_v30 }
 0x340   : > { %v12904_v0 = vadd.f32 %v3151_v16, %v12732_v58  ;;  %4197 = vst.msk [vmem:[#allocation3 + $0x20] sm:$0xff] %vm782_vm2, %v12901_v46 }
 0x341   : > { %10405 = vrcp.f32 %v3367_v34 }
 0x342   : > { %v9206_v35 = vmul.f32 -1.442695, %v12904_v0 }
 0x343   : > { %v10394_v14 = vpop.eup %10393 }
 0x344   : > { %v12912_v56 = vmul.f32 %v10394_v14, %v12849_v20  ;;  %10407 = vpow2.f32 %v9206_v35  ;;  %v10396_v63 = vpop.eup %10395 }
 0x345   : > { %v2996_v48 = vadd.f32 1.0, %v10396_v63 }
 0x346   : > { %3168 = vrot.lane.b32.xlu0 %v12912_v56, %s11158_s16 }
 0x347   : > { %v10398_v58 = vpop.eup %10397  ;;  %10409 = vrcp.f32 %v2996_v48 }
 0x348   : > { %v12917_v41 = vmul.f32 %v10398_v58, %v12853_v42  ;;  %v10400_v54 = vpop.eup %10399 }
 0x349   : > { %v2997_v2 = vadd.f32 1.0, %v10400_v54 }
 0x34a   : > { %3170 = vrot.lane.b32.xlu1 %v12917_v41, %s11158_s16  ;;  %v10402_v53 = vpop.eup %10401 }
 0x34b   : > { %v9599_v15 = vpop.f32.mrf.mxu1  ;;  %v3462_v20 = vmul.f32 %v10402_v53, %v12861_v44  ;;  %10411 = vrcp.f32 %v2997_v2 }
 0x34c   : > { %v10404_v3 = vpop.eup %10403 }
 0x34d   : > { %v9600_v9 = vpop.f32.mrf.mxu1  ;;  %3494 = vst.msk [vmem:[#allocation2 + $0x31] sm:$0xff] %vm782_vm2, %v3462_v20  ;;  %v3368_v47 = vadd.f32 1.0, %v10404_v3 }
 0x34e   : > { %v9601_v22 = vadd.f32 %v9600_v9, %v9599_v15  ;;  %v10406_v25 = vpop.eup %10405 }
 0x34f   : > { %v9602_v42 = vpop.f32.mrf.mxu1  ;;  %v3463_v26 = vmul.f32 %v10406_v25, %v12871_v55  ;;  %10413 = vrcp.f32 %v3368_v47 }
 0x350   : > { %v2669_v28 = vadd.f32 %v12927_v23, %v9601_v22 }
 0x351   : > { %v10408_v44 = vpop.eup %10407  ;;  %v9603_v57 = vpop.f32.mrf.mxu1  ;;  %3495 = vst.msk [vmem:[#allocation2 + $0x39] sm:$0xff] %vm782_vm2, %v3463_v26 }
 0x352   : > { %v3369_v60 = vadd.f32 1.0, %v10408_v44  ;;  %v12932_v45 = vadd.f32 %v12865_v13, %v2669_v28  ;;  %v9604_v17 = vadd.f32 %v9603_v57, %v9602_v42  ;;  %v12947_v13 = vpop.f32.mrf.mxu0 }
 0x354   : > { %10415 = vrcp.f32 %v3369_v60  ;;  %v9187_v55 = vmul.f32 -1.442695, %v12932_v45  ;;  %v2672_v7 = vadd.f32 %v12927_v23, %v9604_v17  ;;  %v12936_v40 = vld [vmem:[#allocation2 + $0x31] sm:$0xff]  ;;  %v10410_v24 = vpop.eup %10409  ;;  %v2837_v53 = vpop.f32.mrf.mxu0 }
 0x355   : > { %v12938_v18 = vld [vmem:[#allocation2 + $0x30] sm:$0xff]  ;;  %4198 = vst.msk [vmem:[#allocation3 + $0x38] sm:$0xff] %vm782_vm2, %v12936_v40  ;;  %v12950_v16 = vmul.f32 %v10410_v24, %v12878_v37 }
 0x356   : > { %10417 = vpow2.f32 %v9187_v55  ;;  %v12941_v51 = vadd.f32 %v12875_v21, %v2672_v7  ;;  %3560 = vst.msk [vmem:[#allocation3 + $0x60] sm:$0xff] %vm782_vm2, %v12938_v18  ;;  %v12985_v42 = vpop.f32.mrf.mxu0 }
 0x357   : > { %3172 = vrot.lane.b32.xlu0 %v12950_v16, %s11158_s16 }
 0x358   : > { %v9188_v34 = vmul.f32 -1.442695, %v12941_v51  ;;  %v3153_v35 = vpop.permute.xlu0 %3152  ;;  %v9605_v14 = vpop.f32.mrf.mxu1  ;;  %v12955_v21 = vld [vmem:[#allocation2 + $0x32] sm:$0xff]  ;;  %v12957_v63 = vld [vmem:[#allocation2 + $0x3a] sm:$0xff] }
 0x359   : > { %v12959_v58 = vld [vmem:[#allocation2 + $0x38] sm:$0xff]  ;;  %v10412_v48 = vpop.eup %10411  ;;  %v12962_v54 = vadd.f32 %v3153_v35, %v12763_v49  ;;  %4836 = vst.msk [vmem:[#allocation3 + $0x10] sm:$0xff] %vm782_vm2, %v12955_v21  ;;  %4837 = vst.msk [vmem:[#allocation3 + $0x28] sm:$0xff] %vm782_vm2, %v12957_v63 }
 0x35a   : > { %10419 = vpow2.f32 %v9188_v34  ;;  %v12968_v37 = vld [vmem:[#allocation2 + $0x39] sm:$0xff]  ;;  %3561 = vst.msk [vmem:[#allocation3 + $0x78] sm:$0xff] %vm782_vm2, %v12959_v58  ;;  %v9606_v2 = vpop.f32.mrf.mxu1  ;;  %v12973_v15 = vmul.f32 %v10412_v48, %v12884_v10  ;;  %v2840_v34 = vpop.f32.mrf.mxu0 }
 0x35b   : > { %4199 = vst.msk [vmem:[#allocation3 + $0x50] sm:$0xff] %vm782_vm2, %v12968_v37  ;;  %v9207_v49 = vmul.f32 -1.442695, %v12962_v54  ;;  %v9607_v20 = vadd.f32 %v9606_v2, %v9605_v14 }
 0x35c   : > { %v10414_v3 = vpop.eup %10413  ;;  %3174 = vrot.lane.b32.xlu1 %v12973_v15, %s11158_s16  ;;  %v3155_v9 = vpop.permute.xlu1 %3154 }
 0x35d   : > { %v9608_v47 = vpop.f32.mrf.mxu1  ;;  %v3464_v22 = vmul.f32 %v10414_v3, %v12892_v11  ;;  %10421 = vpow2.f32 %v9207_v49  ;;  %v2677_v25 = vadd.f32 %v12927_v23, %v9607_v20  ;;  %v12983_v10 = vadd.f32 %v3155_v9, %v12770_v33 }
 0x35f   : > { %v9609_v26 = vpop.f32.mrf.mxu1  ;;  %3496 = vst.msk [vmem:[#allocation2 + $0x49] sm:$0xff] %vm782_vm2, %v3464_v22  ;;  %v12988_v28 = vadd.f32 %v2837_v53, %v2677_v25  ;;  %v9208_v44 = vmul.f32 -1.442695, %v12983_v10 }
 0x360   : > { %v9610_v57 = vadd.f32 %v9609_v26, %v9608_v47  ;;  %v4870_v17 = vld [vmem:[#allocation3 + $0x10] sm:$0xff]  ;;  %v4873_v55 = vld [vmem:[#allocation3 + $0x28] sm:$0xff] }
 0x361   : > { %v10416_v60 = vpop.eup %10415  ;;  %v9189_v7 = vmul.f32 -1.442695, %v12988_v28  ;;  %10423 = vpow2.f32 %v9208_v44  ;;  %v4966_v35 = vpack.c.bf16 %v4873_v55, %v4870_v17 }
 0x362   : > { %v3465_v11 = vmul.f32 %v10416_v60, %v12904_v0  ;;  %v2680_v33 = vadd.f32 %v12927_v23, %v9610_v57 }
 0x363   : > { %v10418_v24 = vpop.eup %10417  ;;  %10425 = vpow2.f32 %v9189_v7  ;;  %9993 = vmatprep.mubr.msk.bf16.mxu1 %vm782_vm2, %v4966_v35 }
 0x364   : > { %3497 = vst.msk [vmem:[#allocation2 + $0x51] sm:$0xff] %vm782_vm2, %v3465_v11  ;;  %v2998_v14 = vadd.f32 1.0, %v10418_v24  ;;  %v12995_v48 = vadd.f32 %v2840_v34, %v2680_v33 }
 0x366   : > { %10427 = vrcp.f32 %v2998_v14  ;;  %v9190_v53 = vmul.f32 -1.442695, %v12995_v48  ;;  %v12999_v2 = vld [vmem:[#allocation2 + $0x49] sm:$0xff] }
 0x367   : > { %v10420_v0 = vpop.eup %10419  ;;  %v13001_v49 = vld [vmem:[#allocation2 + $0x48] sm:$0xff]  ;;  %4200 = vst.msk [vmem:[#allocation3 + $0x68] sm:$0xff] %vm782_vm2, %v12999_v2 }
 0x368   : > { %v2999_v20 = vadd.f32 1.0, %v10420_v0  ;;  %10429 = vpow2.f32 %v9190_v53  ;;  %3562 = vst.msk [vmem:[#allocation3 + $0x90] sm:$0xff] %vm782_vm2, %v13001_v49 }
 0x36a   : > { %10431 = vrcp.f32 %v2999_v20  ;;  %v10422_v3 = vpop.eup %10421  ;;  %v3157_v9 = vpop.permute.xlu0 %3156 }
 0x36b   : > { %v9611_v47 = vpop.f32.mrf.mxu1  ;;  %v13007_v22 = vld [vmem:[#allocation2 + $0x4a] sm:$0xff]  ;;  %v13009_v25 = vld [vmem:[#allocation2 + $0x52] sm:$0xff]  ;;  %v3370_v44 = vadd.f32 1.0, %v10422_v3  ;;  %v13014_v57 = vadd.f32 %v3157_v9, %v12792_v19 }
 0x36c   : > { %v13011_v26 = vld [vmem:[#allocation2 + $0x50] sm:$0xff]  ;;  %4838 = vst.msk [vmem:[#allocation3 + $0x40] sm:$0xff] %vm782_vm2, %v13007_v22  ;;  %4839 = vst.msk [vmem:[#allocation3 + $0x58] sm:$0xff] %vm782_vm2, %v13009_v25 }
 0x36d   : > { %v13020_v60 = vld [vmem:[#allocation2 + $0x51] sm:$0xff]  ;;  %3563 = vst.msk [vmem:[#allocation3 + $0xa8] sm:$0xff] %vm782_vm2, %v13011_v26  ;;  %v9612_v17 = vpop.f32.mrf.mxu1  ;;  %10433 = vrcp.f32 %v3370_v44  ;;  %v9209_v55 = vmul.f32 -1.442695, %v13014_v57 }
 0x36e   : > { %4201 = vst.msk [vmem:[#allocation3 + $0x80] sm:$0xff] %vm782_vm2, %v13020_v60  ;;  %v9613_v19 = vadd.f32 %v9612_v17, %v9611_v47  ;;  %v10424_v11 = vpop.eup %10423 }
 0x36f   : > { %v3159_v7 = vpop.permute.xlu1 %3158  ;;  %v9614_v33 = vpop.f32.mrf.mxu1  ;;  %v3371_v24 = vadd.f32 1.0, %v10424_v11  ;;  %10435 = vpow2.f32 %v9209_v55 }
 0x370   : > { %v2685_v34 = vadd.f32 %v12927_v23, %v9613_v19  ;;  %v13029_v35 = vadd.f32 %v3159_v7, %v12805_v50  ;;  %v10426_v14 = vpop.eup %10425  ;;  %v13035_v11 = vpop.f32.mrf.mxu0 }
 0x371   : > { %v9615_v53 = vpop.f32.mrf.mxu1  ;;  %v3000_v0 = vadd.f32 1.0, %v10426_v14  ;;  %10437 = vrcp.f32 %v3371_v24 }
 0x372   : > { %v13032_v20 = vadd.f32 %v12947_v13, %v2685_v34  ;;  %v9210_v3 = vmul.f32 -1.442695, %v13029_v35  ;;  %v9616_v47 = vadd.f32 %v9615_v53, %v9614_v33  ;;  %v2853_v14 = vpop.f32.mrf.mxu0 }
 0x373   : > { %v10428_v9 = vpop.eup %10427  ;;  %v4876_v44 = vld [vmem:[#allocation3 + $0x40] sm:$0xff]  ;;  %v4879_v17 = vld [vmem:[#allocation3 + $0x58] sm:$0xff]  ;;  %10439 = vrcp.f32 %v3000_v0 }
 0x374   : > { %v13038_v55 = vmul.f32 %v10428_v9, %v12932_v45  ;;  %v9191_v50 = vmul.f32 -1.442695, %v13032_v20  ;;  %v4969_v19 = vpack.c.bf16 %v4879_v17, %v4876_v44  ;;  %10441 = vpow2.f32 %v9210_v3 }
 0x375   : > { %v10430_v7 = vpop.eup %10429  ;;  %v2688_v13 = vadd.f32 %v12927_v23, %v9616_v47  ;;  %v9617_v33 = vpop.f32.mrf.mxu1 }
 0x376   : > { %v3001_v24 = vadd.f32 1.0, %v10430_v7  ;;  %10443 = vpow2.f32 %v9191_v50  ;;  %9994 = vmatmul.mubr.msk.bf16.vlgmr.msra.gmra.mxu1 %vm782_vm2, %v4969_v19  ;;  %3176 = vrot.lane.b32.xlu0 %v13038_v55, %s11158_s16  ;;  %v13055_v50 = vpop.f32.mrf.mxu0 }
 0x377   : > { %v10432_v34 = vpop.eup %10431  ;;  %v13046_v45 = vadd.f32 %v12985_v42, %v2688_v13  ;;  %v9618_v53 = vpop.f32.mrf.mxu1 }
 0x378   : > { %10445 = vrcp.f32 %v3001_v24  ;;  %v13049_v0 = vmul.f32 %v10432_v34, %v12941_v51  ;;  %v9619_v9 = vadd.f32 %v9618_v53, %v9617_v33 }
 0x379   : > { %v9192_v3 = vmul.f32 -1.442695, %v13046_v45  ;;  %v9620_v47 = vpop.f32.mrf.mxu1 }
 0x37a   : > { %3178 = vrot.lane.b32.xlu1 %v13049_v0, %s11158_s16  ;;  %v10434_v44 = vpop.eup %10433  ;;  %v2693_v17 = vadd.f32 %v12927_v23, %v9619_v9 }
 0x37b   : > { %10447 = vpow2.f32 %v9192_v3  ;;  %v3466_v42 = vmul.f32 %v10434_v44, %v12962_v54  ;;  %v9621_v19 = vpop.f32.mrf.mxu1  ;;  %v2856_v3 = vpop.f32.mrf.mxu0 }
 0x37c   : > { %v10436_v7 = vpop.eup %10435  ;;  %v13058_v13 = vadd.f32 %v2853_v14, %v2693_v17  ;;  %v9622_v51 = vadd.f32 %v9621_v19, %v9620_v47 }
 0x37d   : > { %3498 = vst.msk [vmem:[#allocation2 + $0x61] sm:$0xff] %vm782_vm2, %v3466_v42  ;;  %v3372_v24 = vadd.f32 1.0, %v10436_v7 }
 0x37e   : > { %v10438_v33 = vpop.eup %10437  ;;  %v9193_v34 = vmul.f32 -1.442695, %v13058_v13  ;;  %v2696_v53 = vadd.f32 %v12927_v23, %v9622_v51 }
 0x37f   : > { %v3467_v9 = vmul.f32 %v10438_v33, %v12983_v10  ;;  %10449 = vrcp.f32 %v3372_v24 }
 0x380   : > { %v10440_v43 = vpop.eup %10439  ;;  %10451 = vpow2.f32 %v9193_v34  ;;  %v13064_v54 = vadd.f32 %v2856_v3, %v2696_v53 }
 0x381   : > { %v10442_v44 = vpop.eup %10441  ;;  %v13067_v14 = vmul.f32 %v10440_v43, %v12988_v28  ;;  %3499 = vst.msk [vmem:[#allocation2 + $0x69] sm:$0xff] %vm782_vm2, %v3467_v9 }
 0x382   : > { %v3373_v17 = vadd.f32 1.0, %v10442_v44  ;;  %v9194_v42 = vmul.f32 -1.442695, %v13064_v54 }
 0x383   : > { %v10444_v47 = vpop.eup %10443  ;;  %3180 = vrot.lane.b32.xlu0 %v13067_v14, %s11158_s16 }
 0x384   : > { %v3002_v19 = vadd.f32 1.0, %v10444_v47  ;;  %10453 = vrcp.f32 %v3373_v17  ;;  %v13073_v7 = vld [vmem:[#allocation2 + $0x60] sm:$0xff] }
 0x385   : > { %v10446_v10 = vpop.eup %10445  ;;  %v13075_v51 = vld [vmem:[#allocation2 + $0x61] sm:$0xff]  ;;  %3564 = vst.msk [vmem:[#allocation3 + $0xc0] sm:$0xff] %vm782_vm2, %v13073_v7 }
 0x386   : > { %10455 = vrcp.f32 %v3002_v19  ;;  %v13078_v43 = vmul.f32 %v10446_v10, %v12995_v48  ;;  %4202 = vst.msk [vmem:[#allocation3 + $0x98] sm:$0xff] %vm782_vm2, %v13075_v51 }
 0x387   : > { %10457 = vpow2.f32 %v9194_v42 }
 0x388   : > { %v10448_v28 = vpop.eup %10447  ;;  %3182 = vrot.lane.b32.xlu1 %v13078_v43, %s11158_s16  ;;  %v3161_v33 = vpop.permute.xlu0 %3160  ;;  %v13086_v34 = vld [vmem:[#allocation2 + $0x62] sm:$0xff]  ;;  %v13088_v53 = vld [vmem:[#allocation2 + $0x6a] sm:$0xff] }
 0x389   : > { %v3003_v24 = vadd.f32 1.0, %v10448_v28  ;;  %v13090_v3 = vld [vmem:[#allocation2 + $0x68] sm:$0xff]  ;;  %v13093_v48 = vadd.f32 %v3161_v33, %v12837_v59  ;;  %4840 = vst.msk [vmem:[#allocation3 + $0x70] sm:$0xff] %vm782_vm2, %v13086_v34  ;;  %4841 = vst.msk [vmem:[#allocation3 + $0x88] sm:$0xff] %vm782_vm2, %v13088_v53 }
 0x38a   : > { %v13099_v9 = vld [vmem:[#allocation2 + $0x69] sm:$0xff]  ;;  %3565 = vst.msk [vmem:[#allocation3 + $0xd8] sm:$0xff] %vm782_vm2, %v13090_v3 }
 0x38b   : > { %10459 = vrcp.f32 %v3003_v24  ;;  %4203 = vst.msk [vmem:[#allocation3 + $0xb0] sm:$0xff] %vm782_vm2, %v13099_v9  ;;  %v9211_v44 = vmul.f32 -1.442695, %v13093_v48 }
 0x38c   : > { %v10450_v47 = vpop.eup %10449  ;;  %v3163_v59 = vpop.permute.xlu1 %3162 }
 0x38d   : > { %v10452_v17 = vpop.eup %10451  ;;  %v3468_v42 = vmul.f32 %v10450_v47, %v13014_v57  ;;  %10461 = vpow2.f32 %v9211_v44  ;;  %v13108_v19 = vadd.f32 %v3163_v59, %v12843_v5  ;;  %v9623_v10 = vpop.f32.mrf.mxu1 }
 0x38e   : > { %v3004_v28 = vadd.f32 1.0, %v10452_v17 }
 0x38f   : > { %3500 = vst.msk [vmem:[#allocation2 + $0x79] sm:$0xff] %vm782_vm2, %v3468_v42  ;;  %v9212_v24 = vmul.f32 -1.442695, %v13108_v19  ;;  %v9624_v33 = vpop.f32.mrf.mxu1 }
 0x390   : > { %10463 = vrcp.f32 %v3004_v28  ;;  %v9625_v31 = vadd.f32 %v9624_v33, %v9623_v10  ;;  %v4882_v1 = vld [vmem:[#allocation3 + $0x70] sm:$0xff]  ;;  %v4885_v52 = vld [vmem:[#allocation3 + $0x88] sm:$0xff] }
 0x391   : > { %v10454_v8 = vpop.eup %10453  ;;  %10465 = vpow2.f32 %v9212_v24  ;;  %v9626_v62 = vpop.f32.mrf.mxu1  ;;  %v4972_v36 = vpack.c.bf16 %v4885_v52, %v4882_v1 }
 0x392   : > { %v3469_v44 = vmul.f32 %v10454_v8, %v13029_v35  ;;  %v2701_v5 = vadd.f32 %v12927_v23, %v9625_v31 }
 0x393   : > { %v10456_v57 = vpop.eup %10455  ;;  %9997 = vmatprep.mubr.msk.bf16.mxu1 %vm782_vm2, %v4972_v36  ;;  %v9627_v17 = vpop.f32.mrf.mxu1 }
 0x394   : > { %v10458_v47 = vpop.eup %10457  ;;  %v13115_v59 = vmul.f32 %v10456_v57, %v13032_v20  ;;  %3501 = vst.msk [vmem:[#allocation2 + $0x81] sm:$0xff] %vm782_vm2, %v3469_v44  ;;  %v13120_v10 = vadd.f32 %v13035_v11, %v2701_v5  ;;  %v9628_v28 = vadd.f32 %v9627_v17, %v9626_v62 }
 0x395   : > { %v3005_v42 = vadd.f32 1.0, %v10458_v47 }
 0x396   : > { %3184 = vrot.lane.b32.xlu0 %v13115_v59, %s11158_s16  ;;  %v9195_v52 = vmul.f32 -1.442695, %v13120_v10  ;;  %v2704_v1 = vadd.f32 %v12927_v23, %v9628_v28  ;;  %v13126_v8 = vld [vmem:[#allocation2 + $0x78] sm:$0xff] }
 0x397   : > { %10467 = vrcp.f32 %v3005_v42  ;;  %v13128_v31 = vld [vmem:[#allocation2 + $0x79] sm:$0xff]  ;;  %3566 = vst.msk [vmem:[#allocation3 + $0xf0] sm:$0xff] %vm782_vm2, %v13126_v8 }
 0x398   : > { %v10460_v36 = vpop.eup %10459  ;;  %4204 = vst.msk [vmem:[#allocation3 + $0xc8] sm:$0xff] %vm782_vm2, %v13128_v31  ;;  %10469 = vpow2.f32 %v9195_v52  ;;  %v13135_v62 = vadd.f32 %v13055_v50, %v2704_v1 }
 0x399   : > { %v13138_v35 = vmul.f32 %v10460_v36, %v13046_v45 }
 0x39a   : > { %v10462_v20 = vpop.eup %10461  ;;  %v9196_v11 = vmul.f32 -1.442695, %v13135_v62  ;;  %v3165_v24 = vpop.permute.xlu0 %3164 }
 0x39b   : > { %3186 = vrot.lane.b32.xlu1 %v13138_v35, %s11158_s16  ;;  %v3374_v33 = vadd.f32 1.0, %v10462_v20  ;;  %v13144_v57 = vadd.f32 %v3165_v24, %v12855_v39  ;;  %v13146_v44 = vld [vmem:[#allocation2 + $0x7a] sm:$0xff]  ;;  %v13148_v5 = vld [vmem:[#allocation2 + $0x82] sm:$0xff]  ;;  %v13172_v20 = vpop.f32.mrf.mxu0 }
 0x39c   : > { %16360 = vst [vmem:[#allocation49_spill] sm:$0xff] %v13146_v44  ;;  %16361 = vst [vmem:[#allocation50_spill] sm:$0xff] %v13148_v5  ;;  %v13150_v50 = vld [vmem:[#allocation2 + $0x80] sm:$0xff]  ;;  %10471 = vpow2.f32 %v9196_v11 }
 0x39d   : > { %4842 = vst.msk [vmem:[#allocation3 + $0xa0] sm:$0xff] %vm782_vm2, %v13146_v44  ;;  %4843 = vst.msk [vmem:[#allocation3 + $0xb8] sm:$0xff] %vm782_vm2, %v13148_v5  ;;  %v13156_v45 = vld [vmem:[#allocation2 + $0x81] sm:$0xff]  ;;  %v10464_v39 = vpop.eup %10463  ;;  %10473 = vrcp.f32 %v3374_v33  ;;  %v9213_v47 = vmul.f32 -1.442695, %v13144_v57 }
 0x39e   : > { %3567 = vst.msk [vmem:[#allocation3 + $0x108] sm:$0xff] %vm782_vm2, %v13150_v50  ;;  %4205 = vst.msk [vmem:[#allocation3 + $0xe0] sm:$0xff] %vm782_vm2, %v13156_v45  ;;  %v10466_v17 = vpop.eup %10465  ;;  %v13164_v42 = vmul.f32 %v10464_v39, %v13058_v13 }
 0x39f   : > { %v3167_v28 = vpop.permute.xlu1 %3166  ;;  %v3375_v52 = vadd.f32 1.0, %v10466_v17  ;;  %10475 = vpow2.f32 %v9213_v47 }
 0x3a0   : > { %v13167_v1 = vadd.f32 %v3167_v28, %v12863_v27  ;;  %3188 = vrot.lane.b32.xlu0 %v13164_v42, %s11158_s16  ;;  %v2869_v27 = vpop.f32.mrf.mxu0 }
 0x3a1   : > { %10477 = vrcp.f32 %v3375_v52 }
 0x3a2   : > { %v9214_v36 = vmul.f32 -1.442695, %v13167_v1  ;;  %v13180_v12 = vpop.f32.mrf.mxu0 }
 0x3a4   : > { %v10468_v11 = vpop.eup %10467  ;;  %10479 = vpow2.f32 %v9214_v36  ;;  %v4888_v24 = vld [vmem:[#allocation3 + $0xa0] sm:$0xff]  ;;  %v4891_v33 = vld [vmem:[#allocation3 + $0xb8] sm:$0xff] }
 0x3a5   : > { %v13175_v13 = vmul.f32 %v10468_v11, %v13064_v54  ;;  %v4975_v39 = vpack.c.bf16 %v4891_v33, %v4888_v24  ;;  %v10470_v47 = vpop.eup %10469  ;;  %v9629_v17 = vpop.f32.mrf.mxu1 }
 0x3a6   : > { %v3006_v28 = vadd.f32 1.0, %v10470_v47 }
 0x3a7   : > { %3190 = vrot.lane.b32.xlu1 %v13175_v13, %s11158_s16  ;;  %9998 = vmatmul.mubr.msk.bf16.gmra.mxu1 %vm782_vm2, %v4975_v39  ;;  %v9630_v52 = vpop.f32.mrf.mxu1 }
 0x3a8   : > { %10481 = vrcp.f32 %v3006_v28  ;;  %v9631_v38 = vadd.f32 %v9630_v52, %v9629_v17  ;;  %v2872_v17 = vpop.f32.mrf.mxu0 }
 0x3a9   : > { %v10472_v61 = vpop.eup %10471  ;;  %v9632_v36 = vpop.f32.mrf.mxu1 }
 0x3aa   : > { %v10474_v29 = vpop.eup %10473  ;;  %v3007_v54 = vadd.f32 1.0, %v10472_v61  ;;  %v2709_v11 = vadd.f32 %v12927_v23, %v9631_v38 }
 0x3ab   : > { %v3470_v24 = vmul.f32 %v10474_v29, %v13093_v48  ;;  %v9633_v33 = vpop.f32.mrf.mxu1 }
 0x3ac   : > { %v10476_v47 = vpop.eup %10475  ;;  %10483 = vrcp.f32 %v3007_v54  ;;  %v9634_v4 = vadd.f32 %v9633_v33, %v9632_v36  ;;  %v13184_v44 = vadd.f32 %v2869_v27, %v2709_v11 }
 0x3ad   : > { %3502 = vst.msk [vmem:[#allocation2 + $0x91] sm:$0xff] %vm782_vm2, %v3470_v24  ;;  %v3376_v39 = vadd.f32 1.0, %v10476_v47 }
 0x3ae   : > { %v10478_v28 = vpop.eup %10477  ;;  %v9197_v52 = vmul.f32 -1.442695, %v13184_v44  ;;  %v2712_v5 = vadd.f32 %v12927_v23, %v9634_v4 }
 0x3af   : > { %v3471_v61 = vmul.f32 %v10478_v28, %v13108_v19  ;;  %10485 = vrcp.f32 %v3376_v39 }
 0x3b0   : > { %10487 = vpow2.f32 %v9197_v52  ;;  %v13190_v29 = vadd.f32 %v2872_v17, %v2712_v5 }
 0x3b1   : > { %v10480_v38 = vpop.eup %10479  ;;  %3503 = vst.msk [vmem:[#allocation2 + $0x99] sm:$0xff] %vm782_vm2, %v3471_v61 }
 0x3b2   : > { %v3377_v48 = vadd.f32 1.0, %v10480_v38  ;;  %v9198_v27 = vmul.f32 -1.442695, %v13190_v29 }
 0x3b4   : > { %10489 = vrcp.f32 %v3377_v48  ;;  %v13194_v36 = vld [vmem:[#allocation2 + $0x90] sm:$0xff] }
 0x3b5   : > { %10491 = vpow2.f32 %v9198_v27  ;;  %v13196_v54 = vld [vmem:[#allocation2 + $0x91] sm:$0xff]  ;;  %v10482_v11 = vpop.eup %10481  ;;  %3568 = vst.msk [vmem:[#allocation3 + $0x120] sm:$0xff] %vm782_vm2, %v13194_v36 }
 0x3b6   : > { %16362 = vst [vmem:[#allocation51_spill] sm:$0xff] %v13196_v54  ;;  %4206 = vst.msk [vmem:[#allocation3 + $0xf8] sm:$0xff] %vm782_vm2, %v13196_v54  ;;  %v13203_v4 = vmul.f32 %v10482_v11, %v13120_v10 }
 0x3b8   : > { %v3169_v19 = vpop.permute.xlu0 %3168  ;;  %3192 = vrot.lane.b32.xlu0 %v13203_v4, %s11158_s16  ;;  %v13210_v24 = vld [vmem:[#allocation2 + $0x92] sm:$0xff]  ;;  %v13212_v33 = vld [vmem:[#allocation2 + $0x9a] sm:$0xff] }
 0x3b9   : > { %v13206_v5 = vadd.f32 %v3169_v19, %v12912_v56  ;;  %16363 = vst [vmem:[#allocation52_spill] sm:$0xff] %v13210_v24  ;;  %16364 = vst [vmem:[#allocation53_spill] sm:$0xff] %v13212_v33  ;;  %v13214_v47 = vld [vmem:[#allocation2 + $0x98] sm:$0xff]  ;;  %v10484_v39 = vpop.eup %10483 }
 0x3ba   : > { %16365 = vst [vmem:[#allocation54_spill] sm:$0xff] %v13214_v47  ;;  %4844 = vst.msk [vmem:[#allocation3 + $0xd0] sm:$0xff] %vm782_vm2, %v13210_v24  ;;  %v13220_v10 = vld [vmem:[#allocation2 + $0x99] sm:$0xff]  ;;  %v13225_v56 = vmul.f32 %v10484_v39, %v13135_v62 }
 0x3bb   : > { %4845 = vst.msk [vmem:[#allocation3 + $0xe8] sm:$0xff] %vm782_vm2, %v13212_v33  ;;  %16366 = vst [vmem:[#allocation55_spill] sm:$0xff] %v13220_v10  ;;  %v9215_v17 = vmul.f32 -1.442695, %v13206_v5 }
 0x3bc   : > { %3569 = vst.msk [vmem:[#allocation3 + $0x138] sm:$0xff] %vm782_vm2, %v13214_v47  ;;  %4207 = vst.msk [vmem:[#allocation3 + $0x110] sm:$0xff] %vm782_vm2, %v13220_v10  ;;  %v3171_v28 = vpop.permute.xlu1 %3170  ;;  %v10486_v52 = vpop.eup %10485  ;;  %3194 = vrot.lane.b32.xlu1 %v13225_v56, %s11158_s16 }
 0x3bd   : > { %10493 = vpow2.f32 %v9215_v17  ;;  %v13231_v61 = vadd.f32 %v3171_v28, %v12917_v41  ;;  %v10488_v38 = vpop.eup %10487  ;;  %v3472_v48 = vmul.f32 %v10486_v52, %v13144_v57  ;;  %v9635_v27 = vpop.f32.mrf.mxu1 }
 0x3be   : > { %v3008_v62 = vadd.f32 1.0, %v10488_v38 }
 0x3bf   : > { %v9216_v11 = vmul.f32 -1.442695, %v13231_v61  ;;  %3504 = vst.msk [vmem:[#allocation2 + $0xa9] sm:$0xff] %vm782_vm2, %v3472_v48  ;;  %v9636_v19 = vpop.f32.mrf.mxu1 }
 0x3c0   : > { %10495 = vrcp.f32 %v3008_v62  ;;  %v9637_v24 = vadd.f32 %v9636_v19, %v9635_v27 }
 0x3c1   : > { %v10490_v39 = vpop.eup %10489  ;;  %v4894_v17 = vld [vmem:[#allocation3 + $0xd0] sm:$0xff]  ;;  %10497 = vpow2.f32 %v9216_v11  ;;  %v9638_v10 = vpop.f32.mrf.mxu1 }
 0x3c2   : > { %v4897_v33 = vld [vmem:[#allocation3 + $0xe8] sm:$0xff]  ;;  %v10492_v41 = vpop.eup %10491  ;;  %v3473_v28 = vmul.f32 %v10490_v39, %v13167_v1  ;;  %v2717_v57 = vadd.f32 %v12927_v23, %v9637_v24 }
 0x3c3   : > { %v4978_v47 = vpack.c.bf16 %v4897_v33, %v4894_v17  ;;  %v3009_v54 = vadd.f32 1.0, %v10492_v41  ;;  %v9639_v52 = vpop.f32.mrf.mxu1 }
 0x3c4   : > { %3505 = vst.msk [vmem:[#allocation2 + $0xb1] sm:$0xff] %vm782_vm2, %v3473_v28  ;;  %v13243_v38 = vadd.f32 %v13172_v20, %v2717_v57  ;;  %v9640_v48 = vadd.f32 %v9639_v52, %v9638_v10 }
 0x3c5   : > { %10001 = vmatprep.mubr.msk.bf16.mxu1 %vm782_vm2, %v4978_v47  ;;  %10499 = vrcp.f32 %v3009_v54 }
 0x3c6   : > { %v9199_v27 = vmul.f32 -1.442695, %v13243_v38  ;;  %v2720_v1 = vadd.f32 %v12927_v23, %v9640_v48  ;;  %v13247_v62 = vld [vmem:[#allocation2 + $0xa8] sm:$0xff] }
 0x3c7   : > { %v13249_v33 = vld [vmem:[#allocation2 + $0xa9] sm:$0xff]  ;;  %3570 = vst.msk [vmem:[#allocation3 + $0x150] sm:$0xff] %vm782_vm2, %v13247_v62 }
 0x3c8   : > { %4208 = vst.msk [vmem:[#allocation3 + $0x128] sm:$0xff] %vm782_vm2, %v13249_v33  ;;  %10501 = vpow2.f32 %v9199_v27  ;;  %v13256_v54 = vadd.f32 %v13180_v12, %v2720_v1 }
 0x3c9   : > { %v3173_v10 = vpop.permute.xlu0 %3172 }
 0x3ca   : > { %v10494_v20 = vpop.eup %10493  ;;  %v9200_v47 = vmul.f32 -1.442695, %v13256_v54  ;;  %v13266_v39 = vadd.f32 %v3173_v10, %v12950_v16 }
 0x3cb   : > { %v3378_v24 = vadd.f32 1.0, %v10494_v20  ;;  %v13259_v23 = vld [vmem:[#allocation2 + $0xaa] sm:$0xff]  ;;  %v13261_v11 = vld [vmem:[#allocation2 + $0xb2] sm:$0xff] }
 0x3cc   : > { %v13263_v19 = vld [vmem:[#allocation2 + $0xb0] sm:$0xff]  ;;  %4846 = vst.msk [vmem:[#allocation3 + $0x100] sm:$0xff] %vm782_vm2, %v13259_v23  ;;  %4847 = vst.msk [vmem:[#allocation3 + $0x118] sm:$0xff] %vm782_vm2, %v13261_v11  ;;  %v9217_v16 = vmul.f32 -1.442695, %v13266_v39 }
 0x3cd   : > { %v13272_v12 = vld [vmem:[#allocation2 + $0xb1] sm:$0xff]  ;;  %3571 = vst.msk [vmem:[#allocation3 + $0x168] sm:$0xff] %vm782_vm2, %v13263_v19  ;;  %10503 = vrcp.f32 %v3378_v24  ;;  %v10496_v17 = vpop.eup %10495 }
 0x3ce   : > { %4209 = vst.msk [vmem:[#allocation3 + $0x140] sm:$0xff] %vm782_vm2, %v13272_v12  ;;  %10505 = vpow2.f32 %v9200_v47  ;;  %v10498_v41 = vpop.eup %10497  ;;  %v13280_v28 = vmul.f32 %v10496_v17, %v13184_v44  ;;  %v3175_v57 = vpop.permute.xlu1 %3174 }
 0x3cf   : > { %v3379_v52 = vadd.f32 1.0, %v10498_v41  ;;  %10507 = vpow2.f32 %v9217_v16  ;;  %v13283_v48 = vadd.f32 %v3175_v57, %v12973_v15 }
 0x3d0   : > { %3196 = vrot.lane.b32.xlu0 %v13280_v28, %s11158_s16 }
 0x3d1   : > { %10509 = vrcp.f32 %v3379_v52  ;;  %v9218_v1 = vmul.f32 -1.442695, %v13283_v48 }
 0x3d2   : > { %v10500_v27 = vpop.eup %10499 }
 0x3d3   : > { %v13289_v20 = vmul.f32 %v10500_v27, %v13190_v29  ;;  %v4900_v24 = vld [vmem:[#allocation3 + $0x100] sm:$0xff]  ;;  %v4903_v47 = vld [vmem:[#allocation3 + $0x118] sm:$0xff]  ;;  %10511 = vpow2.f32 %v9218_v1 }
 0x3d4   : > { %v4981_v44 = vpack.c.bf16 %v4903_v47, %v4900_v24 }
 0x3d5   : > { %3198 = vrot.lane.b32.xlu1 %v13289_v20, %s11158_s16  ;;  %v10502_v10 = vpop.eup %10501 }
 0x3d6   : > { %10002 = vmatmul.mubr.msk.bf16.gmra.mxu1 %vm782_vm2, %v4981_v44  ;;  %v3010_v15 = vadd.f32 1.0, %v10502_v10 }
 0x3d8   : > { %10513 = vrcp.f32 %v3010_v15 }
 0x3da   : > { %v10504_v17 = vpop.eup %10503 }
 0x3db   : > { %v10506_v16 = vpop.eup %10505  ;;  %v3474_v41 = vmul.f32 %v10504_v17, %v13206_v5  ;;  %v10160_v17 = vld [vmem:[%s16251_s3 + $0xc8] sm:$0xff]  }
 0x3dc   : > { %v3011_v57 = vadd.f32 1.0, %v10506_v16  ;;  %v10508_v52 = vpop.eup %10507 }
 0x3dd   : > { %3506 = vst.msk [vmem:[#allocation2 + $0xc1] sm:$0xff] %vm782_vm2, %v3474_v41  ;;  %v3380_v29 = vadd.f32 1.0, %v10508_v52 }
 0x3de   : > { %10515 = vrcp.f32 %v3011_v57  ;;  %v10510_v27 = vpop.eup %10509 }
 0x3df   : > { %v3475_v1 = vmul.f32 %v10510_v27, %v13231_v61  ;;  %10517 = vrcp.f32 %v3380_v29  ;;  %v10159_v61 = vld [vmem:[%s16251_s3 + $0x108] sm:$0xff]  }
 0x3e0   : > { %v10512_v24 = vpop.eup %10511  ;;  %9659 = vmatprep.subr.bf16.mxu0 %v10159_v61 }
 0x3e1   : > { %3507 = vst.msk [vmem:[#allocation2 + $0xc9] sm:$0xff] %vm782_vm2, %v3475_v1  ;;  %v3381_v47 = vadd.f32 1.0, %v10512_v24  ;;  %9660 = vmatpush3.bf16.msra.mxu0 %v10160_v17  ;;  %v10162_v24 = vld [vmem:[%s16251_s3 + $0xc0] sm:$0xff]  }
 0x3e3   : > { %10519 = vrcp.f32 %v3381_v47 }
 0x3e4   : > { %v13298_v44 = vld [vmem:[#allocation2 + $0xc0] sm:$0xff] }
 0x3e5   : > { %v13300_v10 = vld [vmem:[#allocation2 + $0xc1] sm:$0xff]  ;;  %3572 = vst.msk [vmem:[#allocation3 + $0x180] sm:$0xff] %vm782_vm2, %v13298_v44  ;;  %v10514_v5 = vpop.eup %10513 }
 0x3e6   : > { %4210 = vst.msk [vmem:[#allocation3 + $0x158] sm:$0xff] %vm782_vm2, %v13300_v10  ;;  %v13310_v15 = vmul.f32 %v10514_v5, %v13243_v38  ;;  %v10161_v38 = vld [vmem:[%s16251_s3 + $0x100] sm:$0xff]  }
 0x3e7   : > { %9661 = vmatprep.subr.bf16.mxu0 %v10161_v38 }
 0x3e8   : > { %v3177_v16 = vpop.permute.xlu0 %3176  ;;  %3200 = vrot.lane.b32.xlu0 %v13310_v15, %s11158_s16  ;;  %v4816_v57 = vld [vmem:[#allocation2 + $0xc2] sm:$0xff]  ;;  %v13320_v52 = vld [vmem:[#allocation2 + $0xca] sm:$0xff]  ;;  %9662 = vmatpush3.bf16.msra.mxu0 %v10162_v24 }
 0x3e9   : > { %v13316_v41 = vadd.f32 %v3177_v16, %v13038_v55  ;;  %v13322_v29 = vld [vmem:[#allocation2 + $0xc8] sm:$0xff]  ;;  %4848 = vst.msk [vmem:[#allocation3 + $0x130] sm:$0xff] %vm782_vm2, %v4816_v57  ;;  %4849 = vst.msk [vmem:[#allocation3 + $0x148] sm:$0xff] %vm782_vm2, %v13320_v52  ;;  %v10165_v24 = vld [vmem:[%s16251_s3 + $0xf0] sm:$0xff]  }
 0x3ea   : > { %v13330_v55 = vld [vmem:[#allocation2 + $0xc9] sm:$0xff]  ;;  %3573 = vst.msk [vmem:[#allocation3 + $0x198] sm:$0xff] %vm782_vm2, %v13322_v29 }
 0x3eb   : > { %v10516_v27 = vpop.eup %10515  ;;  %v9219_v1 = vmul.f32 -1.442695, %v13316_v41  ;;  %4211 = vst.msk [vmem:[#allocation3 + $0x170] sm:$0xff] %vm782_vm2, %v13330_v55 }
 0x3ec   : > { %v13341_v47 = vmul.f32 %v10516_v27, %v13256_v54  ;;  %v3179_v5 = vpop.permute.xlu1 %3178  ;;  %v10518_v61 = vpop.eup %10517  ;;  %3656 = vrot.lane.b32.xlu0 %v12887_v6, %s11156_s12  ;;  %v10163_v54 = vld [vmem:[%s16251_s3 + $0xf8] sm:$0xff]  }
 0x3ed   : > { %10521 = vpow2.f32 %v9219_v1  ;;  %v13344_v17 = vadd.f32 %v3179_v5, %v13049_v0  ;;  %v3476_v16 = vmul.f32 %v10518_v61, %v13266_v39  ;;  %v10164_v0 = vld [vmem:[%s16251_s3 + $0xb8] sm:$0xff]   ;;  %9663 = vmatprep.subr.bf16.mxu0 %v10163_v54  ;;  %v10166_v5 = vld [vmem:[%s16251_s3 + $0xb0] sm:$0xff]   ;;  %v4229_v61 = vld [vmem:[#allocation2 + $0x22] sm:$0xff] }
 0x3ee   : > { %3202 = vrot.lane.b32.xlu1 %v13341_v47, %s11158_s16  ;;  %9664 = vmatpush3.bf16.msra.mxu0 %v10164_v0  ;;  %v10168_v54 = vld [vmem:[%s16251_s3 + $0xa8] sm:$0xff]  }
 0x3ef   : > { %v9220_v57 = vmul.f32 -1.442695, %v13344_v17  ;;  %3508 = vst.msk [vmem:[#allocation2 + $0xd9] sm:$0xff] %vm782_vm2, %v3476_v16  ;;  %9665 = vmatprep.subr.bf16.mxu0 %v10165_v24 }
 0x3f0   : > { %v10520_v6 = vpop.eup %10519  ;;  %3660 = vrot.lane.b32.xlu0 %v12936_v40, %s11156_s12  ;;  %v4906_v39 = vld [vmem:[#allocation3 + $0x130] sm:$0xff]  ;;  %v4909_v38 = vld [vmem:[#allocation3 + $0x148] sm:$0xff] }
 0x3f1   : > { %10523 = vpow2.f32 %v9220_v57  ;;  %v3477_v27 = vmul.f32 %v10520_v6, %v13283_v48  ;;  %v4984_v1 = vpack.c.bf16 %v4909_v38, %v4906_v39  ;;  %v10167_v48 = vld [vmem:[%s16251_s3 + $0xe8] sm:$0xff]   ;;  %v10169_v38 = vld [vmem:[%s16251_s3 + $0xe0] sm:$0xff]  }
 0x3f2   : > { %4036 = vrot.lane.b32.xlu1 %v12889_v32, %s11158_s16  ;;  %9666 = vmatpush3.bf16.msra.mxu0 %v10166_v5 }
 0x3f3   : > { %3509 = vst.msk [vmem:[#allocation2 + $0xe1] sm:$0xff] %vm782_vm2, %v3477_v27  ;;  %10005 = vmatprep.mubr.msk.bf16.mxu1 %vm782_vm2, %v4984_v1  ;;  %9667 = vmatprep.subr.bf16.mxu0 %v10167_v48 }
 0x3f4   : > { %4294 = vrot.lane.b32.xlu0 %v4229_v61, %s11156_s12 }
 0x3f5   : > { %v3181_v32 = vpop.permute.xlu0 %3180 }
 0x3f6   : > { %4484 = vrot.lane.b32.xlu1 %v12938_v18, %s11157_s13  ;;  %v13379_v16 = vadd.f32 %v3181_v32, %v13067_v14  ;;  %v13384_v57 = vld [vmem:[#allocation2 + $0xd8] sm:$0xff]  ;;  %9668 = vmatpush3.bf16.msra.mxu0 %v10168_v54 }
 0x3f7   : > { %v13386_v0 = vld [vmem:[#allocation2 + $0xd9] sm:$0xff]  ;;  %3574 = vst.msk [vmem:[#allocation3 + $0x1b0] sm:$0xff] %vm782_vm2, %v13384_v57  ;;  %9669 = vmatprep.subr.bf16.mxu0 %v10169_v38  ;;  %v10174_v38 = vld [vmem:[%s16251_s3 + $0x90] sm:$0xff]  }
 0x3f8   : > { %4212 = vst.msk [vmem:[#allocation3 + $0x188] sm:$0xff] %vm782_vm2, %v13386_v0  ;;  %v9221_v6 = vmul.f32 -1.442695, %v13379_v16  ;;  %4038 = vrot.lane.b32.xlu0 %v12899_v30, %s11158_s16  ;;  %v10170_v30 = vld [vmem:[%s16251_s3 + $0xa0] sm:$0xff]   ;;  %v10171_v54 = vld [vmem:[%s16251_s3 + $0xd8] sm:$0xff]  }
 0x3fa   : > { %v10522_v14 = vpop.eup %10521  ;;  %4676 = vrot.lane.b32.xlu1 %v12936_v40, %s11158_s16  ;;  %v3183_v39 = vpop.permute.xlu1 %3182  ;;  %10525 = vpow2.f32 %v9221_v6  ;;  %v4818_v24 = vld [vmem:[#allocation2 + $0xda] sm:$0xff]  ;;  %v4819_v5 = vld [vmem:[#allocation2 + $0xe2] sm:$0xff]  ;;  %9670 = vmatpush3.bf16.msra.mxu0 %v10170_v30 }
 0x3fb   : > { %v3382_v27 = vadd.f32 1.0, %v10522_v14  ;;  %v13401_v1 = vadd.f32 %v3183_v39, %v13078_v43  ;;  %4850 = vst.msk [vmem:[#allocation3 + $0x160] sm:$0xff] %vm782_vm2, %v4818_v24  ;;  %4851 = vst.msk [vmem:[#allocation3 + $0x178] sm:$0xff] %vm782_vm2, %v4819_v5  ;;  %v13408_v40 = vld [vmem:[#allocation2 + $0xe0] sm:$0xff]  ;;  %9671 = vmatprep.subr.bf16.mxu0 %v10171_v54 }
 0x3fc   : > { %v13410_v32 = vld [vmem:[#allocation2 + $0xe1] sm:$0xff]  ;;  %3850 = vrot.lane.b32.xlu0 %v4229_v61, %s11157_s13  ;;  %3575 = vst.msk [vmem:[#allocation3 + $0x1c8] sm:$0xff] %vm782_vm2, %v13408_v40  ;;  %v10172_v61 = vld [vmem:[%s16251_s3 + $0x98] sm:$0xff]  }
 0x3fd   : > { %10527 = vrcp.f32 %v3382_v27  ;;  %v9222_v48 = vmul.f32 -1.442695, %v13401_v1  ;;  %4213 = vst.msk [vmem:[#allocation3 + $0x1a0] sm:$0xff] %vm782_vm2, %v13410_v32  ;;  %v4228_v24 = vld [vmem:[#allocation2 + $0x1a] sm:$0xff] }
 0x3fe   : > { %v10524_v43 = vpop.eup %10523  ;;  %4040 = vrot.lane.b32.xlu1 %v12938_v18, %s11158_s16  ;;  %9672 = vmatpush3.bf16.msra.mxu0 %v10172_v61  ;;  %v10173_v18 = vld [vmem:[%s16251_s3 + $0xd0] sm:$0xff]  }
 0x3ff   : > { %v3383_v6 = vadd.f32 1.0, %v10524_v43  ;;  %10529 = vpow2.f32 %v9222_v48  ;;  %9673 = vmatprep.subr.bf16.mxu0 %v10173_v18 }
 0x400   : > { %4486 = vrot.lane.b32.xlu0 %v12959_v58, %s11157_s13 }
 0x401   : > { %10531 = vrcp.f32 %v3383_v6 }
 0x402   : > { %3658 = vrot.lane.b32.xlu1 %v12901_v46, %s11156_s12  ;;  %v4912_v14 = vld [vmem:[#allocation3 + $0x160] sm:$0xff]  ;;  %v4915_v39 = vld [vmem:[#allocation3 + $0x178] sm:$0xff]  ;;  %9674 = vmatpush3.bf16.msra.mxu0 %v10174_v38 }
 0x403   : > { %v4987_v27 = vpack.c.bf16 %v4915_v39, %v4912_v14 }
 0x404   : > { %4678 = vrot.lane.b32.xlu0 %v12968_v37, %s11158_s16 }
 0x405   : > { %10006 = vmatmul.mubr.msk.bf16.gmra.mxu1 %vm782_vm2, %v4987_v27 }
 0x406   : > { %4292 = vrot.lane.b32.xlu1 %v4228_v24, %s11156_s12 }
 0x407   : > { %v10526_v46 = vpop.eup %10525 }
 0x408   : > { %v3185_v5 = vpop.permute.xlu0 %3184  ;;  %v3384_v30 = vadd.f32 1.0, %v10526_v46  ;;  %4298 = vrot.lane.b32.xlu0 %v12957_v63, %s11156_s12 }
 0x409   : > { %v13441_v48 = vadd.f32 %v3185_v5, %v13115_v59 }
 0x40a   : > { %v10528_v43 = vpop.eup %10527  ;;  %3848 = vrot.lane.b32.xlu1 %v4228_v24, %s11157_s13  ;;  %10533 = vrcp.f32 %v3384_v30 }
 0x40b   : > { %v3478_v54 = vmul.f32 %v10528_v43, %v13316_v41  ;;  %v9223_v6 = vmul.f32 -1.442695, %v13441_v48 }
 0x40c   : > { %v10530_v61 = vpop.eup %10529  ;;  %4042 = vrot.lane.b32.xlu0 %v12959_v58, %s11158_s16 }
 0x40d   : > { %3510 = vst.msk [vmem:[#allocation2 + $0xf1] sm:$0xff] %vm782_vm2, %v3478_v54  ;;  %v3385_v18 = vadd.f32 1.0, %v10530_v61  ;;  %10535 = vpow2.f32 %v9223_v6  ;;  %v3187_v14 = vpop.permute.xlu1 %3186 }
 0x40e   : > { %v10532_v59 = vpop.eup %10531  ;;  %v13452_v39 = vadd.f32 %v3187_v14, %v13138_v35  ;;  %3662 = vrot.lane.b32.xlu1 %v12968_v37, %s11156_s12 }
 0x40f   : > { %v3479_v41 = vmul.f32 %v10532_v59, %v13344_v17  ;;  %10537 = vrcp.f32 %v3385_v18 }
 0x410   : > { %v9224_v38 = vmul.f32 -1.442695, %v13452_v39  ;;  %3854 = vrot.lane.b32.xlu0 %v12957_v63, %s11157_s13 }
 0x411   : > { %3511 = vst.msk [vmem:[#allocation2 + $0xf9] sm:$0xff] %vm782_vm2, %v3479_v41 }
 0x412   : > { %10539 = vpow2.f32 %v9224_v38  ;;  %4296 = vrot.lane.b32.xlu1 %v12955_v21, %s11156_s12  ;;  %v3189_v58 = vpop.permute.xlu0 %3188 }
 0x413   : > { %v13464_v35 = vadd.f32 %v3189_v58, %v13164_v42 }
 0x414   : > { %v13466_v27 = vld [vmem:[#allocation2 + $0xf0] sm:$0xff]  ;;  %3664 = vrot.lane.b32.xlu0 %v12999_v2, %s11156_s12 }
 0x415   : > { %v13468_v37 = vld [vmem:[#allocation2 + $0xf1] sm:$0xff]  ;;  %3576 = vst.msk [vmem:[#allocation3 + $0x1e0] sm:$0xff] %vm782_vm2, %v13466_v27  ;;  %v9225_v63 = vmul.f32 -1.442695, %v13464_v35 }
 0x416   : > { %4214 = vst.msk [vmem:[#allocation3 + $0x1b8] sm:$0xff] %vm782_vm2, %v13468_v37  ;;  %3852 = vrot.lane.b32.xlu1 %v12955_v21, %s11157_s13 }
 0x417   : > { %v10534_v42 = vpop.eup %10533  ;;  %10541 = vpow2.f32 %v9225_v63 }
 0x418   : > { %v4820_v17 = vld [vmem:[#allocation2 + $0xf2] sm:$0xff]  ;;  %v4821_v24 = vld [vmem:[#allocation2 + $0xfa] sm:$0xff]  ;;  %v3480_v5 = vmul.f32 %v10534_v42, %v13379_v16  ;;  %4490 = vrot.lane.b32.xlu0 %v13011_v26, %s11157_s13 }
 0x419   : > { %v13479_v46 = vld [vmem:[#allocation2 + $0xf8] sm:$0xff]  ;;  %v3191_v30 = vpop.permute.xlu1 %3190  ;;  %4852 = vst.msk [vmem:[#allocation3 + $0x190] sm:$0xff] %vm782_vm2, %v4820_v17  ;;  %4853 = vst.msk [vmem:[#allocation3 + $0x1a8] sm:$0xff] %vm782_vm2, %v4821_v24 }
 0x41a   : > { %v13486_v43 = vld [vmem:[#allocation2 + $0xf9] sm:$0xff]  ;;  %3577 = vst.msk [vmem:[#allocation3 + $0x1f8] sm:$0xff] %vm782_vm2, %v13479_v46  ;;  %v10536_v21 = vpop.eup %10535  ;;  %v13491_v54 = vadd.f32 %v3191_v30, %v13175_v13  ;;  %4488 = vrot.lane.b32.xlu1 %v13001_v49, %s11157_s13  ;;  %3512 = vst.msk [vmem:[#allocation2 + $0x109] sm:$0xff] %vm782_vm2, %v3480_v5 }
 0x41b   : > { %4215 = vst.msk [vmem:[#allocation3 + $0x1d0] sm:$0xff] %vm782_vm2, %v13486_v43  ;;  %v3386_v16 = vadd.f32 1.0, %v10536_v21 }
 0x41c   : > { %v10538_v6 = vpop.eup %10537  ;;  %v9226_v61 = vmul.f32 -1.442695, %v13491_v54  ;;  %4682 = vrot.lane.b32.xlu0 %v13020_v60, %s11158_s16 }
 0x41d   : > { %v3481_v18 = vmul.f32 %v10538_v6, %v13401_v1  ;;  %10543 = vrcp.f32 %v3386_v16 }
 0x41e   : > { %10545 = vpow2.f32 %v9226_v61  ;;  %4680 = vrot.lane.b32.xlu1 %v12999_v2, %s11158_s16 }
 0x41f   : > { %v10540_v13 = vpop.eup %10539  ;;  %3513 = vst.msk [vmem:[#allocation2 + $0x111] sm:$0xff] %vm782_vm2, %v3481_v18 }
 0x420   : > { %v3387_v14 = vadd.f32 1.0, %v10540_v13  ;;  %v4918_v59 = vld [vmem:[#allocation3 + $0x190] sm:$0xff]  ;;  %v4921_v41 = vld [vmem:[#allocation3 + $0x1a8] sm:$0xff]  ;;  %4302 = vrot.lane.b32.xlu0 %v13009_v25, %s11156_s12 }
 0x421   : > { %v4990_v38 = vpack.c.bf16 %v4921_v41, %v4918_v59  ;;  %v13509_v1 = vld [vmem:[#allocation2 + $0x108] sm:$0xff] }
 0x422   : > { %10547 = vrcp.f32 %v3387_v14  ;;  %4044 = vrot.lane.b32.xlu1 %v13001_v49, %s11158_s16  ;;  %v13511_v58 = vld [vmem:[#allocation2 + $0x109] sm:$0xff]  ;;  %3578 = vst.msk [vmem:[#allocation3 + $0x210] sm:$0xff] %vm782_vm2, %v13509_v1 }
 0x423   : > { %10009 = vmatprep.mubr.msk.bf16.mxu1 %vm782_vm2, %v4990_v38  ;;  %4216 = vst.msk [vmem:[#allocation3 + $0x1e8] sm:$0xff] %vm782_vm2, %v13511_v58 }
 0x424   : > { %v10542_v2 = vpop.eup %10541  ;;  %4046 = vrot.lane.b32.xlu0 %v13011_v26, %s11158_s16 }
 0x425   : > { %v3388_v63 = vadd.f32 1.0, %v10542_v2 }
 0x426   : > { %4300 = vrot.lane.b32.xlu1 %v13007_v22, %s11156_s12  ;;  %v4822_v49 = vld [vmem:[#allocation2 + $0x10a] sm:$0xff]  ;;  %v4823_v42 = vld [vmem:[#allocation2 + $0x112] sm:$0xff] }
 0x427   : > { %v13522_v17 = vld [vmem:[#allocation2 + $0x110] sm:$0xff]  ;;  %4854 = vst.msk [vmem:[#allocation3 + $0x1c0] sm:$0xff] %vm782_vm2, %v4822_v49  ;;  %4855 = vst.msk [vmem:[#allocation3 + $0x1d8] sm:$0xff] %vm782_vm2, %v4823_v42  ;;  %10549 = vrcp.f32 %v3388_v63 }
 0x428   : > { %v13526_v24 = vld [vmem:[#allocation2 + $0x111] sm:$0xff]  ;;  %3579 = vst.msk [vmem:[#allocation3 + $0x228] sm:$0xff] %vm782_vm2, %v13522_v17  ;;  %3856 = vrot.lane.b32.xlu0 %v13007_v22, %s11157_s13 }
 0x429   : > { %4217 = vst.msk [vmem:[#allocation3 + $0x200] sm:$0xff] %vm782_vm2, %v13526_v24 }
 0x42a   : > { %v10544_v26 = vpop.eup %10543  ;;  %3666 = vrot.lane.b32.xlu1 %v13020_v60, %s11156_s12  ;;  %v3193_v21 = vpop.permute.xlu0 %3192 }
 0x42b   : > { %v10546_v5 = vpop.eup %10545  ;;  %v3482_v30 = vmul.f32 %v10544_v26, %v13441_v48  ;;  %v13538_v6 = vadd.f32 %v3193_v21, %v13203_v4 }
 0x42c   : > { %v3389_v16 = vadd.f32 1.0, %v10546_v5  ;;  %4048 = vrot.lane.b32.xlu0 %v13073_v7, %s11158_s16 }
 0x42d   : > { %3514 = vst.msk [vmem:[#allocation2 + $0x121] sm:$0xff] %vm782_vm2, %v3482_v30  ;;  %v9227_v22 = vmul.f32 -1.442695, %v13538_v6 }
 0x42e   : > { %10551 = vrcp.f32 %v3389_v16  ;;  %3858 = vrot.lane.b32.xlu1 %v13009_v25, %s11157_s13  ;;  %v4924_v60 = vld [vmem:[#allocation3 + $0x1c0] sm:$0xff]  ;;  %v4927_v61 = vld [vmem:[#allocation3 + $0x1d8] sm:$0xff]  ;;  %v3195_v48 = vpop.permute.xlu1 %3194 }
 0x42f   : > { %v10548_v18 = vpop.eup %10547  ;;  %v4993_v13 = vpack.c.bf16 %v4927_v61, %v4924_v60  ;;  %10553 = vpow2.f32 %v9227_v22  ;;  %v13548_v4 = vadd.f32 %v3195_v48, %v13225_v56 }
 0x430   : > { %v3483_v14 = vmul.f32 %v10548_v18, %v13452_v39  ;;  %3668 = vrot.lane.b32.xlu0 %v13075_v51, %s11156_s12 }
 0x431   : > { %10010 = vmatmul.mubr.msk.bf16.gmra.mxu1 %vm782_vm2, %v4993_v13  ;;  %v9228_v25 = vmul.f32 -1.442695, %v13548_v4 }
 0x432   : > { %3515 = vst.msk [vmem:[#allocation2 + $0x129] sm:$0xff] %vm782_vm2, %v3483_v14  ;;  %4492 = vrot.lane.b32.xlu1 %v13073_v7, %s11157_s13 }
 0x433   : > { %10555 = vpow2.f32 %v9228_v25 }
 0x434   : > { %v13557_v59 = vld [vmem:[#allocation2 + $0x120] sm:$0xff]  ;;  %v10550_v41 = vpop.eup %10549  ;;  %4494 = vrot.lane.b32.xlu0 %v13090_v3, %s11157_s13 }
 0x435   : > { %v13559_v39 = vld [vmem:[#allocation2 + $0x121] sm:$0xff]  ;;  %3580 = vst.msk [vmem:[#allocation3 + $0x240] sm:$0xff] %vm782_vm2, %v13557_v59  ;;  %v3484_v56 = vmul.f32 %v10550_v41, %v13464_v35 }
 0x436   : > { %4218 = vst.msk [vmem:[#allocation3 + $0x218] sm:$0xff] %vm782_vm2, %v13559_v39  ;;  %4684 = vrot.lane.b32.xlu1 %v13075_v51, %s11158_s16 }
 0x437   : > { %3516 = vst.msk [vmem:[#allocation2 + $0x139] sm:$0xff] %vm782_vm2, %v3484_v56 }
 0x438   : > { %4686 = vrot.lane.b32.xlu0 %v13099_v9, %s11158_s16 }
 0x439   : > { %v4824_v7 = vld [vmem:[#allocation2 + $0x122] sm:$0xff]  ;;  %v4825_v38 = vld [vmem:[#allocation2 + $0x12a] sm:$0xff] }
 0x43a   : > { %v13573_v2 = vld [vmem:[#allocation2 + $0x128] sm:$0xff]  ;;  %4304 = vrot.lane.b32.xlu1 %v13086_v34, %s11156_s12  ;;  %4856 = vst.msk [vmem:[#allocation3 + $0x1f0] sm:$0xff] %vm782_vm2, %v4824_v7  ;;  %4857 = vst.msk [vmem:[#allocation3 + $0x208] sm:$0xff] %vm782_vm2, %v4825_v38 }
 0x43b   : > { %v13579_v35 = vld [vmem:[#allocation2 + $0x129] sm:$0xff]  ;;  %3581 = vst.msk [vmem:[#allocation3 + $0x258] sm:$0xff] %vm782_vm2, %v13573_v2  ;;  %v10552_v51 = vpop.eup %10551 }
 0x43c   : > { %4219 = vst.msk [vmem:[#allocation3 + $0x230] sm:$0xff] %vm782_vm2, %v13579_v35  ;;  %v3485_v63 = vmul.f32 %v10552_v51, %v13491_v54  ;;  %v10554_v49 = vpop.eup %10553  ;;  %4306 = vrot.lane.b32.xlu0 %v13088_v53, %s11156_s12  ;;  %v16368_v51 = vld [vmem:[#allocation49_spill] sm:$0xff] }
 0x43d   : > { %v3390_v42 = vadd.f32 1.0, %v10554_v49 }
 0x43e   : > { %3517 = vst.msk [vmem:[#allocation2 + $0x141] sm:$0xff] %vm782_vm2, %v3485_v63  ;;  %4050 = vrot.lane.b32.xlu1 %v13090_v3, %s11158_s16  ;;  %v13591_v26 = vld [vmem:[#allocation2 + $0x138] sm:$0xff] }
 0x43f   : > { %v13593_v5 = vld [vmem:[#allocation2 + $0x139] sm:$0xff]  ;;  %10557 = vrcp.f32 %v3390_v42  ;;  %3582 = vst.msk [vmem:[#allocation3 + $0x270] sm:$0xff] %vm782_vm2, %v13591_v26 }
 0x440   : > { %4220 = vst.msk [vmem:[#allocation3 + $0x248] sm:$0xff] %vm782_vm2, %v13593_v5  ;;  %v10556_v54 = vpop.eup %10555  ;;  %3860 = vrot.lane.b32.xlu0 %v13086_v34, %s11157_s13 }
 0x441   : > { %v4930_v30 = vld [vmem:[#allocation3 + $0x1f0] sm:$0xff]  ;;  %v4933_v21 = vld [vmem:[#allocation3 + $0x208] sm:$0xff]  ;;  %v3391_v16 = vadd.f32 1.0, %v10556_v54 }
 0x442   : > { %3670 = vrot.lane.b32.xlu1 %v13099_v9, %s11156_s12  ;;  %v4996_v3 = vpack.c.bf16 %v4933_v21, %v4930_v30  ;;  %v3197_v22 = vpop.permute.xlu0 %3196 }
 0x443   : > { %10559 = vrcp.f32 %v3391_v16  ;;  %v13605_v60 = vadd.f32 %v3197_v22, %v13280_v28 }
 0x444   : > { %10013 = vmatprep.mubr.msk.bf16.mxu1 %vm782_vm2, %v4996_v3  ;;  %4496 = vrot.lane.b32.xlu0 %v13126_v8, %s11157_s13 }
 0x445   : > { %v4826_v61 = vld [vmem:[#allocation2 + $0x13a] sm:$0xff]  ;;  %v4827_v18 = vld [vmem:[#allocation2 + $0x142] sm:$0xff]  ;;  %v9229_v48 = vmul.f32 -1.442695, %v13605_v60 }
 0x446   : > { %v13609_v34 = vld [vmem:[#allocation2 + $0x140] sm:$0xff]  ;;  %3862 = vrot.lane.b32.xlu1 %v13088_v53, %s11157_s13  ;;  %4858 = vst.msk [vmem:[#allocation3 + $0x220] sm:$0xff] %vm782_vm2, %v4826_v61  ;;  %4859 = vst.msk [vmem:[#allocation3 + $0x238] sm:$0xff] %vm782_vm2, %v4827_v18  ;;  %v16369_v18 = vld [vmem:[#allocation51_spill] sm:$0xff] }
 0x447   : > { %v13616_v9 = vld [vmem:[#allocation2 + $0x141] sm:$0xff]  ;;  %3583 = vst.msk [vmem:[#allocation3 + $0x288] sm:$0xff] %vm782_vm2, %v13609_v34  ;;  %v3199_v28 = vpop.permute.xlu1 %3198  ;;  %10561 = vpow2.f32 %v9229_v48 }
 0x448   : > { %4221 = vst.msk [vmem:[#allocation3 + $0x260] sm:$0xff] %vm782_vm2, %v13616_v9  ;;  %v13623_v13 = vadd.f32 %v3199_v28, %v13289_v20  ;;  %4688 = vrot.lane.b32.xlu0 %v13128_v31, %s11158_s16  ;;  %v16370_v48 = vld [vmem:[#allocation54_spill] sm:$0xff] }
 0x44a   : > { %v9230_v53 = vmul.f32 -1.442695, %v13623_v13  ;;  %4498 = vrot.lane.b32.xlu1 %v13150_v50, %s11157_s13 }
 0x44c   : > { %10563 = vpow2.f32 %v9230_v53  ;;  %v10558_v14 = vpop.eup %10557  ;;  %4052 = vrot.lane.b32.xlu0 %v13126_v8, %s11158_s16  ;;  %v16367_v8 = vld [vmem:[#allocation50_spill] sm:$0xff] }
 0x44d   : > { %v4936_v25 = vld [vmem:[#allocation3 + $0x220] sm:$0xff]  ;;  %v4939_v41 = vld [vmem:[#allocation3 + $0x238] sm:$0xff]  ;;  %v3486_v56 = vmul.f32 %v10558_v14, %v13538_v6 }
 0x44e   : > { %4690 = vrot.lane.b32.xlu1 %v13156_v45, %s11158_s16  ;;  %v4999_v20 = vpack.c.bf16 %v4939_v41, %v4936_v25 }
 0x44f   : > { %3518 = vst.msk [vmem:[#allocation2 + $0x151] sm:$0xff] %vm782_vm2, %v3486_v56 }
 0x450   : > { %10014 = vmatmul.mubr.msk.bf16.gmra.mxu1 %vm782_vm2, %v4999_v20  ;;  %v10560_v7 = vpop.eup %10559  ;;  %3672 = vrot.lane.b32.xlu0 %v13128_v31, %s11156_s12 }
 0x451   : > { %v3487_v38 = vmul.f32 %v10560_v7, %v13548_v4  ;;  %v16371_v7 = vld [vmem:[#allocation55_spill] sm:$0xff] }
 0x452   : > { %4310 = vrot.lane.b32.xlu1 %v16367_v8, %s11156_s12 }
 0x453   : > { %3519 = vst.msk [vmem:[#allocation2 + $0x159] sm:$0xff] %vm782_vm2, %v3487_v38 }
 0x454   : > { %v10562_v6 = vpop.eup %10561  ;;  %4308 = vrot.lane.b32.xlu0 %v16368_v51, %s11156_s12 }
 0x455   : > { %v3392_v63 = vadd.f32 1.0, %v10562_v6 }
 0x456   : > { %4054 = vrot.lane.b32.xlu1 %v13150_v50, %s11158_s16  ;;  %v13647_v49 = vld [vmem:[#allocation2 + $0x150] sm:$0xff] }
 0x457   : > { %v13649_v42 = vld [vmem:[#allocation2 + $0x151] sm:$0xff]  ;;  %10565 = vrcp.f32 %v3392_v63  ;;  %3584 = vst.msk [vmem:[#allocation3 + $0x2a0] sm:$0xff] %vm782_vm2, %v13647_v49 }
 0x458   : > { %4222 = vst.msk [vmem:[#allocation3 + $0x278] sm:$0xff] %vm782_vm2, %v13649_v42  ;;  %3864 = vrot.lane.b32.xlu0 %v16368_v51, %s11157_s13 }
 0x459   : > { %v10564_v31 = vpop.eup %10563 }
 0x45a   : > { %v3393_v4 = vadd.f32 1.0, %v10564_v31  ;;  %3674 = vrot.lane.b32.xlu1 %v13156_v45, %s11156_s12  ;;  %v3201_v50 = vpop.permute.xlu0 %3200  ;;  %v4828_v54 = vld [vmem:[#allocation2 + $0x152] sm:$0xff]  ;;  %v4829_v30 = vld [vmem:[#allocation2 + $0x15a] sm:$0xff] }
 0x45b   : > { %v13659_v21 = vld [vmem:[#allocation2 + $0x158] sm:$0xff]  ;;  %v13662_v16 = vadd.f32 %v3201_v50, %v13310_v15  ;;  %4860 = vst.msk [vmem:[#allocation3 + $0x250] sm:$0xff] %vm782_vm2, %v4828_v54  ;;  %4861 = vst.msk [vmem:[#allocation3 + $0x268] sm:$0xff] %vm782_vm2, %v4829_v30 }
 0x45c   : > { %10567 = vrcp.f32 %v3393_v4  ;;  %v13666_v3 = vld [vmem:[#allocation2 + $0x159] sm:$0xff]  ;;  %3585 = vst.msk [vmem:[#allocation3 + $0x2b8] sm:$0xff] %vm782_vm2, %v13659_v21  ;;  %4500 = vrot.lane.b32.xlu0 %v13194_v36, %s11157_s13 }
 0x45d   : > { %4223 = vst.msk [vmem:[#allocation3 + $0x290] sm:$0xff] %vm782_vm2, %v13666_v3  ;;  %v9231_v45 = vmul.f32 -1.442695, %v13662_v16  ;;  %v16373_v54 = vld [vmem:[#allocation52_spill] sm:$0xff] }
 0x45e   : > { %3866 = vrot.lane.b32.xlu1 %v16367_v8, %s11157_s13  ;;  %v3657_v15 = vpop.permute.xlu0 %3656 }
 0x45f   : > { %10569 = vpow2.f32 %v9231_v45  ;;  %3750 = vst.msk [vmem:[#allocation3 + $0x30] sm:$0xff] %vm1095_vm4, %v3657_v15  ;;  %v16375_v45 = vld [vmem:[#allocation44_spill] sm:$0xff] }
 0x460   : > { %v3203_v22 = vpop.permute.xlu1 %3202  ;;  %4692 = vrot.lane.b32.xlu0 %v16369_v18, %s11158_s16 }
 0x461   : > { %v13679_v61 = vadd.f32 %v3203_v22, %v13341_v47 }
 0x462   : > { %4502 = vrot.lane.b32.xlu1 %v16370_v48, %s11157_s13  ;;  %v3661_v53 = vpop.permute.xlu0 %3660  ;;  %v4942_v14 = vld [vmem:[#allocation3 + $0x250] sm:$0xff]  ;;  %v4945_v25 = vld [vmem:[#allocation3 + $0x268] sm:$0xff] }
 0x463   : > { %v9232_v28 = vmul.f32 -1.442695, %v13679_v61  ;;  %3752 = vst.msk [vmem:[#allocation3 + $0x60] sm:$0xff] %vm1095_vm4, %v3661_v53  ;;  %v5002_v56 = vpack.c.bf16 %v4945_v25, %v4942_v14  ;;  %v6176_v53 = vld [vmem:[#allocation2 + $0x8] sm:$0xff] }
 0x464   : > { %v4037_v41 = vpop.permute.xlu1 %4036  ;;  %v10566_v20 = vpop.eup %10565  ;;  %4056 = vrot.lane.b32.xlu0 %v13194_v36, %s11158_s16  ;;  %v6175_v36 = vld [vmem:[#allocation2] sm:$0xff] }
 0x465   : > { %10571 = vpow2.f32 %v9232_v28  ;;  %4132 = vst.msk [vmem:[#allocation3] sm:$0xff] %vm1481_vm6, %v4037_v41  ;;  %v3488_v47 = vmul.f32 %v10566_v20, %v13605_v60  ;;  %10017 = vmatprep.mubr.msk.bf16.mxu1 %vm782_vm2, %v5002_v56  ;;  %v16372_v60 = vld [vmem:[#allocation53_spill] sm:$0xff] }
 0x466   : > { %4694 = vrot.lane.b32.xlu1 %v16371_v7, %s11158_s16  ;;  %v4295_v38 = vpop.permute.xlu0 %4294 }
 0x467   : > { %3520 = vst.msk [vmem:[#allocation2 + $0x169] sm:$0xff] %vm782_vm2, %v3488_v47 }
 0x468   : > { %v4485_v8 = vpop.permute.xlu1 %4484  ;;  %4389 = vst.msk [vmem:[#allocation3 + $0x20] sm:$0xff] %vm1095_vm4, %v4295_v38  ;;  %3676 = vrot.lane.b32.xlu0 %v16369_v18, %s11156_s12 }
 0x469   : > { %v10568_v6 = vpop.eup %10567 }
 0x46a   : > { %v3489_v51 = vmul.f32 %v10568_v6, %v13623_v13  ;;  %4314 = vrot.lane.b32.xlu1 %v16372_v60, %s11156_s12  ;;  %v4039_v63 = vpop.permute.xlu0 %4038  ;;  %v16374_v13 = vld [vmem:[#allocation42_spill] sm:$0xff] }
 0x46b   : > { %4133 = vst.msk [vmem:[#allocation3 + $0x18] sm:$0xff] %vm1481_vm6, %v4039_v63 }
 0x46c   : > { %3521 = vst.msk [vmem:[#allocation2 + $0x171] sm:$0xff] %vm782_vm2, %v3489_v51  ;;  %v13702_v31 = vld [vmem:[#allocation3] sm:$0xff]  ;;  %v4677_v4 = vpop.permute.xlu1 %4676  ;;  %v10570_v50 = vpop.eup %10569  ;;  %4312 = vrot.lane.b32.xlu0 %v16373_v54, %s11156_s12 }
 0x46d   : > { %6207 = vst.msk [vmem:[#allocation3] sm:$0xff] %vm782_vm2, %v6175_v36  ;;  %v3394_v30 = vadd.f32 1.0, %v10570_v50  ;;  %v16377_v51 = vld [vmem:[#allocation47_spill] sm:$0xff] }
 0x46e   : > { %6399 = vst.msk [vmem:[#allocation3] sm:$0xff] %vm1095_vm4, %v16374_v13  ;;  %4058 = vrot.lane.b32.xlu1 %v16370_v48, %s11158_s16  ;;  %v3851_v15 = vpop.permute.xlu0 %3850  ;;  %v13714_v22 = vld [vmem:[#allocation2 + $0x168] sm:$0xff] }
 0x46f   : > { %6591 = vst.msk [vmem:[#allocation3] sm:$0xff] %vm1288_vm5, %v16375_v45  ;;  %v13716_v18 = vld [vmem:[#allocation2 + $0x169] sm:$0xff]  ;;  %10573 = vrcp.f32 %v3394_v30 }
 0x470   : > { %v4041_v28 = vpop.permute.xlu1 %4040  ;;  %3586 = vst.msk [vmem:[#allocation3 + $0x2d0] sm:$0xff] %vm782_vm2, %v13714_v22  ;;  %4224 = vst.msk [vmem:[#allocation3 + $0x2a8] sm:$0xff] %vm782_vm2, %v13716_v18  ;;  %3868 = vrot.lane.b32.xlu0 %v16373_v54, %s11157_s13 }
 0x472   : > { %v10572_v48 = vpop.eup %10571  ;;  %3678 = vrot.lane.b32.xlu1 %v16371_v7, %s11156_s12  ;;  %v4871_v25 = vld [vmem:[#allocation3 + $0x18] sm:$0xff]  ;;  %v4487_v41 = vpop.permute.xlu0 %4486  ;;  %v16376_v7 = vld [vmem:[#allocation45_spill] sm:$0xff] }
 0x473   : > { %v3395_v14 = vadd.f32 1.0, %v10572_v48  ;;  %v4830_v56 = vld [vmem:[#allocation2 + $0x16a] sm:$0xff]  ;;  %v4831_v20 = vld [vmem:[#allocation2 + $0x172] sm:$0xff]  ;;  %6208 = vst.msk [vmem:[#allocation3 + $0x18] sm:$0xff] %vm782_vm2, %v6176_v53 }
 0x474   : > { %v3659_v47 = vpop.permute.xlu1 %3658  ;;  %4581 = vst.msk [vmem:[#allocation3 + $0x20] sm:$0xff] %vm1288_vm5, %v4487_v41  ;;  %v13730_v38 = vld [vmem:[#allocation2 + $0x170] sm:$0xff]  ;;  %4504 = vrot.lane.b32.xlu0 %v13247_v62, %s11157_s13  ;;  %v4964_v41 = vpack.c.bf16 %v4871_v25, %v13702_v31 }
 0x475   : > { %4862 = vst.msk [vmem:[#allocation3 + $0x280] sm:$0xff] %vm782_vm2, %v4830_v56  ;;  %4863 = vst.msk [vmem:[#allocation3 + $0x298] sm:$0xff] %vm782_vm2, %v4831_v20  ;;  %v13732_v6 = vld [vmem:[#allocation2 + $0x171] sm:$0xff]  ;;  %10575 = vrcp.f32 %v3395_v14 }
 0x476   : > { %6400 = vst.msk [vmem:[#allocation3 + $0x18] sm:$0xff] %vm1095_vm4, %v16376_v7  ;;  %3751 = vst.msk [vmem:[#allocation3 + $0x48] sm:$0xff] %vm1095_vm4, %v3659_v47  ;;  %3870 = vrot.lane.b32.xlu1 %v16372_v60, %s11157_s13  ;;  %v4679_v36 = vpop.permute.xlu0 %4678 }
 0x477   : > { %4225 = vst.msk [vmem:[#allocation3 + $0x2c0] sm:$0xff] %vm782_vm2, %v13732_v6  ;;  %3587 = vst.msk [vmem:[#allocation3 + $0x2e8] sm:$0xff] %vm782_vm2, %v13730_v38 }
 0x478   : > { %6592 = vst.msk [vmem:[#allocation3 + $0x18] sm:$0xff] %vm1288_vm5, %v16377_v51  ;;  %3943 = vst.msk [vmem:[#allocation3 + $0x48] sm:$0xff] %vm1288_vm5, %v3851_v15  ;;  %v4293_v63 = vpop.permute.xlu1 %4292  ;;  %4696 = vrot.lane.b32.xlu0 %v13249_v33, %s11158_s16 }
 0x479   : > { %4773 = vst.msk [vmem:[#allocation3 + $0x20] sm:$0xff] %vm1481_vm6, %v4679_v36 }
 0x47a   : > { %4388 = vst.msk [vmem:[#allocation3 + $0x8] sm:$0xff] %vm1095_vm4, %v4293_v63  ;;  %4506 = vrot.lane.b32.xlu1 %v13263_v19, %s11157_s13  ;;  %v4299_v50 = vpop.permute.xlu0 %4298 }
 0x47b   : > { %4580 = vst.msk [vmem:[#allocation3 + $0x8] sm:$0xff] %vm1288_vm5, %v4485_v8 }
 0x47c   : > { %4772 = vst.msk [vmem:[#allocation3 + $0x8] sm:$0xff] %vm1481_vm6, %v4677_v4  ;;  %v4948_v54 = vld [vmem:[#allocation3 + $0x280] sm:$0xff]  ;;  %v4951_v30 = vld [vmem:[#allocation3 + $0x298] sm:$0xff]  ;;  %v3849_v60 = vpop.permute.xlu1 %3848  ;;  %v10574_v45 = vpop.eup %10573  ;;  %4060 = vrot.lane.b32.xlu0 %v13247_v62, %s11158_s16 }
 0x47d   : > { %4391 = vst.msk [vmem:[#allocation3 + $0x50] sm:$0xff] %vm1095_vm4, %v4299_v50  ;;  %v5005_v13 = vpack.c.bf16 %v4951_v30, %v4948_v54  ;;  %v3490_v8 = vmul.f32 %v10574_v45, %v13662_v16 }
 0x47e   : > { %3942 = vst.msk [vmem:[#allocation3 + $0x30] sm:$0xff] %vm1288_vm5, %v3849_v60  ;;  %4698 = vrot.lane.b32.xlu1 %v13272_v12, %s11158_s16  ;;  %v4043_v4 = vpop.permute.xlu0 %4042 }
 0x47f   : > { %4134 = vst.msk [vmem:[#allocation3 + $0x30] sm:$0xff] %vm1481_vm6, %v4041_v28  ;;  %10018 = vmatmul.mubr.msk.bf16.gmra.mxu1 %vm782_vm2, %v5005_v13  ;;  %4135 = vst.msk [vmem:[#allocation3 + $0x48] sm:$0xff] %vm1481_vm6, %v4043_v4 }
 0x480   : > { %3522 = vst.msk [vmem:[#allocation2 + $0x181] sm:$0xff] %vm782_vm2, %v3490_v8  ;;  %v3663_v15 = vpop.permute.xlu1 %3662  ;;  %3680 = vrot.lane.b32.xlu0 %v13249_v33, %s11156_s12  ;;  %v4872_v28 = vld [vmem:[#allocation3 + $0x20] sm:$0xff] }
 0x481   : > { %3753 = vst.msk [vmem:[#allocation3 + $0x78] sm:$0xff] %vm1095_vm4, %v3663_v15 }
 0x482   : > { %v10576_v62 = vpop.eup %10575  ;;  %4318 = vrot.lane.b32.xlu1 %v13261_v11, %s11156_s12  ;;  %v3855_v48 = vpop.permute.xlu0 %3854 }
 0x483   : > { %v4869_v16 = vld [vmem:[#allocation3 + $0x8] sm:$0xff]  ;;  %v3491_v53 = vmul.f32 %v10576_v62, %v13679_v61  ;;  %3945 = vst.msk [vmem:[#allocation3 + $0x78] sm:$0xff] %vm1288_vm5, %v3855_v48  ;;  %v3797_v48 = vld [vmem:[#allocation2 + $0xca] sm:$0xff] }
 0x484   : > { %v4965_v14 = vpack.c.bf16 %v4872_v28, %v4869_v16  ;;  %v4297_v56 = vpop.permute.xlu1 %4296  ;;  %4316 = vrot.lane.b32.xlu0 %v13259_v23, %s11156_s12  ;;  %v4242_v16 = vld [vmem:[#allocation2 + $0xc2] sm:$0xff] }
 0x485   : > { %3523 = vst.msk [vmem:[#allocation2 + $0x189] sm:$0xff] %vm782_vm2, %v3491_v53 }
 0x486   : > { %4390 = vst.msk [vmem:[#allocation3 + $0x38] sm:$0xff] %vm1095_vm4, %v4297_v56  ;;  %5245 = vmatprep.mubr.bf16.mxu0 %v4965_v14  ;;  %4062 = vrot.lane.b32.xlu1 %v13263_v19, %s11158_s16  ;;  %v3665_v33 = vpop.permute.xlu0 %3664  ;;  %v4877_v60 = vld [vmem:[#allocation3 + $0x48] sm:$0xff] }
 0x487   : > { %5246 = vmatmul.mubr.bf16.vlgmr.msra.gmra.mxu0 %v4964_v41  ;;  %v13781_v61 = vld [vmem:[#allocation2 + $0x181] sm:$0xff]  ;;  %3754 = vst.msk [vmem:[#allocation3 + $0x90] sm:$0xff] %vm1095_vm4, %v3665_v33 }
 0x488   : > { %v3853_v20 = vpop.permute.xlu1 %3852  ;;  %4226 = vst.msk [vmem:[#allocation3 + $0x2d8] sm:$0xff] %vm782_vm2, %v13781_v61  ;;  %3872 = vrot.lane.b32.xlu0 %v13259_v23, %s11157_s13 }
 0x489   : > { %3944 = vst.msk [vmem:[#allocation3 + $0x60] sm:$0xff] %vm1288_vm5, %v3853_v20  ;;  %v4245_v20 = vld [vmem:[#allocation2 + $0xe2] sm:$0xff] }
 0x48a   : > { %3682 = vrot.lane.b32.xlu1 %v13272_v12, %s11156_s12  ;;  %v4491_v31 = vpop.permute.xlu0 %4490 }
 0x48b   : > { %4583 = vst.msk [vmem:[#allocation3 + $0x50] sm:$0xff] %vm1288_vm5, %v4491_v31 }
 0x48c   : > { %v4489_v19 = vpop.permute.xlu1 %4488  ;;  %v4832_v25 = vld [vmem:[#allocation2 + $0x182] sm:$0xff]  ;;  %v4833_v47 = vld [vmem:[#allocation2 + $0x18a] sm:$0xff]  ;;  %4508 = vrot.lane.b32.xlu0 %v13298_v44, %s11157_s13 }
 0x48d   : > { %4582 = vst.msk [vmem:[#allocation3 + $0x38] sm:$0xff] %vm1288_vm5, %v4489_v19  ;;  %v13797_v7 = vld [vmem:[#allocation2 + $0x189] sm:$0xff] }
 0x48e   : > { %4864 = vst.msk [vmem:[#allocation3 + $0x2b0] sm:$0xff] %vm782_vm2, %v4832_v25  ;;  %4865 = vst.msk [vmem:[#allocation3 + $0x2c8] sm:$0xff] %vm782_vm2, %v4833_v47  ;;  %3874 = vrot.lane.b32.xlu1 %v13261_v11, %s11157_s13  ;;  %v4683_v23 = vpop.permute.xlu0 %4682 }
 0x48f   : > { %4227 = vst.msk [vmem:[#allocation3 + $0x2f0] sm:$0xff] %vm782_vm2, %v13797_v7 }
 0x490   : > { %v4681_v12 = vpop.permute.xlu1 %4680  ;;  %4775 = vst.msk [vmem:[#allocation3 + $0x50] sm:$0xff] %vm1481_vm6, %v4683_v23  ;;  %4700 = vrot.lane.b32.xlu0 %v13300_v10, %s11158_s16  ;;  %v4244_v23 = vld [vmem:[#allocation2 + $0xda] sm:$0xff] }
 0x491   : > { %4774 = vst.msk [vmem:[#allocation3 + $0x38] sm:$0xff] %vm1481_vm6, %v4681_v12 }
 0x492   : > { %4510 = vrot.lane.b32.xlu1 %v13322_v29, %s11157_s13  ;;  %v4303_v51 = vpop.permute.xlu0 %4302 }
 0x493   : > { %4393 = vst.msk [vmem:[#allocation3 + $0x80] sm:$0xff] %vm1095_vm4, %v4303_v51 }
 0x494   : > { %v4045_v36 = vpop.permute.xlu1 %4044  ;;  %4064 = vrot.lane.b32.xlu0 %v13298_v44, %s11158_s16  ;;  %v4874_v44 = vld [vmem:[#allocation3 + $0x30] sm:$0xff] }
 0x495   : > { %v4954_v11 = vld [vmem:[#allocation3 + $0x2b0] sm:$0xff]  ;;  %v4957_v63 = vld [vmem:[#allocation3 + $0x2c8] sm:$0xff]  ;;  %4136 = vst.msk [vmem:[#allocation3 + $0x60] sm:$0xff] %vm1481_vm6, %v4045_v36  ;;  %v4967_v4 = vpack.c.bf16 %v4877_v60, %v4874_v44 }
 0x496   : > { %v5008_v50 = vpack.c.bf16 %v4957_v63, %v4954_v11  ;;  %4702 = vrot.lane.b32.xlu1 %v13330_v55, %s11158_s16  ;;  %v4047_v54 = vpop.permute.xlu0 %4046 }
 0x497   : > { %v4878_v30 = vld [vmem:[#allocation3 + $0x50] sm:$0xff]  ;;  %4137 = vst.msk [vmem:[#allocation3 + $0x78] sm:$0xff] %vm1481_vm6, %v4047_v54 }
 0x498   : > { %10021 = vmatprep.mubr.msk.bf16.mxu1 %vm782_vm2, %v5008_v50  ;;  %v4301_v13 = vpop.permute.xlu1 %4300  ;;  %v4875_v45 = vld [vmem:[#allocation3 + $0x38] sm:$0xff]  ;;  %3684 = vrot.lane.b32.xlu0 %v13300_v10, %s11156_s12 }
 0x499   : > { %4392 = vst.msk [vmem:[#allocation3 + $0x68] sm:$0xff] %vm1095_vm4, %v4301_v13  ;;  %v4968_v8 = vpack.c.bf16 %v4878_v30, %v4875_v45 }
 0x49a   : > { %4322 = vrot.lane.b32.xlu1 %v13320_v52, %s11156_s12  ;;  %v3857_v15 = vpop.permute.xlu0 %3856 }
 0x49b   : > { %5253 = vmatprep.mubr.bf16.mxu0 %v4968_v8  ;;  %3946 = vst.msk [vmem:[#allocation3 + $0x90] sm:$0xff] %vm1288_vm5, %v3857_v15 }
 0x49c   : > { %v3667_v62 = vpop.permute.xlu1 %3666  ;;  %5254 = vmatmul.mubr.bf16.gmra.mxu0 %v4967_v4  ;;  %4320 = vrot.lane.b32.xlu0 %v4242_v16, %s11156_s12  ;;  %v4880_v51 = vld [vmem:[#allocation3 + $0x60] sm:$0xff]  ;;  %v4247_v4 = vld [vmem:[#allocation2 + $0xfa] sm:$0xff] }
 0x49d   : > { %3755 = vst.msk [vmem:[#allocation3 + $0xa8] sm:$0xff] %vm1095_vm4, %v3667_v62 }
 0x49e   : > { %4066 = vrot.lane.b32.xlu1 %v13322_v29, %s11158_s16  ;;  %v4049_v10 = vpop.permute.xlu0 %4048  ;;  %v4883_v31 = vld [vmem:[#allocation3 + $0x78] sm:$0xff] }
 0x49f   : > { %4138 = vst.msk [vmem:[#allocation3 + $0x90] sm:$0xff] %vm1481_vm6, %v4049_v10  ;;  %v4970_v36 = vpack.c.bf16 %v4883_v31, %v4880_v51  ;;  %v4249_v31 = vld [vmem:[#allocation2 + $0x112] sm:$0xff] }
 0x4a0   : > { %v3859_v28 = vpop.permute.xlu1 %3858  ;;  %3876 = vrot.lane.b32.xlu0 %v4242_v16, %s11157_s13 }
 0x4a1   : > { %3947 = vst.msk [vmem:[#allocation3 + $0xa8] sm:$0xff] %vm1288_vm5, %v3859_v28  ;;  %v4246_v28 = vld [vmem:[#allocation2 + $0xf2] sm:$0xff] }
 0x4a2   : > { %3686 = vrot.lane.b32.xlu1 %v13330_v55, %s11156_s12  ;;  %v3669_v52 = vpop.permute.xlu0 %3668 }
 0x4a3   : > { %3756 = vst.msk [vmem:[#allocation3 + $0xc0] sm:$0xff] %vm1095_vm4, %v3669_v52 }
 0x4a4   : > { %v4493_v53 = vpop.permute.xlu1 %4492  ;;  %4512 = vrot.lane.b32.xlu0 %v13384_v57, %s11157_s13 }
 0x4a5   : > { %4584 = vst.msk [vmem:[#allocation3 + $0x68] sm:$0xff] %vm1288_vm5, %v4493_v53 }
 0x4a6   : > { %3878 = vrot.lane.b32.xlu1 %v3797_v48, %s11157_s13  ;;  %v4495_v29 = vpop.permute.xlu0 %4494  ;;  %v4886_v62 = vld [vmem:[#allocation3 + $0x90] sm:$0xff] }
 0x4a7   : > { %4585 = vst.msk [vmem:[#allocation3 + $0x80] sm:$0xff] %vm1288_vm5, %v4495_v29 }
 0x4a8   : > { %v4685_v14 = vpop.permute.xlu1 %4684  ;;  %4704 = vrot.lane.b32.xlu0 %v13386_v0, %s11158_s16 }
 0x4a9   : > { %4776 = vst.msk [vmem:[#allocation3 + $0x68] sm:$0xff] %vm1481_vm6, %v4685_v14 }
 0x4aa   : > { %4514 = vrot.lane.b32.xlu1 %v13408_v40, %s11157_s13  ;;  %v4687_v55 = vpop.permute.xlu0 %4686 }
 0x4ab   : > { %4777 = vst.msk [vmem:[#allocation3 + $0x80] sm:$0xff] %vm1481_vm6, %v4687_v55 }
 0x4ac   : > { %v4305_v41 = vpop.permute.xlu1 %4304  ;;  %4068 = vrot.lane.b32.xlu0 %v13384_v57, %s11158_s16 }
 0x4ad   : > { %4394 = vst.msk [vmem:[#allocation3 + $0x98] sm:$0xff] %vm1095_vm4, %v4305_v41 }
 0x4ae   : > { %4706 = vrot.lane.b32.xlu1 %v13410_v32, %s11158_s16  ;;  %v4307_v56 = vpop.permute.xlu0 %4306 }
 0x4af   : > { %4395 = vst.msk [vmem:[#allocation3 + $0xb0] sm:$0xff] %vm1095_vm4, %v4307_v56 }
 0x4b0   : > { %v4051_v33 = vpop.permute.xlu1 %4050  ;;  %3688 = vrot.lane.b32.xlu0 %v13386_v0, %s11156_s12  ;;  %v4881_v25 = vld [vmem:[#allocation3 + $0x68] sm:$0xff] }
 0x4b1   : > { %4139 = vst.msk [vmem:[#allocation3 + $0xa8] sm:$0xff] %vm1481_vm6, %v4051_v33 }
 0x4b2   : > { %4326 = vrot.lane.b32.xlu1 %v4245_v20, %s11156_s12  ;;  %v3861_v19 = vpop.permute.xlu0 %3860  ;;  %v4884_v47 = vld [vmem:[#allocation3 + $0x80] sm:$0xff] }
 0x4b3   : > { %3948 = vst.msk [vmem:[#allocation3 + $0xc0] sm:$0xff] %vm1288_vm5, %v3861_v19  ;;  %v4971_v12 = vpack.c.bf16 %v4884_v47, %v4881_v25 }
 0x4b4   : > { %v3671_v57 = vpop.permute.xlu1 %3670  ;;  %4324 = vrot.lane.b32.xlu0 %v4244_v23, %s11156_s12 }
 0x4b5   : > { %3757 = vst.msk [vmem:[#allocation3 + $0xd8] sm:$0xff] %vm1095_vm4, %v3671_v57  ;;  %5261 = vmatprep.mubr.bf16.mxu0 %v4971_v12 }
 0x4b6   : > { %4070 = vrot.lane.b32.xlu1 %v13408_v40, %s11158_s16  ;;  %5262 = vmatmul.mubr.bf16.gmra.mxu0 %v4970_v36  ;;  %v4497_v0 = vpop.permute.xlu0 %4496 }
 0x4b7   : > { %4586 = vst.msk [vmem:[#allocation3 + $0x98] sm:$0xff] %vm1288_vm5, %v4497_v0 }
 0x4b8   : > { %v3863_v11 = vpop.permute.xlu1 %3862  ;;  %3880 = vrot.lane.b32.xlu0 %v4244_v23, %s11157_s13  ;;  %v4889_v13 = vld [vmem:[#allocation3 + $0xa8] sm:$0xff]  ;;  %v4248_v23 = vld [vmem:[#allocation2 + $0x10a] sm:$0xff] }
 0x4b9   : > { %3949 = vst.msk [vmem:[#allocation3 + $0xd8] sm:$0xff] %vm1288_vm5, %v3863_v11 }
 0x4ba   : > { %3690 = vrot.lane.b32.xlu1 %v13410_v32, %s11156_s12  ;;  %v4689_v63 = vpop.permute.xlu0 %4688 }
 0x4bb   : > { %4778 = vst.msk [vmem:[#allocation3 + $0x98] sm:$0xff] %vm1481_vm6, %v4689_v63 }
 0x4bc   : > { %v4499_v50 = vpop.permute.xlu1 %4498  ;;  %4516 = vrot.lane.b32.xlu0 %v13466_v27, %s11157_s13 }
 0x4bd   : > { %4587 = vst.msk [vmem:[#allocation3 + $0xb0] sm:$0xff] %vm1288_vm5, %v4499_v50 }
 0x4be   : > { %3882 = vrot.lane.b32.xlu1 %v4245_v20, %s11157_s13  ;;  %v4053_v40 = vpop.permute.xlu0 %4052 }
 0x4bf   : > { %4140 = vst.msk [vmem:[#allocation3 + $0xc0] sm:$0xff] %vm1481_vm6, %v4053_v40 }
 0x4c0   : > { %v4691_v54 = vpop.permute.xlu1 %4690  ;;  %4708 = vrot.lane.b32.xlu0 %v13468_v37, %s11158_s16 }
 0x4c1   : > { %4779 = vst.msk [vmem:[#allocation3 + $0xb0] sm:$0xff] %vm1481_vm6, %v4691_v54 }
 0x4c2   : > { %4518 = vrot.lane.b32.xlu1 %v13479_v46, %s11157_s13  ;;  %v3673_v32 = vpop.permute.xlu0 %3672  ;;  %v4887_v8 = vld [vmem:[#allocation3 + $0x98] sm:$0xff] }
 0x4c3   : > { %3758 = vst.msk [vmem:[#allocation3 + $0xf0] sm:$0xff] %vm1095_vm4, %v3673_v32 }
 0x4c4   : > { %v4311_v30 = vpop.permute.xlu1 %4310  ;;  %4072 = vrot.lane.b32.xlu0 %v13466_v27, %s11158_s16  ;;  %v4973_v27 = vpack.c.bf16 %v4889_v13, %v4886_v62 }
 0x4c5   : > { %4397 = vst.msk [vmem:[#allocation3 + $0xe0] sm:$0xff] %vm1095_vm4, %v4311_v30  ;;  %v4251_v30 = vld [vmem:[#allocation2 + $0x12a] sm:$0xff] }
 0x4c6   : > { %4710 = vrot.lane.b32.xlu1 %v13486_v43, %s11158_s16  ;;  %v4309_v60 = vpop.permute.xlu0 %4308  ;;  %v4892_v25 = vld [vmem:[#allocation3 + $0xc0] sm:$0xff] }
 0x4c7   : > { %4396 = vst.msk [vmem:[#allocation3 + $0xc8] sm:$0xff] %vm1095_vm4, %v4309_v60 }
 0x4c8   : > { %v4055_v45 = vpop.permute.xlu1 %4054  ;;  %v4890_v44 = vld [vmem:[#allocation3 + $0xb0] sm:$0xff]  ;;  %3692 = vrot.lane.b32.xlu0 %v13468_v37, %s11156_s12 }
 0x4c9   : > { %4141 = vst.msk [vmem:[#allocation3 + $0xd8] sm:$0xff] %vm1481_vm6, %v4055_v45  ;;  %v4974_v15 = vpack.c.bf16 %v4890_v44, %v4887_v8  ;;  %v4250_v44 = vld [vmem:[#allocation2 + $0x122] sm:$0xff] }
 0x4ca   : > { %4330 = vrot.lane.b32.xlu1 %v4247_v4, %s11156_s12  ;;  %v3865_v16 = vpop.permute.xlu0 %3864 }
 0x4cb   : > { %5269 = vmatprep.mubr.bf16.mxu0 %v4974_v15  ;;  %3950 = vst.msk [vmem:[#allocation3 + $0xf0] sm:$0xff] %vm1288_vm5, %v3865_v16 }
 0x4cc   : > { %v3675_v10 = vpop.permute.xlu1 %3674  ;;  %5270 = vmatmul.mubr.bf16.gmra.mxu0 %v4973_v27  ;;  %4328 = vrot.lane.b32.xlu0 %v4246_v28, %s11156_s12 }
 0x4cd   : > { %3759 = vst.msk [vmem:[#allocation3 + $0x108] sm:$0xff] %vm1095_vm4, %v3675_v10 }
 0x4ce   : > { %4074 = vrot.lane.b32.xlu1 %v13479_v46, %s11158_s16  ;;  %v4501_v37 = vpop.permute.xlu0 %4500 }
 0x4cf   : > { %4588 = vst.msk [vmem:[#allocation3 + $0xc8] sm:$0xff] %vm1288_vm5, %v4501_v37 }
 0x4d0   : > { %v3867_v52 = vpop.permute.xlu1 %3866  ;;  %3884 = vrot.lane.b32.xlu0 %v4246_v28, %s11157_s13  ;;  %v4895_v41 = vld [vmem:[#allocation3 + $0xd8] sm:$0xff] }
 0x4d1   : > { %3951 = vst.msk [vmem:[#allocation3 + $0x108] sm:$0xff] %vm1288_vm5, %v3867_v52 }
 0x4d2   : > { %3694 = vrot.lane.b32.xlu1 %v13486_v43, %s11156_s12  ;;  %v4693_v53 = vpop.permute.xlu0 %4692 }
 0x4d3   : > { %4780 = vst.msk [vmem:[#allocation3 + $0xc8] sm:$0xff] %vm1481_vm6, %v4693_v53 }
 0x4d4   : > { %v4503_v48 = vpop.permute.xlu1 %4502  ;;  %4520 = vrot.lane.b32.xlu0 %v13509_v1, %s11157_s13 }
 0x4d5   : > { %4589 = vst.msk [vmem:[#allocation3 + $0xe0] sm:$0xff] %vm1288_vm5, %v4503_v48  ;;  %v4253_v48 = vld [vmem:[#allocation2 + $0x142] sm:$0xff] }
 0x4d6   : > { %3886 = vrot.lane.b32.xlu1 %v4247_v4, %s11157_s13  ;;  %v4057_v46 = vpop.permute.xlu0 %4056 }
 0x4d7   : > { %4142 = vst.msk [vmem:[#allocation3 + $0xf0] sm:$0xff] %vm1481_vm6, %v4057_v46 }
 0x4d8   : > { %v4695_v29 = vpop.permute.xlu1 %4694  ;;  %4712 = vrot.lane.b32.xlu0 %v13511_v58, %s11158_s16 }
 0x4d9   : > { %4781 = vst.msk [vmem:[#allocation3 + $0xe0] sm:$0xff] %vm1481_vm6, %v4695_v29 }
 0x4da   : > { %4522 = vrot.lane.b32.xlu1 %v13522_v17, %s11157_s13  ;;  %v3677_v43 = vpop.permute.xlu0 %3676  ;;  %v4893_v33 = vld [vmem:[#allocation3 + $0xc8] sm:$0xff] }
 0x4db   : > { %3760 = vst.msk [vmem:[#allocation3 + $0x120] sm:$0xff] %vm1095_vm4, %v3677_v43 }
 0x4dc   : > { %v4315_v14 = vpop.permute.xlu1 %4314  ;;  %4076 = vrot.lane.b32.xlu0 %v13509_v1, %s11158_s16  ;;  %v4976_v1 = vpack.c.bf16 %v4895_v41, %v4892_v25 }
 0x4dd   : > { %4399 = vst.msk [vmem:[#allocation3 + $0x110] sm:$0xff] %vm1095_vm4, %v4315_v14 }
 0x4de   : > { %4714 = vrot.lane.b32.xlu1 %v13526_v24, %s11158_s16  ;;  %v4313_v55 = vpop.permute.xlu0 %4312  ;;  %v4898_v13 = vld [vmem:[#allocation3 + $0xf0] sm:$0xff] }
 0x4df   : > { %4398 = vst.msk [vmem:[#allocation3 + $0xf8] sm:$0xff] %vm1095_vm4, %v4313_v55  ;;  %v4252_v55 = vld [vmem:[#allocation2 + $0x13a] sm:$0xff] }
 0x4e0   : > { %v4059_v56 = vpop.permute.xlu1 %4058  ;;  %v4896_v20 = vld [vmem:[#allocation3 + $0xe0] sm:$0xff]  ;;  %3696 = vrot.lane.b32.xlu0 %v13511_v58, %s11156_s12 }
 0x4e1   : > { %4143 = vst.msk [vmem:[#allocation3 + $0x108] sm:$0xff] %vm1481_vm6, %v4059_v56  ;;  %v4977_v19 = vpack.c.bf16 %v4896_v20, %v4893_v33 }
 0x4e2   : > { %4334 = vrot.lane.b32.xlu1 %v4249_v31, %s11156_s12  ;;  %v3869_v47 = vpop.permute.xlu0 %3868 }
 0x4e3   : > { %5277 = vmatprep.mubr.bf16.mxu0 %v4977_v19  ;;  %3952 = vst.msk [vmem:[#allocation3 + $0x120] sm:$0xff] %vm1288_vm5, %v3869_v47 }
 0x4e4   : > { %v3679_v57 = vpop.permute.xlu1 %3678  ;;  %5278 = vmatmul.mubr.bf16.gmra.mxu0 %v4976_v1  ;;  %4332 = vrot.lane.b32.xlu0 %v4248_v23, %s11156_s12 }
 0x4e5   : > { %3761 = vst.msk [vmem:[#allocation3 + $0x138] sm:$0xff] %vm1095_vm4, %v3679_v57 }
 0x4e6   : > { %4078 = vrot.lane.b32.xlu1 %v13522_v17, %s11158_s16  ;;  %v4505_v58 = vpop.permute.xlu0 %4504 }
 0x4e7   : > { %4590 = vst.msk [vmem:[#allocation3 + $0xf8] sm:$0xff] %vm1288_vm5, %v4505_v58 }
 0x4e8   : > { %v3871_v12 = vpop.permute.xlu1 %3870  ;;  %3888 = vrot.lane.b32.xlu0 %v4248_v23, %s11157_s13  ;;  %v4901_v50 = vld [vmem:[#allocation3 + $0x108] sm:$0xff] }
 0x4e9   : > { %3953 = vst.msk [vmem:[#allocation3 + $0x138] sm:$0xff] %vm1288_vm5, %v3871_v12  ;;  %v4255_v23 = vld [vmem:[#allocation2 + $0x15a] sm:$0xff] }
 0x4ea   : > { %3698 = vrot.lane.b32.xlu1 %v13526_v24, %s11156_s12  ;;  %v4697_v51 = vpop.permute.xlu0 %4696 }
 0x4eb   : > { %4782 = vst.msk [vmem:[#allocation3 + $0xf8] sm:$0xff] %vm1481_vm6, %v4697_v51 }
 0x4ec   : > { %v4507_v36 = vpop.permute.xlu1 %4506  ;;  %4524 = vrot.lane.b32.xlu0 %v13557_v59, %s11157_s13 }
 0x4ed   : > { %4591 = vst.msk [vmem:[#allocation3 + $0x110] sm:$0xff] %vm1288_vm5, %v4507_v36 }
 0x4ee   : > { %3890 = vrot.lane.b32.xlu1 %v4249_v31, %s11157_s13  ;;  %v4061_v17 = vpop.permute.xlu0 %4060 }
 0x4ef   : > { %4144 = vst.msk [vmem:[#allocation3 + $0x120] sm:$0xff] %vm1481_vm6, %v4061_v17  ;;  %v4254_v17 = vld [vmem:[#allocation2 + $0x152] sm:$0xff] }
 0x4f0   : > { %v4699_v0 = vpop.permute.xlu1 %4698  ;;  %4716 = vrot.lane.b32.xlu0 %v13559_v39, %s11158_s16 }
 0x4f1   : > { %4783 = vst.msk [vmem:[#allocation3 + $0x110] sm:$0xff] %vm1481_vm6, %v4699_v0 }
 0x4f2   : > { %4526 = vrot.lane.b32.xlu1 %v13573_v2, %s11157_s13  ;;  %v3681_v24 = vpop.permute.xlu0 %3680  ;;  %v4899_v54 = vld [vmem:[#allocation3 + $0xf8] sm:$0xff] }
 0x4f3   : > { %3762 = vst.msk [vmem:[#allocation3 + $0x150] sm:$0xff] %vm1095_vm4, %v3681_v24 }
 0x4f4   : > { %v4319_v11 = vpop.permute.xlu1 %4318  ;;  %4080 = vrot.lane.b32.xlu0 %v13557_v59, %s11158_s16  ;;  %v4979_v59 = vpack.c.bf16 %v4901_v50, %v4898_v13  ;;  %v4257_v13 = vld [vmem:[#allocation2 + $0x172] sm:$0xff] }
 0x4f5   : > { %4401 = vst.msk [vmem:[#allocation3 + $0x140] sm:$0xff] %vm1095_vm4, %v4319_v11 }
 0x4f6   : > { %4718 = vrot.lane.b32.xlu1 %v13579_v35, %s11158_s16  ;;  %v4317_v63 = vpop.permute.xlu0 %4316  ;;  %v4904_v29 = vld [vmem:[#allocation3 + $0x120] sm:$0xff] }
 0x4f7   : > { %4400 = vst.msk [vmem:[#allocation3 + $0x128] sm:$0xff] %vm1095_vm4, %v4317_v63 }
 0x4f8   : > { %v4063_v40 = vpop.permute.xlu1 %4062  ;;  %v4902_v32 = vld [vmem:[#allocation3 + $0x110] sm:$0xff]  ;;  %3700 = vrot.lane.b32.xlu0 %v13559_v39, %s11156_s12 }
 0x4f9   : > { %4145 = vst.msk [vmem:[#allocation3 + $0x138] sm:$0xff] %vm1481_vm6, %v4063_v40  ;;  %v4980_v60 = vpack.c.bf16 %v4902_v32, %v4899_v54 }
 0x4fa   : > { %4338 = vrot.lane.b32.xlu1 %v4251_v30, %s11156_s12  ;;  %v3873_v45 = vpop.permute.xlu0 %3872 }
 0x4fb   : > { %5285 = vmatprep.mubr.bf16.mxu0 %v4980_v60  ;;  %3954 = vst.msk [vmem:[#allocation3 + $0x150] sm:$0xff] %vm1288_vm5, %v3873_v45 }
 0x4fc   : > { %v3683_v8 = vpop.permute.xlu1 %3682  ;;  %5286 = vmatmul.mubr.bf16.gmra.mxu0 %v4979_v59  ;;  %4336 = vrot.lane.b32.xlu0 %v4250_v44, %s11156_s12 }
 0x4fd   : > { %3763 = vst.msk [vmem:[#allocation3 + $0x168] sm:$0xff] %vm1095_vm4, %v3683_v8  ;;  %v14046_v8 = vpop.f32.mrf.mxu1 }
 0x4fe   : > { %4082 = vrot.lane.b32.xlu1 %v13573_v2, %s11158_s16  ;;  %v4509_v39 = vpop.permute.xlu0 %4508 }
 0x4ff   : > { %4592 = vst.msk [vmem:[#allocation3 + $0x128] sm:$0xff] %vm1288_vm5, %v4509_v39 }
 0x500   : > { %v3875_v4 = vpop.permute.xlu1 %3874  ;;  %3892 = vrot.lane.b32.xlu0 %v4250_v44, %s11157_s13  ;;  %v4907_v28 = vld [vmem:[#allocation3 + $0x138] sm:$0xff] }
 0x501   : > { %3955 = vst.msk [vmem:[#allocation3 + $0x168] sm:$0xff] %vm1288_vm5, %v3875_v4  ;;  %v4256_v4 = vld [vmem:[#allocation2 + $0x16a] sm:$0xff] }
 0x502   : > { %3702 = vrot.lane.b32.xlu1 %v13579_v35, %s11156_s12  ;;  %v4701_v15 = vpop.permute.xlu0 %4700 }
 0x503   : > { %4784 = vst.msk [vmem:[#allocation3 + $0x128] sm:$0xff] %vm1481_vm6, %v4701_v15  ;;  %v5408_v15 = vpop.f32.mrf.mxu1 }
 0x504   : > { %v4511_v62 = vpop.permute.xlu1 %4510  ;;  %4528 = vrot.lane.b32.xlu0 %v13591_v26, %s11157_s13 }
 0x505   : > { %4593 = vst.msk [vmem:[#allocation3 + $0x140] sm:$0xff] %vm1288_vm5, %v4511_v62 }
 0x506   : > { %3894 = vrot.lane.b32.xlu1 %v4251_v30, %s11157_s13  ;;  %v4065_v2 = vpop.permute.xlu0 %4064 }
 0x507   : > { %4146 = vst.msk [vmem:[#allocation3 + $0x150] sm:$0xff] %vm1481_vm6, %v4065_v2 }
 0x508   : > { %v4703_v27 = vpop.permute.xlu1 %4702  ;;  %4720 = vrot.lane.b32.xlu0 %v13593_v5, %s11158_s16 }
 0x509   : > { %4785 = vst.msk [vmem:[#allocation3 + $0x140] sm:$0xff] %vm1481_vm6, %v4703_v27  ;;  %v14056_v27 = vld [vmem:[%s16252_s4 + $0x1] ss:$0 sm:$0xff] }
 0x50a   : > { %4530 = vrot.lane.b32.xlu1 %v13609_v34, %s11157_s13  ;;  %v3685_v35 = vpop.permute.xlu0 %3684  ;;  %v4905_v52 = vld [vmem:[#allocation3 + $0x128] sm:$0xff] }
 0x50b   : > { %3764 = vst.msk [vmem:[#allocation3 + $0x180] sm:$0xff] %vm1095_vm4, %v3685_v35 }
 0x50c   : > { %v4323_v16 = vpop.permute.xlu1 %4322  ;;  %4084 = vrot.lane.b32.xlu0 %v13591_v26, %s11158_s16  ;;  %v4982_v26 = vpack.c.bf16 %v4907_v28, %v4904_v29 }
 0x50d   : > { %4403 = vst.msk [vmem:[#allocation3 + $0x170] sm:$0xff] %vm1095_vm4, %v4323_v16 }
 0x50e   : > { %4722 = vrot.lane.b32.xlu1 %v13616_v9, %s11158_s16  ;;  %v4321_v10 = vpop.permute.xlu0 %4320  ;;  %v4910_v12 = vld [vmem:[#allocation3 + $0x150] sm:$0xff] }
 0x50f   : > { %4402 = vst.msk [vmem:[#allocation3 + $0x158] sm:$0xff] %vm1095_vm4, %v4321_v10  ;;  %v14063_v10 = vpop.f32.mrf.mxu1 }
 0x510   : > { %v4067_v37 = vpop.permute.xlu1 %4066  ;;  %v4908_v53 = vld [vmem:[#allocation3 + $0x140] sm:$0xff]  ;;  %3704 = vrot.lane.b32.xlu0 %v13593_v5, %s11156_s12 }
 0x511   : > { %4147 = vst.msk [vmem:[#allocation3 + $0x168] sm:$0xff] %vm1481_vm6, %v4067_v37  ;;  %v4983_v46 = vpack.c.bf16 %v4908_v53, %v4905_v52 }
 0x512   : > { %4342 = vrot.lane.b32.xlu1 %v4253_v48, %s11156_s12  ;;  %v3877_v43 = vpop.permute.xlu0 %3876 }
 0x513   : > { %5293 = vmatprep.mubr.bf16.mxu0 %v4983_v46  ;;  %3956 = vst.msk [vmem:[#allocation3 + $0x180] sm:$0xff] %vm1288_vm5, %v3877_v43 }
 0x514   : > { %v3687_v14 = vpop.permute.xlu1 %3686  ;;  %5294 = vmatmul.mubr.bf16.gmra.mxu0 %v4982_v26  ;;  %4340 = vrot.lane.b32.xlu0 %v4252_v55, %s11156_s12 }
 0x515   : > { %3765 = vst.msk [vmem:[#allocation3 + $0x198] sm:$0xff] %vm1095_vm4, %v3687_v14  ;;  %v5411_v14 = vpop.f32.mrf.mxu1 }
 0x516   : > { %4086 = vrot.lane.b32.xlu1 %v13609_v34, %s11158_s16  ;;  %v4513_v5 = vpop.permute.xlu0 %4512 }
 0x517   : > { %4594 = vst.msk [vmem:[#allocation3 + $0x158] sm:$0xff] %vm1288_vm5, %v4513_v5 }
 0x518   : > { %v3879_v41 = vpop.permute.xlu1 %3878  ;;  %3896 = vrot.lane.b32.xlu0 %v4252_v55, %s11157_s13  ;;  %v4913_v25 = vld [vmem:[#allocation3 + $0x168] sm:$0xff] }
 0x519   : > { %3957 = vst.msk [vmem:[#allocation3 + $0x198] sm:$0xff] %vm1288_vm5, %v3879_v41  ;;  %v4449_v41 = vld [vmem:[#allocation2 + $0x188] sm:$0xff] }
 0x51a   : > { %3706 = vrot.lane.b32.xlu1 %v13616_v9, %s11156_s12  ;;  %v4705_v56 = vpop.permute.xlu0 %4704 }
 0x51b   : > { %4786 = vst.msk [vmem:[#allocation3 + $0x158] sm:$0xff] %vm1481_vm6, %v4705_v56 }
 0x51c   : > { %v4515_v33 = vpop.permute.xlu1 %4514  ;;  %4532 = vrot.lane.b32.xlu0 %v13647_v49, %s11157_s13 }
 0x51d   : > { %4595 = vst.msk [vmem:[#allocation3 + $0x170] sm:$0xff] %vm1288_vm5, %v4515_v33 }
 0x51e   : > { %3898 = vrot.lane.b32.xlu1 %v4253_v48, %s11157_s13  ;;  %v4069_v34 = vpop.permute.xlu0 %4068  ;;  %v4448_v48 = vld [vmem:[#allocation2 + $0x180] sm:$0xff] }
 0x51f   : > { %4148 = vst.msk [vmem:[#allocation3 + $0x180] sm:$0xff] %vm1481_vm6, %v4069_v34 }
 0x520   : > { %v4707_v20 = vpop.permute.xlu1 %4706  ;;  %4724 = vrot.lane.b32.xlu0 %v13649_v42, %s11158_s16 }
 0x521   : > { %4787 = vst.msk [vmem:[#allocation3 + $0x170] sm:$0xff] %vm1481_vm6, %v4707_v20  ;;  %v4960_v20 = vld [vmem:[#allocation3 + $0x2e0] sm:$0xff] }
 0x522   : > { %4534 = vrot.lane.b32.xlu1 %v13659_v21, %s11157_s13  ;;  %v3689_v9 = vpop.permute.xlu0 %3688  ;;  %v4911_v47 = vld [vmem:[#allocation3 + $0x158] sm:$0xff] }
 0x523   : > { %3766 = vst.msk [vmem:[#allocation3 + $0x1b0] sm:$0xff] %vm1095_vm4, %v3689_v9  ;;  %v4963_v9 = vld [vmem:[#allocation3 + $0x2f8] sm:$0xff] }
 0x524   : > { %v4327_v31 = vpop.permute.xlu1 %4326  ;;  %4088 = vrot.lane.b32.xlu0 %v13647_v49, %s11158_s16  ;;  %v4985_v49 = vpack.c.bf16 %v4913_v25, %v4910_v12 }
 0x525   : > { %4405 = vst.msk [vmem:[#allocation3 + $0x1a0] sm:$0xff] %vm1095_vm4, %v4327_v31  ;;  %v5011_v31 = vpack.c.bf16 %v4963_v9, %v4960_v20 }
 0x526   : > { %4726 = vrot.lane.b32.xlu1 %v13666_v3, %s11158_s16  ;;  %v4325_v19 = vpop.permute.xlu0 %4324  ;;  %v4916_v45 = vld [vmem:[#allocation3 + $0x180] sm:$0xff] }
 0x527   : > { %4404 = vst.msk [vmem:[#allocation3 + $0x188] sm:$0xff] %vm1095_vm4, %v4325_v19  ;;  %10022 = vmatmul.mubr.msk.bf16.gmra.mxu1 %vm782_vm2, %v5011_v31 }
 0x528   : > { %v4071_v1 = vpop.permute.xlu1 %4070  ;;  %v4914_v57 = vld [vmem:[#allocation3 + $0x170] sm:$0xff]  ;;  %3708 = vrot.lane.b32.xlu0 %v13649_v42, %s11156_s12 }
 0x529   : > { %4149 = vst.msk [vmem:[#allocation3 + $0x198] sm:$0xff] %vm1481_vm6, %v4071_v1  ;;  %v4986_v58 = vpack.c.bf16 %v4914_v57, %v4911_v47  ;;  %v4258_v1 = vld [vmem:[#allocation2 + $0x182] sm:$0xff] }
 0x52a   : > { %4346 = vrot.lane.b32.xlu1 %v4255_v23, %s11156_s12  ;;  %v3881_v51 = vpop.permute.xlu0 %3880 }
 0x52b   : > { %5301 = vmatprep.mubr.bf16.mxu0 %v4986_v58  ;;  %3958 = vst.msk [vmem:[#allocation3 + $0x1b0] sm:$0xff] %vm1288_vm5, %v3881_v51 }
 0x52c   : > { %v3691_v36 = vpop.permute.xlu1 %3690  ;;  %5302 = vmatmul.mubr.bf16.gmra.mxu0 %v4985_v49  ;;  %4344 = vrot.lane.b32.xlu0 %v4254_v17, %s11156_s12 }
 0x52d   : > { %3767 = vst.msk [vmem:[#allocation3 + $0x1c8] sm:$0xff] %vm1095_vm4, %v3691_v36 }
 0x52e   : > { %4090 = vrot.lane.b32.xlu1 %v13659_v21, %s11158_s16  ;;  %v4517_v42 = vpop.permute.xlu0 %4516 }
 0x52f   : > { %4596 = vst.msk [vmem:[#allocation3 + $0x188] sm:$0xff] %vm1288_vm5, %v4517_v42 }
 0x530   : > { %v3883_v0 = vpop.permute.xlu1 %3882  ;;  %3900 = vrot.lane.b32.xlu0 %v4254_v17, %s11157_s13  ;;  %v4919_v54 = vld [vmem:[#allocation3 + $0x198] sm:$0xff] }
 0x531   : > { %3959 = vst.msk [vmem:[#allocation3 + $0x1c8] sm:$0xff] %vm1288_vm5, %v3883_v0 }
 0x532   : > { %3710 = vrot.lane.b32.xlu1 %v13666_v3, %s11156_s12  ;;  %v4709_v24 = vpop.permute.xlu0 %4708 }
 0x533   : > { %4788 = vst.msk [vmem:[#allocation3 + $0x188] sm:$0xff] %vm1481_vm6, %v4709_v24 }
 0x534   : > { %v4519_v11 = vpop.permute.xlu1 %4518  ;;  %4536 = vrot.lane.b32.xlu0 %v13714_v22, %s11157_s13 }
 0x535   : > { %4597 = vst.msk [vmem:[#allocation3 + $0x1a0] sm:$0xff] %vm1288_vm5, %v4519_v11 }
 0x536   : > { %3902 = vrot.lane.b32.xlu1 %v4255_v23, %s11157_s13  ;;  %v4073_v21 = vpop.permute.xlu0 %4072  ;;  %v4259_v23 = vld [vmem:[#allocation2 + $0x18a] sm:$0xff] }
 0x537   : > { %4150 = vst.msk [vmem:[#allocation3 + $0x1b0] sm:$0xff] %vm1481_vm6, %v4073_v21 }
 0x538   : > { %v4711_v63 = vpop.permute.xlu1 %4710  ;;  %4728 = vrot.lane.b32.xlu0 %v13716_v18, %s11158_s16 }
 0x539   : > { %4789 = vst.msk [vmem:[#allocation3 + $0x1a0] sm:$0xff] %vm1481_vm6, %v4711_v63 }
 0x53a   : > { %4538 = vrot.lane.b32.xlu1 %v13730_v38, %s11157_s13  ;;  %v3693_v3 = vpop.permute.xlu0 %3692  ;;  %v4917_v30 = vld [vmem:[#allocation3 + $0x188] sm:$0xff] }
 0x53b   : > { %3768 = vst.msk [vmem:[#allocation3 + $0x1e0] sm:$0xff] %vm1095_vm4, %v3693_v3 }
 0x53c   : > { %v4331_v50 = vpop.permute.xlu1 %4330  ;;  %4092 = vrot.lane.b32.xlu0 %v13714_v22, %s11158_s16  ;;  %v4988_v22 = vpack.c.bf16 %v4919_v54, %v4916_v45 }
 0x53d   : > { %4407 = vst.msk [vmem:[#allocation3 + $0x1d0] sm:$0xff] %vm1095_vm4, %v4331_v50 }
 0x53e   : > { %4730 = vrot.lane.b32.xlu1 %v13732_v6, %s11158_s16  ;;  %v4329_v40 = vpop.permute.xlu0 %4328  ;;  %v4922_v12 = vld [vmem:[#allocation3 + $0x1b0] sm:$0xff] }
 0x53f   : > { %4406 = vst.msk [vmem:[#allocation3 + $0x1b8] sm:$0xff] %vm1095_vm4, %v4329_v40 }
 0x540   : > { %v4075_v32 = vpop.permute.xlu1 %4074  ;;  %v4920_v60 = vld [vmem:[#allocation3 + $0x1a0] sm:$0xff]  ;;  %3712 = vrot.lane.b32.xlu0 %v13716_v18, %s11156_s12 }
 0x541   : > { %4151 = vst.msk [vmem:[#allocation3 + $0x1c8] sm:$0xff] %vm1481_vm6, %v4075_v32  ;;  %v4989_v59 = vpack.c.bf16 %v4920_v60, %v4917_v30 }
 0x542   : > { %4350 = vrot.lane.b32.xlu1 %v4257_v13, %s11156_s12  ;;  %v3885_v44 = vpop.permute.xlu0 %3884 }
 0x543   : > { %5309 = vmatprep.mubr.bf16.mxu0 %v4989_v59  ;;  %3960 = vst.msk [vmem:[#allocation3 + $0x1e0] sm:$0xff] %vm1288_vm5, %v3885_v44 }
 0x544   : > { %v3695_v39 = vpop.permute.xlu1 %3694  ;;  %5310 = vmatmul.mubr.bf16.gmra.mxu0 %v4988_v22  ;;  %4348 = vrot.lane.b32.xlu0 %v4256_v4, %s11156_s12 }
 0x545   : > { %3769 = vst.msk [vmem:[#allocation3 + $0x1f8] sm:$0xff] %vm1095_vm4, %v3695_v39 }
 0x546   : > { %4094 = vrot.lane.b32.xlu1 %v13730_v38, %s11158_s16  ;;  %v4521_v62 = vpop.permute.xlu0 %4520 }
 0x547   : > { %v9675_v18 = vpop.f32.mrf.mxu0  ;;  %4598 = vst.msk [vmem:[#allocation3 + $0x1b8] sm:$0xff] %vm1288_vm5, %v4521_v62 }
 0x548   : > { %v3887_v2 = vpop.permute.xlu1 %3886  ;;  %3904 = vrot.lane.b32.xlu0 %v4256_v4, %s11157_s13  ;;  %v4925_v19 = vld [vmem:[#allocation3 + $0x1c8] sm:$0xff] }
 0x549   : > { %v9676_v35 = vpop.f32.mrf.mxu0  ;;  %3961 = vst.msk [vmem:[#allocation3 + $0x1f8] sm:$0xff] %vm1288_vm5, %v3887_v2 }
 0x54a   : > { %v9677_v16 = vadd.f32 %v9676_v35, %v9675_v18  ;;  %3714 = vrot.lane.b32.xlu1 %v13732_v6, %s11156_s12  ;;  %v4713_v37 = vpop.permute.xlu0 %4712 }
 0x54b   : > { %v9678_v38 = vpop.f32.mrf.mxu0  ;;  %4790 = vst.msk [vmem:[#allocation3 + $0x1b8] sm:$0xff] %vm1481_vm6, %v4713_v37 }
 0x54c   : > { %v5248_v28 = vadd.f32 %v9677_v16, %v14056_v27  ;;  %v4523_v52 = vpop.permute.xlu1 %4522  ;;  %4540 = vrot.lane.b32.xlu0 %v4448_v48, %s11157_s13 }
 0x54d   : > { %v9679_v53 = vpop.f32.mrf.mxu0  ;;  %4599 = vst.msk [vmem:[#allocation3 + $0x1d0] sm:$0xff] %vm1288_vm5, %v4523_v52 }
 0x54e   : > { %v14067_v46 = vadd.f32 %v5408_v15, %v5248_v28  ;;  %v9680_v29 = vadd.f32 %v9679_v53, %v9678_v38  ;;  %3906 = vrot.lane.b32.xlu1 %v4257_v13, %s11157_s13  ;;  %v4077_v43 = vpop.permute.xlu0 %4076 }
 0x54f   : > { %4152 = vst.msk [vmem:[#allocation3 + $0x1e0] sm:$0xff] %vm1481_vm6, %v4077_v43 }
 0x550   : > { %v9305_v6 = vmul.f32 -1.442695, %v14067_v46  ;;  %v5251_v26 = vadd.f32 %v9680_v29, %v14056_v27  ;;  %v4715_v55 = vpop.permute.xlu1 %4714  ;;  %4732 = vrot.lane.b32.xlu0 %v13781_v61, %s11158_s16 }
 0x551   : > { %4791 = vst.msk [vmem:[#allocation3 + $0x1d0] sm:$0xff] %vm1481_vm6, %v4715_v55 }
 0x552   : > { %10577 = vpow2.f32 %v9305_v6  ;;  %v14075_v5 = vadd.f32 %v5411_v14, %v5251_v26  ;;  %4542 = vrot.lane.b32.xlu1 %v4449_v41, %s11157_s13  ;;  %v3697_v33 = vpop.permute.xlu0 %3696  ;;  %v4923_v47 = vld [vmem:[#allocation3 + $0x1b8] sm:$0xff]  ;;  %v14124_v26 = vpop.f32.mrf.mxu1 }
 0x553   : > { %3770 = vst.msk [vmem:[#allocation3 + $0x210] sm:$0xff] %vm1095_vm4, %v3697_v33 }
 0x554   : > { %v9306_v56 = vmul.f32 -1.442695, %v14075_v5  ;;  %v4335_v34 = vpop.permute.xlu1 %4334  ;;  %4096 = vrot.lane.b32.xlu0 %v4448_v48, %s11158_s16 }
 0x555   : > { %4409 = vst.msk [vmem:[#allocation3 + $0x200] sm:$0xff] %vm1095_vm4, %v4335_v34 }
 0x556   : > { %10579 = vpow2.f32 %v9306_v56  ;;  %4734 = vrot.lane.b32.xlu1 %v13797_v7, %s11158_s16  ;;  %v4333_v61 = vpop.permute.xlu0 %4332  ;;  %v4991_v7 = vpack.c.bf16 %v4925_v19, %v4922_v12  ;;  %v4928_v37 = vld [vmem:[#allocation3 + $0x1e0] sm:$0xff]  ;;  %v5424_v56 = vpop.f32.mrf.mxu1 }
 0x557   : > { %4408 = vst.msk [vmem:[#allocation3 + $0x1e8] sm:$0xff] %vm1095_vm4, %v4333_v61 }
 0x558   : > { %v4079_v25 = vpop.permute.xlu1 %4078  ;;  %v4926_v57 = vld [vmem:[#allocation3 + $0x1d0] sm:$0xff]  ;;  %4352 = vrot.lane.b32.xlu0 %v4258_v1, %s11156_s12 }
 0x559   : > { %4153 = vst.msk [vmem:[#allocation3 + $0x1f8] sm:$0xff] %vm1481_vm6, %v4079_v25  ;;  %v4992_v58 = vpack.c.bf16 %v4926_v57, %v4923_v47  ;;  %v14133_v25 = vpop.f32.mrf.mxu1  ;;  %v7485_v47 = vld [vmem:[#allocation2 + $0x19a] sm:$0xff]  ;;  %v7486_v57 = vld [vmem:[#allocation2 + $0x1a2] sm:$0xff] }
 0x55a   : > { %4354 = vrot.lane.b32.xlu1 %v4259_v23, %s11156_s12  ;;  %v3889_v49 = vpop.permute.xlu0 %3888  ;;  %7517 = vst.msk [vmem:[#allocation3 + $0x2e0] sm:$0xff] %vm782_vm2, %v7485_v47  ;;  %7518 = vst.msk [vmem:[#allocation3 + $0x2f8] sm:$0xff] %vm782_vm2, %v7486_v57 }
 0x55b   : > { %5317 = vmatprep.mubr.bf16.mxu0 %v4992_v58  ;;  %3962 = vst.msk [vmem:[#allocation3 + $0x210] sm:$0xff] %vm1288_vm5, %v3889_v49 }
 0x55c   : > { %v3699_v51 = vpop.permute.xlu1 %3698  ;;  %v9681_v36 = vpop.f32.mrf.mxu0  ;;  %5318 = vmatmul.mubr.bf16.gmra.mxu0 %v4991_v7 }
 0x55d   : > { %3771 = vst.msk [vmem:[#allocation3 + $0x228] sm:$0xff] %vm1095_vm4, %v3699_v51 }
 0x55e   : > { %4098 = vrot.lane.b32.xlu1 %v4449_v41, %s11158_s16  ;;  %v9682_v42 = vpop.f32.mrf.mxu0  ;;  %v4525_v11 = vpop.permute.xlu0 %4524 }
 0x55f   : > { %v10578_v17 = vpop.eup %10577  ;;  %v9683_v24 = vadd.f32 %v9682_v42, %v9681_v36  ;;  %4600 = vst.msk [vmem:[#allocation3 + $0x1e8] sm:$0xff] %vm1288_vm5, %v4525_v11  ;;  %v5427_v36 = vpop.f32.mrf.mxu1 }
 0x560   : > { %v5631_v0 = vadd.f32 1.0, %v10578_v17  ;;  %v3891_v21 = vpop.permute.xlu1 %3890  ;;  %v9684_v63 = vpop.f32.mrf.mxu0  ;;  %v4931_v35 = vld [vmem:[#allocation3 + $0x1f8] sm:$0xff] }
 0x561   : > { %v5256_v3 = vadd.f32 %v9683_v24, %v14056_v27  ;;  %3963 = vst.msk [vmem:[#allocation3 + $0x228] sm:$0xff] %vm1288_vm5, %v3891_v21  ;;  %v4994_v53 = vpack.c.bf16 %v4931_v35, %v4928_v37 }
 0x562   : > { %10581 = vrcp.f32 %v5631_v0  ;;  %v9685_v40 = vpop.f32.mrf.mxu0  ;;  %v4717_v60 = vpop.permute.xlu0 %4716 }
 0x563   : > { %v10580_v50 = vpop.eup %10579  ;;  %v14099_v32 = vadd.f32 %v14046_v8, %v5256_v3  ;;  %v9686_v30 = vadd.f32 %v9685_v40, %v9684_v63  ;;  %4792 = vst.msk [vmem:[#allocation3 + $0x1e8] sm:$0xff] %vm1481_vm6, %v4717_v60 }
 0x564   : > { %v5632_v54 = vadd.f32 1.0, %v10580_v50  ;;  %v4527_v13 = vpop.permute.xlu1 %4526 }
 0x565   : > { %v9307_v59 = vmul.f32 -1.442695, %v14099_v32  ;;  %v5259_v45 = vadd.f32 %v9686_v30, %v14056_v27  ;;  %4601 = vst.msk [vmem:[#allocation3 + $0x200] sm:$0xff] %vm1288_vm5, %v4527_v13 }
 0x566   : > { %10583 = vrcp.f32 %v5632_v54  ;;  %v4081_v44 = vpop.permute.xlu0 %4080 }
 0x567   : > { %10585 = vpow2.f32 %v9307_v59  ;;  %v14106_v22 = vadd.f32 %v14063_v10, %v5259_v45  ;;  %4154 = vst.msk [vmem:[#allocation3 + $0x210] sm:$0xff] %vm1481_vm6, %v4081_v44 }
 0x568   : > { %v4719_v39 = vpop.permute.xlu1 %4718 }
 0x569   : > { %v9308_v8 = vmul.f32 -1.442695, %v14106_v22  ;;  %4793 = vst.msk [vmem:[#allocation3 + $0x200] sm:$0xff] %vm1481_vm6, %v4719_v39 }
 0x56a   : > { %v3701_v4 = vpop.permute.xlu0 %3700  ;;  %v4929_v38 = vld [vmem:[#allocation3 + $0x1e8] sm:$0xff] }
 0x56b   : > { %10587 = vpow2.f32 %v9308_v8  ;;  %3772 = vst.msk [vmem:[#allocation3 + $0x240] sm:$0xff] %vm1095_vm4, %v3701_v4 }
 0x56c   : > { %v4339_v18 = vpop.permute.xlu1 %4338 }
 0x56d   : > { %4411 = vst.msk [vmem:[#allocation3 + $0x230] sm:$0xff] %vm1095_vm4, %v4339_v18 }
 0x56e   : > { %v4337_v2 = vpop.permute.xlu0 %4336  ;;  %v4934_v13 = vld [vmem:[#allocation3 + $0x210] sm:$0xff] }
 0x56f   : > { %v10582_v15 = vpop.eup %10581  ;;  %4410 = vst.msk [vmem:[#allocation3 + $0x218] sm:$0xff] %vm1095_vm4, %v4337_v2 }
 0x570   : > { %v14114_v62 = vmul.f32 %v10582_v15, %v14067_v46  ;;  %v4083_v16 = vpop.permute.xlu1 %4082  ;;  %v4932_v10 = vld [vmem:[#allocation3 + $0x200] sm:$0xff] }
 0x571   : > { %4155 = vst.msk [vmem:[#allocation3 + $0x228] sm:$0xff] %vm1481_vm6, %v4083_v16  ;;  %v4995_v28 = vpack.c.bf16 %v4932_v10, %v4929_v38 }
 0x572   : > { %5791 = vrot.lane.b32.xlu0 %v14114_v62, %s11158_s16  ;;  %v3893_v46 = vpop.permute.xlu0 %3892 }
 0x573   : > { %v10584_v52 = vpop.eup %10583  ;;  %5325 = vmatprep.mubr.bf16.mxu0 %v4995_v28  ;;  %3964 = vst.msk [vmem:[#allocation3 + $0x240] sm:$0xff] %vm1288_vm5, %v3893_v46 }
 0x574   : > { %v14121_v48 = vmul.f32 %v10584_v52, %v14075_v5  ;;  %v10586_v29 = vpop.eup %10585  ;;  %v3703_v6 = vpop.permute.xlu1 %3702  ;;  %5326 = vmatmul.mubr.bf16.gmra.mxu0 %v4994_v53 }
 0x575   : > { %v5633_v43 = vadd.f32 1.0, %v10586_v29  ;;  %3773 = vst.msk [vmem:[#allocation3 + $0x258] sm:$0xff] %vm1095_vm4, %v3703_v6 }
 0x576   : > { %5793 = vrot.lane.b32.xlu1 %v14121_v48, %s11158_s16  ;;  %v9687_v14 = vpop.f32.mrf.mxu0  ;;  %v4529_v55 = vpop.permute.xlu0 %4528 }
 0x577   : > { %10589 = vrcp.f32 %v5633_v43  ;;  %4602 = vst.msk [vmem:[#allocation3 + $0x218] sm:$0xff] %vm1288_vm5, %v4529_v55 }
 0x578   : > { %v10588_v5 = vpop.eup %10587  ;;  %v3895_v41 = vpop.permute.xlu1 %3894  ;;  %v4937_v3 = vld [vmem:[#allocation3 + $0x228] sm:$0xff] }
 0x579   : > { %v5634_v33 = vadd.f32 1.0, %v10588_v5  ;;  %3965 = vst.msk [vmem:[#allocation3 + $0x258] sm:$0xff] %vm1288_vm5, %v3895_v41  ;;  %v9688_v34 = vpop.f32.mrf.mxu0  ;;  %v4997_v59 = vpack.c.bf16 %v4937_v3, %v4934_v13 }
 0x57a   : > { %v9689_v20 = vadd.f32 %v9688_v34, %v9687_v14  ;;  %v4721_v31 = vpop.permute.xlu0 %4720 }
 0x57b   : > { %10591 = vrcp.f32 %v5634_v33  ;;  %v9690_v9 = vpop.f32.mrf.mxu0  ;;  %4794 = vst.msk [vmem:[#allocation3 + $0x218] sm:$0xff] %vm1481_vm6, %v4721_v31 }
 0x57c   : > { %v5264_v61 = vadd.f32 %v9689_v20, %v14056_v27  ;;  %v4531_v19 = vpop.permute.xlu1 %4530 }
 0x57d   : > { %4603 = vst.msk [vmem:[#allocation3 + $0x230] sm:$0xff] %vm1288_vm5, %v4531_v19  ;;  %v9691_v1 = vpop.f32.mrf.mxu0 }
 0x57e   : > { %v14136_v23 = vadd.f32 %v5424_v56, %v5264_v61  ;;  %v9692_v58 = vadd.f32 %v9691_v1, %v9690_v9  ;;  %v4085_v12 = vpop.permute.xlu0 %4084  ;;  %v14186_v1 = vpop.f32.mrf.mxu1 }
 0x57f   : > { %4156 = vst.msk [vmem:[#allocation3 + $0x240] sm:$0xff] %vm1481_vm6, %v4085_v12 }
 0x580   : > { %v9309_v7 = vmul.f32 -1.442695, %v14136_v23  ;;  %v5267_v49 = vadd.f32 %v9692_v58, %v14056_v27  ;;  %v4723_v51 = vpop.permute.xlu1 %4722 }
 0x581   : > { %4795 = vst.msk [vmem:[#allocation3 + $0x230] sm:$0xff] %vm1481_vm6, %v4723_v51 }
 0x582   : > { %10593 = vpow2.f32 %v9309_v7  ;;  %v14144_v17 = vadd.f32 %v5427_v36, %v5267_v49  ;;  %v3705_v42 = vpop.permute.xlu0 %3704  ;;  %v4935_v54 = vld [vmem:[#allocation3 + $0x218] sm:$0xff]  ;;  %v5440_v36 = vpop.f32.mrf.mxu1 }
 0x583   : > { %3774 = vst.msk [vmem:[#allocation3 + $0x270] sm:$0xff] %vm1095_vm4, %v3705_v42 }
 0x584   : > { %v10590_v0 = vpop.eup %10589  ;;  %v9310_v24 = vmul.f32 -1.442695, %v14144_v17  ;;  %v4343_v11 = vpop.permute.xlu1 %4342 }
 0x585   : > { %v14149_v21 = vmul.f32 %v10590_v0, %v14099_v32  ;;  %4413 = vst.msk [vmem:[#allocation3 + $0x260] sm:$0xff] %vm1095_vm4, %v4343_v11 }
 0x586   : > { %10595 = vpow2.f32 %v9310_v24  ;;  %v4341_v63 = vpop.permute.xlu0 %4340 }
 0x587   : > { %5795 = vrot.lane.b32.xlu0 %v14149_v21, %s11158_s16  ;;  %4412 = vst.msk [vmem:[#allocation3 + $0x248] sm:$0xff] %vm1095_vm4, %v4341_v63 }
 0x588   : > { %v10592_v50 = vpop.eup %10591  ;;  %v4087_v40 = vpop.permute.xlu1 %4086  ;;  %v4938_v30 = vld [vmem:[#allocation3 + $0x230] sm:$0xff] }
 0x589   : > { %v14156_v60 = vmul.f32 %v10592_v50, %v14106_v22  ;;  %4157 = vst.msk [vmem:[#allocation3 + $0x258] sm:$0xff] %vm1481_vm6, %v4087_v40  ;;  %v4998_v32 = vpack.c.bf16 %v4938_v30, %v4935_v54  ;;  %v14200_v40 = vpop.f32.mrf.mxu1 }
 0x58a   : > { %v3897_v45 = vpop.permute.xlu0 %3896 }
 0x58b   : > { %5797 = vrot.lane.b32.xlu1 %v14156_v60, %s11158_s16  ;;  %5333 = vmatprep.mubr.bf16.mxu0 %v4998_v32  ;;  %3966 = vst.msk [vmem:[#allocation3 + $0x270] sm:$0xff] %vm1288_vm5, %v3897_v45 }
 0x58c   : > { %v3707_v44 = vpop.permute.xlu1 %3706  ;;  %v9693_v39 = vpop.f32.mrf.mxu0  ;;  %5334 = vmatmul.mubr.bf16.gmra.mxu0 %v4997_v59 }
 0x58d   : > { %3775 = vst.msk [vmem:[#allocation3 + $0x288] sm:$0xff] %vm1095_vm4, %v3707_v44 }
 0x58e   : > { %v9694_v8 = vpop.f32.mrf.mxu0  ;;  %v4533_v18 = vpop.permute.xlu0 %4532 }
 0x58f   : > { %v10594_v22 = vpop.eup %10593  ;;  %v9695_v4 = vadd.f32 %v9694_v8, %v9693_v39  ;;  %4604 = vst.msk [vmem:[#allocation3 + $0x248] sm:$0xff] %vm1288_vm5, %v4533_v18  ;;  %v5443_v39 = vpop.f32.mrf.mxu1 }
 0x590   : > { %v5635_v15 = vadd.f32 1.0, %v10594_v22  ;;  %v3899_v2 = vpop.permute.xlu1 %3898  ;;  %v9696_v35 = vpop.f32.mrf.mxu0  ;;  %v4943_v34 = vld [vmem:[#allocation3 + $0x258] sm:$0xff] }
 0x591   : > { %v5272_v16 = vadd.f32 %v9695_v4, %v14056_v27  ;;  %3967 = vst.msk [vmem:[#allocation3 + $0x288] sm:$0xff] %vm1288_vm5, %v3899_v2 }
 0x592   : > { %10597 = vrcp.f32 %v5635_v15  ;;  %v9697_v38 = vpop.f32.mrf.mxu0  ;;  %v4725_v52 = vpop.permute.xlu0 %4724 }
 0x593   : > { %v10596_v10 = vpop.eup %10595  ;;  %v14167_v28 = vadd.f32 %v14124_v26, %v5272_v16  ;;  %v9698_v37 = vadd.f32 %v9697_v38, %v9696_v35  ;;  %4796 = vst.msk [vmem:[#allocation3 + $0x248] sm:$0xff] %vm1481_vm6, %v4725_v52 }
 0x594   : > { %v5636_v53 = vadd.f32 1.0, %v10596_v10  ;;  %v4535_v46 = vpop.permute.xlu1 %4534 }
 0x595   : > { %v9311_v29 = vmul.f32 -1.442695, %v14167_v28  ;;  %v5275_v6 = vadd.f32 %v9698_v37, %v14056_v27  ;;  %4605 = vst.msk [vmem:[#allocation3 + $0x260] sm:$0xff] %vm1288_vm5, %v4535_v46 }
 0x596   : > { %10599 = vrcp.f32 %v5636_v53  ;;  %v4089_v14 = vpop.permute.xlu0 %4088 }
 0x597   : > { %10601 = vpow2.f32 %v9311_v29  ;;  %v14174_v43 = vadd.f32 %v14133_v25, %v5275_v6  ;;  %4158 = vst.msk [vmem:[#allocation3 + $0x270] sm:$0xff] %vm1481_vm6, %v4089_v14  ;;  %v4940_v25 = vld [vmem:[#allocation3 + $0x240] sm:$0xff] }
 0x598   : > { %v4727_v26 = vpop.permute.xlu1 %4726  ;;  %v5000_v47 = vpack.c.bf16 %v4943_v34, %v4940_v25 }
 0x599   : > { %v9312_v55 = vmul.f32 -1.442695, %v14174_v43  ;;  %4797 = vst.msk [vmem:[#allocation3 + $0x260] sm:$0xff] %vm1481_vm6, %v4727_v26 }
 0x59a   : > { %v3709_v5 = vpop.permute.xlu0 %3708  ;;  %v4941_v31 = vld [vmem:[#allocation3 + $0x248] sm:$0xff] }
 0x59b   : > { %10603 = vpow2.f32 %v9312_v55  ;;  %3776 = vst.msk [vmem:[#allocation3 + $0x2a0] sm:$0xff] %vm1095_vm4, %v3709_v5 }
 0x59c   : > { %v4347_v41 = vpop.permute.xlu1 %4346 }
 0x59d   : > { %4415 = vst.msk [vmem:[#allocation3 + $0x290] sm:$0xff] %vm1095_vm4, %v4347_v41 }
 0x59e   : > { %v4345_v33 = vpop.permute.xlu0 %4344  ;;  %v4946_v6 = vld [vmem:[#allocation3 + $0x270] sm:$0xff] }
 0x59f   : > { %v10598_v56 = vpop.eup %10597  ;;  %4414 = vst.msk [vmem:[#allocation3 + $0x278] sm:$0xff] %vm1095_vm4, %v4345_v33 }
 0x5a0   : > { %v14182_v20 = vmul.f32 %v10598_v56, %v14136_v23  ;;  %v4091_v9 = vpop.permute.xlu1 %4090  ;;  %v4944_v61 = vld [vmem:[#allocation3 + $0x260] sm:$0xff] }
 0x5a1   : > { %4159 = vst.msk [vmem:[#allocation3 + $0x288] sm:$0xff] %vm1481_vm6, %v4091_v9  ;;  %v5001_v19 = vpack.c.bf16 %v4944_v61, %v4941_v31 }
 0x5a2   : > { %5799 = vrot.lane.b32.xlu0 %v14182_v20, %s11158_s16  ;;  %v3901_v58 = vpop.permute.xlu0 %3900 }
 0x5a3   : > { %v10600_v57 = vpop.eup %10599  ;;  %5341 = vmatprep.mubr.bf16.mxu0 %v5001_v19  ;;  %3968 = vst.msk [vmem:[#allocation3 + $0x2a0] sm:$0xff] %vm1288_vm5, %v3901_v58 }
 0x5a4   : > { %v10602_v23 = vpop.eup %10601  ;;  %v14191_v12 = vmul.f32 %v10600_v57, %v14144_v17  ;;  %v3711_v7 = vpop.permute.xlu1 %3710  ;;  %5342 = vmatmul.mubr.bf16.gmra.mxu0 %v5000_v47 }
 0x5a5   : > { %v9699_v49 = vpop.f32.mrf.mxu0  ;;  %v5637_v51 = vadd.f32 1.0, %v10602_v23  ;;  %3777 = vst.msk [vmem:[#allocation3 + $0x2b8] sm:$0xff] %vm1095_vm4, %v3711_v7 }
 0x5a6   : > { %5801 = vrot.lane.b32.xlu1 %v14191_v12, %s11158_s16  ;;  %v4537_v24 = vpop.permute.xlu0 %4536 }
 0x5a7   : > { %v9700_v42 = vpop.f32.mrf.mxu0  ;;  %10605 = vrcp.f32 %v5637_v51  ;;  %4606 = vst.msk [vmem:[#allocation3 + $0x278] sm:$0xff] %vm1288_vm5, %v4537_v24 }
 0x5a8   : > { %v9701_v0 = vadd.f32 %v9700_v42, %v9699_v49  ;;  %v10604_v11 = vpop.eup %10603  ;;  %v3903_v63 = vpop.permute.xlu1 %3902  ;;  %v4949_v10 = vld [vmem:[#allocation3 + $0x288] sm:$0xff] }
 0x5a9   : > { %v9702_v17 = vpop.f32.mrf.mxu0  ;;  %v5638_v3 = vadd.f32 1.0, %v10604_v11  ;;  %3969 = vst.msk [vmem:[#allocation3 + $0x2b8] sm:$0xff] %vm1288_vm5, %v3903_v63  ;;  %v5003_v14 = vpack.c.bf16 %v4949_v10, %v4946_v6 }
 0x5aa   : > { %v5280_v50 = vadd.f32 %v9701_v0, %v14056_v27  ;;  %v4729_v13 = vpop.permute.xlu0 %4728 }
 0x5ab   : > { %v9703_v54 = vpop.f32.mrf.mxu0  ;;  %10607 = vrcp.f32 %v5638_v3  ;;  %4798 = vst.msk [vmem:[#allocation3 + $0x278] sm:$0xff] %vm1481_vm6, %v4729_v13  ;;  %v10176_v3 = vld [vmem:[%s16251_s3 + $0x1a0] sm:$0xff]   ;;  %v16381_v13 = vld [vmem:[#allocation43_spill] sm:$0xff] }
 0x5ac   : > { %v14202_v30 = vadd.f32 %v5440_v36, %v5280_v50  ;;  %v9704_v32 = vadd.f32 %v9703_v54, %v9702_v17  ;;  %v4539_v59 = vpop.permute.xlu1 %4538  ;;  %v16379_v54 = vld [vmem:[#allocation41_spill] sm:$0xff] }
 0x5ad   : > { %4607 = vst.msk [vmem:[#allocation3 + $0x290] sm:$0xff] %vm1288_vm5, %v4539_v59 }
 0x5ae   : > { %v9313_v45 = vmul.f32 -1.442695, %v14202_v30  ;;  %v5283_v44 = vadd.f32 %v9704_v32, %v14056_v27  ;;  %v4093_v22 = vpop.permute.xlu0 %4092  ;;  %v16380_v32 = vld [vmem:[#allocation40_spill] sm:$0xff] }
 0x5af   : > { %4160 = vst.msk [vmem:[#allocation3 + $0x2a0] sm:$0xff] %vm1481_vm6, %v4093_v22 }
 0x5b0   : > { %10609 = vpow2.f32 %v9313_v45  ;;  %v14208_v8 = vadd.f32 %v5443_v39, %v5283_v44  ;;  %v4731_v4 = vpop.permute.xlu1 %4730 }
 0x5b1   : > { %4799 = vst.msk [vmem:[#allocation3 + $0x290] sm:$0xff] %vm1481_vm6, %v4731_v4 }
 0x5b2   : > { %v9314_v18 = vmul.f32 -1.442695, %v14208_v8  ;;  %v3713_v15 = vpop.permute.xlu0 %3712  ;;  %v4947_v53 = vld [vmem:[#allocation3 + $0x278] sm:$0xff] }
 0x5b3   : > { %3778 = vst.msk [vmem:[#allocation3 + $0x2d0] sm:$0xff] %vm1095_vm4, %v3713_v15  ;;  %v10007_v15 = vpop.f32.mrf.mxu1 }
 0x5b4   : > { %10611 = vpow2.f32 %v9314_v18  ;;  %v10606_v2 = vpop.eup %10605  ;;  %v4351_v35 = vpop.permute.xlu1 %4350 }
 0x5b5   : > { %v14215_v16 = vmul.f32 %v10606_v2, %v14167_v28  ;;  %4417 = vst.msk [vmem:[#allocation3 + $0x2c0] sm:$0xff] %vm1095_vm4, %v4351_v35 }
 0x5b6   : > { %v4349_v38 = vpop.permute.xlu0 %4348  ;;  %v4952_v18 = vld [vmem:[#allocation3 + $0x2a0] sm:$0xff] }
 0x5b7   : > { %5803 = vrot.lane.b32.xlu0 %v14215_v16, %s11158_s16  ;;  %4416 = vst.msk [vmem:[#allocation3 + $0x2a8] sm:$0xff] %vm1095_vm4, %v4349_v38 }
 0x5b8   : > { %v10608_v37 = vpop.eup %10607  ;;  %v4095_v52 = vpop.permute.xlu1 %4094  ;;  %v4950_v46 = vld [vmem:[#allocation3 + $0x290] sm:$0xff] }
 0x5b9   : > { %v14222_v29 = vmul.f32 %v10608_v37, %v14174_v43  ;;  %4161 = vst.msk [vmem:[#allocation3 + $0x2b8] sm:$0xff] %vm1481_vm6, %v4095_v52  ;;  %v5004_v28 = vpack.c.bf16 %v4950_v46, %v4947_v53  ;;  %v5456_v52 = vpop.f32.mrf.mxu1 }
 0x5ba   : > { %v3905_v26 = vpop.permute.xlu0 %3904 }
 0x5bb   : > { %5805 = vrot.lane.b32.xlu1 %v14222_v29, %s11158_s16  ;;  %5349 = vmatprep.mubr.bf16.mxu0 %v5004_v28  ;;  %3970 = vst.msk [vmem:[#allocation3 + $0x2d0] sm:$0xff] %vm1288_vm5, %v3905_v26 }
 0x5bc   : > { %v3715_v5 = vpop.permute.xlu1 %3714  ;;  %v9705_v41 = vpop.f32.mrf.mxu0  ;;  %5350 = vmatmul.mubr.bf16.gmra.mxu0 %v5003_v14 }
 0x5bd   : > { %v10610_v55 = vpop.eup %10609  ;;  %3779 = vst.msk [vmem:[#allocation3 + $0x2e8] sm:$0xff] %vm1095_vm4, %v3715_v5 }
 0x5be   : > { %v5639_v56 = vadd.f32 1.0, %v10610_v55  ;;  %v9706_v43 = vpop.f32.mrf.mxu0  ;;  %v4541_v34 = vpop.permute.xlu0 %4540 }
 0x5bf   : > { %v9707_v33 = vadd.f32 %v9706_v43, %v9705_v41  ;;  %4608 = vst.msk [vmem:[#allocation3 + $0x2a8] sm:$0xff] %vm1288_vm5, %v4541_v34  ;;  %v10008_v43 = vpop.f32.mrf.mxu1 }
 0x5c0   : > { %10613 = vrcp.f32 %v5639_v56  ;;  %v3907_v31 = vpop.permute.xlu1 %3906  ;;  %v9708_v61 = vpop.f32.mrf.mxu0 }
 0x5c1   : > { %v10612_v9 = vpop.eup %10611  ;;  %v5288_v25 = vadd.f32 %v9707_v33, %v14056_v27  ;;  %3971 = vst.msk [vmem:[#allocation3 + $0x2e8] sm:$0xff] %vm1288_vm5, %v3907_v31 }
 0x5c2   : > { %v5640_v19 = vadd.f32 1.0, %v10612_v9  ;;  %v9709_v47 = vpop.f32.mrf.mxu0  ;;  %v4733_v23 = vpop.permute.xlu0 %4732 }
 0x5c3   : > { %v14233_v57 = vadd.f32 %v14186_v1, %v5288_v25  ;;  %v9710_v58 = vadd.f32 %v9709_v47, %v9708_v61  ;;  %4800 = vst.msk [vmem:[#allocation3 + $0x2a8] sm:$0xff] %vm1481_vm6, %v4733_v23  ;;  %v10175_v1 = vld [vmem:[%s16251_s3 + $0x1a8] sm:$0xff]  }
 0x5c4   : > { %10615 = vrcp.f32 %v5640_v19  ;;  %v4543_v7 = vpop.permute.xlu1 %4542  ;;  %10025 = vmatprep.subr.bf16.mxu0 %v10175_v1  ;;  %v5459_v19 = vpop.f32.mrf.mxu1 }
 0x5c5   : > { %v9315_v49 = vmul.f32 -1.442695, %v14233_v57  ;;  %v5291_v51 = vadd.f32 %v9710_v58, %v14056_v27  ;;  %4609 = vst.msk [vmem:[#allocation3 + $0x2c0] sm:$0xff] %vm1288_vm5, %v4543_v7  ;;  %10026 = vmatpush3.bf16.msra.mxu0 %v10175_v1 }
 0x5c6   : > { %v4097_v42 = vpop.permute.xlu0 %4096  ;;  %10027 = vmatprep.subr.bf16.mxu0 %v10176_v3 }
 0x5c7   : > { %10617 = vpow2.f32 %v9315_v49  ;;  %v14240_v36 = vadd.f32 %v14200_v40, %v5291_v51  ;;  %4162 = vst.msk [vmem:[#allocation3 + $0x2d0] sm:$0xff] %vm1481_vm6, %v4097_v42  ;;  %v16378_v40 = vld [vmem:[#allocation39_spill] sm:$0xff] }
 0x5c8   : > { %v4735_v0 = vpop.permute.xlu1 %4734 }
 0x5c9   : > { %v9316_v24 = vmul.f32 -1.442695, %v14240_v36  ;;  %4801 = vst.msk [vmem:[#allocation3 + $0x2c0] sm:$0xff] %vm1481_vm6, %v4735_v0  ;;  %10028 = vmatpush3.bf16.msra.mxu0 %v10176_v3 }
 0x5ca   : > { %v4353_v11 = vpop.permute.xlu0 %4352  ;;  %v4953_v44 = vld [vmem:[#allocation3 + $0x2a8] sm:$0xff] }
 0x5cb   : > { %10619 = vpow2.f32 %v9316_v24  ;;  %4418 = vst.msk [vmem:[#allocation3 + $0x2d8] sm:$0xff] %vm1095_vm4, %v4353_v11 }
 0x5cc   : > { %v4355_v17 = vpop.permute.xlu1 %4354  ;;  %4610 = vst.msk [vmem:[#allocation3 + $0x2d8] sm:$0xff] %vm1288_vm5, %v16378_v40 }
 0x5cd   : > { %v10614_v63 = vpop.eup %10613  ;;  %4419 = vst.msk [vmem:[#allocation3 + $0x2f0] sm:$0xff] %vm1095_vm4, %v4355_v17 }
 0x5ce   : > { %v14253_v50 = vmul.f32 %v10614_v63, %v14202_v30  ;;  %4611 = vst.msk [vmem:[#allocation3 + $0x2f0] sm:$0xff] %vm1288_vm5, %v16379_v54  ;;  %v4955_v30 = vld [vmem:[#allocation3 + $0x2b8] sm:$0xff]  ;;  %v4958_v26 = vld [vmem:[#allocation3 + $0x2d0] sm:$0xff] }
 0x5cf   : > { %4802 = vst.msk [vmem:[#allocation3 + $0x2d8] sm:$0xff] %vm1481_vm6, %v16380_v32  ;;  %4803 = vst.msk [vmem:[#allocation3 + $0x2f0] sm:$0xff] %vm1481_vm6, %v16381_v13  ;;  %v5006_v2 = vpack.c.bf16 %v4955_v30, %v4952_v18 }
 0x5d0   : > { %5807 = vrot.lane.b32.xlu0 %v14253_v50, %s11158_s16  ;;  %v4099_v45 = vpop.permute.xlu1 %4098  ;;  %v4956_v39 = vld [vmem:[#allocation3 + $0x2c0] sm:$0xff] }
 0x5d1   : > { %v10616_v59 = vpop.eup %10615  ;;  %4163 = vst.msk [vmem:[#allocation3 + $0x2e8] sm:$0xff] %vm1481_vm6, %v4099_v45  ;;  %v5007_v4 = vpack.c.bf16 %v4956_v39, %v4953_v44 }
 0x5d2   : > { %v14267_v22 = vmul.f32 %v10616_v59, %v14208_v8 }
 0x5d3   : > { %5357 = vmatprep.mubr.bf16.mxu0 %v5007_v4 }
 0x5d4   : > { %5809 = vrot.lane.b32.xlu1 %v14267_v22, %s11158_s16  ;;  %v10618_v35 = vpop.eup %10617  ;;  %v9711_v38 = vpop.f32.mrf.mxu0  ;;  %5358 = vmatmul.mubr.bf16.gmra.mxu0 %v5006_v2 }
 0x5d5   : > { %v5641_v10 = vadd.f32 1.0, %v10618_v35 }
 0x5d6   : > { %v4959_v37 = vld [vmem:[#allocation3 + $0x2d8] sm:$0xff]  ;;  %v9712_v53 = vpop.f32.mrf.mxu0  ;;  %v4962_v46 = vld [vmem:[#allocation3 + $0x2f0] sm:$0xff] }
 0x5d7   : > { %10621 = vrcp.f32 %v5641_v10  ;;  %v9713_v8 = vadd.f32 %v9712_v53, %v9711_v38  ;;  %v5010_v28 = vpack.c.bf16 %v4962_v46, %v4959_v37 }
 0x5d8   : > { %v10620_v6 = vpop.eup %10619  ;;  %v9714_v14 = vpop.f32.mrf.mxu0  ;;  %v4961_v55 = vld [vmem:[#allocation3 + $0x2e8] sm:$0xff] }
 0x5d9   : > { %v5642_v5 = vadd.f32 1.0, %v10620_v6  ;;  %v5296_v41 = vadd.f32 %v9713_v8, %v14056_v27  ;;  %5365 = vmatprep.mubr.bf16.mxu0 %v5010_v28  ;;  %v5009_v56 = vpack.c.bf16 %v4961_v55, %v4958_v26  ;;  %v14308_v6 = vpop.f32.mrf.mxu1 }
 0x5da   : > { %v9715_v33 = vpop.f32.mrf.mxu0 }
 0x5db   : > { %10623 = vrcp.f32 %v5642_v5  ;;  %v5457_v34 = vadd.f32 %v5456_v52, %v5296_v41  ;;  %v9716_v9 = vadd.f32 %v9715_v33, %v9714_v14 }
 0x5dc   : > { %5366 = vmatmul.mubr.bf16.gmra.mxu0 %v5009_v56 }
 0x5dd   : > { %v9317_v31 = vmul.f32 -1.442695, %v5457_v34  ;;  %v5299_v61 = vadd.f32 %v9716_v9, %v14056_v27 }
 0x5df   : > { %10625 = vpow2.f32 %v9317_v31  ;;  %v5460_v25 = vadd.f32 %v5459_v19, %v5299_v61 }
 0x5e1   : > { %v9318_v47 = vmul.f32 -1.442695, %v5460_v25 }
 0x5e3   : > { %10627 = vpow2.f32 %v9318_v47 }
 0x5e4   : > { %v5792_v58 = vpop.permute.xlu0 %5791  ;;  %v10622_v23 = vpop.eup %10621 }
 0x5e5   : > { %v5887_v7 = vadd.f32 %v5792_v58, %v14114_v62  ;;  %v14276_v49 = vmul.f32 %v10622_v23, %v14233_v57 }
 0x5e7   : > { %v9337_v51 = vmul.f32 -1.442695, %v5887_v7  ;;  %5811 = vrot.lane.b32.xlu0 %v14276_v49, %s11158_s16 }
 0x5e8   : > { %v5794_v42 = vpop.permute.xlu1 %5793  ;;  %v10624_v0 = vpop.eup %10623 }
 0x5e9   : > { %10629 = vpow2.f32 %v9337_v51  ;;  %v5888_v1 = vadd.f32 %v5794_v42, %v14121_v48  ;;  %v14282_v24 = vmul.f32 %v10624_v0, %v14240_v36 }
 0x5eb   : > { %v9338_v11 = vmul.f32 -1.442695, %v5888_v1  ;;  %5813 = vrot.lane.b32.xlu1 %v14282_v24, %s11158_s16 }
 0x5ec   : > { %v10626_v62 = vpop.eup %10625  ;;  %v9717_v57 = vpop.f32.mrf.mxu0 }
 0x5ed   : > { %10631 = vpow2.f32 %v9338_v11  ;;  %v5643_v63 = vadd.f32 1.0, %v10626_v62 }
 0x5ee   : > { %v9718_v17 = vpop.f32.mrf.mxu0 }
 0x5ef   : > { %10633 = vrcp.f32 %v5643_v63  ;;  %v9719_v3 = vadd.f32 %v9718_v17, %v9717_v57 }
 0x5f0   : > { %v10628_v40 = vpop.eup %10627  ;;  %v9720_v54 = vpop.f32.mrf.mxu0 }
 0x5f1   : > { %v5644_v32 = vadd.f32 1.0, %v10628_v40  ;;  %v5304_v13 = vadd.f32 %v9719_v3, %v14056_v27 }
 0x5f2   : > { %v9721_v48 = vpop.f32.mrf.mxu0 }
 0x5f3   : > { %10635 = vrcp.f32 %v5644_v32  ;;  %v14287_v36 = vadd.f32 %v10007_v15, %v5304_v13  ;;  %v9722_v30 = vadd.f32 %v9721_v48, %v9720_v54 }
 0x5f5   : > { %v9319_v45 = vmul.f32 -1.442695, %v14287_v36  ;;  %v5307_v44 = vadd.f32 %v9722_v30, %v14056_v27 }
 0x5f6   : > { %v10630_v59 = vpop.eup %10629 }
 0x5f7   : > { %v6015_v39 = vadd.f32 1.0, %v10630_v59  ;;  %10637 = vpow2.f32 %v9319_v45  ;;  %v14291_v4 = vadd.f32 %v10008_v43, %v5307_v44 }
 0x5f9   : > { %10639 = vrcp.f32 %v6015_v39  ;;  %v9320_v2 = vmul.f32 -1.442695, %v14291_v4  ;;  %v5796_v35 = vpop.permute.xlu0 %5795 }
 0x5fa   : > { %v10632_v18 = vpop.eup %10631  ;;  %v14295_v10 = vadd.f32 %v5796_v35, %v14149_v21 }
 0x5fb   : > { %v6016_v38 = vadd.f32 1.0, %v10632_v18  ;;  %10641 = vpow2.f32 %v9320_v2 }
 0x5fc   : > { %v10634_v15 = vpop.eup %10633  ;;  %v9339_v37 = vmul.f32 -1.442695, %v14295_v10 }
 0x5fd   : > { %10643 = vrcp.f32 %v6016_v38  ;;  %v14298_v52 = vmul.f32 %v10634_v15, %v5457_v34  ;;  %v5798_v53 = vpop.permute.xlu1 %5797 }
 0x5fe   : > { %10645 = vpow2.f32 %v9339_v37  ;;  %v14301_v46 = vadd.f32 %v5798_v53, %v14156_v60  ;;  %v5472_v60 = vpop.f32.mrf.mxu1 }
 0x5ff   : > { %5815 = vrot.lane.b32.xlu0 %v14298_v52, %s11158_s16 }
 0x600   : > { %v10636_v8 = vpop.eup %10635  ;;  %v9340_v28 = vmul.f32 -1.442695, %v14301_v46  ;;  %v14314_v19 = vpop.f32.mrf.mxu1 }
 0x601   : > { %v14306_v21 = vmul.f32 %v10636_v8, %v5460_v25 }
 0x602   : > { %10647 = vpow2.f32 %v9340_v28  ;;  %v5475_v11 = vpop.f32.mrf.mxu1 }
 0x603   : > { %5817 = vrot.lane.b32.xlu1 %v14306_v21, %s11158_s16 }
 0x604   : > { %v10638_v14 = vpop.eup %10637  ;;  %v9723_v26 = vpop.f32.mrf.mxu0 }
 0x605   : > { %v5645_v5 = vadd.f32 1.0, %v10638_v14  ;;  %v14364_v14 = vld [vmem:[%s16252_s4 + $0x1] ss:$0 sm:$0xff] }
 0x606   : > { %v10640_v55 = vpop.eup %10639  ;;  %v9724_v56 = vpop.f32.mrf.mxu0 }
 0x607   : > { %v6111_v41 = vmul.f32 %v10640_v55, %v5887_v7  ;;  %10649 = vrcp.f32 %v5645_v5  ;;  %v9725_v43 = vadd.f32 %v9724_v56, %v9723_v26 }
 0x608   : > { %v10642_v33 = vpop.eup %10641  ;;  %v9726_v34 = vpop.f32.mrf.mxu0 }
 0x609   : > { %6143 = vst.msk [vmem:[#allocation2 + $0x19] sm:$0xff] %vm782_vm2, %v6111_v41  ;;  %v5646_v31 = vadd.f32 1.0, %v10642_v33  ;;  %v5312_v61 = vadd.f32 %v9725_v43, %v14056_v27 }
 0x60a   : > { %v10644_v9 = vpop.eup %10643  ;;  %v9727_v47 = vpop.f32.mrf.mxu0 }
 0x60b   : > { %v6112_v25 = vmul.f32 %v10644_v9, %v5888_v1  ;;  %v10646_v58 = vpop.eup %10645  ;;  %10651 = vrcp.f32 %v5646_v31  ;;  %v14316_v23 = vadd.f32 %v5472_v60, %v5312_v61  ;;  %v9728_v7 = vadd.f32 %v9727_v47, %v9726_v34 }
 0x60c   : > { %v6017_v51 = vadd.f32 1.0, %v10646_v58 }
 0x60d   : > { %6144 = vst.msk [vmem:[#allocation2 + $0x21] sm:$0xff] %vm782_vm2, %v6112_v25  ;;  %v9321_v42 = vmul.f32 -1.442695, %v14316_v23  ;;  %v5315_v0 = vadd.f32 %v9728_v7, %v14056_v27 }
 0x60e   : > { %10653 = vrcp.f32 %v6017_v51 }
 0x60f   : > { %v10648_v62 = vpop.eup %10647  ;;  %10655 = vpow2.f32 %v9321_v42  ;;  %v14321_v57 = vadd.f32 %v5475_v11, %v5315_v0 }
 0x610   : > { %v14323_v1 = vld [vmem:[#allocation2 + $0x18] sm:$0xff]  ;;  %v6018_v17 = vadd.f32 1.0, %v10648_v62 }
 0x611   : > { %v14325_v63 = vld [vmem:[#allocation2 + $0x19] sm:$0xff]  ;;  %6209 = vst.msk [vmem:[#allocation3 + $0x30] sm:$0xff] %vm782_vm2, %v14323_v1  ;;  %v9322_v3 = vmul.f32 -1.442695, %v14321_v57 }
 0x612   : > { %6847 = vst.msk [vmem:[#allocation3 + $0x8] sm:$0xff] %vm782_vm2, %v14325_v63  ;;  %10657 = vrcp.f32 %v6018_v17 }
 0x613   : > { %10659 = vpow2.f32 %v9322_v3 }
 0x614   : > { %v14332_v27 = vld [vmem:[#allocation2 + $0x20] sm:$0xff]  ;;  %v10650_v40 = vpop.eup %10649  ;;  %v5800_v54 = vpop.permute.xlu0 %5799 }
 0x615   : > { %v14334_v32 = vld [vmem:[#allocation2 + $0x21] sm:$0xff]  ;;  %6210 = vst.msk [vmem:[#allocation3 + $0x48] sm:$0xff] %vm782_vm2, %v14332_v27  ;;  %v14339_v13 = vmul.f32 %v10650_v40, %v14287_v36  ;;  %v14342_v48 = vadd.f32 %v5800_v54, %v14182_v20 }
 0x616   : > { %6848 = vst.msk [vmem:[#allocation3 + $0x20] sm:$0xff] %vm782_vm2, %v14334_v32 }
 0x617   : > { %v9341_v30 = vmul.f32 -1.442695, %v14342_v48  ;;  %5819 = vrot.lane.b32.xlu0 %v14339_v13, %s11158_s16 }
 0x618   : > { %v10652_v59 = vpop.eup %10651  ;;  %v5802_v45 = vpop.permute.xlu1 %5801 }
 0x619   : > { %v14350_v44 = vmul.f32 %v10652_v59, %v14291_v4  ;;  %10661 = vpow2.f32 %v9341_v30  ;;  %v14353_v36 = vadd.f32 %v5802_v45, %v14191_v12  ;;  %v14417_v30 = vpop.f32.mrf.mxu1 }
 0x61b   : > { %v10654_v39 = vpop.eup %10653  ;;  %v9342_v20 = vmul.f32 -1.442695, %v14353_v36  ;;  %5821 = vrot.lane.b32.xlu1 %v14350_v44, %s11158_s16 }
 0x61c   : > { %v10656_v18 = vpop.eup %10655  ;;  %v6113_v2 = vmul.f32 %v10654_v39, %v14295_v10  ;;  %v9729_v35 = vpop.f32.mrf.mxu0 }
 0x61d   : > { %v5647_v38 = vadd.f32 1.0, %v10656_v18  ;;  %10663 = vpow2.f32 %v9342_v20  ;;  %v5488_v20 = vpop.f32.mrf.mxu1 }
 0x61e   : > { %6145 = vst.msk [vmem:[#allocation2 + $0x31] sm:$0xff] %vm782_vm2, %v6113_v2  ;;  %v9730_v4 = vpop.f32.mrf.mxu0 }
 0x61f   : > { %v10658_v15 = vpop.eup %10657  ;;  %10665 = vrcp.f32 %v5647_v38  ;;  %v9731_v37 = vadd.f32 %v9730_v4, %v9729_v35 }
 0x620   : > { %v10660_v12 = vpop.eup %10659  ;;  %v6114_v53 = vmul.f32 %v10658_v15, %v14301_v46  ;;  %v9732_v8 = vpop.f32.mrf.mxu0 }
 0x621   : > { %v5648_v28 = vadd.f32 1.0, %v10660_v12  ;;  %v5320_v10 = vadd.f32 %v14364_v14, %v9731_v37  ;;  %v14425_v12 = vpop.f32.mrf.mxu1 }
 0x622   : > { %6146 = vst.msk [vmem:[#allocation2 + $0x39] sm:$0xff] %vm782_vm2, %v6114_v53  ;;  %v9733_v26 = vpop.f32.mrf.mxu0 }
 0x623   : > { %10667 = vrcp.f32 %v5648_v28  ;;  %v14369_v55 = vadd.f32 %v14308_v6, %v5320_v10  ;;  %v9734_v5 = vadd.f32 %v9733_v26, %v9732_v8 }
 0x625   : > { %v9323_v60 = vmul.f32 -1.442695, %v14369_v55  ;;  %v5323_v46 = vadd.f32 %v14364_v14, %v9734_v5  ;;  %v14373_v41 = vld [vmem:[#allocation2 + $0x30] sm:$0xff] }
 0x626   : > { %v14375_v56 = vld [vmem:[#allocation2 + $0x31] sm:$0xff]  ;;  %v10662_v43 = vpop.eup %10661  ;;  %6211 = vst.msk [vmem:[#allocation3 + $0x60] sm:$0xff] %vm782_vm2, %v14373_v41 }
 0x627   : > { %6849 = vst.msk [vmem:[#allocation3 + $0x38] sm:$0xff] %vm782_vm2, %v14375_v56  ;;  %v6019_v33 = vadd.f32 1.0, %v10662_v43  ;;  %10669 = vpow2.f32 %v9323_v60  ;;  %v14382_v6 = vadd.f32 %v14314_v19, %v5323_v46  ;;  %v5491_v46 = vpop.f32.mrf.mxu1 }
 0x629   : > { %10671 = vrcp.f32 %v6019_v33  ;;  %v9324_v34 = vmul.f32 -1.442695, %v14382_v6  ;;  %v5804_v9 = vpop.permute.xlu0 %5803  ;;  %v14385_v31 = vld [vmem:[#allocation2 + $0x32] sm:$0xff]  ;;  %v14387_v61 = vld [vmem:[#allocation2 + $0x3a] sm:$0xff] }
 0x62a   : > { %v14389_v25 = vld [vmem:[#allocation2 + $0x38] sm:$0xff]  ;;  %v10664_v47 = vpop.eup %10663  ;;  %v14392_v58 = vadd.f32 %v5804_v9, %v14215_v16  ;;  %7487 = vst.msk [vmem:[#allocation3 + $0x10] sm:$0xff] %vm782_vm2, %v14385_v31  ;;  %7488 = vst.msk [vmem:[#allocation3 + $0x28] sm:$0xff] %vm782_vm2, %v14387_v61 }
 0x62b   : > { %v14398_v19 = vld [vmem:[#allocation2 + $0x39] sm:$0xff]  ;;  %6212 = vst.msk [vmem:[#allocation3 + $0x78] sm:$0xff] %vm782_vm2, %v14389_v25  ;;  %v6020_v7 = vadd.f32 1.0, %v10664_v47  ;;  %10673 = vpow2.f32 %v9324_v34 }
 0x62c   : > { %6850 = vst.msk [vmem:[#allocation3 + $0x50] sm:$0xff] %vm782_vm2, %v14398_v19  ;;  %v10666_v51 = vpop.eup %10665  ;;  %v9343_v16 = vmul.f32 -1.442695, %v14392_v58 }
 0x62d   : > { %v14406_v42 = vmul.f32 %v10666_v51, %v14316_v23  ;;  %10675 = vrcp.f32 %v6020_v7  ;;  %v5806_v0 = vpop.permute.xlu1 %5805 }
 0x62e   : > { %10677 = vpow2.f32 %v9343_v16  ;;  %v14409_v11 = vadd.f32 %v5806_v0, %v14222_v29 }
 0x62f   : > { %5823 = vrot.lane.b32.xlu0 %v14406_v42, %s11158_s16 }
 0x630   : > { %v10668_v62 = vpop.eup %10667  ;;  %v9344_v17 = vmul.f32 -1.442695, %v14409_v11 }
 0x631   : > { %v14415_v3 = vmul.f32 %v10668_v62, %v14321_v57  ;;  %v7521_v40 = vld [vmem:[#allocation3 + $0x10] sm:$0xff]  ;;  %v7524_v54 = vld [vmem:[#allocation3 + $0x28] sm:$0xff] }
 0x632   : > { %10679 = vpow2.f32 %v9344_v17  ;;  %v7617_v23 = vpack.c.bf16 %v7524_v54, %v7521_v40 }
 0x633   : > { %5825 = vrot.lane.b32.xlu1 %v14415_v3, %s11158_s16 }
 0x634   : > { %v10670_v29 = vpop.eup %10669  ;;  %v9735_v59 = vpop.f32.mrf.mxu0  ;;  %10029 = vmatprep.mubr.msk.bf16.mxu0 %vm782_vm2, %v7617_v23 }
 0x635   : > { %v5649_v45 = vadd.f32 1.0, %v10670_v29 }
 0x636   : > { %v10672_v39 = vpop.eup %10671  ;;  %v9736_v18 = vpop.f32.mrf.mxu0 }
 0x637   : > { %v6115_v57 = vmul.f32 %v10672_v39, %v14342_v48  ;;  %10681 = vrcp.f32 %v5649_v45  ;;  %v9737_v2 = vadd.f32 %v9736_v18, %v9735_v59 }
 0x638   : > { %v10674_v35 = vpop.eup %10673  ;;  %v9738_v38 = vpop.f32.mrf.mxu0 }
 0x639   : > { %6147 = vst.msk [vmem:[#allocation2 + $0x49] sm:$0xff] %vm782_vm2, %v6115_v57  ;;  %v5650_v4 = vadd.f32 1.0, %v10674_v35  ;;  %v5328_v15 = vadd.f32 %v14364_v14, %v9737_v2 }
 0x63a   : > { %v10676_v37 = vpop.eup %10675  ;;  %v9739_v53 = vpop.f32.mrf.mxu0 }
 0x63b   : > { %v10678_v8 = vpop.eup %10677  ;;  %v6116_v28 = vmul.f32 %v10676_v37, %v14353_v36  ;;  %10683 = vrcp.f32 %v5650_v4  ;;  %v14428_v10 = vadd.f32 %v5488_v20, %v5328_v15  ;;  %v9740_v48 = vadd.f32 %v9739_v53, %v9738_v38 }
 0x63c   : > { %v6021_v26 = vadd.f32 1.0, %v10678_v8 }
 0x63d   : > { %6148 = vst.msk [vmem:[#allocation2 + $0x51] sm:$0xff] %vm782_vm2, %v6116_v28  ;;  %v9325_v5 = vmul.f32 -1.442695, %v14428_v10  ;;  %v5331_v60 = vadd.f32 %v14364_v14, %v9740_v48 }
 0x63e   : > { %10685 = vrcp.f32 %v6021_v26 }
 0x63f   : > { %v10680_v43 = vpop.eup %10679  ;;  %10687 = vpow2.f32 %v9325_v5  ;;  %v14433_v33 = vadd.f32 %v5491_v46, %v5331_v60 }
 0x640   : > { %v6022_v34 = vadd.f32 1.0, %v10680_v43  ;;  %v14435_v9 = vld [vmem:[#allocation2 + $0x48] sm:$0xff] }
 0x641   : > { %v14437_v36 = vld [vmem:[#allocation2 + $0x49] sm:$0xff]  ;;  %v9326_v47 = vmul.f32 -1.442695, %v14433_v33  ;;  %6213 = vst.msk [vmem:[#allocation3 + $0x90] sm:$0xff] %vm782_vm2, %v14435_v9 }
 0x642   : > { %v5808_v7 = vpop.permute.xlu0 %5807  ;;  %6851 = vst.msk [vmem:[#allocation3 + $0x68] sm:$0xff] %vm782_vm2, %v14437_v36  ;;  %10689 = vrcp.f32 %v6022_v34 }
 0x643   : > { %v14445_v51 = vadd.f32 %v5808_v7, %v14253_v50  ;;  %10691 = vpow2.f32 %v9326_v47 }
 0x644   : > { %v10682_v16 = vpop.eup %10681  ;;  %v14448_v62 = vld [vmem:[#allocation2 + $0x4a] sm:$0xff]  ;;  %v14450_v17 = vld [vmem:[#allocation2 + $0x52] sm:$0xff] }
 0x645   : > { %v9345_v0 = vmul.f32 -1.442695, %v14445_v51  ;;  %v14452_v40 = vld [vmem:[#allocation2 + $0x50] sm:$0xff]  ;;  %v14455_v54 = vmul.f32 %v10682_v16, %v14369_v55  ;;  %7489 = vst.msk [vmem:[#allocation3 + $0x40] sm:$0xff] %vm782_vm2, %v14448_v62  ;;  %7490 = vst.msk [vmem:[#allocation3 + $0x58] sm:$0xff] %vm782_vm2, %v14450_v17 }
 0x646   : > { %v5810_v23 = vpop.permute.xlu1 %5809  ;;  %v14461_v50 = vld [vmem:[#allocation2 + $0x51] sm:$0xff]  ;;  %6214 = vst.msk [vmem:[#allocation3 + $0xa8] sm:$0xff] %vm782_vm2, %v14452_v40 }
 0x647   : > { %10693 = vpow2.f32 %v9345_v0  ;;  %v14466_v29 = vadd.f32 %v5810_v23, %v14267_v22  ;;  %6852 = vst.msk [vmem:[#allocation3 + $0x80] sm:$0xff] %vm782_vm2, %v14461_v50  ;;  %5827 = vrot.lane.b32.xlu0 %v14455_v54, %s11158_s16 }
 0x648   : > { %v10684_v55 = vpop.eup %10683 }
 0x649   : > { %v9346_v59 = vmul.f32 -1.442695, %v14466_v29  ;;  %v14474_v45 = vmul.f32 %v10684_v55, %v14382_v6 }
 0x64b   : > { %10695 = vpow2.f32 %v9346_v59  ;;  %v10686_v39 = vpop.eup %10685  ;;  %5829 = vrot.lane.b32.xlu1 %v14474_v45, %s11158_s16 }
 0x64c   : > { %v10688_v20 = vpop.eup %10687  ;;  %v6117_v22 = vmul.f32 %v10686_v39, %v14392_v58  ;;  %v9741_v18 = vpop.f32.mrf.mxu0  ;;  %v7527_v57 = vld [vmem:[#allocation3 + $0x40] sm:$0xff]  ;;  %v7530_v2 = vld [vmem:[#allocation3 + $0x58] sm:$0xff] }
 0x64d   : > { %v5651_v35 = vadd.f32 1.0, %v10688_v20  ;;  %v7620_v38 = vpack.c.bf16 %v7530_v2, %v7527_v57 }
 0x64e   : > { %6149 = vst.msk [vmem:[#allocation2 + $0x61] sm:$0xff] %vm782_vm2, %v6117_v22  ;;  %v9742_v4 = vpop.f32.mrf.mxu0 }
 0x64f   : > { %v10690_v15 = vpop.eup %10689  ;;  %10697 = vrcp.f32 %v5651_v35  ;;  %v9743_v6 = vadd.f32 %v9742_v4, %v9741_v18  ;;  %10030 = vmatmul.mubr.msk.bf16.vlgmr.msra.gmra.mxu0 %vm782_vm2, %v7620_v38 }
 0x650   : > { %v10692_v37 = vpop.eup %10691  ;;  %v6118_v53 = vmul.f32 %v10690_v15, %v14409_v11  ;;  %v9744_v8 = vpop.f32.mrf.mxu0 }
 0x651   : > { %v5652_v28 = vadd.f32 1.0, %v10692_v37  ;;  %v5336_v58 = vadd.f32 %v14364_v14, %v9743_v6  ;;  %v14533_v37 = vpop.f32.mrf.mxu1 }
 0x652   : > { %6150 = vst.msk [vmem:[#allocation2 + $0x69] sm:$0xff] %vm782_vm2, %v6118_v53  ;;  %v9745_v48 = vpop.f32.mrf.mxu0 }
 0x653   : > { %10699 = vrcp.f32 %v5652_v28  ;;  %v14485_v5 = vadd.f32 %v14417_v30, %v5336_v58  ;;  %v9746_v60 = vadd.f32 %v9745_v48, %v9744_v8  ;;  %v5504_v48 = vpop.f32.mrf.mxu1 }
 0x654   : > { %v10694_v26 = vpop.eup %10693 }
 0x655   : > { %v6023_v46 = vadd.f32 1.0, %v10694_v26  ;;  %v9327_v43 = vmul.f32 -1.442695, %v14485_v5  ;;  %v5339_v34 = vadd.f32 %v14364_v14, %v9746_v60  ;;  %v14489_v47 = vld [vmem:[#allocation2 + $0x60] sm:$0xff] }
 0x656   : > { %v14491_v11 = vld [vmem:[#allocation2 + $0x61] sm:$0xff]  ;;  %6215 = vst.msk [vmem:[#allocation3 + $0xc0] sm:$0xff] %vm782_vm2, %v14489_v47 }
 0x657   : > { %10701 = vrcp.f32 %v6023_v46  ;;  %6853 = vst.msk [vmem:[#allocation3 + $0x98] sm:$0xff] %vm782_vm2, %v14491_v11  ;;  %v14498_v30 = vadd.f32 %v14425_v12, %v5339_v34 }
 0x658   : > { %v10696_v7 = vpop.eup %10695  ;;  %10703 = vpow2.f32 %v9327_v43 }
 0x659   : > { %v6024_v16 = vadd.f32 1.0, %v10696_v7  ;;  %v9328_v0 = vmul.f32 -1.442695, %v14498_v30  ;;  %v5812_v23 = vpop.permute.xlu0 %5811  ;;  %v14501_v55 = vld [vmem:[#allocation2 + $0x62] sm:$0xff]  ;;  %v14503_v59 = vld [vmem:[#allocation2 + $0x6a] sm:$0xff] }
 0x65a   : > { %v14505_v39 = vld [vmem:[#allocation2 + $0x68] sm:$0xff]  ;;  %v14508_v20 = vadd.f32 %v5812_v23, %v14276_v49  ;;  %7491 = vst.msk [vmem:[#allocation3 + $0x70] sm:$0xff] %vm782_vm2, %v14501_v55  ;;  %7492 = vst.msk [vmem:[#allocation3 + $0x88] sm:$0xff] %vm782_vm2, %v14503_v59 }
 0x65b   : > { %10705 = vrcp.f32 %v6024_v16  ;;  %v14514_v12 = vld [vmem:[#allocation2 + $0x69] sm:$0xff]  ;;  %6216 = vst.msk [vmem:[#allocation3 + $0xd8] sm:$0xff] %vm782_vm2, %v14505_v39 }
 0x65c   : > { %10707 = vpow2.f32 %v9328_v0  ;;  %6854 = vst.msk [vmem:[#allocation3 + $0xb0] sm:$0xff] %vm782_vm2, %v14514_v12  ;;  %v10698_v22 = vpop.eup %10697  ;;  %v9347_v18 = vmul.f32 -1.442695, %v14508_v20  ;;  %v14542_v0 = vpop.f32.mrf.mxu1 }
 0x65d   : > { %v14522_v49 = vmul.f32 %v10698_v22, %v14428_v10  ;;  %v5814_v57 = vpop.permute.xlu1 %5813 }
 0x65e   : > { %10709 = vpow2.f32 %v9347_v18  ;;  %v14525_v2 = vadd.f32 %v5814_v57, %v14282_v24 }
 0x65f   : > { %5831 = vrot.lane.b32.xlu0 %v14522_v49, %s11158_s16 }
 0x660   : > { %v10700_v35 = vpop.eup %10699  ;;  %v9348_v38 = vmul.f32 -1.442695, %v14525_v2 }
 0x661   : > { %v14531_v4 = vmul.f32 %v10700_v35, %v14433_v33  ;;  %v7533_v15 = vld [vmem:[#allocation3 + $0x70] sm:$0xff]  ;;  %v7536_v6 = vld [vmem:[#allocation3 + $0x88] sm:$0xff] }
 0x662   : > { %10711 = vpow2.f32 %v9348_v38  ;;  %v7623_v10 = vpack.c.bf16 %v7536_v6, %v7533_v15  ;;  %v5507_v6 = vpop.f32.mrf.mxu1 }
 0x663   : > { %5833 = vrot.lane.b32.xlu1 %v14531_v4, %s11158_s16 }
 0x664   : > { %v10702_v53 = vpop.eup %10701  ;;  %v9747_v28 = vpop.f32.mrf.mxu0  ;;  %10033 = vmatprep.mubr.msk.bf16.mxu0 %vm782_vm2, %v7623_v10 }
 0x665   : > { %v10704_v24 = vpop.eup %10703  ;;  %v6119_v8 = vmul.f32 %v10702_v53, %v14445_v51 }
 0x666   : > { %v5653_v58 = vadd.f32 1.0, %v10704_v24  ;;  %v9748_v33 = vpop.f32.mrf.mxu0 }
 0x667   : > { %6151 = vst.msk [vmem:[#allocation2 + $0x79] sm:$0xff] %vm782_vm2, %v6119_v8  ;;  %v9749_v60 = vadd.f32 %v9748_v33, %v9747_v28 }
 0x668   : > { %v10706_v26 = vpop.eup %10705  ;;  %10713 = vrcp.f32 %v5653_v58  ;;  %v9750_v34 = vpop.f32.mrf.mxu0 }
 0x669   : > { %v10708_v46 = vpop.eup %10707  ;;  %v6120_v43 = vmul.f32 %v10706_v26, %v14466_v29  ;;  %v5344_v16 = vadd.f32 %v14364_v14, %v9749_v60 }
 0x66a   : > { %v5654_v7 = vadd.f32 1.0, %v10708_v46  ;;  %v9751_v51 = vpop.f32.mrf.mxu0 }
 0x66b   : > { %6152 = vst.msk [vmem:[#allocation2 + $0x81] sm:$0xff] %vm782_vm2, %v6120_v43  ;;  %v10710_v23 = vpop.eup %10709  ;;  %v14545_v22 = vadd.f32 %v5504_v48, %v5344_v16  ;;  %v9752_v18 = vadd.f32 %v9751_v51, %v9750_v34 }
 0x66c   : > { %10715 = vrcp.f32 %v5654_v7  ;;  %v6025_v57 = vadd.f32 1.0, %v10710_v23 }
 0x66d   : > { %v9329_v35 = vmul.f32 -1.442695, %v14545_v22  ;;  %v5347_v38 = vadd.f32 %v14364_v14, %v9752_v18 }
 0x66e   : > { %v14549_v29 = vld [vmem:[#allocation2 + $0x78] sm:$0xff]  ;;  %10717 = vrcp.f32 %v6025_v57 }
 0x66f   : > { %v14551_v15 = vld [vmem:[#allocation2 + $0x79] sm:$0xff]  ;;  %6217 = vst.msk [vmem:[#allocation3 + $0xf0] sm:$0xff] %vm782_vm2, %v14549_v29  ;;  %v10712_v10 = vpop.eup %10711  ;;  %10719 = vpow2.f32 %v9329_v35  ;;  %v14557_v53 = vadd.f32 %v5507_v6, %v5347_v38 }
 0x670   : > { %6855 = vst.msk [vmem:[#allocation3 + $0xc8] sm:$0xff] %vm782_vm2, %v14551_v15  ;;  %v6026_v24 = vadd.f32 1.0, %v10712_v10 }
 0x671   : > { %v9330_v8 = vmul.f32 -1.442695, %v14557_v53  ;;  %v5816_v28 = vpop.permute.xlu0 %5815 }
 0x672   : > { %v14560_v58 = vld [vmem:[#allocation2 + $0x7a] sm:$0xff]  ;;  %v14562_v48 = vld [vmem:[#allocation2 + $0x82] sm:$0xff]  ;;  %10721 = vrcp.f32 %v6026_v24  ;;  %v14567_v26 = vadd.f32 %v5816_v28, %v14298_v52 }
 0x673   : > { %v14564_v33 = vld [vmem:[#allocation2 + $0x80] sm:$0xff]  ;;  %7493 = vst.msk [vmem:[#allocation3 + $0xa0] sm:$0xff] %vm782_vm2, %v14560_v58  ;;  %7494 = vst.msk [vmem:[#allocation3 + $0xb8] sm:$0xff] %vm782_vm2, %v14562_v48  ;;  %10723 = vpow2.f32 %v9330_v8 }
 0x674   : > { %v14573_v60 = vld [vmem:[#allocation2 + $0x81] sm:$0xff]  ;;  %6218 = vst.msk [vmem:[#allocation3 + $0x108] sm:$0xff] %vm782_vm2, %v14564_v33  ;;  %v9349_v43 = vmul.f32 -1.442695, %v14567_v26 }
 0x675   : > { %6856 = vst.msk [vmem:[#allocation3 + $0xe0] sm:$0xff] %vm782_vm2, %v14573_v60  ;;  %v10714_v46 = vpop.eup %10713  ;;  %v5818_v34 = vpop.permute.xlu1 %5817 }
 0x676   : > { %v14581_v52 = vmul.f32 %v10714_v46, %v14485_v5  ;;  %10725 = vpow2.f32 %v9349_v43  ;;  %v14584_v7 = vadd.f32 %v5818_v34, %v14306_v21 }
 0x678   : > { %5835 = vrot.lane.b32.xlu0 %v14581_v52, %s11158_s16  ;;  %v9350_v51 = vmul.f32 -1.442695, %v14584_v7 }
 0x679   : > { %v10716_v16 = vpop.eup %10715 }
 0x67a   : > { %v14590_v23 = vmul.f32 %v10716_v16, %v14498_v30  ;;  %v7539_v18 = vld [vmem:[#allocation3 + $0xa0] sm:$0xff]  ;;  %v7542_v57 = vld [vmem:[#allocation3 + $0xb8] sm:$0xff]  ;;  %10727 = vpow2.f32 %v9350_v51 }
 0x67b   : > { %v7626_v35 = vpack.c.bf16 %v7542_v57, %v7539_v18  ;;  %v10718_v5 = vpop.eup %10717 }
 0x67c   : > { %5837 = vrot.lane.b32.xlu1 %v14590_v23, %s11158_s16  ;;  %v10720_v38 = vpop.eup %10719  ;;  %v6121_v21 = vmul.f32 %v10718_v5, %v14508_v20  ;;  %v9753_v6 = vpop.f32.mrf.mxu0 }
 0x67d   : > { %10034 = vmatmul.mubr.msk.bf16.gmra.mxu0 %vm782_vm2, %v7626_v35  ;;  %v5655_v10 = vadd.f32 1.0, %v10720_v38 }
 0x67e   : > { %6153 = vst.msk [vmem:[#allocation2 + $0x91] sm:$0xff] %vm782_vm2, %v6121_v21  ;;  %v9754_v24 = vpop.f32.mrf.mxu0 }
 0x67f   : > { %v10722_v30 = vpop.eup %10721  ;;  %10729 = vrcp.f32 %v5655_v10  ;;  %v9755_v8 = vadd.f32 %v9754_v24, %v9753_v6 }
 0x680   : > { %v10724_v28 = vpop.eup %10723  ;;  %v6122_v46 = vmul.f32 %v10722_v30, %v14525_v2  ;;  %v9756_v43 = vpop.f32.mrf.mxu0 }
 0x681   : > { %v5656_v34 = vadd.f32 1.0, %v10724_v28  ;;  %v5352_v16 = vadd.f32 %v14364_v14, %v9755_v8 }
 0x682   : > { %6154 = vst.msk [vmem:[#allocation2 + $0x99] sm:$0xff] %vm782_vm2, %v6122_v46  ;;  %v9757_v20 = vpop.f32.mrf.mxu0 }
 0x683   : > { %v10726_v51 = vpop.eup %10725  ;;  %10731 = vrcp.f32 %v5656_v34  ;;  %v14601_v18 = vadd.f32 %v14533_v37, %v5352_v16  ;;  %v9758_v57 = vadd.f32 %v9757_v20, %v9756_v43 }
 0x684   : > { %v6027_v35 = vadd.f32 1.0, %v10726_v51 }
 0x685   : > { %v9331_v5 = vmul.f32 -1.442695, %v14601_v18  ;;  %v5355_v38 = vadd.f32 %v14364_v14, %v9758_v57  ;;  %v14605_v21 = vld [vmem:[#allocation2 + $0x90] sm:$0xff] }
 0x686   : > { %v14607_v2 = vld [vmem:[#allocation2 + $0x91] sm:$0xff]  ;;  %10733 = vrcp.f32 %v6027_v35  ;;  %6219 = vst.msk [vmem:[#allocation3 + $0x120] sm:$0xff] %vm782_vm2, %v14605_v21 }
 0x687   : > { %16382 = vst [vmem:[#allocation50_spill] sm:$0xff] %v14607_v2  ;;  %6857 = vst.msk [vmem:[#allocation3 + $0xf8] sm:$0xff] %vm782_vm2, %v14607_v2  ;;  %v10728_v6 = vpop.eup %10727  ;;  %10735 = vpow2.f32 %v9331_v5  ;;  %v14614_v37 = vadd.f32 %v14542_v0, %v5355_v38 }
 0x688   : > { %v6028_v10 = vadd.f32 1.0, %v10728_v6 }
 0x689   : > { %v9332_v24 = vmul.f32 -1.442695, %v14614_v37  ;;  %v5820_v30 = vpop.permute.xlu0 %5819  ;;  %v14617_v8 = vld [vmem:[#allocation2 + $0x92] sm:$0xff]  ;;  %v14619_v28 = vld [vmem:[#allocation2 + $0x9a] sm:$0xff] }
 0x68a   : > { %16383 = vst [vmem:[#allocation49_spill] sm:$0xff] %v14617_v8  ;;  %16384 = vst [vmem:[#allocation51_spill] sm:$0xff] %v14619_v28  ;;  %v14621_v46 = vld [vmem:[#allocation2 + $0x98] sm:$0xff]  ;;  %10737 = vrcp.f32 %v6028_v10  ;;  %v14624_v43 = vadd.f32 %v5820_v30, %v14339_v13 }
 0x68b   : > { %16385 = vst [vmem:[#allocation54_spill] sm:$0xff] %v14621_v46  ;;  %7495 = vst.msk [vmem:[#allocation3 + $0xd0] sm:$0xff] %vm782_vm2, %v14617_v8  ;;  %v14630_v0 = vld [vmem:[#allocation2 + $0x99] sm:$0xff]  ;;  %10739 = vpow2.f32 %v9332_v24 }
 0x68c   : > { %7496 = vst.msk [vmem:[#allocation3 + $0xe8] sm:$0xff] %vm782_vm2, %v14619_v28  ;;  %16386 = vst [vmem:[#allocation55_spill] sm:$0xff] %v14630_v0  ;;  %v10730_v34 = vpop.eup %10729  ;;  %v9351_v16 = vmul.f32 -1.442695, %v14624_v43 }
 0x68d   : > { %6220 = vst.msk [vmem:[#allocation3 + $0x138] sm:$0xff] %vm782_vm2, %v14621_v46  ;;  %6858 = vst.msk [vmem:[#allocation3 + $0x110] sm:$0xff] %vm782_vm2, %v14630_v0  ;;  %v14638_v13 = vmul.f32 %v10730_v34, %v14545_v22  ;;  %v5822_v20 = vpop.permute.xlu1 %5821  ;;  %v10023_v22 = vpop.f32.mrf.mxu1 }
 0x68e   : > { %10741 = vpow2.f32 %v9351_v16  ;;  %v14641_v51 = vadd.f32 %v5822_v20, %v14350_v44 }
 0x68f   : > { %5839 = vrot.lane.b32.xlu0 %v14638_v13, %s11158_s16  ;;  %v5520_v20 = vpop.f32.mrf.mxu1 }
 0x690   : > { %v10732_v57 = vpop.eup %10731  ;;  %v9352_v35 = vmul.f32 -1.442695, %v14641_v51 }
 0x691   : > { %v14647_v5 = vmul.f32 %v10732_v57, %v14557_v53 }
 0x692   : > { %v7545_v38 = vld [vmem:[#allocation3 + $0xd0] sm:$0xff]  ;;  %10743 = vpow2.f32 %v9352_v35 }
 0x693   : > { %v7548_v6 = vld [vmem:[#allocation3 + $0xe8] sm:$0xff]  ;;  %v10734_v24 = vpop.eup %10733  ;;  %5841 = vrot.lane.b32.xlu1 %v14647_v5, %s11158_s16 }
 0x694   : > { %v7629_v10 = vpack.c.bf16 %v7548_v6, %v7545_v38  ;;  %v10736_v44 = vpop.eup %10735  ;;  %v6123_v30 = vmul.f32 %v10734_v24, %v14567_v26  ;;  %v9759_v34 = vpop.f32.mrf.mxu0 }
 0x695   : > { %v5657_v16 = vadd.f32 1.0, %v10736_v44  ;;  %v10024_v24 = vpop.f32.mrf.mxu1 }
 0x696   : > { %10037 = vmatprep.mubr.msk.bf16.mxu0 %vm782_vm2, %v7629_v10  ;;  %6155 = vst.msk [vmem:[#allocation2 + $0xa9] sm:$0xff] %vm782_vm2, %v6123_v30  ;;  %v9760_v53 = vpop.f32.mrf.mxu0 }
 0x697   : > { %v10738_v57 = vpop.eup %10737  ;;  %10745 = vrcp.f32 %v5657_v16  ;;  %v9761_v35 = vadd.f32 %v9760_v53, %v9759_v34 }
 0x698   : > { %v10740_v38 = vpop.eup %10739  ;;  %v6124_v6 = vmul.f32 %v10738_v57, %v14584_v7  ;;  %v9762_v8 = vpop.f32.mrf.mxu0 }
 0x699   : > { %v5658_v28 = vadd.f32 1.0, %v10740_v38  ;;  %v5360_v0 = vadd.f32 %v14364_v14, %v9761_v35  ;;  %v5523_v57 = vpop.f32.mrf.mxu1 }
 0x69a   : > { %6156 = vst.msk [vmem:[#allocation2 + $0xb1] sm:$0xff] %vm782_vm2, %v6124_v6  ;;  %v9763_v26 = vpop.f32.mrf.mxu0 }
 0x69b   : > { %v10742_v10 = vpop.eup %10741  ;;  %10747 = vrcp.f32 %v5658_v28  ;;  %v14657_v44 = vadd.f32 %v5520_v20, %v5360_v0  ;;  %v9764_v30 = vadd.f32 %v9763_v26, %v9762_v8 }
 0x69c   : > { %v6029_v2 = vadd.f32 1.0, %v10742_v10  ;;  %v9765_v46 = vpop.f32.mrf.mxu0 }
 0x69d   : > { %v9333_v34 = vmul.f32 -1.442695, %v14657_v44  ;;  %v5363_v16 = vadd.f32 %v14364_v14, %v9764_v30  ;;  %v14661_v7 = vld [vmem:[#allocation2 + $0xa8] sm:$0xff] }
 0x69e   : > { %16387 = vst [vmem:[#allocation53_spill] sm:$0xff] %v14661_v7  ;;  %v14663_v53 = vld [vmem:[#allocation2 + $0xa9] sm:$0xff]  ;;  %10749 = vrcp.f32 %v6029_v2  ;;  %v9766_v35 = vpop.f32.mrf.mxu0  ;;  %6221 = vst.msk [vmem:[#allocation3 + $0x150] sm:$0xff] %vm782_vm2, %v14661_v7 }
 0x69f   : > { %16388 = vst [vmem:[#allocation52_spill] sm:$0xff] %v14663_v53  ;;  %6859 = vst.msk [vmem:[#allocation3 + $0x128] sm:$0xff] %vm782_vm2, %v14663_v53  ;;  %v10744_v8 = vpop.eup %10743  ;;  %10751 = vpow2.f32 %v9333_v34  ;;  %v14669_v28 = vadd.f32 %v5523_v57, %v5363_v16  ;;  %v9767_v0 = vadd.f32 %v9766_v35, %v9765_v46 }
 0x6a0   : > { %v6030_v20 = vadd.f32 1.0, %v10744_v8  ;;  %v9768_v38 = vpop.f32.mrf.mxu0 }
 0x6a1   : > { %v9334_v6 = vmul.f32 -1.442695, %v14669_v28  ;;  %v5368_v26 = vadd.f32 %v14364_v14, %v9767_v0  ;;  %v5824_v2 = vpop.permute.xlu0 %5823  ;;  %v14673_v10 = vld [vmem:[#allocation2 + $0xaa] sm:$0xff]  ;;  %v14675_v30 = vld [vmem:[#allocation2 + $0xb2] sm:$0xff] }
 0x6a2   : > { %16389 = vst [vmem:[#allocation42_spill] sm:$0xff] %v14673_v10  ;;  %v14677_v7 = vld [vmem:[#allocation2 + $0xb0] sm:$0xff]  ;;  %10753 = vrcp.f32 %v6030_v20  ;;  %v14680_v53 = vadd.f32 %v5824_v2, %v14406_v42  ;;  %v9769_v34 = vpop.f32.mrf.mxu0  ;;  %7497 = vst.msk [vmem:[#allocation3 + $0x100] sm:$0xff] %vm782_vm2, %v14673_v10 }
 0x6a3   : > { %7498 = vst.msk [vmem:[#allocation3 + $0x118] sm:$0xff] %vm782_vm2, %v14675_v30  ;;  %v14686_v46 = vld [vmem:[#allocation2 + $0xb1] sm:$0xff]  ;;  %6222 = vst.msk [vmem:[#allocation3 + $0x168] sm:$0xff] %vm782_vm2, %v14677_v7  ;;  %10755 = vpow2.f32 %v9334_v6  ;;  %v14690_v16 = vadd.f32 %v10023_v22, %v5368_v26  ;;  %v9770_v57 = vadd.f32 %v9769_v34, %v9768_v38 }
 0x6a4   : > { %6860 = vst.msk [vmem:[#allocation3 + $0x140] sm:$0xff] %vm782_vm2, %v14686_v46  ;;  %v10746_v42 = vpop.eup %10745  ;;  %v9353_v35 = vmul.f32 -1.442695, %v14680_v53 }
 0x6a5   : > { %v14696_v8 = vmul.f32 %v10746_v42, %v14601_v18  ;;  %v9335_v0 = vmul.f32 -1.442695, %v14690_v16  ;;  %v5371_v20 = vadd.f32 %v14364_v14, %v9770_v57  ;;  %v5826_v2 = vpop.permute.xlu1 %5825 }
 0x6a6   : > { %10757 = vpow2.f32 %v9353_v35  ;;  %v14701_v6 = vadd.f32 %v5826_v2, %v14415_v3 }
 0x6a7   : > { %10759 = vpow2.f32 %v9335_v0  ;;  %v14703_v22 = vadd.f32 %v10024_v24, %v5371_v20  ;;  %5843 = vrot.lane.b32.xlu0 %v14696_v8, %s11158_s16 }
 0x6a8   : > { %v10748_v38 = vpop.eup %10747  ;;  %v9354_v26 = vmul.f32 -1.442695, %v14701_v6 }
 0x6a9   : > { %v14709_v18 = vmul.f32 %v10748_v38, %v14614_v37  ;;  %v9336_v34 = vmul.f32 -1.442695, %v14703_v22  ;;  %v7551_v14 = vld [vmem:[#allocation3 + $0x100] sm:$0xff] }
 0x6aa   : > { %v7554_v57 = vld [vmem:[#allocation3 + $0x118] sm:$0xff]  ;;  %10761 = vpow2.f32 %v9354_v26 }
 0x6ab   : > { %v7632_v42 = vpack.c.bf16 %v7554_v57, %v7551_v14  ;;  %v10750_v3 = vpop.eup %10749  ;;  %10763 = vpow2.f32 %v9336_v34  ;;  %5845 = vrot.lane.b32.xlu1 %v14709_v18, %s11158_s16 }
 0x6ac   : > { %v10752_v24 = vpop.eup %10751  ;;  %v6125_v35 = vmul.f32 %v10750_v3, %v14624_v43 }
 0x6ad   : > { %10038 = vmatmul.mubr.msk.bf16.gmra.mxu0 %vm782_vm2, %v7632_v42  ;;  %v5659_v0 = vadd.f32 1.0, %v10752_v24 }
 0x6ae   : > { %6157 = vst.msk [vmem:[#allocation2 + $0xc1] sm:$0xff] %vm782_vm2, %v6125_v35 }
 0x6af   : > { %v10754_v37 = vpop.eup %10753  ;;  %10765 = vrcp.f32 %v5659_v0 }
 0x6b0   : > { %v10756_v20 = vpop.eup %10755  ;;  %v6126_v2 = vmul.f32 %v10754_v37, %v14641_v51 }
 0x6b1   : > { %v5660_v38 = vadd.f32 1.0, %v10756_v20 }
 0x6b2   : > { %6158 = vst.msk [vmem:[#allocation2 + $0xc9] sm:$0xff] %vm782_vm2, %v6126_v2 }
 0x6b3   : > { %v10758_v26 = vpop.eup %10757  ;;  %10767 = vrcp.f32 %v5660_v38 }
 0x6b4   : > { %v10760_v34 = vpop.eup %10759  ;;  %v6031_v14 = vadd.f32 1.0, %v10758_v26 }
 0x6b5   : > { %v5661_v57 = vadd.f32 1.0, %v10760_v34  ;;  %v14719_v10 = vld [vmem:[#allocation2 + $0xc0] sm:$0xff] }
 0x6b6   : > { %v14721_v43 = vld [vmem:[#allocation2 + $0xc1] sm:$0xff]  ;;  %10769 = vrcp.f32 %v6031_v14  ;;  %6223 = vst.msk [vmem:[#allocation3 + $0x180] sm:$0xff] %vm782_vm2, %v14719_v10 }
 0x6b7   : > { %6861 = vst.msk [vmem:[#allocation3 + $0x158] sm:$0xff] %vm782_vm2, %v14721_v43  ;;  %v10762_v51 = vpop.eup %10761  ;;  %10771 = vrcp.f32 %v5661_v57 }
 0x6b8   : > { %v10764_v42 = vpop.eup %10763  ;;  %v6032_v3 = vadd.f32 1.0, %v10762_v51 }
 0x6b9   : > { %v5662_v24 = vadd.f32 1.0, %v10764_v42  ;;  %v5828_v35 = vpop.permute.xlu0 %5827  ;;  %v7467_v0 = vld [vmem:[#allocation2 + $0xc2] sm:$0xff]  ;;  %v14727_v37 = vld [vmem:[#allocation2 + $0xca] sm:$0xff] }
 0x6ba   : > { %v14729_v20 = vld [vmem:[#allocation2 + $0xc8] sm:$0xff]  ;;  %10773 = vrcp.f32 %v6032_v3  ;;  %v14732_v2 = vadd.f32 %v5828_v35, %v14455_v54  ;;  %7499 = vst.msk [vmem:[#allocation3 + $0x130] sm:$0xff] %vm782_vm2, %v7467_v0  ;;  %7500 = vst.msk [vmem:[#allocation3 + $0x148] sm:$0xff] %vm782_vm2, %v14727_v37 }
 0x6bb   : > { %v14737_v38 = vld [vmem:[#allocation2 + $0xc9] sm:$0xff]  ;;  %6224 = vst.msk [vmem:[#allocation3 + $0x198] sm:$0xff] %vm782_vm2, %v14729_v20  ;;  %10775 = vrcp.f32 %v5662_v24 }
 0x6bc   : > { %6862 = vst.msk [vmem:[#allocation3 + $0x170] sm:$0xff] %vm782_vm2, %v14737_v38  ;;  %v10766_v26 = vpop.eup %10765  ;;  %v9355_v34 = vmul.f32 -1.442695, %v14732_v2 }
 0x6bd   : > { %v14745_v54 = vmul.f32 %v10766_v26, %v14657_v44  ;;  %v5830_v14 = vpop.permute.xlu1 %5829  ;;  %v10177_v44 = vld [vmem:[%s16251_s3 + $0x198] sm:$0xff]  }
 0x6be   : > { %10777 = vpow2.f32 %v9355_v34  ;;  %v14748_v57 = vadd.f32 %v5830_v14, %v14474_v45  ;;  %v10178_v45 = vld [vmem:[%s16251_s3 + $0x158] sm:$0xff]   ;;  %9789 = vmatprep.subr.bf16.mxu1 %v10177_v44  ;;  %v10181_v44 = vld [vmem:[%s16251_s3 + $0x188] sm:$0xff]  }
 0x6bf   : > { %5847 = vrot.lane.b32.xlu0 %v14745_v54, %s11158_s16  ;;  %9790 = vmatpush3.bf16.msra.mxu1 %v10178_v45 }
 0x6c0   : > { %v10768_v51 = vpop.eup %10767  ;;  %v9356_v42 = vmul.f32 -1.442695, %v14748_v57 }
 0x6c1   : > { %v14754_v3 = vmul.f32 %v10768_v51, %v14669_v28  ;;  %v7557_v24 = vld [vmem:[#allocation3 + $0x130] sm:$0xff]  ;;  %v7560_v35 = vld [vmem:[#allocation3 + $0x148] sm:$0xff]  ;;  %v10179_v51 = vld [vmem:[%s16251_s3 + $0x190] sm:$0xff]  }
 0x6c2   : > { %10779 = vpow2.f32 %v9356_v42  ;;  %v7635_v0 = vpack.c.bf16 %v7560_v35, %v7557_v24  ;;  %v10180_v42 = vld [vmem:[%s16251_s3 + $0x150] sm:$0xff]   ;;  %9791 = vmatprep.subr.bf16.mxu1 %v10179_v51  ;;  %v10184_v51 = vld [vmem:[%s16251_s3 + $0x140] sm:$0xff]  }
 0x6c3   : > { %v10770_v26 = vpop.eup %10769  ;;  %5849 = vrot.lane.b32.xlu1 %v14754_v3, %s11158_s16  ;;  %9792 = vmatpush3.bf16.msra.mxu1 %v10180_v42 }
 0x6c4   : > { %v10772_v34 = vpop.eup %10771  ;;  %v6127_v28 = vmul.f32 %v10770_v26, %v14680_v53  ;;  %10041 = vmatprep.mubr.msk.bf16.mxu0 %vm782_vm2, %v7635_v0  ;;  %v10182_v0 = vld [vmem:[%s16251_s3 + $0x148] sm:$0xff]   ;;  %9793 = vmatprep.subr.bf16.mxu1 %v10181_v44 }
 0x6c5   : > { %v14767_v14 = vmul.f32 %v10772_v34, %v14690_v16 }
 0x6c6   : > { %6159 = vst.msk [vmem:[#allocation2 + $0xd9] sm:$0xff] %vm782_vm2, %v6127_v28  ;;  %v6880_v28 = vld [vmem:[#allocation2 + $0x22] sm:$0xff] }
 0x6c7   : > { %v10774_v24 = vpop.eup %10773  ;;  %5851 = vrot.lane.b32.xlu0 %v14767_v14, %s11158_s16  ;;  %9794 = vmatpush3.bf16.msra.mxu1 %v10182_v0  ;;  %v10185_v0 = vld [vmem:[%s16251_s3 + $0x178] sm:$0xff]  }
 0x6c8   : > { %v10776_v53 = vpop.eup %10775  ;;  %v6128_v35 = vmul.f32 %v10774_v24, %v14701_v6  ;;  %v6879_v24 = vld [vmem:[#allocation2 + $0x1a] sm:$0xff] }
 0x6c9   : > { %v14780_v16 = vmul.f32 %v10776_v53, %v14703_v22  ;;  %v10183_v22 = vld [vmem:[%s16251_s3 + $0x180] sm:$0xff]  }
 0x6ca   : > { %6160 = vst.msk [vmem:[#allocation2 + $0xe1] sm:$0xff] %vm782_vm2, %v6128_v35  ;;  %9795 = vmatprep.subr.bf16.mxu1 %v10183_v22 }
 0x6cb   : > { %v10778_v45 = vpop.eup %10777  ;;  %5853 = vrot.lane.b32.xlu1 %v14780_v16, %s11158_s16  ;;  %6687 = vrot.lane.b32.xlu0 %v14323_v1, %s11158_s16 }
 0x6cc   : > { %v6033_v6 = vadd.f32 1.0, %v10778_v45  ;;  %9796 = vmatpush3.bf16.msra.mxu1 %v10184_v51 }
 0x6cd   : > { %v14796_v26 = vld [vmem:[#allocation2 + $0xd8] sm:$0xff]  ;;  %9797 = vmatprep.subr.bf16.mxu1 %v10185_v0 }
 0x6ce   : > { %v14798_v34 = vld [vmem:[#allocation2 + $0xd9] sm:$0xff]  ;;  %10781 = vrcp.f32 %v6033_v6  ;;  %6225 = vst.msk [vmem:[#allocation3 + $0x1b0] sm:$0xff] %vm782_vm2, %v14796_v26 }
 0x6cf   : > { %6863 = vst.msk [vmem:[#allocation3 + $0x188] sm:$0xff] %vm782_vm2, %v14798_v34  ;;  %v10780_v1 = vpop.eup %10779  ;;  %6945 = vrot.lane.b32.xlu1 %v6880_v28, %s11156_s12  ;;  %6307 = vrot.lane.b32.xlu0 %v14325_v63, %s11156_s12  ;;  %v10186_v63 = vld [vmem:[%s16251_s3 + $0x138] sm:$0xff]  }
 0x6d0   : > { %v6034_v42 = vadd.f32 1.0, %v10780_v1  ;;  %9798 = vmatpush3.bf16.msra.mxu1 %v10186_v63  ;;  %v10187_v1 = vld [vmem:[%s16251_s3 + $0x170] sm:$0xff]   ;;  %v10190_v63 = vld [vmem:[%s16251_s3 + $0x128] sm:$0xff]  }
 0x6d1   : > { %v5832_v53 = vpop.permute.xlu0 %5831  ;;  %v7469_v35 = vld [vmem:[#allocation2 + $0xda] sm:$0xff]  ;;  %v7470_v44 = vld [vmem:[#allocation2 + $0xe2] sm:$0xff]  ;;  %9799 = vmatprep.subr.bf16.mxu1 %v10187_v1 }
 0x6d2   : > { %10783 = vrcp.f32 %v6034_v42  ;;  %v14814_v45 = vadd.f32 %v5832_v53, %v14522_v49  ;;  %7501 = vst.msk [vmem:[#allocation3 + $0x160] sm:$0xff] %vm782_vm2, %v7469_v35  ;;  %7502 = vst.msk [vmem:[#allocation3 + $0x178] sm:$0xff] %vm782_vm2, %v7470_v44  ;;  %v14821_v6 = vld [vmem:[#allocation2 + $0xe0] sm:$0xff]  ;;  %v10188_v42 = vld [vmem:[%s16251_s3 + $0x130] sm:$0xff]  }
 0x6d3   : > { %v14823_v22 = vld [vmem:[#allocation2 + $0xe1] sm:$0xff]  ;;  %6689 = vrot.lane.b32.xlu1 %v14332_v27, %s11158_s16  ;;  %6943 = vrot.lane.b32.xlu0 %v6879_v24, %s11156_s12  ;;  %6226 = vst.msk [vmem:[#allocation3 + $0x1c8] sm:$0xff] %vm782_vm2, %v14821_v6 }
 0x6d4   : > { %6864 = vst.msk [vmem:[#allocation3 + $0x1a0] sm:$0xff] %vm782_vm2, %v14823_v22  ;;  %v9357_v49 = vmul.f32 -1.442695, %v14814_v45  ;;  %9800 = vmatpush3.bf16.msra.mxu1 %v10188_v42 }
 0x6d5   : > { %v5834_v51 = vpop.permute.xlu1 %5833 }
 0x6d6   : > { %10785 = vpow2.f32 %v9357_v49  ;;  %v14837_v27 = vadd.f32 %v5834_v51, %v14531_v4  ;;  %v10189_v4 = vld [vmem:[%s16251_s3 + $0x168] sm:$0xff]   ;;  %v10192_v51 = vld [vmem:[%s16251_s3 + $0x120] sm:$0xff]  }
 0x6d7   : > { %6309 = vrot.lane.b32.xlu1 %v14334_v32, %s11156_s12  ;;  %6499 = vrot.lane.b32.xlu0 %v6879_v24, %s11157_s13  ;;  %v10191_v24 = vld [vmem:[%s16251_s3 + $0x160] sm:$0xff]  }
 0x6d8   : > { %v9358_v53 = vmul.f32 -1.442695, %v14837_v27  ;;  %9801 = vmatprep.subr.bf16.mxu1 %v10189_v4 }
 0x6d9   : > { %v7563_v35 = vld [vmem:[#allocation3 + $0x160] sm:$0xff]  ;;  %v7566_v44 = vld [vmem:[#allocation3 + $0x178] sm:$0xff]  ;;  %9802 = vmatpush3.bf16.msra.mxu1 %v10190_v63 }
 0x6da   : > { %10787 = vpow2.f32 %v9358_v53  ;;  %v7638_v0 = vpack.c.bf16 %v7566_v44, %v7563_v35  ;;  %9803 = vmatprep.subr.bf16.mxu1 %v10191_v24 }
 0x6db   : > { %v10782_v49 = vpop.eup %10781  ;;  %6501 = vrot.lane.b32.xlu1 %v6880_v28, %s11157_s13  ;;  %7135 = vrot.lane.b32.xlu0 %v14373_v41, %s11157_s13 }
 0x6dc   : > { %v6129_v32 = vmul.f32 %v10782_v49, %v14732_v2  ;;  %10042 = vmatmul.mubr.msk.bf16.gmra.mxu0 %vm782_vm2, %v7638_v0 }
 0x6dd   : > { %9804 = vmatpush3.bf16.msra.mxu1 %v10192_v51 }
 0x6de   : > { %6161 = vst.msk [vmem:[#allocation2 + $0xf1] sm:$0xff] %vm782_vm2, %v6129_v32 }
 0x6df   : > { %v10784_v28 = vpop.eup %10783  ;;  %7137 = vrot.lane.b32.xlu1 %v14389_v25, %s11157_s13  ;;  %7327 = vrot.lane.b32.xlu0 %v14375_v56, %s11158_s16 }
 0x6e0   : > { %v6130_v2 = vmul.f32 %v10784_v28, %v14748_v57 }
 0x6e2   : > { %6162 = vst.msk [vmem:[#allocation2 + $0xf9] sm:$0xff] %vm782_vm2, %v6130_v2 }
 0x6e3   : > { %v10786_v1 = vpop.eup %10785  ;;  %7329 = vrot.lane.b32.xlu1 %v14398_v19, %s11158_s16  ;;  %6691 = vrot.lane.b32.xlu0 %v14373_v41, %s11158_s16 }
 0x6e4   : > { %v6035_v42 = vadd.f32 1.0, %v10786_v1 }
 0x6e5   : > { %v14874_v53 = vld [vmem:[#allocation2 + $0xf0] sm:$0xff] }
 0x6e6   : > { %v14876_v35 = vld [vmem:[#allocation2 + $0xf1] sm:$0xff]  ;;  %10789 = vrcp.f32 %v6035_v42  ;;  %6227 = vst.msk [vmem:[#allocation3 + $0x1e0] sm:$0xff] %vm782_vm2, %v14874_v53 }
 0x6e7   : > { %6865 = vst.msk [vmem:[#allocation3 + $0x1b8] sm:$0xff] %vm782_vm2, %v14876_v35  ;;  %v10788_v57 = vpop.eup %10787  ;;  %6949 = vrot.lane.b32.xlu1 %v14387_v61, %s11156_s12  ;;  %6311 = vrot.lane.b32.xlu0 %v14375_v56, %s11156_s12 }
 0x6e8   : > { %v6036_v41 = vadd.f32 1.0, %v10788_v57 }
 0x6e9   : > { %v7471_v4 = vld [vmem:[#allocation2 + $0xf2] sm:$0xff]  ;;  %v7472_v0 = vld [vmem:[#allocation2 + $0xfa] sm:$0xff] }
 0x6ea   : > { %v5836_v44 = vpop.permute.xlu0 %5835  ;;  %v14886_v63 = vld [vmem:[#allocation2 + $0xf8] sm:$0xff]  ;;  %10791 = vrcp.f32 %v6036_v41  ;;  %7503 = vst.msk [vmem:[#allocation3 + $0x190] sm:$0xff] %vm782_vm2, %v7471_v4  ;;  %7504 = vst.msk [vmem:[#allocation3 + $0x1a8] sm:$0xff] %vm782_vm2, %v7472_v0 }
 0x6eb   : > { %v14889_v49 = vadd.f32 %v5836_v44, %v14581_v52  ;;  %v14893_v32 = vld [vmem:[#allocation2 + $0xf9] sm:$0xff]  ;;  %6228 = vst.msk [vmem:[#allocation3 + $0x1f8] sm:$0xff] %vm782_vm2, %v14886_v63  ;;  %6693 = vrot.lane.b32.xlu1 %v14389_v25, %s11158_s16  ;;  %6947 = vrot.lane.b32.xlu0 %v14385_v31, %s11156_s12 }
 0x6ec   : > { %6866 = vst.msk [vmem:[#allocation3 + $0x1d0] sm:$0xff] %vm782_vm2, %v14893_v32 }
 0x6ed   : > { %v9359_v56 = vmul.f32 -1.442695, %v14889_v49 }
 0x6ee   : > { %v5838_v52 = vpop.permute.xlu1 %5837 }
 0x6ef   : > { %10793 = vpow2.f32 %v9359_v56  ;;  %v14905_v24 = vadd.f32 %v5838_v52, %v14590_v23  ;;  %6313 = vrot.lane.b32.xlu1 %v14398_v19, %s11156_s12  ;;  %6503 = vrot.lane.b32.xlu0 %v14385_v31, %s11157_s13 }
 0x6f1   : > { %v9360_v25 = vmul.f32 -1.442695, %v14905_v24  ;;  %v7569_v51 = vld [vmem:[#allocation3 + $0x190] sm:$0xff]  ;;  %v7572_v28 = vld [vmem:[#allocation3 + $0x1a8] sm:$0xff] }
 0x6f2   : > { %v7641_v2 = vpack.c.bf16 %v7572_v28, %v7569_v51 }
 0x6f3   : > { %10795 = vpow2.f32 %v9360_v25  ;;  %v10790_v1 = vpop.eup %10789  ;;  %6505 = vrot.lane.b32.xlu1 %v14387_v61, %s11157_s13  ;;  %7139 = vrot.lane.b32.xlu0 %v14435_v9, %s11157_s13 }
 0x6f4   : > { %v6131_v23 = vmul.f32 %v10790_v1, %v14814_v45  ;;  %10045 = vmatprep.mubr.msk.bf16.mxu0 %vm782_vm2, %v7641_v2 }
 0x6f6   : > { %6163 = vst.msk [vmem:[#allocation2 + $0x109] sm:$0xff] %vm782_vm2, %v6131_v23 }
 0x6f7   : > { %v10792_v31 = vpop.eup %10791  ;;  %7141 = vrot.lane.b32.xlu1 %v14452_v40, %s11157_s13  ;;  %7331 = vrot.lane.b32.xlu0 %v14437_v36, %s11158_s16 }
 0x6f8   : > { %v6132_v19 = vmul.f32 %v10792_v31, %v14837_v27 }
 0x6fa   : > { %6164 = vst.msk [vmem:[#allocation2 + $0x111] sm:$0xff] %vm782_vm2, %v6132_v19 }
 0x6fb   : > { %7333 = vrot.lane.b32.xlu1 %v14461_v50, %s11158_s16  ;;  %6695 = vrot.lane.b32.xlu0 %v14435_v9, %s11158_s16 }
 0x6fc   : > { %v10794_v61 = vpop.eup %10793 }
 0x6fd   : > { %v6037_v45 = vadd.f32 1.0, %v10794_v61  ;;  %v14929_v42 = vld [vmem:[#allocation2 + $0x108] sm:$0xff] }
 0x6fe   : > { %v14931_v57 = vld [vmem:[#allocation2 + $0x109] sm:$0xff]  ;;  %6229 = vst.msk [vmem:[#allocation3 + $0x210] sm:$0xff] %vm782_vm2, %v14929_v42 }
 0x6ff   : > { %10797 = vrcp.f32 %v6037_v45  ;;  %6867 = vst.msk [vmem:[#allocation3 + $0x1e8] sm:$0xff] %vm782_vm2, %v14931_v57  ;;  %6953 = vrot.lane.b32.xlu1 %v14450_v17, %s11156_s12  ;;  %6315 = vrot.lane.b32.xlu0 %v14437_v36, %s11156_s12 }
 0x700   : > { %v10796_v27 = vpop.eup %10795 }
 0x701   : > { %v6038_v9 = vadd.f32 1.0, %v10796_v27  ;;  %v5840_v41 = vpop.permute.xlu0 %5839  ;;  %v7473_v44 = vld [vmem:[#allocation2 + $0x10a] sm:$0xff]  ;;  %v7474_v4 = vld [vmem:[#allocation2 + $0x112] sm:$0xff] }
 0x702   : > { %v14941_v0 = vld [vmem:[#allocation2 + $0x110] sm:$0xff]  ;;  %v14944_v56 = vadd.f32 %v5840_v41, %v14638_v13  ;;  %7505 = vst.msk [vmem:[#allocation3 + $0x1c0] sm:$0xff] %vm782_vm2, %v7473_v44  ;;  %7506 = vst.msk [vmem:[#allocation3 + $0x1d8] sm:$0xff] %vm782_vm2, %v7474_v4 }
 0x703   : > { %10799 = vrcp.f32 %v6038_v9  ;;  %v14948_v52 = vld [vmem:[#allocation2 + $0x111] sm:$0xff]  ;;  %6230 = vst.msk [vmem:[#allocation3 + $0x228] sm:$0xff] %vm782_vm2, %v14941_v0  ;;  %6697 = vrot.lane.b32.xlu1 %v14452_v40, %s11158_s16  ;;  %6951 = vrot.lane.b32.xlu0 %v14448_v62, %s11156_s12 }
 0x704   : > { %6868 = vst.msk [vmem:[#allocation3 + $0x200] sm:$0xff] %vm782_vm2, %v14948_v52  ;;  %v9361_v36 = vmul.f32 -1.442695, %v14944_v56 }
 0x705   : > { %v5842_v13 = vpop.permute.xlu1 %5841 }
 0x706   : > { %10801 = vpow2.f32 %v9361_v36  ;;  %v14960_v25 = vadd.f32 %v5842_v13, %v14647_v5 }
 0x707   : > { %6317 = vrot.lane.b32.xlu1 %v14461_v50, %s11156_s12  ;;  %6507 = vrot.lane.b32.xlu0 %v14448_v62, %s11157_s13 }
 0x708   : > { %v9362_v40 = vmul.f32 -1.442695, %v14960_v25 }
 0x709   : > { %v7575_v51 = vld [vmem:[#allocation3 + $0x1c0] sm:$0xff]  ;;  %v7578_v28 = vld [vmem:[#allocation3 + $0x1d8] sm:$0xff] }
 0x70a   : > { %10803 = vpow2.f32 %v9362_v40  ;;  %v7644_v2 = vpack.c.bf16 %v7578_v28, %v7575_v51 }
 0x70b   : > { %6509 = vrot.lane.b32.xlu1 %v14450_v17, %s11157_s13  ;;  %7143 = vrot.lane.b32.xlu0 %v14489_v47, %s11157_s13 }
 0x70c   : > { %v10798_v1 = vpop.eup %10797  ;;  %10046 = vmatmul.mubr.msk.bf16.gmra.mxu0 %vm782_vm2, %v7644_v2 }
 0x70d   : > { %v6133_v5 = vmul.f32 %v10798_v1, %v14889_v49 }
 0x70f   : > { %6165 = vst.msk [vmem:[#allocation2 + $0x121] sm:$0xff] %vm782_vm2, %v6133_v5  ;;  %7145 = vrot.lane.b32.xlu1 %v14505_v39, %s11157_s13  ;;  %7335 = vrot.lane.b32.xlu0 %v14491_v11, %s11158_s16 }
 0x710   : > { %v10800_v62 = vpop.eup %10799 }
 0x711   : > { %v6134_v50 = vmul.f32 %v10800_v62, %v14905_v24 }
 0x713   : > { %6166 = vst.msk [vmem:[#allocation2 + $0x129] sm:$0xff] %vm782_vm2, %v6134_v50  ;;  %v10802_v17 = vpop.eup %10801  ;;  %7337 = vrot.lane.b32.xlu1 %v14514_v12, %s11158_s16  ;;  %6699 = vrot.lane.b32.xlu0 %v14489_v47, %s11158_s16 }
 0x714   : > { %v6039_v49 = vadd.f32 1.0, %v10802_v17 }
 0x716   : > { %v14984_v23 = vld [vmem:[#allocation2 + $0x120] sm:$0xff]  ;;  %10805 = vrcp.f32 %v6039_v49 }
 0x717   : > { %v14986_v31 = vld [vmem:[#allocation2 + $0x121] sm:$0xff]  ;;  %6231 = vst.msk [vmem:[#allocation3 + $0x240] sm:$0xff] %vm782_vm2, %v14984_v23  ;;  %v10804_v24 = vpop.eup %10803  ;;  %6957 = vrot.lane.b32.xlu1 %v14503_v59, %s11156_s12  ;;  %6319 = vrot.lane.b32.xlu0 %v14491_v11, %s11156_s12 }
 0x718   : > { %6869 = vst.msk [vmem:[#allocation3 + $0x218] sm:$0xff] %vm782_vm2, %v14986_v31  ;;  %v6040_v47 = vadd.f32 1.0, %v10804_v24 }
 0x719   : > { %v5844_v19 = vpop.permute.xlu0 %5843 }
 0x71a   : > { %v7475_v61 = vld [vmem:[#allocation2 + $0x122] sm:$0xff]  ;;  %v7476_v45 = vld [vmem:[#allocation2 + $0x12a] sm:$0xff]  ;;  %10807 = vrcp.f32 %v6040_v47  ;;  %v14999_v9 = vadd.f32 %v5844_v19, %v14696_v8 }
 0x71b   : > { %v14996_v27 = vld [vmem:[#allocation2 + $0x128] sm:$0xff]  ;;  %7507 = vst.msk [vmem:[#allocation3 + $0x1f0] sm:$0xff] %vm782_vm2, %v7475_v61  ;;  %7508 = vst.msk [vmem:[#allocation3 + $0x208] sm:$0xff] %vm782_vm2, %v7476_v45  ;;  %6701 = vrot.lane.b32.xlu1 %v14505_v39, %s11158_s16  ;;  %6955 = vrot.lane.b32.xlu0 %v14501_v55, %s11156_s12 }
 0x71c   : > { %v15003_v41 = vld [vmem:[#allocation2 + $0x129] sm:$0xff]  ;;  %6232 = vst.msk [vmem:[#allocation3 + $0x258] sm:$0xff] %vm782_vm2, %v14996_v27  ;;  %v9363_v11 = vmul.f32 -1.442695, %v14999_v9 }
 0x71d   : > { %6870 = vst.msk [vmem:[#allocation3 + $0x230] sm:$0xff] %vm782_vm2, %v15003_v41  ;;  %v5846_v8 = vpop.permute.xlu1 %5845 }
 0x71e   : > { %10809 = vpow2.f32 %v9363_v11  ;;  %v15015_v44 = vadd.f32 %v5846_v8, %v14709_v18 }
 0x71f   : > { %6321 = vrot.lane.b32.xlu1 %v14514_v12, %s11156_s12  ;;  %6511 = vrot.lane.b32.xlu0 %v14501_v55, %s11157_s13 }
 0x720   : > { %v9364_v39 = vmul.f32 -1.442695, %v15015_v44 }
 0x722   : > { %v7581_v4 = vld [vmem:[#allocation3 + $0x1f0] sm:$0xff]  ;;  %v7584_v36 = vld [vmem:[#allocation3 + $0x208] sm:$0xff]  ;;  %10811 = vpow2.f32 %v9364_v39  ;;  %v16390_v39 = vld [vmem:[#allocation54_spill] sm:$0xff] }
 0x723   : > { %v7647_v13 = vpack.c.bf16 %v7584_v36, %v7581_v4  ;;  %v10806_v40 = vpop.eup %10805  ;;  %6513 = vrot.lane.b32.xlu1 %v14503_v59, %s11157_s13  ;;  %7147 = vrot.lane.b32.xlu0 %v14549_v29, %s11157_s13 }
 0x724   : > { %v6135_v18 = vmul.f32 %v10806_v40, %v14944_v56 }
 0x725   : > { %10049 = vmatprep.mubr.msk.bf16.mxu0 %vm782_vm2, %v7647_v13 }
 0x726   : > { %6167 = vst.msk [vmem:[#allocation2 + $0x139] sm:$0xff] %vm782_vm2, %v6135_v18  ;;  %v16392_v18 = vld [vmem:[#allocation55_spill] sm:$0xff] }
 0x727   : > { %v10808_v55 = vpop.eup %10807  ;;  %7149 = vrot.lane.b32.xlu1 %v14564_v33, %s11157_s13  ;;  %7339 = vrot.lane.b32.xlu0 %v14551_v15, %s11158_s16 }
 0x728   : > { %v6136_v12 = vmul.f32 %v10808_v55, %v14960_v25 }
 0x72a   : > { %6168 = vst.msk [vmem:[#allocation2 + $0x141] sm:$0xff] %vm782_vm2, %v6136_v12 }
 0x72b   : > { %v10810_v59 = vpop.eup %10809  ;;  %7341 = vrot.lane.b32.xlu1 %v14573_v60, %s11158_s16  ;;  %6703 = vrot.lane.b32.xlu0 %v14549_v29, %s11158_s16 }
 0x72c   : > { %v6041_v56 = vadd.f32 1.0, %v10810_v59 }
 0x72d   : > { %v15039_v51 = vld [vmem:[#allocation2 + $0x138] sm:$0xff] }
 0x72e   : > { %v15041_v28 = vld [vmem:[#allocation2 + $0x139] sm:$0xff]  ;;  %10813 = vrcp.f32 %v6041_v56  ;;  %6233 = vst.msk [vmem:[#allocation3 + $0x270] sm:$0xff] %vm782_vm2, %v15039_v51 }
 0x72f   : > { %6871 = vst.msk [vmem:[#allocation3 + $0x248] sm:$0xff] %vm782_vm2, %v15041_v28  ;;  %v10812_v25 = vpop.eup %10811  ;;  %6961 = vrot.lane.b32.xlu1 %v14562_v48, %s11156_s12  ;;  %6323 = vrot.lane.b32.xlu0 %v14551_v15, %s11156_s12 }
 0x730   : > { %v6042_v29 = vadd.f32 1.0, %v10812_v25 }
 0x731   : > { %v5848_v2 = vpop.permute.xlu0 %5847  ;;  %v7477_v1 = vld [vmem:[#allocation2 + $0x13a] sm:$0xff]  ;;  %v7478_v5 = vld [vmem:[#allocation2 + $0x142] sm:$0xff] }
 0x732   : > { %v15051_v62 = vld [vmem:[#allocation2 + $0x140] sm:$0xff]  ;;  %10815 = vrcp.f32 %v6042_v29  ;;  %v15054_v50 = vadd.f32 %v5848_v2, %v14745_v54  ;;  %7509 = vst.msk [vmem:[#allocation3 + $0x220] sm:$0xff] %vm782_vm2, %v7477_v1  ;;  %7510 = vst.msk [vmem:[#allocation3 + $0x238] sm:$0xff] %vm782_vm2, %v7478_v5 }
 0x733   : > { %v15058_v17 = vld [vmem:[#allocation2 + $0x141] sm:$0xff]  ;;  %6234 = vst.msk [vmem:[#allocation3 + $0x288] sm:$0xff] %vm782_vm2, %v15051_v62  ;;  %6705 = vrot.lane.b32.xlu1 %v14564_v33, %s11158_s16  ;;  %6959 = vrot.lane.b32.xlu0 %v14560_v58, %s11156_s12 }
 0x734   : > { %6872 = vst.msk [vmem:[#allocation3 + $0x260] sm:$0xff] %vm782_vm2, %v15058_v17  ;;  %v9365_v15 = vmul.f32 -1.442695, %v15054_v50 }
 0x735   : > { %v5850_v54 = vpop.permute.xlu1 %5849 }
 0x736   : > { %10817 = vpow2.f32 %v9365_v15  ;;  %v15070_v49 = vadd.f32 %v5850_v54, %v14754_v3 }
 0x737   : > { %6325 = vrot.lane.b32.xlu1 %v14573_v60, %s11156_s12  ;;  %6515 = vrot.lane.b32.xlu0 %v14560_v58, %s11157_s13 }
 0x738   : > { %v9366_v33 = vmul.f32 -1.442695, %v15070_v49 }
 0x739   : > { %v5852_v24 = vpop.permute.xlu0 %5851  ;;  %v7587_v47 = vld [vmem:[#allocation3 + $0x220] sm:$0xff]  ;;  %v7590_v19 = vld [vmem:[#allocation3 + $0x238] sm:$0xff] }
 0x73a   : > { %10819 = vpow2.f32 %v9366_v33  ;;  %v15078_v61 = vadd.f32 %v5852_v24, %v14767_v14  ;;  %v7650_v45 = vpack.c.bf16 %v7590_v19, %v7587_v47  ;;  %v16394_v47 = vld [vmem:[#allocation49_spill] sm:$0xff] }
 0x73b   : > { %v10814_v11 = vpop.eup %10813  ;;  %6517 = vrot.lane.b32.xlu1 %v14562_v48, %s11157_s13  ;;  %7151 = vrot.lane.b32.xlu0 %v14605_v21, %s11157_s13 }
 0x73c   : > { %v6137_v60 = vmul.f32 %v10814_v11, %v14999_v9  ;;  %v9367_v58 = vmul.f32 -1.442695, %v15078_v61  ;;  %10050 = vmatmul.mubr.msk.bf16.gmra.mxu0 %vm782_vm2, %v7650_v45  ;;  %v16391_v9 = vld [vmem:[#allocation50_spill] sm:$0xff] }
 0x73d   : > { %v5854_v3 = vpop.permute.xlu1 %5853  ;;  %v6688_v8 = vpop.permute.xlu0 %6687 }
 0x73e   : > { %6169 = vst.msk [vmem:[#allocation2 + $0x151] sm:$0xff] %vm782_vm2, %v6137_v60  ;;  %10821 = vpow2.f32 %v9367_v58  ;;  %v15089_v14 = vadd.f32 %v5854_v3, %v14780_v16 }
 0x73f   : > { %6783 = vst.msk [vmem:[#allocation3] sm:$0xff] %vm1481_vm6, %v6688_v8  ;;  %v10816_v48 = vpop.eup %10815  ;;  %7153 = vrot.lane.b32.xlu1 %v16390_v39, %s11157_s13  ;;  %7343 = vrot.lane.b32.xlu0 %v16391_v9, %s11158_s16 }
 0x740   : > { %v6138_v4 = vmul.f32 %v10816_v48, %v15015_v44  ;;  %v9368_v36 = vmul.f32 -1.442695, %v15089_v14 }
 0x741   : > { %v6946_v13 = vpop.permute.xlu1 %6945  ;;  %v6308_v40 = vpop.permute.xlu0 %6307 }
 0x742   : > { %6170 = vst.msk [vmem:[#allocation2 + $0x159] sm:$0xff] %vm782_vm2, %v6138_v4  ;;  %10823 = vpow2.f32 %v9368_v36  ;;  %v16395_v36 = vld [vmem:[#allocation53_spill] sm:$0xff] }
 0x743   : > { %7040 = vst.msk [vmem:[#allocation3 + $0x20] sm:$0xff] %vm1095_vm4, %v6946_v13  ;;  %6401 = vst.msk [vmem:[#allocation3 + $0x30] sm:$0xff] %vm1095_vm4, %v6308_v40  ;;  %v10818_v16 = vpop.eup %10817  ;;  %7345 = vrot.lane.b32.xlu1 %v16392_v18, %s11158_s16  ;;  %6707 = vrot.lane.b32.xlu0 %v14605_v21, %s11158_s16  ;;  %v16393_v21 = vld [vmem:[#allocation51_spill] sm:$0xff] }
 0x744   : > { %v6043_v55 = vadd.f32 1.0, %v10818_v16 }
 0x745   : > { %v6690_v44 = vpop.permute.xlu1 %6689  ;;  %v6944_v12 = vpop.permute.xlu0 %6943  ;;  %v15105_v59 = vld [vmem:[#allocation2 + $0x150] sm:$0xff] }
 0x746   : > { %v15107_v56 = vld [vmem:[#allocation2 + $0x151] sm:$0xff]  ;;  %10825 = vrcp.f32 %v6043_v55  ;;  %6784 = vst.msk [vmem:[#allocation3 + $0x18] sm:$0xff] %vm1481_vm6, %v6690_v44 }
 0x747   : > { %7039 = vst.msk [vmem:[#allocation3 + $0x8] sm:$0xff] %vm1095_vm4, %v6944_v12  ;;  %v10820_v25 = vpop.eup %10819  ;;  %6965 = vrot.lane.b32.xlu1 %v16393_v21, %s11156_s12  ;;  %6327 = vrot.lane.b32.xlu0 %v16391_v9, %s11156_s12  ;;  %v16396_v55 = vld [vmem:[#allocation52_spill] sm:$0xff] }
 0x748   : > { %6235 = vst.msk [vmem:[#allocation3 + $0x2a0] sm:$0xff] %vm782_vm2, %v15105_v59  ;;  %6873 = vst.msk [vmem:[#allocation3 + $0x278] sm:$0xff] %vm782_vm2, %v15107_v56  ;;  %v6044_v29 = vadd.f32 1.0, %v10820_v25 }
 0x749   : > { %v6310_v2 = vpop.permute.xlu1 %6309  ;;  %v6500_v1 = vpop.permute.xlu0 %6499  ;;  %v7479_v5 = vld [vmem:[#allocation2 + $0x152] sm:$0xff]  ;;  %v7480_v15 = vld [vmem:[#allocation2 + $0x15a] sm:$0xff] }
 0x74a   : > { %v15119_v54 = vld [vmem:[#allocation2 + $0x158] sm:$0xff]  ;;  %10827 = vrcp.f32 %v6044_v29  ;;  %6402 = vst.msk [vmem:[#allocation3 + $0x48] sm:$0xff] %vm1095_vm4, %v6310_v2 }
 0x74b   : > { %6593 = vst.msk [vmem:[#allocation3 + $0x30] sm:$0xff] %vm1288_vm5, %v6500_v1  ;;  %v15125_v33 = vld [vmem:[#allocation2 + $0x159] sm:$0xff]  ;;  %v10822_v24 = vpop.eup %10821  ;;  %6709 = vrot.lane.b32.xlu1 %v16390_v39, %s11158_s16  ;;  %6963 = vrot.lane.b32.xlu0 %v16394_v47, %s11156_s12 }
 0x74c   : > { %7511 = vst.msk [vmem:[#allocation3 + $0x250] sm:$0xff] %vm782_vm2, %v7479_v5  ;;  %7512 = vst.msk [vmem:[#allocation3 + $0x268] sm:$0xff] %vm782_vm2, %v7480_v15  ;;  %v6045_v19 = vadd.f32 1.0, %v10822_v24 }
 0x74d   : > { %6236 = vst.msk [vmem:[#allocation3 + $0x2b8] sm:$0xff] %vm782_vm2, %v15119_v54  ;;  %6874 = vst.msk [vmem:[#allocation3 + $0x290] sm:$0xff] %vm782_vm2, %v15125_v33  ;;  %v6502_v45 = vpop.permute.xlu1 %6501  ;;  %v7136_v11 = vpop.permute.xlu0 %7135  ;;  %v7522_v29 = vld [vmem:[#allocation3 + $0x18] sm:$0xff] }
 0x74e   : > { %10829 = vrcp.f32 %v6045_v19  ;;  %6594 = vst.msk [vmem:[#allocation3 + $0x48] sm:$0xff] %vm1288_vm5, %v6502_v45  ;;  %7231 = vst.msk [vmem:[#allocation3 + $0x8] sm:$0xff] %vm1288_vm5, %v7136_v11 }
 0x74f   : > { %v10824_v60 = vpop.eup %10823  ;;  %6329 = vrot.lane.b32.xlu1 %v16392_v18, %s11156_s12  ;;  %6519 = vrot.lane.b32.xlu0 %v16394_v47, %s11157_s13  ;;  %v7519_v47 = vld [vmem:[#allocation3] sm:$0xff] }
 0x750   : > { %v6046_v58 = vadd.f32 1.0, %v10824_v60  ;;  %v7615_v45 = vpack.c.bf16 %v7522_v29, %v7519_v47 }
 0x751   : > { %v7138_v3 = vpop.permute.xlu1 %7137  ;;  %v7328_v8 = vpop.permute.xlu0 %7327 }
 0x752   : > { %10831 = vrcp.f32 %v6046_v58  ;;  %7232 = vst.msk [vmem:[#allocation3 + $0x20] sm:$0xff] %vm1288_vm5, %v7138_v3 }
 0x753   : > { %v7593_v48 = vld [vmem:[#allocation3 + $0x250] sm:$0xff]  ;;  %v7596_v39 = vld [vmem:[#allocation3 + $0x268] sm:$0xff]  ;;  %7423 = vst.msk [vmem:[#allocation3 + $0x8] sm:$0xff] %vm1481_vm6, %v7328_v8  ;;  %v10826_v4 = vpop.eup %10825  ;;  %6521 = vrot.lane.b32.xlu1 %v16393_v21, %s11157_s13  ;;  %7155 = vrot.lane.b32.xlu0 %v16395_v36, %s11157_s13 }
 0x754   : > { %v7653_v9 = vpack.c.bf16 %v7596_v39, %v7593_v48  ;;  %v6139_v13 = vmul.f32 %v10826_v4, %v15054_v50  ;;  %v16397_v39 = vld [vmem:[#allocation42_spill] sm:$0xff] }
 0x755   : > { %v7330_v40 = vpop.permute.xlu1 %7329  ;;  %v6692_v16 = vpop.permute.xlu0 %6691 }
 0x756   : > { %10053 = vmatprep.mubr.msk.bf16.mxu0 %vm782_vm2, %v7653_v9  ;;  %6171 = vst.msk [vmem:[#allocation2 + $0x169] sm:$0xff] %vm782_vm2, %v6139_v13 }
 0x757   : > { %7424 = vst.msk [vmem:[#allocation3 + $0x20] sm:$0xff] %vm1481_vm6, %v7330_v40  ;;  %6785 = vst.msk [vmem:[#allocation3 + $0x30] sm:$0xff] %vm1481_vm6, %v6692_v16  ;;  %v10828_v18 = vpop.eup %10827  ;;  %7157 = vrot.lane.b32.xlu1 %v14677_v7, %s11157_s13  ;;  %7347 = vrot.lane.b32.xlu0 %v16396_v55, %s11158_s16 }
 0x758   : > { %v6140_v44 = vmul.f32 %v10828_v18, %v15070_v49 }
 0x759   : > { %v6950_v50 = vpop.permute.xlu1 %6949  ;;  %v6312_v12 = vpop.permute.xlu0 %6311 }
 0x75a   : > { %6172 = vst.msk [vmem:[#allocation2 + $0x171] sm:$0xff] %vm782_vm2, %v6140_v44  ;;  %v7520_v1 = vld [vmem:[#allocation3 + $0x8] sm:$0xff] }
 0x75b   : > { %7042 = vst.msk [vmem:[#allocation3 + $0x50] sm:$0xff] %vm1095_vm4, %v6950_v50  ;;  %6403 = vst.msk [vmem:[#allocation3 + $0x60] sm:$0xff] %vm1095_vm4, %v6312_v12  ;;  %v10830_v25 = vpop.eup %10829  ;;  %7349 = vrot.lane.b32.xlu1 %v14686_v46, %s11158_s16  ;;  %6711 = vrot.lane.b32.xlu0 %v16395_v36, %s11158_s16 }
 0x75c   : > { %v6141_v21 = vmul.f32 %v10830_v25, %v15078_v61 }
 0x75d   : > { %v6694_v2 = vpop.permute.xlu1 %6693  ;;  %v6948_v49 = vpop.permute.xlu0 %6947  ;;  %v15165_v15 = vld [vmem:[#allocation2 + $0x168] sm:$0xff] }
 0x75e   : > { %v7523_v5 = vld [vmem:[#allocation3 + $0x20] sm:$0xff]  ;;  %6173 = vst.msk [vmem:[#allocation2 + $0x181] sm:$0xff] %vm782_vm2, %v6141_v21  ;;  %6237 = vst.msk [vmem:[#allocation3 + $0x2d0] sm:$0xff] %vm782_vm2, %v15165_v15 }
 0x75f   : > { %6786 = vst.msk [vmem:[#allocation3 + $0x48] sm:$0xff] %vm1481_vm6, %v6694_v2  ;;  %v7616_v24 = vpack.c.bf16 %v7523_v5, %v7520_v1  ;;  %v15170_v19 = vld [vmem:[#allocation2 + $0x169] sm:$0xff]  ;;  %v10832_v61 = vpop.eup %10831  ;;  %6969 = vrot.lane.b32.xlu1 %v14675_v30, %s11156_s12  ;;  %6331 = vrot.lane.b32.xlu0 %v16396_v55, %s11156_s12 }
 0x760   : > { %7041 = vst.msk [vmem:[#allocation3 + $0x38] sm:$0xff] %vm1095_vm4, %v6948_v49  ;;  %v6142_v11 = vmul.f32 %v10832_v61, %v15089_v14 }
 0x761   : > { %6875 = vst.msk [vmem:[#allocation3 + $0x2a8] sm:$0xff] %vm782_vm2, %v15170_v19  ;;  %7896 = vmatprep.mubr.bf16.mxu1 %v7616_v24  ;;  %v6314_v60 = vpop.permute.xlu1 %6313  ;;  %v6504_v58 = vpop.permute.xlu0 %6503  ;;  %v7481_v3 = vld [vmem:[#allocation2 + $0x16a] sm:$0xff]  ;;  %v15181_v8 = vld [vmem:[#allocation2 + $0x172] sm:$0xff] }
 0x762   : > { %7897 = vmatmul.mubr.bf16.vlgmr.msra.gmra.mxu1 %v7615_v45  ;;  %v15183_v48 = vld [vmem:[#allocation2 + $0x170] sm:$0xff]  ;;  %6174 = vst.msk [vmem:[#allocation2 + $0x189] sm:$0xff] %vm782_vm2, %v6142_v11  ;;  %7513 = vst.msk [vmem:[#allocation3 + $0x280] sm:$0xff] %vm782_vm2, %v7481_v3  ;;  %v7525_v45 = vld [vmem:[#allocation3 + $0x30] sm:$0xff] }
 0x763   : > { %6404 = vst.msk [vmem:[#allocation3 + $0x78] sm:$0xff] %vm1095_vm4, %v6314_v60  ;;  %v15191_v14 = vld [vmem:[#allocation2 + $0x171] sm:$0xff]  ;;  %6713 = vrot.lane.b32.xlu1 %v14677_v7, %s11158_s16  ;;  %6967 = vrot.lane.b32.xlu0 %v16397_v39, %s11156_s12 }
 0x764   : > { %6595 = vst.msk [vmem:[#allocation3 + $0x60] sm:$0xff] %vm1288_vm5, %v6504_v58  ;;  %v6893_v58 = vld [vmem:[#allocation2 + $0xc2] sm:$0xff] }
 0x765   : > { %7514 = vst.msk [vmem:[#allocation3 + $0x298] sm:$0xff] %vm782_vm2, %v15181_v8  ;;  %6238 = vst.msk [vmem:[#allocation3 + $0x2e8] sm:$0xff] %vm782_vm2, %v15183_v48  ;;  %v6506_v9 = vpop.permute.xlu1 %6505  ;;  %v7140_v4 = vpop.permute.xlu0 %7139  ;;  %v15201_v36 = vld [vmem:[#allocation2 + $0x181] sm:$0xff] }
 0x766   : > { %6876 = vst.msk [vmem:[#allocation3 + $0x2c0] sm:$0xff] %vm782_vm2, %v15191_v14  ;;  %6877 = vst.msk [vmem:[#allocation3 + $0x2d8] sm:$0xff] %vm782_vm2, %v15201_v36  ;;  %v7528_v49 = vld [vmem:[#allocation3 + $0x48] sm:$0xff] }
 0x767   : > { %6596 = vst.msk [vmem:[#allocation3 + $0x78] sm:$0xff] %vm1288_vm5, %v6506_v9  ;;  %7233 = vst.msk [vmem:[#allocation3 + $0x38] sm:$0xff] %vm1288_vm5, %v7140_v4  ;;  %6333 = vrot.lane.b32.xlu1 %v14686_v46, %s11156_s12  ;;  %6523 = vrot.lane.b32.xlu0 %v16397_v39, %s11157_s13 }
 0x769   : > { %v7142_v7 = vpop.permute.xlu1 %7141  ;;  %v7332_v13 = vpop.permute.xlu0 %7331  ;;  %v7599_v40 = vld [vmem:[#allocation3 + $0x280] sm:$0xff]  ;;  %v7483_v18 = vld [vmem:[#allocation2 + $0x182] sm:$0xff] }
 0x76a   : > { %7234 = vst.msk [vmem:[#allocation3 + $0x50] sm:$0xff] %vm1288_vm5, %v7142_v7  ;;  %v7484_v44 = vld [vmem:[#allocation2 + $0x18a] sm:$0xff] }
 0x76b   : > { %7425 = vst.msk [vmem:[#allocation3 + $0x38] sm:$0xff] %vm1481_vm6, %v7332_v13  ;;  %v15214_v50 = vld [vmem:[#allocation2 + $0x189] sm:$0xff]  ;;  %6525 = vrot.lane.b32.xlu1 %v14675_v30, %s11157_s13  ;;  %7159 = vrot.lane.b32.xlu0 %v14719_v10, %s11157_s13 }
 0x76c   : > { %v7602_v16 = vld [vmem:[#allocation3 + $0x298] sm:$0xff]  ;;  %7515 = vst.msk [vmem:[#allocation3 + $0x2b0] sm:$0xff] %vm782_vm2, %v7483_v18  ;;  %7516 = vst.msk [vmem:[#allocation3 + $0x2c8] sm:$0xff] %vm782_vm2, %v7484_v44 }
 0x76d   : > { %v7656_v55 = vpack.c.bf16 %v7602_v16, %v7599_v40  ;;  %6878 = vst.msk [vmem:[#allocation3 + $0x2f0] sm:$0xff] %vm782_vm2, %v15214_v50  ;;  %v7334_v46 = vpop.permute.xlu1 %7333  ;;  %v6696_v12 = vpop.permute.xlu0 %6695  ;;  %v6896_v44 = vld [vmem:[#allocation2 + $0xe2] sm:$0xff] }
 0x76e   : > { %7426 = vst.msk [vmem:[#allocation3 + $0x50] sm:$0xff] %vm1481_vm6, %v7334_v46  ;;  %6787 = vst.msk [vmem:[#allocation3 + $0x60] sm:$0xff] %vm1481_vm6, %v6696_v12 }
 0x76f   : > { %10054 = vmatmul.mubr.msk.bf16.gmra.mxu0 %vm782_vm2, %v7656_v55  ;;  %7161 = vrot.lane.b32.xlu1 %v14729_v20, %s11157_s13 }
 0x770   : > { %7351 = vrot.lane.b32.xlu0 %v14721_v43, %s11158_s16 }
 0x771   : > { %v6954_v30 = vpop.permute.xlu1 %6953  ;;  %v6316_v25 = vpop.permute.xlu0 %6315 }
 0x772   : > { %7044 = vst.msk [vmem:[#allocation3 + $0x80] sm:$0xff] %vm1095_vm4, %v6954_v30  ;;  %6405 = vst.msk [vmem:[#allocation3 + $0x90] sm:$0xff] %vm1095_vm4, %v6316_v25  ;;  %v7526_v24 = vld [vmem:[#allocation3 + $0x38] sm:$0xff] }
 0x773   : > { %v7605_v21 = vld [vmem:[#allocation3 + $0x2b0] sm:$0xff]  ;;  %v7608_v29 = vld [vmem:[#allocation3 + $0x2c8] sm:$0xff]  ;;  %7353 = vrot.lane.b32.xlu1 %v14737_v38, %s11158_s16 }
 0x774   : > { %6715 = vrot.lane.b32.xlu0 %v14719_v10, %s11158_s16  ;;  %v7659_v2 = vpack.c.bf16 %v7608_v29, %v7605_v21  ;;  %v7618_v10 = vpack.c.bf16 %v7528_v49, %v7525_v45  ;;  %v6895_v21 = vld [vmem:[#allocation2 + $0xda] sm:$0xff] }
 0x775   : > { %v6698_v1 = vpop.permute.xlu1 %6697  ;;  %v6952_v5 = vpop.permute.xlu0 %6951  ;;  %v7529_v47 = vld [vmem:[#allocation3 + $0x50] sm:$0xff]  ;;  %v7531_v12 = vld [vmem:[#allocation3 + $0x60] sm:$0xff] }
 0x776   : > { %10057 = vmatprep.mubr.msk.bf16.mxu0 %vm782_vm2, %v7659_v2  ;;  %6788 = vst.msk [vmem:[#allocation3 + $0x78] sm:$0xff] %vm1481_vm6, %v6698_v1  ;;  %v7619_v61 = vpack.c.bf16 %v7529_v47, %v7526_v24 }
 0x777   : > { %7043 = vst.msk [vmem:[#allocation3 + $0x68] sm:$0xff] %vm1095_vm4, %v6952_v5  ;;  %6973 = vrot.lane.b32.xlu1 %v14727_v37, %s11156_s12 }
 0x778   : > { %6335 = vrot.lane.b32.xlu0 %v14721_v43, %s11156_s12  ;;  %7904 = vmatprep.mubr.bf16.mxu1 %v7619_v61 }
 0x779   : > { %v6318_v11 = vpop.permute.xlu1 %6317  ;;  %7905 = vmatmul.mubr.bf16.gmra.mxu1 %v7618_v10  ;;  %v6508_v60 = vpop.permute.xlu0 %6507 }
 0x77a   : > { %6406 = vst.msk [vmem:[#allocation3 + $0xa8] sm:$0xff] %vm1095_vm4, %v6318_v11  ;;  %v6898_v11 = vld [vmem:[#allocation2 + $0xfa] sm:$0xff] }
 0x77b   : > { %6597 = vst.msk [vmem:[#allocation3 + $0x90] sm:$0xff] %vm1288_vm5, %v6508_v60  ;;  %6717 = vrot.lane.b32.xlu1 %v14729_v20, %s11158_s16  ;;  %v6448_v20 = vld [vmem:[#allocation2 + $0xca] sm:$0xff] }
 0x77c   : > { %6971 = vrot.lane.b32.xlu0 %v6893_v58, %s11156_s12 }
 0x77d   : > { %v6510_v3 = vpop.permute.xlu1 %6509  ;;  %v7144_v37 = vpop.permute.xlu0 %7143  ;;  %v7534_v13 = vld [vmem:[#allocation3 + $0x78] sm:$0xff] }
 0x77e   : > { %6598 = vst.msk [vmem:[#allocation3 + $0xa8] sm:$0xff] %vm1288_vm5, %v6510_v3  ;;  %7235 = vst.msk [vmem:[#allocation3 + $0x68] sm:$0xff] %vm1288_vm5, %v7144_v37  ;;  %v7621_v30 = vpack.c.bf16 %v7534_v13, %v7531_v12 }
 0x77f   : > { %6337 = vrot.lane.b32.xlu1 %v14737_v38, %s11156_s12 }
 0x780   : > { %6527 = vrot.lane.b32.xlu0 %v6893_v58, %s11157_s13 }
 0x781   : > { %v7146_v43 = vpop.permute.xlu1 %7145  ;;  %v7336_v39 = vpop.permute.xlu0 %7335 }
 0x782   : > { %7236 = vst.msk [vmem:[#allocation3 + $0x80] sm:$0xff] %vm1288_vm5, %v7146_v43  ;;  %v6897_v43 = vld [vmem:[#allocation2 + $0xf2] sm:$0xff] }
 0x783   : > { %7427 = vst.msk [vmem:[#allocation3 + $0x68] sm:$0xff] %vm1481_vm6, %v7336_v39  ;;  %6529 = vrot.lane.b32.xlu1 %v6448_v20, %s11157_s13 }
 0x784   : > { %7163 = vrot.lane.b32.xlu0 %v14796_v26, %s11157_s13 }
 0x785   : > { %v7338_v9 = vpop.permute.xlu1 %7337  ;;  %v6700_v4 = vpop.permute.xlu0 %6699 }
 0x786   : > { %7428 = vst.msk [vmem:[#allocation3 + $0x80] sm:$0xff] %vm1481_vm6, %v7338_v9  ;;  %6789 = vst.msk [vmem:[#allocation3 + $0x90] sm:$0xff] %vm1481_vm6, %v6700_v4 }
 0x787   : > { %7165 = vrot.lane.b32.xlu1 %v14821_v6, %s11157_s13 }
 0x788   : > { %7355 = vrot.lane.b32.xlu0 %v14798_v34, %s11158_s16 }
 0x789   : > { %v6958_v38 = vpop.permute.xlu1 %6957  ;;  %v6320_v7 = vpop.permute.xlu0 %6319 }
 0x78a   : > { %7046 = vst.msk [vmem:[#allocation3 + $0xb0] sm:$0xff] %vm1095_vm4, %v6958_v38  ;;  %6407 = vst.msk [vmem:[#allocation3 + $0xc0] sm:$0xff] %vm1095_vm4, %v6320_v7  ;;  %v7532_v18 = vld [vmem:[#allocation3 + $0x68] sm:$0xff] }
 0x78b   : > { %7357 = vrot.lane.b32.xlu1 %v14823_v22, %s11158_s16 }
 0x78c   : > { %6719 = vrot.lane.b32.xlu0 %v14796_v26, %s11158_s16 }
 0x78d   : > { %v6702_v40 = vpop.permute.xlu1 %6701  ;;  %v6956_v16 = vpop.permute.xlu0 %6955  ;;  %v7535_v55 = vld [vmem:[#allocation3 + $0x80] sm:$0xff]  ;;  %v7537_v58 = vld [vmem:[#allocation3 + $0x90] sm:$0xff] }
 0x78e   : > { %6790 = vst.msk [vmem:[#allocation3 + $0xa8] sm:$0xff] %vm1481_vm6, %v6702_v40  ;;  %v7622_v46 = vpack.c.bf16 %v7535_v55, %v7532_v18  ;;  %v6900_v55 = vld [vmem:[#allocation2 + $0x112] sm:$0xff] }
 0x78f   : > { %7045 = vst.msk [vmem:[#allocation3 + $0x98] sm:$0xff] %vm1095_vm4, %v6956_v16  ;;  %6977 = vrot.lane.b32.xlu1 %v6896_v44, %s11156_s12 }
 0x790   : > { %6339 = vrot.lane.b32.xlu0 %v14798_v34, %s11156_s12  ;;  %7912 = vmatprep.mubr.bf16.mxu1 %v7622_v46 }
 0x791   : > { %v6322_v26 = vpop.permute.xlu1 %6321  ;;  %7913 = vmatmul.mubr.bf16.gmra.mxu1 %v7621_v30  ;;  %v6512_v25 = vpop.permute.xlu0 %6511 }
 0x792   : > { %6408 = vst.msk [vmem:[#allocation3 + $0xd8] sm:$0xff] %vm1095_vm4, %v6322_v26  ;;  %v6899_v26 = vld [vmem:[#allocation2 + $0x10a] sm:$0xff] }
 0x793   : > { %6599 = vst.msk [vmem:[#allocation3 + $0xc0] sm:$0xff] %vm1288_vm5, %v6512_v25  ;;  %6721 = vrot.lane.b32.xlu1 %v14821_v6, %s11158_s16 }
 0x794   : > { %6975 = vrot.lane.b32.xlu0 %v6895_v21, %s11156_s12 }
 0x795   : > { %v6514_v29 = vpop.permute.xlu1 %6513  ;;  %v7148_v2 = vpop.permute.xlu0 %7147  ;;  %v7540_v24 = vld [vmem:[#allocation3 + $0xa8] sm:$0xff] }
 0x796   : > { %6600 = vst.msk [vmem:[#allocation3 + $0xd8] sm:$0xff] %vm1288_vm5, %v6514_v29  ;;  %7237 = vst.msk [vmem:[#allocation3 + $0x98] sm:$0xff] %vm1288_vm5, %v7148_v2  ;;  %v7624_v3 = vpack.c.bf16 %v7540_v24, %v7537_v58  ;;  %v6902_v24 = vld [vmem:[#allocation2 + $0x12a] sm:$0xff] }
 0x797   : > { %6341 = vrot.lane.b32.xlu1 %v14823_v22, %s11156_s12 }
 0x798   : > { %6531 = vrot.lane.b32.xlu0 %v6895_v21, %s11157_s13 }
 0x799   : > { %v7150_v34 = vpop.permute.xlu1 %7149  ;;  %v7340_v49 = vpop.permute.xlu0 %7339 }
 0x79a   : > { %7238 = vst.msk [vmem:[#allocation3 + $0xb0] sm:$0xff] %vm1288_vm5, %v7150_v34 }
 0x79b   : > { %7429 = vst.msk [vmem:[#allocation3 + $0x98] sm:$0xff] %vm1481_vm6, %v7340_v49  ;;  %6533 = vrot.lane.b32.xlu1 %v6896_v44, %s11157_s13 }
 0x79c   : > { %7167 = vrot.lane.b32.xlu0 %v14874_v53, %s11157_s13 }
 0x79d   : > { %v7342_v6 = vpop.permute.xlu1 %7341  ;;  %v6704_v1 = vpop.permute.xlu0 %6703 }
 0x79e   : > { %7430 = vst.msk [vmem:[#allocation3 + $0xb0] sm:$0xff] %vm1481_vm6, %v7342_v6  ;;  %6791 = vst.msk [vmem:[#allocation3 + $0xc0] sm:$0xff] %vm1481_vm6, %v6704_v1 }
 0x79f   : > { %7169 = vrot.lane.b32.xlu1 %v14886_v63, %s11157_s13 }
 0x7a0   : > { %7359 = vrot.lane.b32.xlu0 %v14876_v35, %s11158_s16 }
 0x7a1   : > { %v6962_v22 = vpop.permute.xlu1 %6961  ;;  %v6324_v5 = vpop.permute.xlu0 %6323 }
 0x7a2   : > { %7048 = vst.msk [vmem:[#allocation3 + $0xe0] sm:$0xff] %vm1095_vm4, %v6962_v22  ;;  %6409 = vst.msk [vmem:[#allocation3 + $0xf0] sm:$0xff] %vm1095_vm4, %v6324_v5  ;;  %v7538_v45 = vld [vmem:[#allocation3 + $0x98] sm:$0xff] }
 0x7a3   : > { %7361 = vrot.lane.b32.xlu1 %v14893_v32, %s11158_s16 }
 0x7a4   : > { %6723 = vrot.lane.b32.xlu0 %v14874_v53, %s11158_s16 }
 0x7a5   : > { %v6706_v47 = vpop.permute.xlu1 %6705  ;;  %v6960_v61 = vpop.permute.xlu0 %6959  ;;  %v7541_v10 = vld [vmem:[#allocation3 + $0xb0] sm:$0xff]  ;;  %v7543_v46 = vld [vmem:[#allocation3 + $0xc0] sm:$0xff] }
 0x7a6   : > { %6792 = vst.msk [vmem:[#allocation3 + $0xd8] sm:$0xff] %vm1481_vm6, %v6706_v47  ;;  %v7625_v60 = vpack.c.bf16 %v7541_v10, %v7538_v45 }
 0x7a7   : > { %7047 = vst.msk [vmem:[#allocation3 + $0xc8] sm:$0xff] %vm1095_vm4, %v6960_v61  ;;  %6981 = vrot.lane.b32.xlu1 %v6898_v11, %s11156_s12 }
 0x7a8   : > { %6343 = vrot.lane.b32.xlu0 %v14876_v35, %s11156_s12  ;;  %7920 = vmatprep.mubr.bf16.mxu1 %v7625_v60 }
 0x7a9   : > { %v6326_v53 = vpop.permute.xlu1 %6325  ;;  %7921 = vmatmul.mubr.bf16.gmra.mxu1 %v7624_v3  ;;  %v6516_v37 = vpop.permute.xlu0 %6515 }
 0x7aa   : > { %6410 = vst.msk [vmem:[#allocation3 + $0x108] sm:$0xff] %vm1095_vm4, %v6326_v53 }
 0x7ab   : > { %6601 = vst.msk [vmem:[#allocation3 + $0xf0] sm:$0xff] %vm1288_vm5, %v6516_v37  ;;  %6725 = vrot.lane.b32.xlu1 %v14886_v63, %s11158_s16 }
 0x7ac   : > { %6979 = vrot.lane.b32.xlu0 %v6897_v43, %s11156_s12 }
 0x7ad   : > { %v6518_v39 = vpop.permute.xlu1 %6517  ;;  %v7152_v20 = vpop.permute.xlu0 %7151  ;;  %v7546_v7 = vld [vmem:[#allocation3 + $0xd8] sm:$0xff] }
 0x7ae   : > { %6602 = vst.msk [vmem:[#allocation3 + $0x108] sm:$0xff] %vm1288_vm5, %v6518_v39  ;;  %7239 = vst.msk [vmem:[#allocation3 + $0xc8] sm:$0xff] %vm1288_vm5, %v7152_v20  ;;  %v7627_v12 = vpack.c.bf16 %v7546_v7, %v7543_v46 }
 0x7af   : > { %6345 = vrot.lane.b32.xlu1 %v14893_v32, %s11156_s12 }
 0x7b0   : > { %6535 = vrot.lane.b32.xlu0 %v6897_v43, %s11157_s13 }
 0x7b1   : > { %v7154_v35 = vpop.permute.xlu1 %7153  ;;  %v7344_v9 = vpop.permute.xlu0 %7343 }
 0x7b2   : > { %7240 = vst.msk [vmem:[#allocation3 + $0xe0] sm:$0xff] %vm1288_vm5, %v7154_v35 }
 0x7b3   : > { %7431 = vst.msk [vmem:[#allocation3 + $0xc8] sm:$0xff] %vm1481_vm6, %v7344_v9  ;;  %6537 = vrot.lane.b32.xlu1 %v6898_v11, %s11157_s13  ;;  %v6901_v11 = vld [vmem:[#allocation2 + $0x122] sm:$0xff] }
 0x7b4   : > { %7171 = vrot.lane.b32.xlu0 %v14929_v42, %s11157_s13 }
 0x7b5   : > { %v7346_v63 = vpop.permute.xlu1 %7345  ;;  %v6708_v4 = vpop.permute.xlu0 %6707 }
 0x7b6   : > { %7432 = vst.msk [vmem:[#allocation3 + $0xe0] sm:$0xff] %vm1481_vm6, %v7346_v63  ;;  %6793 = vst.msk [vmem:[#allocation3 + $0xf0] sm:$0xff] %vm1481_vm6, %v6708_v4  ;;  %v6904_v63 = vld [vmem:[#allocation2 + $0x142] sm:$0xff] }
 0x7b7   : > { %7173 = vrot.lane.b32.xlu1 %v14941_v0, %s11157_s13 }
 0x7b8   : > { %7363 = vrot.lane.b32.xlu0 %v14931_v57, %s11158_s16 }
 0x7b9   : > { %v6966_v32 = vpop.permute.xlu1 %6965  ;;  %v6328_v38 = vpop.permute.xlu0 %6327 }
 0x7ba   : > { %7050 = vst.msk [vmem:[#allocation3 + $0x110] sm:$0xff] %vm1095_vm4, %v6966_v32  ;;  %6411 = vst.msk [vmem:[#allocation3 + $0x120] sm:$0xff] %vm1095_vm4, %v6328_v38  ;;  %v7544_v16 = vld [vmem:[#allocation3 + $0xc8] sm:$0xff] }
 0x7bb   : > { %7365 = vrot.lane.b32.xlu1 %v14948_v52, %s11158_s16 }
 0x7bc   : > { %6727 = vrot.lane.b32.xlu0 %v14929_v42, %s11158_s16 }
 0x7bd   : > { %v6710_v13 = vpop.permute.xlu1 %6709  ;;  %v6964_v40 = vpop.permute.xlu0 %6963  ;;  %v7547_v18 = vld [vmem:[#allocation3 + $0xe0] sm:$0xff]  ;;  %v7549_v61 = vld [vmem:[#allocation3 + $0xf0] sm:$0xff] }
 0x7be   : > { %6794 = vst.msk [vmem:[#allocation3 + $0x108] sm:$0xff] %vm1481_vm6, %v6710_v13  ;;  %v7628_v44 = vpack.c.bf16 %v7547_v18, %v7544_v16  ;;  %v6903_v13 = vld [vmem:[#allocation2 + $0x13a] sm:$0xff] }
 0x7bf   : > { %7049 = vst.msk [vmem:[#allocation3 + $0xf8] sm:$0xff] %vm1095_vm4, %v6964_v40  ;;  %6985 = vrot.lane.b32.xlu1 %v6900_v55, %s11156_s12 }
 0x7c0   : > { %6347 = vrot.lane.b32.xlu0 %v14931_v57, %s11156_s12  ;;  %7928 = vmatprep.mubr.bf16.mxu1 %v7628_v44 }
 0x7c1   : > { %v6330_v42 = vpop.permute.xlu1 %6329  ;;  %7929 = vmatmul.mubr.bf16.gmra.mxu1 %v7627_v12  ;;  %v6520_v30 = vpop.permute.xlu0 %6519 }
 0x7c2   : > { %6412 = vst.msk [vmem:[#allocation3 + $0x138] sm:$0xff] %vm1095_vm4, %v6330_v42 }
 0x7c3   : > { %6603 = vst.msk [vmem:[#allocation3 + $0x120] sm:$0xff] %vm1288_vm5, %v6520_v30  ;;  %6729 = vrot.lane.b32.xlu1 %v14941_v0, %s11158_s16 }
 0x7c4   : > { %6983 = vrot.lane.b32.xlu0 %v6899_v26, %s11156_s12 }
 0x7c5   : > { %v6522_v25 = vpop.permute.xlu1 %6521  ;;  %v7156_v21 = vpop.permute.xlu0 %7155  ;;  %v7552_v49 = vld [vmem:[#allocation3 + $0x108] sm:$0xff] }
 0x7c6   : > { %6604 = vst.msk [vmem:[#allocation3 + $0x138] sm:$0xff] %vm1288_vm5, %v6522_v25  ;;  %7241 = vst.msk [vmem:[#allocation3 + $0xf8] sm:$0xff] %vm1288_vm5, %v7156_v21  ;;  %v7630_v45 = vpack.c.bf16 %v7552_v49, %v7549_v61  ;;  %v6906_v25 = vld [vmem:[#allocation2 + $0x15a] sm:$0xff] }
 0x7c7   : > { %6349 = vrot.lane.b32.xlu1 %v14948_v52, %s11156_s12 }
 0x7c8   : > { %6539 = vrot.lane.b32.xlu0 %v6899_v26, %s11157_s13 }
 0x7c9   : > { %v7158_v57 = vpop.permute.xlu1 %7157  ;;  %v7348_v29 = vpop.permute.xlu0 %7347 }
 0x7ca   : > { %7242 = vst.msk [vmem:[#allocation3 + $0x110] sm:$0xff] %vm1288_vm5, %v7158_v57 }
 0x7cb   : > { %7433 = vst.msk [vmem:[#allocation3 + $0xf8] sm:$0xff] %vm1481_vm6, %v7348_v29  ;;  %6541 = vrot.lane.b32.xlu1 %v6900_v55, %s11157_s13 }
 0x7cc   : > { %7175 = vrot.lane.b32.xlu0 %v14984_v23, %s11157_s13 }
 0x7cd   : > { %v7350_v0 = vpop.permute.xlu1 %7349  ;;  %v6712_v2 = vpop.permute.xlu0 %6711 }
 0x7ce   : > { %7434 = vst.msk [vmem:[#allocation3 + $0x110] sm:$0xff] %vm1481_vm6, %v7350_v0  ;;  %6795 = vst.msk [vmem:[#allocation3 + $0x120] sm:$0xff] %vm1481_vm6, %v6712_v2  ;;  %v6905_v2 = vld [vmem:[#allocation2 + $0x152] sm:$0xff] }
 0x7cf   : > { %7177 = vrot.lane.b32.xlu1 %v14996_v27, %s11157_s13 }
 0x7d0   : > { %7367 = vrot.lane.b32.xlu0 %v14986_v31, %s11158_s16 }
 0x7d1   : > { %v6970_v52 = vpop.permute.xlu1 %6969  ;;  %v6332_v34 = vpop.permute.xlu0 %6331 }
 0x7d2   : > { %7052 = vst.msk [vmem:[#allocation3 + $0x140] sm:$0xff] %vm1095_vm4, %v6970_v52  ;;  %6413 = vst.msk [vmem:[#allocation3 + $0x150] sm:$0xff] %vm1095_vm4, %v6332_v34  ;;  %v7550_v22 = vld [vmem:[#allocation3 + $0xf8] sm:$0xff] }
 0x7d3   : > { %7369 = vrot.lane.b32.xlu1 %v15003_v41, %s11158_s16 }
 0x7d4   : > { %6731 = vrot.lane.b32.xlu0 %v14984_v23, %s11158_s16 }
 0x7d5   : > { %v6714_v6 = vpop.permute.xlu1 %6713  ;;  %v6968_v1 = vpop.permute.xlu0 %6967  ;;  %v7553_v5 = vld [vmem:[#allocation3 + $0x110] sm:$0xff]  ;;  %v7555_v32 = vld [vmem:[#allocation3 + $0x120] sm:$0xff] }
 0x7d6   : > { %6796 = vst.msk [vmem:[#allocation3 + $0x138] sm:$0xff] %vm1481_vm6, %v6714_v6  ;;  %v7631_v47 = vpack.c.bf16 %v7553_v5, %v7550_v22 }
 0x7d7   : > { %7051 = vst.msk [vmem:[#allocation3 + $0x128] sm:$0xff] %vm1095_vm4, %v6968_v1  ;;  %6989 = vrot.lane.b32.xlu1 %v6902_v24, %s11156_s12 }
 0x7d8   : > { %6351 = vrot.lane.b32.xlu0 %v14986_v31, %s11156_s12  ;;  %7936 = vmatprep.mubr.bf16.mxu1 %v7631_v47 }
 0x7d9   : > { %v6334_v23 = vpop.permute.xlu1 %6333  ;;  %7937 = vmatmul.mubr.bf16.gmra.mxu1 %v7630_v45  ;;  %v6524_v10 = vpop.permute.xlu0 %6523 }
 0x7da   : > { %6414 = vst.msk [vmem:[#allocation3 + $0x168] sm:$0xff] %vm1095_vm4, %v6334_v23 }
 0x7db   : > { %6605 = vst.msk [vmem:[#allocation3 + $0x150] sm:$0xff] %vm1288_vm5, %v6524_v10  ;;  %6733 = vrot.lane.b32.xlu1 %v14996_v27, %s11158_s16 }
 0x7dc   : > { %6987 = vrot.lane.b32.xlu0 %v6901_v11, %s11156_s12 }
 0x7dd   : > { %v6526_v60 = vpop.permute.xlu1 %6525  ;;  %v7160_v58 = vpop.permute.xlu0 %7159  ;;  %v7558_v43 = vld [vmem:[#allocation3 + $0x138] sm:$0xff] }
 0x7de   : > { %6606 = vst.msk [vmem:[#allocation3 + $0x168] sm:$0xff] %vm1288_vm5, %v6526_v60  ;;  %7243 = vst.msk [vmem:[#allocation3 + $0x128] sm:$0xff] %vm1288_vm5, %v7160_v58  ;;  %v7633_v38 = vpack.c.bf16 %v7558_v43, %v7555_v32  ;;  %v6907_v58 = vld [vmem:[#allocation2 + $0x16a] sm:$0xff] }
 0x7df   : > { %6353 = vrot.lane.b32.xlu1 %v15003_v41, %s11156_s12 }
 0x7e0   : > { %6543 = vrot.lane.b32.xlu0 %v6901_v11, %s11157_s13 }
 0x7e1   : > { %v7162_v31 = vpop.permute.xlu1 %7161 }
 0x7e2   : > { %v7352_v3 = vpop.permute.xlu0 %7351  ;;  %7244 = vst.msk [vmem:[#allocation3 + $0x140] sm:$0xff] %vm1288_vm5, %v7162_v31 }
 0x7e3   : > { %7435 = vst.msk [vmem:[#allocation3 + $0x128] sm:$0xff] %vm1481_vm6, %v7352_v3  ;;  %6545 = vrot.lane.b32.xlu1 %v6902_v24, %s11157_s13 }
 0x7e4   : > { %7179 = vrot.lane.b32.xlu0 %v15039_v51, %s11157_s13 }
 0x7e5   : > { %v7354_v27 = vpop.permute.xlu1 %7353 }
 0x7e6   : > { %v6716_v53 = vpop.permute.xlu0 %6715  ;;  %7436 = vst.msk [vmem:[#allocation3 + $0x140] sm:$0xff] %vm1481_vm6, %v7354_v27 }
 0x7e7   : > { %6797 = vst.msk [vmem:[#allocation3 + $0x150] sm:$0xff] %vm1481_vm6, %v6716_v53  ;;  %7181 = vrot.lane.b32.xlu1 %v15051_v62, %s11157_s13  ;;  %v15478_v53 = vld [vmem:[%s16252_s4 + $0x2] ss:$0 sm:$0xff] }
 0x7e8   : > { %7371 = vrot.lane.b32.xlu0 %v15041_v28, %s11158_s16 }
 0x7e9   : > { %v6974_v41 = vpop.permute.xlu1 %6973 }
 0x7ea   : > { %v6336_v37 = vpop.permute.xlu0 %6335  ;;  %7054 = vst.msk [vmem:[#allocation3 + $0x170] sm:$0xff] %vm1095_vm4, %v6974_v41  ;;  %v7556_v35 = vld [vmem:[#allocation3 + $0x128] sm:$0xff] }
 0x7eb   : > { %6415 = vst.msk [vmem:[#allocation3 + $0x180] sm:$0xff] %vm1095_vm4, %v6336_v37  ;;  %7373 = vrot.lane.b32.xlu1 %v15058_v17, %s11158_s16 }
 0x7ec   : > { %6735 = vrot.lane.b32.xlu0 %v15039_v51, %s11158_s16 }
 0x7ed   : > { %v6718_v39 = vpop.permute.xlu1 %6717  ;;  %v7559_v9 = vld [vmem:[#allocation3 + $0x140] sm:$0xff] }
 0x7ee   : > { %v6972_v20 = vpop.permute.xlu0 %6971  ;;  %6798 = vst.msk [vmem:[#allocation3 + $0x168] sm:$0xff] %vm1481_vm6, %v6718_v39  ;;  %v7634_v4 = vpack.c.bf16 %v7559_v9, %v7556_v35  ;;  %v7561_v57 = vld [vmem:[#allocation3 + $0x150] sm:$0xff]  ;;  %v6462_v9 = vld [vmem:[#allocation2 + $0x172] sm:$0xff] }
 0x7ef   : > { %7053 = vst.msk [vmem:[#allocation3 + $0x158] sm:$0xff] %vm1095_vm4, %v6972_v20  ;;  %6993 = vrot.lane.b32.xlu1 %v6904_v63, %s11156_s12 }
 0x7f0   : > { %6355 = vrot.lane.b32.xlu0 %v15041_v28, %s11156_s12  ;;  %7944 = vmatprep.mubr.bf16.mxu1 %v7634_v4 }
 0x7f1   : > { %v6338_v51 = vpop.permute.xlu1 %6337  ;;  %7945 = vmatmul.mubr.bf16.gmra.mxu1 %v7633_v38 }
 0x7f2   : > { %v6528_v7 = vpop.permute.xlu0 %6527  ;;  %6416 = vst.msk [vmem:[#allocation3 + $0x198] sm:$0xff] %vm1095_vm4, %v6338_v51 }
 0x7f3   : > { %6607 = vst.msk [vmem:[#allocation3 + $0x180] sm:$0xff] %vm1288_vm5, %v6528_v7  ;;  %6737 = vrot.lane.b32.xlu1 %v15051_v62, %s11158_s16  ;;  %v7100_v7 = vld [vmem:[#allocation2 + $0x188] sm:$0xff] }
 0x7f4   : > { %6991 = vrot.lane.b32.xlu0 %v6903_v13, %s11156_s12 }
 0x7f5   : > { %v6530_v40 = vpop.permute.xlu1 %6529  ;;  %v7564_v46 = vld [vmem:[#allocation3 + $0x168] sm:$0xff] }
 0x7f6   : > { %v7164_v16 = vpop.permute.xlu0 %7163  ;;  %6608 = vst.msk [vmem:[#allocation3 + $0x198] sm:$0xff] %vm1288_vm5, %v6530_v40  ;;  %v7636_v29 = vpack.c.bf16 %v7564_v46, %v7561_v57  ;;  %v7293_v40 = vld [vmem:[#allocation2 + $0x199] sm:$0xff] }
 0x7f7   : > { %7245 = vst.msk [vmem:[#allocation3 + $0x158] sm:$0xff] %vm1288_vm5, %v7164_v16  ;;  %6357 = vrot.lane.b32.xlu1 %v15058_v17, %s11156_s12 }
 0x7f8   : > { %6547 = vrot.lane.b32.xlu0 %v6903_v13, %s11157_s13 }
 0x7f9   : > { %v7166_v28 = vpop.permute.xlu1 %7165 }
 0x7fa   : > { %v7356_v18 = vpop.permute.xlu0 %7355  ;;  %7246 = vst.msk [vmem:[#allocation3 + $0x170] sm:$0xff] %vm1288_vm5, %v7166_v28 }
 0x7fb   : > { %7437 = vst.msk [vmem:[#allocation3 + $0x158] sm:$0xff] %vm1481_vm6, %v7356_v18  ;;  %6549 = vrot.lane.b32.xlu1 %v6904_v63, %s11157_s13  ;;  %v7099_v63 = vld [vmem:[#allocation2 + $0x180] sm:$0xff] }
 0x7fc   : > { %7183 = vrot.lane.b32.xlu0 %v15105_v59, %s11157_s13 }
 0x7fd   : > { %v7358_v62 = vpop.permute.xlu1 %7357 }
 0x7fe   : > { %v6720_v55 = vpop.permute.xlu0 %6719  ;;  %7438 = vst.msk [vmem:[#allocation3 + $0x170] sm:$0xff] %vm1481_vm6, %v7358_v62 }
 0x7ff   : > { %6799 = vst.msk [vmem:[#allocation3 + $0x180] sm:$0xff] %vm1481_vm6, %v6720_v55  ;;  %7185 = vrot.lane.b32.xlu1 %v15119_v54, %s11157_s13  ;;  %v7294_v55 = vld [vmem:[#allocation2 + $0x1a1] sm:$0xff] }
 0x800   : > { %7375 = vrot.lane.b32.xlu0 %v15107_v56, %s11158_s16 }
 0x801   : > { %v6978_v17 = vpop.permute.xlu1 %6977 }
 0x802   : > { %v6340_v44 = vpop.permute.xlu0 %6339  ;;  %7056 = vst.msk [vmem:[#allocation3 + $0x1a0] sm:$0xff] %vm1095_vm4, %v6978_v17  ;;  %v7562_v30 = vld [vmem:[#allocation3 + $0x158] sm:$0xff] }
 0x803   : > { %6417 = vst.msk [vmem:[#allocation3 + $0x1b0] sm:$0xff] %vm1095_vm4, %v6340_v44  ;;  %7377 = vrot.lane.b32.xlu1 %v15125_v33, %s11158_s16  ;;  %v7614_v44 = vld [vmem:[#allocation3 + $0x2f8] sm:$0xff] }
 0x804   : > { %6739 = vrot.lane.b32.xlu0 %v15105_v59, %s11158_s16 }
 0x805   : > { %v6722_v12 = vpop.permute.xlu1 %6721  ;;  %v7565_v26 = vld [vmem:[#allocation3 + $0x170] sm:$0xff] }
 0x806   : > { %v6976_v42 = vpop.permute.xlu0 %6975  ;;  %6800 = vst.msk [vmem:[#allocation3 + $0x198] sm:$0xff] %vm1481_vm6, %v6722_v12  ;;  %v7637_v21 = vpack.c.bf16 %v7565_v26, %v7562_v30  ;;  %v7567_v23 = vld [vmem:[#allocation3 + $0x180] sm:$0xff] }
 0x807   : > { %7055 = vst.msk [vmem:[#allocation3 + $0x188] sm:$0xff] %vm1095_vm4, %v6976_v42  ;;  %6997 = vrot.lane.b32.xlu1 %v6906_v25, %s11156_s12 }
 0x808   : > { %6359 = vrot.lane.b32.xlu0 %v15107_v56, %s11156_s12  ;;  %7952 = vmatprep.mubr.bf16.mxu1 %v7637_v21  ;;  %v6909_v21 = vld [vmem:[#allocation2 + $0x182] sm:$0xff] }
 0x809   : > { %v6342_v59 = vpop.permute.xlu1 %6341  ;;  %7953 = vmatmul.mubr.bf16.gmra.mxu1 %v7636_v29 }
 0x80a   : > { %v6532_v0 = vpop.permute.xlu0 %6531  ;;  %6418 = vst.msk [vmem:[#allocation3 + $0x1c8] sm:$0xff] %vm1095_vm4, %v6342_v59 }
 0x80b   : > { %6609 = vst.msk [vmem:[#allocation3 + $0x1b0] sm:$0xff] %vm1288_vm5, %v6532_v0  ;;  %6741 = vrot.lane.b32.xlu1 %v15119_v54, %s11158_s16 }
 0x80c   : > { %6995 = vrot.lane.b32.xlu0 %v6905_v2, %s11156_s12 }
 0x80d   : > { %v6534_v52 = vpop.permute.xlu1 %6533  ;;  %v7570_v22 = vld [vmem:[#allocation3 + $0x198] sm:$0xff] }
 0x80e   : > { %v7168_v34 = vpop.permute.xlu0 %7167  ;;  %6610 = vst.msk [vmem:[#allocation3 + $0x1c8] sm:$0xff] %vm1288_vm5, %v6534_v52  ;;  %v7639_v10 = vpack.c.bf16 %v7570_v22, %v7567_v23  ;;  %v6910_v52 = vld [vmem:[#allocation2 + $0x18a] sm:$0xff]  ;;  %v16398_v22 = vld [vmem:[#allocation8_spill] sm:$0xff] }
 0x80f   : > { %7247 = vst.msk [vmem:[#allocation3 + $0x188] sm:$0xff] %vm1288_vm5, %v7168_v34  ;;  %6361 = vrot.lane.b32.xlu1 %v15125_v33, %s11156_s12 }
 0x810   : > { %6551 = vrot.lane.b32.xlu0 %v6905_v2, %s11157_s13 }
 0x811   : > { %v7170_v56 = vpop.permute.xlu1 %7169 }
 0x812   : > { %v7360_v49 = vpop.permute.xlu0 %7359  ;;  %7248 = vst.msk [vmem:[#allocation3 + $0x1a0] sm:$0xff] %vm1288_vm5, %v7170_v56 }
 0x813   : > { %7439 = vst.msk [vmem:[#allocation3 + $0x188] sm:$0xff] %vm1481_vm6, %v7360_v49  ;;  %6553 = vrot.lane.b32.xlu1 %v6906_v25, %s11157_s13 }
 0x814   : > { %7187 = vrot.lane.b32.xlu0 %v15165_v15, %s11157_s13 }
 0x815   : > { %v7362_v54 = vpop.permute.xlu1 %7361 }
 0x816   : > { %v6724_v6 = vpop.permute.xlu0 %6723  ;;  %7440 = vst.msk [vmem:[#allocation3 + $0x1a0] sm:$0xff] %vm1481_vm6, %v7362_v54 }
 0x817   : > { %6801 = vst.msk [vmem:[#allocation3 + $0x1b0] sm:$0xff] %vm1481_vm6, %v6724_v6  ;;  %7189 = vrot.lane.b32.xlu1 %v15183_v48, %s11157_s13 }
 0x818   : > { %7379 = vrot.lane.b32.xlu0 %v15170_v19, %s11158_s16 }
 0x819   : > { %v6982_v33 = vpop.permute.xlu1 %6981 }
 0x81a   : > { %v6344_v1 = vpop.permute.xlu0 %6343  ;;  %7058 = vst.msk [vmem:[#allocation3 + $0x1d0] sm:$0xff] %vm1095_vm4, %v6982_v33  ;;  %v7568_v47 = vld [vmem:[#allocation3 + $0x188] sm:$0xff] }
 0x81b   : > { %6419 = vst.msk [vmem:[#allocation3 + $0x1e0] sm:$0xff] %vm1095_vm4, %v6344_v1  ;;  %7381 = vrot.lane.b32.xlu1 %v15191_v14, %s11158_s16 }
 0x81c   : > { %6743 = vrot.lane.b32.xlu0 %v15165_v15, %s11158_s16 }
 0x81d   : > { %v6726_v5 = vpop.permute.xlu1 %6725  ;;  %v7571_v61 = vld [vmem:[#allocation3 + $0x1a0] sm:$0xff] }
 0x81e   : > { %v6980_v24 = vpop.permute.xlu0 %6979  ;;  %6802 = vst.msk [vmem:[#allocation3 + $0x1c8] sm:$0xff] %vm1481_vm6, %v6726_v5  ;;  %v7640_v45 = vpack.c.bf16 %v7571_v61, %v7568_v47  ;;  %v7573_v29 = vld [vmem:[#allocation3 + $0x1b0] sm:$0xff] }
 0x81f   : > { %7057 = vst.msk [vmem:[#allocation3 + $0x1b8] sm:$0xff] %vm1095_vm4, %v6980_v24  ;;  %7001 = vrot.lane.b32.xlu1 %v15181_v8, %s11156_s12  ;;  %v15473_v8 = vpop.f32.mrf.mxu0 }
 0x820   : > { %6363 = vrot.lane.b32.xlu0 %v15170_v19, %s11156_s12  ;;  %7960 = vmatprep.mubr.bf16.mxu1 %v7640_v45 }
 0x821   : > { %v6346_v15 = vpop.permute.xlu1 %6345  ;;  %7961 = vmatmul.mubr.bf16.gmra.mxu1 %v7639_v10  ;;  %v8059_v37 = vpop.f32.mrf.mxu0 }
 0x822   : > { %v9805_v11 = vpop.f32.mrf.mxu1  ;;  %6420 = vst.msk [vmem:[#allocation3 + $0x1f8] sm:$0xff] %vm1095_vm4, %v6346_v15  ;;  %v6536_v60 = vpop.permute.xlu0 %6535  ;;  %v16399_v15 = vld [vmem:[#allocation10_spill] sm:$0xff] }
 0x823   : > { %6611 = vst.msk [vmem:[#allocation3 + $0x1e0] sm:$0xff] %vm1288_vm5, %v6536_v60  ;;  %6745 = vrot.lane.b32.xlu1 %v15183_v48, %s11158_s16 }
 0x824   : > { %v9806_v31 = vpop.f32.mrf.mxu1  ;;  %6999 = vrot.lane.b32.xlu0 %v6907_v58, %s11156_s12 }
 0x825   : > { %v9807_v19 = vadd.f32 %v9806_v31, %v9805_v11  ;;  %v6538_v3 = vpop.permute.xlu1 %6537  ;;  %v7576_v17 = vld [vmem:[#allocation3 + $0x1c8] sm:$0xff]  ;;  %v16400_v11 = vld [vmem:[#allocation7_spill] sm:$0xff] }
 0x826   : > { %v9808_v27 = vpop.f32.mrf.mxu1  ;;  %6612 = vst.msk [vmem:[#allocation3 + $0x1f8] sm:$0xff] %vm1288_vm5, %v6538_v3  ;;  %v7172_v41 = vpop.permute.xlu0 %7171 }
 0x827   : > { %7249 = vst.msk [vmem:[#allocation3 + $0x1b8] sm:$0xff] %vm1288_vm5, %v7172_v41  ;;  %6365 = vrot.lane.b32.xlu1 %v15191_v14, %s11156_s12  ;;  %v7899_v43 = vadd.f32 %v9807_v19, %v15478_v53  ;;  %v15490_v14 = vpop.f32.mrf.mxu0  ;;  %v16402_v41 = vld [vmem:[#allocation12_spill] sm:$0xff] }
 0x828   : > { %v9809_v48 = vpop.f32.mrf.mxu1  ;;  %6555 = vrot.lane.b32.xlu0 %v6907_v58, %s11157_s13 }
 0x829   : > { %v9810_v39 = vadd.f32 %v9809_v48, %v9808_v27  ;;  %v7174_v20 = vpop.permute.xlu1 %7173  ;;  %v15492_v4 = vadd.f32 %v8059_v37, %v7899_v43  ;;  %v8062_v13 = vpop.f32.mrf.mxu0  ;;  %v16401_v27 = vld [vmem:[#allocation9_spill] sm:$0xff] }
 0x82a   : > { %7250 = vst.msk [vmem:[#allocation3 + $0x1d0] sm:$0xff] %vm1288_vm5, %v7174_v20  ;;  %v7364_v35 = vpop.permute.xlu0 %7363  ;;  %v16404_v20 = vld [vmem:[#allocation11_spill] sm:$0xff] }
 0x82b   : > { %7441 = vst.msk [vmem:[#allocation3 + $0x1b8] sm:$0xff] %vm1481_vm6, %v7364_v35  ;;  %6557 = vrot.lane.b32.xlu1 %v6462_v9, %s11157_s13  ;;  %v7902_v32 = vadd.f32 %v9810_v39, %v15478_v53  ;;  %v9441_v16 = vmul.f32 -1.442695, %v15492_v4  ;;  %v16403_v39 = vld [vmem:[#allocation14_spill] sm:$0xff] }
 0x82c   : > { %7191 = vrot.lane.b32.xlu0 %v7099_v63, %s11157_s13 }
 0x82d   : > { %v7366_v38 = vpop.permute.xlu1 %7365  ;;  %v15501_v28 = vadd.f32 %v8062_v13, %v7902_v32  ;;  %10833 = vpow2.f32 %v9441_v16  ;;  %v16405_v13 = vld [vmem:[#allocation13_spill] sm:$0xff] }
 0x82e   : > { %7442 = vst.msk [vmem:[#allocation3 + $0x1d0] sm:$0xff] %vm1481_vm6, %v7366_v38  ;;  %v6728_v51 = vpop.permute.xlu0 %6727 }
 0x82f   : > { %6803 = vst.msk [vmem:[#allocation3 + $0x1e0] sm:$0xff] %vm1481_vm6, %v6728_v51  ;;  %7193 = vrot.lane.b32.xlu1 %v7100_v7, %s11157_s13  ;;  %v9442_v46 = vmul.f32 -1.442695, %v15501_v28 }
 0x830   : > { %7383 = vrot.lane.b32.xlu0 %v15201_v36, %s11158_s16  ;;  %v7611_v36 = vld [vmem:[#allocation3 + $0x2e0] sm:$0xff] }
 0x831   : > { %v6986_v18 = vpop.permute.xlu1 %6985  ;;  %v7662_v26 = vpack.c.bf16 %v7614_v44, %v7611_v36  ;;  %10835 = vpow2.f32 %v9442_v46  ;;  %v16407_v46 = vld [vmem:[#allocation18_spill] sm:$0xff] }
 0x832   : > { %7060 = vst.msk [vmem:[#allocation3 + $0x200] sm:$0xff] %vm1095_vm4, %v6986_v18  ;;  %v6348_v62 = vpop.permute.xlu0 %6347  ;;  %v7574_v42 = vld [vmem:[#allocation3 + $0x1b8] sm:$0xff] }
 0x833   : > { %6421 = vst.msk [vmem:[#allocation3 + $0x210] sm:$0xff] %vm1095_vm4, %v6348_v62  ;;  %7385 = vrot.lane.b32.xlu1 %v15214_v50, %s11158_s16  ;;  %v7642_v50 = vpack.c.bf16 %v7576_v17, %v7573_v29  ;;  %10058 = vmatmul.mubr.msk.bf16.gmra.mxu0 %vm782_vm2, %v7662_v26 }
 0x834   : > { %7387 = vrot.lane.b32.xlu0 %v7293_v40, %s11158_s16  ;;  %v16406_v40 = vld [vmem:[#allocation16_spill] sm:$0xff] }
 0x835   : > { %v6730_v12 = vpop.permute.xlu1 %6729  ;;  %v7577_v30 = vld [vmem:[#allocation3 + $0x1d0] sm:$0xff] }
 0x836   : > { %6804 = vst.msk [vmem:[#allocation3 + $0x1f8] sm:$0xff] %vm1481_vm6, %v6730_v12  ;;  %v6984_v25 = vpop.permute.xlu0 %6983  ;;  %v7643_v57 = vpack.c.bf16 %v7577_v30, %v7574_v42  ;;  %v7579_v51 = vld [vmem:[#allocation3 + $0x1e0] sm:$0xff] }
 0x837   : > { %7059 = vst.msk [vmem:[#allocation3 + $0x1e8] sm:$0xff] %vm1095_vm4, %v6984_v25  ;;  %7389 = vrot.lane.b32.xlu1 %v7294_v55, %s11158_s16  ;;  %v16408_v42 = vld [vmem:[#allocation15_spill] sm:$0xff] }
 0x838   : > { %7003 = vrot.lane.b32.xlu0 %v6909_v21, %s11156_s12  ;;  %7968 = vmatprep.mubr.bf16.mxu1 %v7643_v57 }
 0x839   : > { %v6350_v59 = vpop.permute.xlu1 %6349  ;;  %v9811_v0 = vpop.f32.mrf.mxu1  ;;  %7969 = vmatmul.mubr.bf16.gmra.mxu1 %v7642_v50 }
 0x83a   : > { %6422 = vst.msk [vmem:[#allocation3 + $0x228] sm:$0xff] %vm1095_vm4, %v6350_v59  ;;  %v6540_v2 = vpop.permute.xlu0 %6539  ;;  %v10834_v61 = vpop.eup %10833 }
 0x83b   : > { %6613 = vst.msk [vmem:[#allocation3 + $0x210] sm:$0xff] %vm1288_vm5, %v6540_v2  ;;  %7005 = vrot.lane.b32.xlu1 %v6910_v52, %s11156_s12  ;;  %v9812_v34 = vpop.f32.mrf.mxu1  ;;  %v8282_v58 = vadd.f32 1.0, %v10834_v61  ;;  %v16409_v2 = vld [vmem:[#allocation17_spill] sm:$0xff]  ;;  %v16411_v61 = vld [vmem:[#allocation22_spill] sm:$0xff]  ;;  %s215_s12 = sand.u32 1, %s11145_s19  }
 0x83c   : > { %6747 = vrot.lane.b32.xlu0 %v7099_v63, %s11158_s16  ;;  %v9813_v56 = vadd.f32 %v9812_v34, %v9811_v0  ;;  %v16410_v34 = vld [vmem:[#allocation20_spill] sm:$0xff]  ;;  %s9066_s13 = sshll.u32 %s215_s12, 8 }
 0x83d   : > { %v6542_v49 = vpop.permute.xlu1 %6541  ;;  %v9814_v54 = vpop.f32.mrf.mxu1  ;;  %v7582_v35 = vld [vmem:[#allocation3 + $0x1f8] sm:$0xff]  ;;  %s15823_s26 = scalar_lea.vmem [#allocation4], %s9066_s13 }
 0x83e   : > { %v7907_v6 = vadd.f32 %v9813_v56, %v15478_v53  ;;  %6614 = vst.msk [vmem:[#allocation3 + $0x228] sm:$0xff] %vm1288_vm5, %v6542_v49  ;;  %v7176_v33 = vpop.permute.xlu0 %7175  ;;  %v7645_v16 = vpack.c.bf16 %v7582_v35, %v7579_v51  ;;  %s9000_s7 = sshll.u32 %s15823_s26, 4  ;;  %s16202_s7 = int_to_ptr.vmem [resolvable:$true] %s9000_s7 }
 0x83f   : > { %7251 = vst.msk [vmem:[#allocation3 + $0x1e8] sm:$0xff] %vm1288_vm5, %v7176_v33  ;;  %6749 = vrot.lane.b32.xlu1 %v7100_v7, %s11158_s16  ;;  %v9815_v1 = vpop.f32.mrf.mxu1  ;;  %v15552_v7 = vpop.f32.mrf.mxu0  ;;  %s11093_s11 = scalar_lea.vmem %s16202_s7, 4096  ;;  %p11100_p0 = scmp.lt.s32.totalorder %s16202_s7, %s11098_s15 }
 0x840   : > { %8826 = vrot.lane.b32.xlu0 %v16398_v22, %s11158_s16  ;;  %v15525_v5 = vadd.f32 %v15473_v8, %v7907_v6  ;;  %v9816_v24 = vadd.f32 %v9815_v1, %v9814_v54  ;;  %v10836_v8 = vpop.eup %10835  ;;  %p11094_p11 = scmp.ne.s32.totalorder %s16202_s7, %s11093_s11  ;;  %p11101_p1 = scmp.lt.s32.totalorder %s11099_s17, %s11093_s11 }
 0x841   : > { %v7178_v47 = vpop.permute.xlu1 %7177  ;;  %v8283_v48 = vadd.f32 1.0, %v10836_v8  ;;  %v8075_v44 = vpop.f32.mrf.mxu0 }
 0x842   : > { %v9443_v45 = vmul.f32 -1.442695, %v15525_v5  ;;  %v7910_v23 = vadd.f32 %v9816_v24, %v15478_v53  ;;  %7252 = vst.msk [vmem:[#allocation3 + $0x200] sm:$0xff] %vm1288_vm5, %v7178_v47  ;;  %v7368_v10 = vpop.permute.xlu0 %7367  ;;  %p11095_p12 = pnand %p11094_p11, %p11230_p5  ;;  %p11102_p2 = por %p11101_p1, %p11100_p0 }
 0x843   : > { %7443 = vst.msk [vmem:[#allocation3 + $0x1e8] sm:$0xff] %vm1481_vm6, %v7368_v10  ;;  %8828 = vrot.lane.b32.xlu1 %v16399_v15, %s11158_s16  ;;  %v15567_v0 = vpop.f32.mrf.mxu0 }
 0x844   : > { %8830 = vrot.lane.b32.xlu0 %v16400_v11, %s11158_s16  ;;  %10837 = vpow2.f32 %v9443_v45  ;;  %v15536_v60 = vadd.f32 %v15490_v14, %v7910_v23  ;;  %p11096_p13 = pneg %p11095_p12 }
 0x845   : > { %v7370_v31 = vpop.permute.xlu1 %7369  ;;  %v8078_v47 = vpop.f32.mrf.mxu0 }
 0x846   : > { %v9444_v19 = vmul.f32 -1.442695, %v15536_v60  ;;  %7444 = vst.msk [vmem:[#allocation3 + $0x200] sm:$0xff] %vm1481_vm6, %v7370_v31  ;;  %v6732_v3 = vpop.permute.xlu0 %6731  ;;  %p11103_p3 = pnand %p11102_p2, %p11096_p13 }
 0x847   : > { %6805 = vst.msk [vmem:[#allocation3 + $0x210] sm:$0xff] %vm1481_vm6, %v6732_v3  ;;  %8832 = vrot.lane.b32.xlu1 %v16401_v27, %s11158_s16 }
 0x848   : > { %8834 = vrot.lane.b32.xlu0 %v16402_v41, %s11158_s16  ;;  %10839 = vpow2.f32 %v9444_v19 }
 0x849   : > { %10841 = vrcp.f32 %v8282_v58  ;;  %v6990_v37 = vpop.permute.xlu1 %6989 }
 0x84a   : > { %7062 = vst.msk [vmem:[#allocation3 + $0x230] sm:$0xff] %vm1095_vm4, %v6990_v37  ;;  %v6352_v43 = vpop.permute.xlu0 %6351  ;;  %10843 = vrcp.f32 %v8283_v48  ;;  %v7580_v63 = vld [vmem:[#allocation3 + $0x1e8] sm:$0xff] }
 0x84b   : > { %6423 = vst.msk [vmem:[#allocation3 + $0x240] sm:$0xff] %vm1095_vm4, %v6352_v43  ;;  %8836 = vrot.lane.b32.xlu1 %v16403_v39, %s11158_s16 }
 0x84c   : > { %8838 = vrot.lane.b32.xlu0 %v16404_v20, %s11158_s16 }
 0x84d   : > { %v6734_v9 = vpop.permute.xlu1 %6733  ;;  %v7583_v14 = vld [vmem:[#allocation3 + $0x200] sm:$0xff] }
 0x84e   : > { %6806 = vst.msk [vmem:[#allocation3 + $0x228] sm:$0xff] %vm1481_vm6, %v6734_v9  ;;  %v6988_v32 = vpop.permute.xlu0 %6987  ;;  %v7646_v38 = vpack.c.bf16 %v7583_v14, %v7580_v63  ;;  %v7585_v43 = vld [vmem:[#allocation3 + $0x210] sm:$0xff] }
 0x84f   : > { %7061 = vst.msk [vmem:[#allocation3 + $0x218] sm:$0xff] %vm1095_vm4, %v6988_v32  ;;  %8840 = vrot.lane.b32.xlu1 %v16405_v13, %s11158_s16 }
 0x850   : > { %8842 = vrot.lane.b32.xlu0 %v16406_v40, %s11158_s16  ;;  %7976 = vmatprep.mubr.bf16.mxu1 %v7646_v38 }
 0x851   : > { %v10838_v18 = vpop.eup %10837  ;;  %v6354_v62 = vpop.permute.xlu1 %6353  ;;  %7977 = vmatmul.mubr.bf16.gmra.mxu1 %v7645_v16 }
 0x852   : > { %v9817_v55 = vpop.f32.mrf.mxu1  ;;  %v8284_v17 = vadd.f32 1.0, %v10838_v18  ;;  %6424 = vst.msk [vmem:[#allocation3 + $0x258] sm:$0xff] %vm1095_vm4, %v6354_v62  ;;  %v6544_v36 = vpop.permute.xlu0 %6543 }
 0x853   : > { %6615 = vst.msk [vmem:[#allocation3 + $0x240] sm:$0xff] %vm1288_vm5, %v6544_v36  ;;  %8844 = vrot.lane.b32.xlu1 %v16407_v46, %s11158_s16 }
 0x854   : > { %v9818_v12 = vpop.f32.mrf.mxu1  ;;  %8846 = vrot.lane.b32.xlu0 %v16408_v42, %s11158_s16  ;;  %10845 = vrcp.f32 %v8284_v17 }
 0x855   : > { %v9819_v30 = vadd.f32 %v9818_v12, %v9817_v55  ;;  %v10840_v26 = vpop.eup %10839  ;;  %v6546_v25 = vpop.permute.xlu1 %6545  ;;  %v7588_v8 = vld [vmem:[#allocation3 + $0x228] sm:$0xff] }
 0x856   : > { %v9820_v21 = vpop.f32.mrf.mxu1  ;;  %v10842_v57 = vpop.eup %10841  ;;  %v8285_v29 = vadd.f32 1.0, %v10840_v26  ;;  %6616 = vst.msk [vmem:[#allocation3 + $0x258] sm:$0xff] %vm1288_vm5, %v6546_v25  ;;  %v7648_v39 = vpack.c.bf16 %v7588_v8, %v7585_v43 }
 0x857   : > { %v7915_v50 = vadd.f32 %v9819_v30, %v15478_v53  ;;  %v7180_v59 = vpop.permute.xlu0 %7179  ;;  %8848 = vrot.lane.b32.xlu1 %v16409_v2, %s11158_s16  ;;  %v15577_v54 = vmul.f32 %v10842_v57, %v15492_v4  ;;  %v10844_v33 = vpop.eup %10843 }
 0x858   : > { %7253 = vst.msk [vmem:[#allocation3 + $0x218] sm:$0xff] %vm1288_vm5, %v7180_v59  ;;  %v9821_v52 = vpop.f32.mrf.mxu1  ;;  %8850 = vrot.lane.b32.xlu0 %v16410_v34, %s11158_s16  ;;  %10847 = vrcp.f32 %v8285_v29  ;;  %v15590_v45 = vmul.f32 %v10844_v33, %v15501_v28  ;;  %v15640_v33 = vpop.f32.mrf.mxu0 }
 0x859   : > { %v15574_v56 = vadd.f32 %v8075_v44, %v7915_v50  ;;  %v9822_v49 = vadd.f32 %v9821_v52, %v9820_v21  ;;  %v7182_v6 = vpop.permute.xlu1 %7181 }
 0x85a   : > { %7254 = vst.msk [vmem:[#allocation3 + $0x230] sm:$0xff] %vm1288_vm5, %v7182_v6 }
 0x85b   : > { %v9445_v1 = vmul.f32 -1.442695, %v15574_v56  ;;  %v7918_v22 = vadd.f32 %v9822_v49, %v15478_v53  ;;  %v7372_v24 = vpop.permute.xlu0 %7371  ;;  %8852 = vrot.lane.b32.xlu1 %v16411_v61, %s11158_s16 }
 0x85c   : > { %7445 = vst.msk [vmem:[#allocation3 + $0x218] sm:$0xff] %vm1481_vm6, %v7372_v24  ;;  %8442 = vrot.lane.b32.xlu0 %v15577_v54, %s11158_s16 }
 0x85d   : > { %10849 = vpow2.f32 %v9445_v1  ;;  %v15587_v4 = vadd.f32 %v8078_v47, %v7918_v22  ;;  %v7374_v23 = vpop.permute.xlu1 %7373 }
 0x85e   : > { %7446 = vst.msk [vmem:[#allocation3 + $0x230] sm:$0xff] %vm1481_vm6, %v7374_v23  ;;  %v8091_v23 = vpop.f32.mrf.mxu0 }
 0x85f   : > { %v9446_v10 = vmul.f32 -1.442695, %v15587_v4  ;;  %v6736_v15 = vpop.permute.xlu0 %6735  ;;  %8444 = vrot.lane.b32.xlu1 %v15590_v45, %s11158_s16 }
 0x860   : > { %6807 = vst.msk [vmem:[#allocation3 + $0x240] sm:$0xff] %vm1481_vm6, %v6736_v15 }
 0x861   : > { %10851 = vpow2.f32 %v9446_v10  ;;  %v10846_v11 = vpop.eup %10845  ;;  %v6994_v58 = vpop.permute.xlu1 %6993 }
 0x862   : > { %v15598_v31 = vmul.f32 %v10846_v11, %v15525_v5  ;;  %7064 = vst.msk [vmem:[#allocation3 + $0x260] sm:$0xff] %vm1095_vm4, %v6994_v58 }
 0x863   : > { %v6356_v28 = vpop.permute.xlu0 %6355  ;;  %v7586_v27 = vld [vmem:[#allocation3 + $0x218] sm:$0xff] }
 0x864   : > { %6425 = vst.msk [vmem:[#allocation3 + $0x270] sm:$0xff] %vm1095_vm4, %v6356_v28  ;;  %8446 = vrot.lane.b32.xlu0 %v15598_v31, %s11158_s16 }
 0x865   : > { %v10848_v19 = vpop.eup %10847  ;;  %v6738_v3 = vpop.permute.xlu1 %6737  ;;  %v7589_v41 = vld [vmem:[#allocation3 + $0x230] sm:$0xff] }
 0x866   : > { %v15605_v48 = vmul.f32 %v10848_v19, %v15536_v60  ;;  %6808 = vst.msk [vmem:[#allocation3 + $0x258] sm:$0xff] %vm1481_vm6, %v6738_v3  ;;  %v7649_v37 = vpack.c.bf16 %v7589_v41, %v7586_v27  ;;  %v15649_v27 = vpop.f32.mrf.mxu0 }
 0x867   : > { %v6992_v5 = vpop.permute.xlu0 %6991  ;;  %v7591_v6 = vld [vmem:[#allocation3 + $0x240] sm:$0xff] }
 0x868   : > { %7063 = vst.msk [vmem:[#allocation3 + $0x248] sm:$0xff] %vm1095_vm4, %v6992_v5  ;;  %8448 = vrot.lane.b32.xlu1 %v15605_v48, %s11158_s16  ;;  %7984 = vmatprep.mubr.bf16.mxu1 %v7649_v37 }
 0x869   : > { %v6358_v35 = vpop.permute.xlu1 %6357  ;;  %v9823_v9 = vpop.f32.mrf.mxu1  ;;  %7985 = vmatmul.mubr.bf16.gmra.mxu1 %v7648_v39 }
 0x86a   : > { %v10850_v20 = vpop.eup %10849  ;;  %6426 = vst.msk [vmem:[#allocation3 + $0x288] sm:$0xff] %vm1095_vm4, %v6358_v35 }
 0x86b   : > { %v8286_v63 = vadd.f32 1.0, %v10850_v20  ;;  %v6548_v60 = vpop.permute.xlu0 %6547  ;;  %v9824_v14 = vpop.f32.mrf.mxu1 }
 0x86c   : > { %6617 = vst.msk [vmem:[#allocation3 + $0x270] sm:$0xff] %vm1288_vm5, %v6548_v60  ;;  %v9825_v32 = vadd.f32 %v9824_v14, %v9823_v9  ;;  %v8094_v9 = vpop.f32.mrf.mxu0 }
 0x86d   : > { %10853 = vrcp.f32 %v8286_v63  ;;  %v6550_v51 = vpop.permute.xlu1 %6549  ;;  %v9826_v13 = vpop.f32.mrf.mxu1  ;;  %v7594_v50 = vld [vmem:[#allocation3 + $0x258] sm:$0xff] }
 0x86e   : > { %v10852_v38 = vpop.eup %10851  ;;  %v7923_v16 = vadd.f32 %v9825_v32, %v15478_v53  ;;  %6618 = vst.msk [vmem:[#allocation3 + $0x288] sm:$0xff] %vm1288_vm5, %v6550_v51  ;;  %v7651_v1 = vpack.c.bf16 %v7594_v50, %v7591_v6 }
 0x86f   : > { %v8287_v40 = vadd.f32 1.0, %v10852_v38  ;;  %v7184_v18 = vpop.permute.xlu0 %7183  ;;  %v9827_v62 = vpop.f32.mrf.mxu1 }
 0x870   : > { %7255 = vst.msk [vmem:[#allocation3 + $0x248] sm:$0xff] %vm1288_vm5, %v7184_v18  ;;  %v15617_v55 = vadd.f32 %v15552_v7, %v7923_v16  ;;  %v9828_v17 = vadd.f32 %v9827_v62, %v9826_v13 }
 0x871   : > { %10855 = vrcp.f32 %v8287_v40  ;;  %v7186_v36 = vpop.permute.xlu1 %7185 }
 0x872   : > { %v9447_v44 = vmul.f32 -1.442695, %v15617_v55  ;;  %v7926_v46 = vadd.f32 %v9828_v17, %v15478_v53  ;;  %7256 = vst.msk [vmem:[#allocation3 + $0x260] sm:$0xff] %vm1288_vm5, %v7186_v36 }
 0x873   : > { %v7376_v12 = vpop.permute.xlu0 %7375 }
 0x874   : > { %7447 = vst.msk [vmem:[#allocation3 + $0x248] sm:$0xff] %vm1481_vm6, %v7376_v12  ;;  %10857 = vpow2.f32 %v9447_v44  ;;  %v15624_v42 = vadd.f32 %v15567_v0, %v7926_v46 }
 0x875   : > { %v7378_v30 = vpop.permute.xlu1 %7377 }
 0x876   : > { %v9448_v26 = vmul.f32 -1.442695, %v15624_v42  ;;  %7448 = vst.msk [vmem:[#allocation3 + $0x260] sm:$0xff] %vm1481_vm6, %v7378_v30 }
 0x877   : > { %v6740_v7 = vpop.permute.xlu0 %6739 }
 0x878   : > { %6809 = vst.msk [vmem:[#allocation3 + $0x270] sm:$0xff] %vm1481_vm6, %v6740_v7  ;;  %10859 = vpow2.f32 %v9448_v26 }
 0x879   : > { %v6998_v21 = vpop.permute.xlu1 %6997 }
 0x87a   : > { %v10854_v25 = vpop.eup %10853  ;;  %7066 = vst.msk [vmem:[#allocation3 + $0x290] sm:$0xff] %vm1095_vm4, %v6998_v21 }
 0x87b   : > { %v15630_v57 = vmul.f32 %v10854_v25, %v15574_v56  ;;  %v6360_v29 = vpop.permute.xlu0 %6359  ;;  %v7592_v2 = vld [vmem:[#allocation3 + $0x248] sm:$0xff] }
 0x87c   : > { %6427 = vst.msk [vmem:[#allocation3 + $0x2a0] sm:$0xff] %vm1095_vm4, %v6360_v29 }
 0x87d   : > { %8450 = vrot.lane.b32.xlu0 %v15630_v57, %s11158_s16  ;;  %v6742_v0 = vpop.permute.xlu1 %6741  ;;  %v7595_v52 = vld [vmem:[#allocation3 + $0x260] sm:$0xff] }
 0x87e   : > { %v10856_v59 = vpop.eup %10855  ;;  %6810 = vst.msk [vmem:[#allocation3 + $0x288] sm:$0xff] %vm1481_vm6, %v6742_v0  ;;  %v7652_v49 = vpack.c.bf16 %v7595_v52, %v7592_v2 }
 0x87f   : > { %v15637_v34 = vmul.f32 %v10856_v59, %v15587_v4  ;;  %v6996_v56 = vpop.permute.xlu0 %6995  ;;  %v7597_v12 = vld [vmem:[#allocation3 + $0x270] sm:$0xff] }
 0x880   : > { %7065 = vst.msk [vmem:[#allocation3 + $0x278] sm:$0xff] %vm1095_vm4, %v6996_v56  ;;  %7992 = vmatprep.mubr.bf16.mxu1 %v7652_v49 }
 0x881   : > { %8452 = vrot.lane.b32.xlu1 %v15637_v34, %s11158_s16  ;;  %v10858_v22 = vpop.eup %10857  ;;  %v6362_v24 = vpop.permute.xlu1 %6361  ;;  %7993 = vmatmul.mubr.bf16.gmra.mxu1 %v7651_v1 }
 0x882   : > { %v9829_v47 = vpop.f32.mrf.mxu1  ;;  %v8288_v61 = vadd.f32 1.0, %v10858_v22  ;;  %6428 = vst.msk [vmem:[#allocation3 + $0x2b8] sm:$0xff] %vm1095_vm4, %v6362_v24 }
 0x883   : > { %v6552_v4 = vpop.permute.xlu0 %6551 }
 0x884   : > { %6619 = vst.msk [vmem:[#allocation3 + $0x2a0] sm:$0xff] %vm1288_vm5, %v6552_v4  ;;  %v9830_v10 = vpop.f32.mrf.mxu1  ;;  %10861 = vrcp.f32 %v8288_v61 }
 0x885   : > { %v9831_v15 = vadd.f32 %v9830_v10, %v9829_v47  ;;  %v10860_v11 = vpop.eup %10859  ;;  %v6554_v58 = vpop.permute.xlu1 %6553  ;;  %v7600_v16 = vld [vmem:[#allocation3 + $0x288] sm:$0xff] }
 0x886   : > { %v9832_v28 = vpop.f32.mrf.mxu1  ;;  %v8289_v8 = vadd.f32 1.0, %v10860_v11  ;;  %6620 = vst.msk [vmem:[#allocation3 + $0x2b8] sm:$0xff] %vm1288_vm5, %v6554_v58  ;;  %v7654_v30 = vpack.c.bf16 %v7600_v16, %v7597_v12 }
 0x887   : > { %v7931_v19 = vadd.f32 %v9831_v15, %v15478_v53  ;;  %v7188_v3 = vpop.permute.xlu0 %7187 }
 0x888   : > { %7257 = vst.msk [vmem:[#allocation3 + $0x278] sm:$0xff] %vm1288_vm5, %v7188_v3  ;;  %v9833_v41 = vpop.f32.mrf.mxu1  ;;  %10863 = vrcp.f32 %v8289_v8 }
 0x889   : > { %v15652_v5 = vadd.f32 %v8091_v23, %v7931_v19  ;;  %v9834_v37 = vadd.f32 %v9833_v41, %v9832_v28  ;;  %v7190_v43 = vpop.permute.xlu1 %7189  ;;  %v16412_v19 = vld [vmem:[#allocation46_spill] sm:$0xff] }
 0x88a   : > { %7258 = vst.msk [vmem:[#allocation3 + $0x290] sm:$0xff] %vm1288_vm5, %v7190_v43 }
 0x88b   : > { %v9449_v39 = vmul.f32 -1.442695, %v15652_v5  ;;  %v7934_v20 = vadd.f32 %v9834_v37, %v15478_v53  ;;  %v7380_v35 = vpop.permute.xlu0 %7379 }
 0x88c   : > { %7449 = vst.msk [vmem:[#allocation3 + $0x278] sm:$0xff] %vm1481_vm6, %v7380_v35 }
 0x88d   : > { %10865 = vpow2.f32 %v9449_v39  ;;  %v15658_v63 = vadd.f32 %v8094_v9, %v7934_v20  ;;  %v7382_v60 = vpop.permute.xlu1 %7381  ;;  %v15707_v9 = vpop.f32.mrf.mxu0 }
 0x88e   : > { %7450 = vst.msk [vmem:[#allocation3 + $0x290] sm:$0xff] %vm1481_vm6, %v7382_v60  ;;  %v16413_v60 = vld [vmem:[#allocation48_spill] sm:$0xff] }
 0x88f   : > { %v9450_v14 = vmul.f32 -1.442695, %v15658_v63  ;;  %v6744_v32 = vpop.permute.xlu0 %6743  ;;  %v8107_v16 = vpop.f32.mrf.mxu0 }
 0x890   : > { %6811 = vst.msk [vmem:[#allocation3 + $0x2a0] sm:$0xff] %vm1481_vm6, %v6744_v32 }
 0x891   : > { %10867 = vpow2.f32 %v9450_v14  ;;  %v10862_v38 = vpop.eup %10861  ;;  %v7002_v51 = vpop.permute.xlu1 %7001 }
 0x892   : > { %v15664_v13 = vmul.f32 %v10862_v38, %v15617_v55  ;;  %7068 = vst.msk [vmem:[#allocation3 + $0x2c0] sm:$0xff] %vm1095_vm4, %v7002_v51 }
 0x893   : > { %v6364_v40 = vpop.permute.xlu0 %6363  ;;  %v7598_v17 = vld [vmem:[#allocation3 + $0x278] sm:$0xff] }
 0x894   : > { %6429 = vst.msk [vmem:[#allocation3 + $0x2d0] sm:$0xff] %vm1095_vm4, %v6364_v40  ;;  %8454 = vrot.lane.b32.xlu0 %v15664_v13, %s11158_s16 }
 0x895   : > { %v10864_v18 = vpop.eup %10863  ;;  %v6746_v62 = vpop.permute.xlu1 %6745  ;;  %v7601_v36 = vld [vmem:[#allocation3 + $0x290] sm:$0xff] }
 0x896   : > { %v15671_v44 = vmul.f32 %v10864_v18, %v15624_v42  ;;  %6812 = vst.msk [vmem:[#allocation3 + $0x2b8] sm:$0xff] %vm1481_vm6, %v6746_v62  ;;  %v7655_v46 = vpack.c.bf16 %v7601_v36, %v7598_v17 }
 0x897   : > { %v7000_v55 = vpop.permute.xlu0 %6999  ;;  %v7603_v35 = vld [vmem:[#allocation3 + $0x2a0] sm:$0xff] }
 0x898   : > { %7067 = vst.msk [vmem:[#allocation3 + $0x2a8] sm:$0xff] %vm1095_vm4, %v7000_v55  ;;  %8456 = vrot.lane.b32.xlu1 %v15671_v44, %s11158_s16  ;;  %8000 = vmatprep.mubr.bf16.mxu1 %v7655_v46 }
 0x899   : > { %v6366_v7 = vpop.permute.xlu1 %6365  ;;  %v9835_v25 = vpop.f32.mrf.mxu1  ;;  %8001 = vmatmul.mubr.bf16.gmra.mxu1 %v7654_v30 }
 0x89a   : > { %v10866_v26 = vpop.eup %10865  ;;  %6430 = vst.msk [vmem:[#allocation3 + $0x2e8] sm:$0xff] %vm1095_vm4, %v6366_v7 }
 0x89b   : > { %v8290_v21 = vadd.f32 1.0, %v10866_v26  ;;  %v6556_v42 = vpop.permute.xlu0 %6555  ;;  %v9836_v29 = vpop.f32.mrf.mxu1 }
 0x89c   : > { %6621 = vst.msk [vmem:[#allocation3 + $0x2d0] sm:$0xff] %vm1288_vm5, %v6556_v42  ;;  %v9837_v50 = vadd.f32 %v9836_v29, %v9835_v25  ;;  %v10044_v26 = vpop.f32.mrf.mxu0 }
 0x89d   : > { %10869 = vrcp.f32 %v8290_v21  ;;  %v6558_v0 = vpop.permute.xlu1 %6557  ;;  %v9838_v2 = vpop.f32.mrf.mxu1  ;;  %v7606_v3 = vld [vmem:[#allocation3 + $0x2b8] sm:$0xff] }
 0x89e   : > { %v10868_v59 = vpop.eup %10867  ;;  %v7939_v56 = vadd.f32 %v9837_v50, %v15478_v53  ;;  %6622 = vst.msk [vmem:[#allocation3 + $0x2e8] sm:$0xff] %vm1288_vm5, %v6558_v0  ;;  %v7657_v14 = vpack.c.bf16 %v7606_v3, %v7603_v35 }
 0x89f   : > { %v8291_v52 = vadd.f32 1.0, %v10868_v59  ;;  %v7192_v49 = vpop.permute.xlu0 %7191  ;;  %v9839_v6 = vpop.f32.mrf.mxu1 }
 0x8a0   : > { %7259 = vst.msk [vmem:[#allocation3 + $0x2a8] sm:$0xff] %vm1288_vm5, %v7192_v49  ;;  %v15683_v1 = vadd.f32 %v15640_v33, %v7939_v56  ;;  %v9840_v22 = vadd.f32 %v9839_v6, %v9838_v2 }
 0x8a1   : > { %10871 = vrcp.f32 %v8291_v52  ;;  %v7194_v24 = vpop.permute.xlu1 %7193 }
 0x8a2   : > { %v9451_v47 = vmul.f32 -1.442695, %v15683_v1  ;;  %v7942_v61 = vadd.f32 %v9840_v22, %v15478_v53  ;;  %7260 = vst.msk [vmem:[#allocation3 + $0x2c0] sm:$0xff] %vm1288_vm5, %v7194_v24  ;;  %v8110_v22 = vpop.f32.mrf.mxu0 }
 0x8a3   : > { %v7384_v4 = vpop.permute.xlu0 %7383 }
 0x8a4   : > { %7451 = vst.msk [vmem:[#allocation3 + $0x2a8] sm:$0xff] %vm1481_vm6, %v7384_v4  ;;  %10873 = vpow2.f32 %v9451_v47  ;;  %v15690_v23 = vadd.f32 %v15649_v27, %v7942_v61 }
 0x8a5   : > { %v7386_v10 = vpop.permute.xlu1 %7385 }
 0x8a6   : > { %v9452_v15 = vmul.f32 -1.442695, %v15690_v23  ;;  %7452 = vst.msk [vmem:[#allocation3 + $0x2c0] sm:$0xff] %vm1481_vm6, %v7386_v10 }
 0x8a7   : > { %v7388_v33 = vpop.permute.xlu0 %7387 }
 0x8a8   : > { %10875 = vpow2.f32 %v9452_v15 }
 0x8a9   : > { %v7390_v58 = vpop.permute.xlu1 %7389 }
 0x8aa   : > { %v10870_v11 = vpop.eup %10869 }
 0x8ab   : > { %v15695_v28 = vmul.f32 %v10870_v11, %v15652_v5  ;;  %v7004_v8 = vpop.permute.xlu0 %7003  ;;  %v7604_v37 = vld [vmem:[#allocation3 + $0x2a8] sm:$0xff] }
 0x8ac   : > { %7069 = vst.msk [vmem:[#allocation3 + $0x2d8] sm:$0xff] %vm1095_vm4, %v7004_v8 }
 0x8ad   : > { %7261 = vst.msk [vmem:[#allocation3 + $0x2d8] sm:$0xff] %vm1288_vm5, %v16412_v19  ;;  %8458 = vrot.lane.b32.xlu0 %v15695_v28, %s11158_s16  ;;  %v7006_v41 = vpop.permute.xlu1 %7005  ;;  %v7607_v43 = vld [vmem:[#allocation3 + $0x2c0] sm:$0xff] }
 0x8ae   : > { %v10872_v27 = vpop.eup %10871  ;;  %7453 = vst.msk [vmem:[#allocation3 + $0x2d8] sm:$0xff] %vm1481_vm6, %v7388_v33  ;;  %v7658_v20 = vpack.c.bf16 %v7607_v43, %v7604_v37 }
 0x8af   : > { %v15704_v39 = vmul.f32 %v10872_v27, %v15658_v63  ;;  %7070 = vst.msk [vmem:[#allocation3 + $0x2f0] sm:$0xff] %vm1095_vm4, %v7006_v41  ;;  %v6748_v5 = vpop.permute.xlu0 %6747 }
 0x8b0   : > { %7262 = vst.msk [vmem:[#allocation3 + $0x2f0] sm:$0xff] %vm1288_vm5, %v16413_v60  ;;  %8008 = vmatprep.mubr.bf16.mxu1 %v7658_v20 }
 0x8b1   : > { %6813 = vst.msk [vmem:[#allocation3 + $0x2d0] sm:$0xff] %vm1481_vm6, %v6748_v5  ;;  %7454 = vst.msk [vmem:[#allocation3 + $0x2f0] sm:$0xff] %vm1481_vm6, %v7390_v58  ;;  %8460 = vrot.lane.b32.xlu1 %v15704_v39, %s11158_s16  ;;  %v10874_v63 = vpop.eup %10873  ;;  %v6750_v32 = vpop.permute.xlu1 %6749  ;;  %8009 = vmatmul.mubr.bf16.gmra.mxu1 %v7657_v14 }
 0x8b2   : > { %v9841_v38 = vpop.f32.mrf.mxu1  ;;  %v8292_v51 = vadd.f32 1.0, %v10874_v63  ;;  %6814 = vst.msk [vmem:[#allocation3 + $0x2e8] sm:$0xff] %vm1481_vm6, %v6750_v32 }
 0x8b3   : > { %v15716_v40 = vpop.permute.xlu0 %8826 }
 0x8b4   : > { %v9842_v18 = vpop.f32.mrf.mxu1  ;;  %10877 = vrcp.f32 %v8292_v51 }
 0x8b5   : > { %v9843_v62 = vadd.f32 %v9842_v18, %v9841_v38  ;;  %v10876_v17 = vpop.eup %10875  ;;  %v15718_v36 = vpop.permute.xlu1 %8828  ;;  %v7610_v25 = vld [vmem:[#allocation3 + $0x2d8] sm:$0xff] }
 0x8b6   : > { %v9844_v55 = vpop.f32.mrf.mxu1  ;;  %v8293_v46 = vadd.f32 1.0, %v10876_v17 }
 0x8b7   : > { %v7947_v12 = vadd.f32 %v9843_v62, %v15478_v53  ;;  %v15721_v30 = vpop.permute.xlu0 %8830 }
 0x8b8   : > { %v9845_v7 = vpop.f32.mrf.mxu1  ;;  %v7613_v21 = vld [vmem:[#allocation3 + $0x2f0] sm:$0xff]  ;;  %10879 = vrcp.f32 %v8293_v46 }
 0x8b9   : > { %v15723_v42 = vadd.f32 %v8107_v16, %v7947_v12  ;;  %v9846_v29 = vadd.f32 %v9845_v7, %v9844_v55  ;;  %v7661_v50 = vpack.c.bf16 %v7613_v21, %v7610_v25  ;;  %v15725_v59 = vpop.permute.xlu1 %8832  ;;  %v7609_v0 = vld [vmem:[#allocation3 + $0x2d0] sm:$0xff]  ;;  %v7612_v2 = vld [vmem:[#allocation3 + $0x2e8] sm:$0xff] }
 0x8ba   : > { %v7660_v6 = vpack.c.bf16 %v7612_v2, %v7609_v0 }
 0x8bb   : > { %v9453_v52 = vmul.f32 -1.442695, %v15723_v42  ;;  %v7950_v56 = vadd.f32 %v9846_v29, %v15478_v53  ;;  %v15729_v49 = vpop.permute.xlu0 %8834  ;;  %8016 = vmatprep.mubr.bf16.mxu1 %v7661_v50 }
 0x8bc   : > { %8017 = vmatmul.mubr.bf16.gmra.mxu1 %v7660_v6 }
 0x8bd   : > { %10881 = vpow2.f32 %v9453_v52  ;;  %v8111_v24 = vadd.f32 %v8110_v22, %v7950_v56  ;;  %v15731_v47 = vpop.permute.xlu1 %8836  ;;  %v15791_v56 = vpop.f32.mrf.mxu0 }
 0x8bf   : > { %v9454_v61 = vmul.f32 -1.442695, %v8111_v24  ;;  %v15733_v4 = vpop.permute.xlu0 %8838 }
 0x8c1   : > { %10883 = vpow2.f32 %v9454_v61  ;;  %v10878_v10 = vpop.eup %10877  ;;  %v15735_v15 = vpop.permute.xlu1 %8840 }
 0x8c2   : > { %v15738_v33 = vmul.f32 %v10878_v10, %v15683_v1 }
 0x8c3   : > { %v15740_v11 = vpop.permute.xlu0 %8842 }
 0x8c4   : > { %8462 = vrot.lane.b32.xlu0 %v15738_v33, %s11158_s16 }
 0x8c5   : > { %v10880_v58 = vpop.eup %10879  ;;  %v15744_v8 = vpop.permute.xlu1 %8844 }
 0x8c6   : > { %v15747_v19 = vmul.f32 %v10880_v58, %v15690_v23  ;;  %v8123_v58 = vpop.f32.mrf.mxu0 }
 0x8c7   : > { %v15749_v3 = vpop.permute.xlu0 %8846 }
 0x8c8   : > { %8464 = vrot.lane.b32.xlu1 %v15747_v19, %s11158_s16 }
 0x8c9   : > { %v15753_v41 = vpop.permute.xlu1 %8848  ;;  %v9847_v1 = vpop.f32.mrf.mxu1 }
 0x8ca   : > { %v10882_v27 = vpop.eup %10881 }
 0x8cb   : > { %v8294_v37 = vadd.f32 1.0, %v10882_v27  ;;  %v15755_v43 = vpop.permute.xlu0 %8850  ;;  %v9848_v5 = vpop.f32.mrf.mxu1 }
 0x8cc   : > { %v9849_v20 = vadd.f32 %v9848_v5, %v9847_v1 }
 0x8cd   : > { %10885 = vrcp.f32 %v8294_v37  ;;  %v15757_v60 = vpop.permute.xlu1 %8852  ;;  %v9850_v23 = vpop.f32.mrf.mxu1 }
 0x8ce   : > { %v10884_v35 = vpop.eup %10883  ;;  %v7955_v63 = vadd.f32 %v9849_v20, %v15478_v53 }
 0x8cf   : > { %v8295_v14 = vadd.f32 1.0, %v10884_v35  ;;  %v8443_v32 = vpop.permute.xlu0 %8442  ;;  %v9851_v51 = vpop.f32.mrf.mxu1 }
 0x8d0   : > { %v15761_v38 = vadd.f32 %v8443_v32, %v15577_v54  ;;  %v15764_v16 = vadd.f32 %v15707_v9, %v7955_v63  ;;  %v9852_v18 = vadd.f32 %v9851_v51, %v9850_v23  ;;  %v15796_v23 = vpop.f32.mrf.mxu0 }
 0x8d1   : > { %10887 = vrcp.f32 %v8295_v14  ;;  %v8445_v17 = vpop.permute.xlu1 %8444 }
 0x8d2   : > { %v9473_v62 = vmul.f32 -1.442695, %v15761_v38  ;;  %v9455_v55 = vmul.f32 -1.442695, %v15764_v16  ;;  %v7958_v46 = vadd.f32 %v9852_v18, %v15478_v53  ;;  %v15770_v12 = vadd.f32 %v8445_v17, %v15590_v45 }
 0x8d4   : > { %10889 = vpow2.f32 %v9473_v62  ;;  %v15772_v54 = vadd.f32 %v10044_v26, %v7958_v46  ;;  %v9474_v7 = vmul.f32 -1.442695, %v15770_v12 }
 0x8d5   : > { %10891 = vpow2.f32 %v9455_v55  ;;  %v8126_v55 = vpop.f32.mrf.mxu0 }
 0x8d6   : > { %v9456_v9 = vmul.f32 -1.442695, %v15772_v54  ;;  %10893 = vpow2.f32 %v9474_v7  ;;  %v8447_v25 = vpop.permute.xlu0 %8446 }
 0x8d7   : > { %v15777_v21 = vadd.f32 %v8447_v25, %v15598_v31 }
 0x8d8   : > { %10895 = vpow2.f32 %v9456_v9 }
 0x8d9   : > { %v9475_v50 = vmul.f32 -1.442695, %v15777_v21 }
 0x8da   : > { %v10886_v29 = vpop.eup %10885  ;;  %v8449_v0 = vpop.permute.xlu1 %8448 }
 0x8db   : > { %v15781_v45 = vmul.f32 %v10886_v29, %v15723_v42  ;;  %10897 = vpow2.f32 %v9475_v50  ;;  %v15784_v26 = vadd.f32 %v8449_v0, %v15605_v48 }
 0x8dd   : > { %8466 = vrot.lane.b32.xlu0 %v15781_v45, %s11158_s16  ;;  %v9476_v52 = vmul.f32 -1.442695, %v15784_v26 }
 0x8de   : > { %v10888_v2 = vpop.eup %10887 }
 0x8df   : > { %v15789_v31 = vmul.f32 %v10888_v2, %v8111_v24  ;;  %10899 = vpow2.f32 %v9476_v52 }
 0x8e1   : > { %v10890_v6 = vpop.eup %10889  ;;  %8468 = vrot.lane.b32.xlu1 %v15789_v31, %s11158_s16  ;;  %v9853_v61 = vpop.f32.mrf.mxu1 }
 0x8e2   : > { %v10892_v42 = vpop.eup %10891  ;;  %v8666_v22 = vadd.f32 1.0, %v10890_v6 }
 0x8e3   : > { %v8296_v48 = vadd.f32 1.0, %v10892_v42  ;;  %v10894_v10 = vpop.eup %10893  ;;  %v9854_v27 = vpop.f32.mrf.mxu1 }
 0x8e4   : > { %10901 = vrcp.f32 %v8666_v22  ;;  %v8667_v1 = vadd.f32 1.0, %v10894_v10  ;;  %v9855_v37 = vadd.f32 %v9854_v27, %v9853_v61 }
 0x8e5   : > { %10903 = vrcp.f32 %v8296_v48  ;;  %v10896_v24 = vpop.eup %10895  ;;  %v9856_v5 = vpop.f32.mrf.mxu1 }
 0x8e6   : > { %v8297_v20 = vadd.f32 1.0, %v10896_v24  ;;  %10905 = vrcp.f32 %v8667_v1  ;;  %v7963_v35 = vadd.f32 %v9855_v37, %v15478_v53 }
 0x8e7   : > { %v9857_v14 = vpop.f32.mrf.mxu1 }
 0x8e8   : > { %v10898_v63 = vpop.eup %10897  ;;  %10907 = vrcp.f32 %v8297_v20  ;;  %v15798_v32 = vadd.f32 %v8123_v58, %v7963_v35  ;;  %v9858_v51 = vadd.f32 %v9857_v14, %v9856_v5 }
 0x8e9   : > { %v8668_v18 = vadd.f32 1.0, %v10898_v63 }
 0x8ea   : > { %v9457_v62 = vmul.f32 -1.442695, %v15798_v32  ;;  %v7966_v17 = vadd.f32 %v9858_v51, %v15478_v53 }
 0x8eb   : > { %10909 = vrcp.f32 %v8668_v18 }
 0x8ec   : > { %v10900_v46 = vpop.eup %10899  ;;  %10911 = vpow2.f32 %v9457_v62  ;;  %v15803_v7 = vadd.f32 %v8126_v55, %v7966_v17 }
 0x8ed   : > { %v8669_v9 = vadd.f32 1.0, %v10900_v46 }
 0x8ee   : > { %v9458_v25 = vmul.f32 -1.442695, %v15803_v7 }
 0x8ef   : > { %v8451_v29 = vpop.permute.xlu0 %8450  ;;  %10913 = vrcp.f32 %v8669_v9 }
 0x8f0   : > { %v15809_v50 = vadd.f32 %v8451_v29, %v15630_v57  ;;  %10915 = vpow2.f32 %v9458_v25 }
 0x8f1   : > { %v10902_v0 = vpop.eup %10901 }
 0x8f2   : > { %v10904_v53 = vpop.eup %10903  ;;  %v8762_v2 = vmul.f32 %v10902_v0, %v15761_v38  ;;  %v9477_v52 = vmul.f32 -1.442695, %v15809_v50 }
 0x8f3   : > { %v15814_v6 = vmul.f32 %v10904_v53, %v15764_v16  ;;  %v8453_v42 = vpop.permute.xlu1 %8452  ;;  %v10906_v22 = vpop.eup %10905 }
 0x8f4   : > { %v8922_v61 = vadd.f32 %v15716_v40, %v8762_v2  ;;  %10917 = vpow2.f32 %v9477_v52  ;;  %v15818_v48 = vadd.f32 %v8453_v42, %v15637_v34  ;;  %v8763_v57 = vmul.f32 %v10906_v22, %v15770_v12 }
 0x8f5   : > { %8470 = vrot.lane.b32.xlu0 %v15814_v6, %s11158_s16  ;;  %v10908_v10 = vpop.eup %10907 }
 0x8f6   : > { %8954 = vst.msk [vmem:[%s15823_s26] sm:$0xff] %vm782_vm2, %v8922_v61  ;;  %v9478_v38 = vmul.f32 -1.442695, %v15818_v48  ;;  %v15829_v40 = vmul.f32 %v10908_v10, %v15772_v54  ;;  %v8923_v34 = vadd.f32 %v15718_v36, %v8763_v57  ;;  %v15875_v57 = vpop.f32.mrf.mxu0 }
 0x8f8   : > { %10919 = vpow2.f32 %v9478_v38  ;;  %v10910_v16 = vpop.eup %10909  ;;  %8955 = vst.msk [vmem:[%s15823_s26 + $0x8] sm:$0xff] %vm782_vm2, %v8923_v34  ;;  %8472 = vrot.lane.b32.xlu1 %v15829_v40, %s11158_s16 }
 0x8f9   : > { %v10912_v12 = vpop.eup %10911  ;;  %v8764_v58 = vmul.f32 %v10910_v16, %v15777_v21  ;;  %v9859_v27 = vpop.f32.mrf.mxu1  ;;  %v15844_v21 = vld [vmem:[%s16252_s4 + $0x2] ss:$0 sm:$0xff] }
 0x8fa   : > { %v8298_v1 = vadd.f32 1.0, %v10912_v12  ;;  %v8139_v16 = vpop.f32.mrf.mxu0 }
 0x8fb   : > { %v8924_v37 = vadd.f32 %v15721_v30, %v8764_v58  ;;  %v9860_v24 = vpop.f32.mrf.mxu1 }
 0x8fc   : > { %v10914_v54 = vpop.eup %10913  ;;  %10921 = vrcp.f32 %v8298_v1  ;;  %v9861_v5 = vadd.f32 %v9860_v24, %v9859_v27 }
 0x8fd   : > { %v10916_v36 = vpop.eup %10915  ;;  %8956 = vst.msk [vmem:[%s15823_s26 + $0x10] sm:$0xff] %vm782_vm2, %v8924_v37  ;;  %v8765_v20 = vmul.f32 %v10914_v54, %v15784_v26  ;;  %v9862_v35 = vpop.f32.mrf.mxu1 }
 0x8fe   : > { %v8299_v14 = vadd.f32 1.0, %v10916_v36  ;;  %v7971_v63 = vadd.f32 %v15844_v21, %v9861_v5 }
 0x8ff   : > { %v8925_v30 = vadd.f32 %v15725_v59, %v8765_v20  ;;  %v9863_v51 = vpop.f32.mrf.mxu1 }
 0x900   : > { %10923 = vrcp.f32 %v8299_v14  ;;  %v15849_v62 = vadd.f32 %v15791_v56, %v7971_v63  ;;  %v9864_v17 = vadd.f32 %v9863_v51, %v9862_v35 }
 0x901   : > { %v10918_v18 = vpop.eup %10917  ;;  %8957 = vst.msk [vmem:[%s15823_s26 + $0x18] sm:$0xff] %vm782_vm2, %v8925_v30 }
 0x902   : > { %v8670_v26 = vadd.f32 1.0, %v10918_v18  ;;  %v9459_v55 = vmul.f32 -1.442695, %v15849_v62  ;;  %v7974_v46 = vadd.f32 %v15844_v21, %v9864_v17 }
 0x904   : > { %10925 = vrcp.f32 %v8670_v26  ;;  %v15856_v25 = vadd.f32 %v15796_v23, %v7974_v46 }
 0x905   : > { %v10920_v9 = vpop.eup %10919  ;;  %10927 = vpow2.f32 %v9459_v55 }
 0x906   : > { %v8671_v59 = vadd.f32 1.0, %v10920_v9  ;;  %v9460_v29 = vmul.f32 -1.442695, %v15856_v25  ;;  %v8455_v0 = vpop.permute.xlu0 %8454 }
 0x907   : > { %v15860_v56 = vadd.f32 %v8455_v0, %v15664_v13 }
 0x908   : > { %10929 = vrcp.f32 %v8671_v59 }
 0x909   : > { %10931 = vpow2.f32 %v9460_v29  ;;  %v10922_v53 = vpop.eup %10921  ;;  %v9479_v2 = vmul.f32 -1.442695, %v15860_v56 }
 0x90a   : > { %v15864_v52 = vmul.f32 %v10922_v53, %v15798_v32  ;;  %v8457_v42 = vpop.permute.xlu1 %8456 }
 0x90b   : > { %10933 = vpow2.f32 %v9479_v2  ;;  %v15867_v23 = vadd.f32 %v8457_v42, %v15671_v44 }
 0x90c   : > { %8474 = vrot.lane.b32.xlu0 %v15864_v52, %s11158_s16 }
 0x90d   : > { %v10924_v22 = vpop.eup %10923  ;;  %v9480_v61 = vmul.f32 -1.442695, %v15867_v23 }
 0x90e   : > { %v15873_v13 = vmul.f32 %v10924_v22, %v15803_v7 }
 0x90f   : > { %10935 = vpow2.f32 %v9480_v61 }
 0x910   : > { %8476 = vrot.lane.b32.xlu1 %v15873_v13, %s11158_s16 }
 0x911   : > { %v10926_v32 = vpop.eup %10925  ;;  %v9865_v38 = vpop.f32.mrf.mxu1 }
 0x912   : > { %v10928_v10 = vpop.eup %10927  ;;  %v8766_v44 = vmul.f32 %v10926_v32, %v15809_v50  ;;  %v15885_v50 = vpop.f32.mrf.mxu0 }
 0x913   : > { %v8300_v34 = vadd.f32 1.0, %v10928_v10  ;;  %v9866_v58 = vpop.f32.mrf.mxu1 }
 0x914   : > { %v8926_v12 = vadd.f32 %v15729_v49, %v8766_v44  ;;  %v9867_v7 = vadd.f32 %v9866_v58, %v9865_v38  ;;  %v8142_v51 = vpop.f32.mrf.mxu0 }
 0x915   : > { %v10930_v27 = vpop.eup %10929  ;;  %10937 = vrcp.f32 %v8300_v34  ;;  %v9868_v24 = vpop.f32.mrf.mxu1 }
 0x916   : > { %v10932_v1 = vpop.eup %10931  ;;  %8958 = vst.msk [vmem:[%s15823_s26 + $0x20] sm:$0xff] %vm782_vm2, %v8926_v12  ;;  %v8767_v37 = vmul.f32 %v10930_v27, %v15818_v48  ;;  %v7979_v5 = vadd.f32 %v15844_v21, %v9867_v7 }
 0x917   : > { %v8301_v54 = vadd.f32 1.0, %v10932_v1  ;;  %v9869_v20 = vpop.f32.mrf.mxu1 }
 0x918   : > { %v8927_v36 = vadd.f32 %v15731_v47, %v8767_v37  ;;  %v10934_v49 = vpop.eup %10933  ;;  %v15888_v35 = vadd.f32 %v8139_v16, %v7979_v5  ;;  %v9870_v14 = vadd.f32 %v9869_v20, %v9868_v24 }
 0x919   : > { %10939 = vrcp.f32 %v8301_v54  ;;  %v8672_v63 = vadd.f32 1.0, %v10934_v49 }
 0x91a   : > { %8959 = vst.msk [vmem:[%s15823_s26 + $0x28] sm:$0xff] %vm782_vm2, %v8927_v36  ;;  %v9461_v30 = vmul.f32 -1.442695, %v15888_v35  ;;  %v7982_v48 = vadd.f32 %v15844_v21, %v9870_v14 }
 0x91b   : > { %10941 = vrcp.f32 %v8672_v63 }
 0x91c   : > { %v10936_v18 = vpop.eup %10935  ;;  %10943 = vpow2.f32 %v9461_v30  ;;  %v15894_v17 = vadd.f32 %v8142_v51, %v7982_v48 }
 0x91d   : > { %v8673_v47 = vadd.f32 1.0, %v10936_v18 }
 0x91e   : > { %v9462_v26 = vmul.f32 -1.442695, %v15894_v17 }
 0x91f   : > { %v8459_v55 = vpop.permute.xlu0 %8458  ;;  %10945 = vrcp.f32 %v8673_v47  ;;  %v15949_v47 = vpop.f32.mrf.mxu0 }
 0x920   : > { %v15898_v46 = vadd.f32 %v8459_v55, %v15695_v28  ;;  %10947 = vpow2.f32 %v9462_v26 }
 0x922   : > { %v10938_v9 = vpop.eup %10937  ;;  %v9481_v59 = vmul.f32 -1.442695, %v15898_v46 }
 0x923   : > { %v15902_v29 = vmul.f32 %v10938_v9, %v15849_v62  ;;  %v8461_v0 = vpop.permute.xlu1 %8460 }
 0x924   : > { %10949 = vpow2.f32 %v9481_v59  ;;  %v15905_v53 = vadd.f32 %v8461_v0, %v15704_v39  ;;  %v8155_v59 = vpop.f32.mrf.mxu0 }
 0x925   : > { %8478 = vrot.lane.b32.xlu0 %v15902_v29, %s11158_s16 }
 0x926   : > { %v10940_v2 = vpop.eup %10939  ;;  %v9482_v28 = vmul.f32 -1.442695, %v15905_v53 }
 0x927   : > { %v15911_v42 = vmul.f32 %v10940_v2, %v15856_v25 }
 0x928   : > { %10951 = vpow2.f32 %v9482_v28  ;;  %v10942_v22 = vpop.eup %10941 }
 0x929   : > { %8480 = vrot.lane.b32.xlu1 %v15911_v42, %s11158_s16  ;;  %v10944_v62 = vpop.eup %10943  ;;  %v8768_v61 = vmul.f32 %v10942_v22, %v15860_v56  ;;  %v9871_v39 = vpop.f32.mrf.mxu1 }
 0x92a   : > { %v8302_v32 = vadd.f32 1.0, %v10944_v62 }
 0x92b   : > { %v8928_v10 = vadd.f32 %v15733_v4, %v8768_v61  ;;  %v9872_v44 = vpop.f32.mrf.mxu1 }
 0x92c   : > { %v10946_v38 = vpop.eup %10945  ;;  %10953 = vrcp.f32 %v8302_v32  ;;  %v9873_v34 = vadd.f32 %v9872_v44, %v9871_v39 }
 0x92d   : > { %v10948_v16 = vpop.eup %10947  ;;  %8960 = vst.msk [vmem:[%s15823_s26 + $0x30] sm:$0xff] %vm782_vm2, %v8928_v10  ;;  %v8769_v25 = vmul.f32 %v10946_v38, %v15867_v23  ;;  %v9874_v12 = vpop.f32.mrf.mxu1 }
 0x92e   : > { %v8303_v58 = vadd.f32 1.0, %v10948_v16  ;;  %v7987_v27 = vadd.f32 %v15844_v21, %v9873_v34 }
 0x92f   : > { %v8929_v56 = vadd.f32 %v15735_v15, %v8769_v25  ;;  %v9875_v7 = vpop.f32.mrf.mxu1 }
 0x930   : > { %10955 = vrcp.f32 %v8303_v58  ;;  %v15923_v4 = vadd.f32 %v15875_v57, %v7987_v27  ;;  %v9876_v37 = vadd.f32 %v9875_v7, %v9874_v12 }
 0x931   : > { %v10950_v1 = vpop.eup %10949  ;;  %8961 = vst.msk [vmem:[%s15823_s26 + $0x38] sm:$0xff] %vm782_vm2, %v8929_v56 }
 0x932   : > { %v8674_v24 = vadd.f32 1.0, %v10950_v1  ;;  %v9463_v54 = vmul.f32 -1.442695, %v15923_v4  ;;  %v7990_v23 = vadd.f32 %v15844_v21, %v9876_v37 }
 0x934   : > { %10957 = vrcp.f32 %v8674_v24  ;;  %v15930_v36 = vadd.f32 %v15885_v50, %v7990_v23 }
 0x935   : > { %v10952_v5 = vpop.eup %10951  ;;  %10959 = vpow2.f32 %v9463_v54 }
 0x936   : > { %v8675_v15 = vadd.f32 1.0, %v10952_v5  ;;  %v9464_v20 = vmul.f32 -1.442695, %v15930_v36  ;;  %v8463_v49 = vpop.permute.xlu0 %8462 }
 0x937   : > { %v15934_v57 = vadd.f32 %v8463_v49, %v15738_v33 }
 0x938   : > { %10961 = vrcp.f32 %v8675_v15 }
 0x939   : > { %10963 = vpow2.f32 %v9464_v20  ;;  %v10954_v14 = vpop.eup %10953  ;;  %v9483_v63 = vmul.f32 -1.442695, %v15934_v57 }
 0x93a   : > { %v15938_v30 = vmul.f32 %v10954_v14, %v15888_v35  ;;  %v8465_v48 = vpop.permute.xlu1 %8464 }
 0x93b   : > { %10965 = vpow2.f32 %v9483_v63  ;;  %v15941_v50 = vadd.f32 %v8465_v48, %v15747_v19 }
 0x93c   : > { %8482 = vrot.lane.b32.xlu0 %v15938_v30, %s11158_s16 }
 0x93d   : > { %v10956_v51 = vpop.eup %10955  ;;  %v9484_v18 = vmul.f32 -1.442695, %v15941_v50 }
 0x93e   : > { %v15947_v33 = vmul.f32 %v10956_v51, %v15894_v17 }
 0x93f   : > { %10967 = vpow2.f32 %v9484_v18 }
 0x940   : > { %8484 = vrot.lane.b32.xlu1 %v15947_v33, %s11158_s16 }
 0x941   : > { %v10958_v35 = vpop.eup %10957  ;;  %v9877_v55 = vpop.f32.mrf.mxu1 }
 0x942   : > { %v10960_v26 = vpop.eup %10959  ;;  %v8770_v19 = vmul.f32 %v10958_v35, %v15898_v46  ;;  %v15959_v46 = vpop.f32.mrf.mxu0 }
 0x943   : > { %v8304_v9 = vadd.f32 1.0, %v10960_v26  ;;  %v9878_v2 = vpop.f32.mrf.mxu1 }
 0x944   : > { %v8930_v0 = vadd.f32 %v15740_v11, %v8770_v19  ;;  %v9879_v17 = vadd.f32 %v9878_v2, %v9877_v55  ;;  %v8158_v12 = vpop.f32.mrf.mxu0 }
 0x945   : > { %v10962_v28 = vpop.eup %10961  ;;  %10969 = vrcp.f32 %v8304_v9  ;;  %v9880_v61 = vpop.f32.mrf.mxu1 }
 0x946   : > { %v10964_v22 = vpop.eup %10963  ;;  %8962 = vst.msk [vmem:[%s15823_s26 + $0x40] sm:$0xff] %vm782_vm2, %v8930_v0  ;;  %v8771_v62 = vmul.f32 %v10962_v28, %v15905_v53  ;;  %v7995_v32 = vadd.f32 %v15844_v21, %v9879_v17 }
 0x947   : > { %v8305_v39 = vadd.f32 1.0, %v10964_v22  ;;  %v9881_v44 = vpop.f32.mrf.mxu1 }
 0x948   : > { %v8931_v10 = vadd.f32 %v15744_v8, %v8771_v62  ;;  %v10966_v11 = vpop.eup %10965  ;;  %v15962_v38 = vadd.f32 %v8155_v59, %v7995_v32  ;;  %v9882_v34 = vadd.f32 %v9881_v44, %v9880_v61 }
 0x949   : > { %10971 = vrcp.f32 %v8305_v39  ;;  %v8676_v16 = vadd.f32 1.0, %v10966_v11 }
 0x94a   : > { %8963 = vst.msk [vmem:[%s15823_s26 + $0x48] sm:$0xff] %vm782_vm2, %v8931_v10  ;;  %v9465_v25 = vmul.f32 -1.442695, %v15962_v38  ;;  %v7998_v53 = vadd.f32 %v15844_v21, %v9882_v34  ;;  %v10059_v10 = vpop.f32.mrf.mxu0 }
 0x94b   : > { %10973 = vrcp.f32 %v8676_v16 }
 0x94c   : > { %v10968_v58 = vpop.eup %10967  ;;  %10975 = vpow2.f32 %v9465_v25  ;;  %v8159_v27 = vadd.f32 %v8158_v12, %v7998_v53  ;;  %v8171_v25 = vpop.f32.mrf.mxu0 }
 0x94d   : > { %v8677_v56 = vadd.f32 1.0, %v10968_v58 }
 0x94e   : > { %v9466_v8 = vmul.f32 -1.442695, %v8159_v27 }
 0x94f   : > { %v8467_v7 = vpop.permute.xlu0 %8466  ;;  %10977 = vrcp.f32 %v8677_v56 }
 0x950   : > { %v8550_v1 = vadd.f32 %v8467_v7, %v15781_v45  ;;  %10979 = vpow2.f32 %v9466_v8 }
 0x952   : > { %v10970_v37 = vpop.eup %10969  ;;  %v9485_v24 = vmul.f32 -1.442695, %v8550_v1 }
 0x953   : > { %v15970_v54 = vmul.f32 %v10970_v37, %v15923_v4  ;;  %v8469_v23 = vpop.permute.xlu1 %8468  ;;  %v10060_v37 = vpop.f32.mrf.mxu0 }
 0x954   : > { %10981 = vpow2.f32 %v9485_v24  ;;  %v8551_v5 = vadd.f32 %v8469_v23, %v15789_v31 }
 0x955   : > { %8486 = vrot.lane.b32.xlu0 %v15970_v54, %s11158_s16 }
 0x956   : > { %v10972_v15 = vpop.eup %10971  ;;  %v9486_v20 = vmul.f32 -1.442695, %v8551_v5 }
 0x957   : > { %v15976_v49 = vmul.f32 %v10972_v15, %v15930_v36 }
 0x958   : > { %10983 = vpow2.f32 %v9486_v20  ;;  %v10974_v45 = vpop.eup %10973 }
 0x959   : > { %8488 = vrot.lane.b32.xlu1 %v15976_v49, %s11158_s16  ;;  %v10976_v4 = vpop.eup %10975  ;;  %v8772_v14 = vmul.f32 %v10974_v45, %v15934_v57  ;;  %v9883_v63 = vpop.f32.mrf.mxu1 }
 0x95a   : > { %v8306_v48 = vadd.f32 1.0, %v10976_v4  ;;  %v8174_v45 = vpop.f32.mrf.mxu0 }
 0x95b   : > { %v8932_v31 = vadd.f32 %v15749_v3, %v8772_v14  ;;  %v9884_v51 = vpop.f32.mrf.mxu1 }
 0x95c   : > { %v10978_v18 = vpop.eup %10977  ;;  %10985 = vrcp.f32 %v8306_v48  ;;  %v9885_v35 = vadd.f32 %v9884_v51, %v9883_v63 }
 0x95d   : > { %v10980_v26 = vpop.eup %10979  ;;  %8964 = vst.msk [vmem:[%s15823_s26 + $0x50] sm:$0xff] %vm782_vm2, %v8932_v31  ;;  %v8773_v36 = vmul.f32 %v10978_v18, %v15941_v50  ;;  %v9886_v19 = vpop.f32.mrf.mxu1 }
 0x95e   : > { %v8307_v55 = vadd.f32 1.0, %v10980_v26  ;;  %v8003_v9 = vadd.f32 %v15844_v21, %v9885_v35 }
 0x95f   : > { %v8933_v57 = vadd.f32 %v15753_v41, %v8773_v36  ;;  %v9887_v59 = vpop.f32.mrf.mxu1 }
 0x960   : > { %10987 = vrcp.f32 %v8307_v55  ;;  %v8164_v3 = vadd.f32 %v15949_v47, %v8003_v9  ;;  %v9888_v2 = vadd.f32 %v9887_v59, %v9886_v19 }
 0x961   : > { %v10982_v0 = vpop.eup %10981  ;;  %8965 = vst.msk [vmem:[%s15823_s26 + $0x58] sm:$0xff] %vm782_vm2, %v8933_v57 }
 0x962   : > { %v8678_v28 = vadd.f32 1.0, %v10982_v0  ;;  %v9467_v17 = vmul.f32 -1.442695, %v8164_v3  ;;  %v8006_v22 = vadd.f32 %v15844_v21, %v9888_v2 }
 0x964   : > { %10989 = vrcp.f32 %v8678_v28  ;;  %v8167_v62 = vadd.f32 %v15959_v46, %v8006_v22 }
 0x965   : > { %v10984_v50 = vpop.eup %10983  ;;  %10991 = vpow2.f32 %v9467_v17 }
 0x966   : > { %v8679_v61 = vadd.f32 1.0, %v10984_v50  ;;  %v9468_v39 = vmul.f32 -1.442695, %v8167_v62 }
 0x968   : > { %10993 = vrcp.f32 %v8679_v61 }
 0x969   : > { %10995 = vpow2.f32 %v9468_v39  ;;  %v10986_v41 = vpop.eup %10985 }
 0x96a   : > { %v15993_v32 = vmul.f32 %v10986_v41, %v15962_v38 }
 0x96c   : > { %8490 = vrot.lane.b32.xlu0 %v15993_v32, %s11158_s16 }
 0x96d   : > { %v10988_v47 = vpop.eup %10987 }
 0x96e   : > { %v15997_v44 = vmul.f32 %v10988_v47, %v8159_v27 }
 0x970   : > { %8492 = vrot.lane.b32.xlu1 %v15997_v44, %s11158_s16 }
 0x971   : > { %v10990_v11 = vpop.eup %10989  ;;  %v9889_v16 = vpop.f32.mrf.mxu1 }
 0x972   : > { %v10992_v46 = vpop.eup %10991  ;;  %v8774_v34 = vmul.f32 %v10990_v11, %v8550_v1 }
 0x973   : > { %v8308_v53 = vadd.f32 1.0, %v10992_v46  ;;  %v9890_v12 = vpop.f32.mrf.mxu1 }
 0x974   : > { %v8934_v38 = vadd.f32 %v15755_v43, %v8774_v34  ;;  %v9891_v56 = vadd.f32 %v9890_v12, %v9889_v16  ;;  %v16416_v12 = vld [vmem:[#allocation24_spill] sm:$0xff] }
 0x975   : > { %v10994_v58 = vpop.eup %10993  ;;  %10997 = vrcp.f32 %v8308_v53  ;;  %v9892_v7 = vpop.f32.mrf.mxu1  ;;  %v16414_v53 = vld [vmem:[#allocation19_spill] sm:$0xff] }
 0x976   : > { %v10996_v8 = vpop.eup %10995  ;;  %8966 = vst.msk [vmem:[%s15823_s26 + $0x60] sm:$0xff] %vm782_vm2, %v8934_v38  ;;  %v8775_v27 = vmul.f32 %v10994_v58, %v8551_v5  ;;  %v8011_v23 = vadd.f32 %v15844_v21, %v9891_v56  ;;  %v16415_v38 = vld [vmem:[#allocation21_spill] sm:$0xff]  ;;  %v16417_v58 = vld [vmem:[#allocation26_spill] sm:$0xff]  ;;  %v16418_v56 = vld [vmem:[#allocation23_spill] sm:$0xff] }
 0x977   : > { %v8309_v24 = vadd.f32 1.0, %v10996_v8  ;;  %v9893_v15 = vpop.f32.mrf.mxu1  ;;  %v16419_v8 = vld [vmem:[#allocation25_spill] sm:$0xff] }
 0x978   : > { %v8935_v1 = vadd.f32 %v15757_v60, %v8775_v27  ;;  %v9894_v20 = vadd.f32 %v9893_v15, %v9892_v7  ;;  %v8172_v43 = vadd.f32 %v8171_v25, %v8011_v23  ;;  %v16420_v27 = vld [vmem:[#allocation28_spill] sm:$0xff]  ;;  %v16421_v7 = vld [vmem:[#allocation30_spill] sm:$0xff]  ;;  %v16426_v15 = vld [vmem:[#allocation31_spill] sm:$0xff] }
 0x979   : > { %10999 = vrcp.f32 %v8309_v24  ;;  %v16423_v24 = vld [vmem:[#allocation29_spill] sm:$0xff]  ;;  %v16424_v23 = vld [vmem:[#allocation32_spill] sm:$0xff] }
 0x97a   : > { %8967 = vst.msk [vmem:[%s15823_s26 + $0x68] sm:$0xff] %vm782_vm2, %v8935_v1  ;;  %v9469_v4 = vmul.f32 -1.442695, %v8172_v43  ;;  %v8014_v14 = vadd.f32 %v15844_v21, %v9894_v20  ;;  %v16425_v1 = vld [vmem:[#allocation34_spill] sm:$0xff]  ;;  %v16427_v20 = vld [vmem:[#allocation33_spill] sm:$0xff] }
 0x97c   : > { %11001 = vpow2.f32 %v9469_v4  ;;  %v8175_v63 = vadd.f32 %v8174_v45, %v8014_v14  ;;  %v9895_v5 = vpop.f32.mrf.mxu1  ;;  %v16429_v45 = vld [vmem:[#allocation38_spill] sm:$0xff]  ;;  %v16430_v4 = vld [vmem:[#allocation35_spill] sm:$0xff]  ;;  %v16431_v14 = vld [vmem:[#allocation37_spill] sm:$0xff] }
 0x97e   : > { %v9470_v48 = vmul.f32 -1.442695, %v8175_v63  ;;  %v9896_v31 = vpop.f32.mrf.mxu1 }
 0x97f   : > { %v9897_v51 = vadd.f32 %v9896_v31, %v9895_v5 }
 0x980   : > { %11003 = vpow2.f32 %v9470_v48  ;;  %v9898_v18 = vpop.f32.mrf.mxu1  ;;  %v8473_v48 = vpop.permute.xlu1 %8472 }
 0x981   : > { %v8019_v60 = vadd.f32 %v15844_v21, %v9897_v51  ;;  %v16075_v51 = vadd.f32 %v8473_v48, %v15829_v40 }
 0x982   : > { %v10998_v35 = vpop.eup %10997  ;;  %v9899_v36 = vpop.f32.mrf.mxu1 }
 0x983   : > { %v16010_v26 = vmul.f32 %v10998_v35, %v8164_v3  ;;  %v8180_v19 = vadd.f32 %v10059_v10, %v8019_v60  ;;  %v9900_v55 = vadd.f32 %v9899_v36, %v9898_v18 }
 0x984   : > { %v8477_v60 = vpop.permute.xlu1 %8476 }
 0x985   : > { %8494 = vrot.lane.b32.xlu0 %v16010_v26, %s11158_s16  ;;  %v9471_v57 = vmul.f32 -1.442695, %v8180_v19  ;;  %v8022_v59 = vadd.f32 %v15844_v21, %v9900_v55  ;;  %v16083_v55 = vadd.f32 %v8477_v60, %v15873_v13 }
 0x986   : > { %v11000_v9 = vpop.eup %10999 }
 0x987   : > { %v16015_v0 = vmul.f32 %v11000_v9, %v8167_v62  ;;  %11005 = vpow2.f32 %v9471_v57  ;;  %v8183_v2 = vadd.f32 %v10060_v37, %v8022_v59  ;;  %v16422_v37 = vld [vmem:[#allocation27_spill] sm:$0xff]  ;;  %v9490_v59 = vmul.f32 -1.442695, %v16083_v55 }
 0x989   : > { %8496 = vrot.lane.b32.xlu1 %v16015_v0, %s11158_s16  ;;  %v11002_v28 = vpop.eup %11001  ;;  %v9472_v3 = vmul.f32 -1.442695, %v8183_v2 }
 0x98a   : > { %v8310_v17 = vadd.f32 1.0, %v11002_v28 }
 0x98b   : > { %11007 = vpow2.f32 %v9472_v3 }
 0x98c   : > { %11009 = vrcp.f32 %v8310_v17 }
 0x98d   : > { %v11004_v22 = vpop.eup %11003 }
 0x98e   : > { %v8311_v50 = vadd.f32 1.0, %v11004_v22 }
 0x990   : > { %11011 = vrcp.f32 %v8311_v50 }
 0x994   : > { %v11006_v61 = vpop.eup %11005 }
 0x995   : > { %v8312_v39 = vadd.f32 1.0, %v11006_v61 }
 0x997   : > { %11013 = vrcp.f32 %v8312_v39 }
 0x998   : > { %v11008_v41 = vpop.eup %11007 }
 0x999   : > { %v11010_v21 = vpop.eup %11009  ;;  %v8313_v62 = vadd.f32 1.0, %v11008_v41 }
 0x99a   : > { %v16019_v47 = vmul.f32 %v11010_v21, %v8172_v43  ;;  %v16428_v43 = vld [vmem:[#allocation36_spill] sm:$0xff] }
 0x99b   : > { %11015 = vrcp.f32 %v8313_v62  ;;  %v8481_v40 = vpop.permute.xlu1 %8480 }
 0x99c   : > { %8498 = vrot.lane.b32.xlu0 %v16019_v47, %s11158_s16 }
 0x99d   : > { %v11012_v10 = vpop.eup %11011 }
 0x99e   : > { %v16023_v11 = vmul.f32 %v11012_v10, %v8175_v63  ;;  %v8471_v63 = vpop.permute.xlu0 %8470 }
 0x99f   : > { %v16072_v5 = vadd.f32 %v8471_v63, %v15814_v6 }
 0x9a0   : > { %8500 = vrot.lane.b32.xlu1 %v16023_v11, %s11158_s16 }
 0x9a1   : > { %v9487_v18 = vmul.f32 -1.442695, %v16072_v5 }
 0x9a2   : > { %v8475_v31 = vpop.permute.xlu0 %8474 }
 0x9a3   : > { %v16079_v35 = vadd.f32 %v8475_v31, %v15864_v52  ;;  %11017 = vpow2.f32 %v9487_v18 }
 0x9a4   : > { %v11014_v46 = vpop.eup %11013 }
 0x9a5   : > { %v16027_v34 = vmul.f32 %v11014_v46, %v8180_v19  ;;  %v9488_v19 = vmul.f32 -1.442695, %v16075_v51  ;;  %v9489_v6 = vmul.f32 -1.442695, %v16079_v35 }
 0x9a6   : > { %v8479_v36 = vpop.permute.xlu0 %8478 }
 0x9a7   : > { %8502 = vrot.lane.b32.xlu0 %v16027_v34, %s11158_s16  ;;  %v16087_v9 = vadd.f32 %v8479_v36, %v15902_v29  ;;  %11019 = vpow2.f32 %v9488_v19 }
 0x9a8   : > { %v11016_v16 = vpop.eup %11015  ;;  %11021 = vpow2.f32 %v9489_v6 }
 0x9a9   : > { %v16031_v25 = vmul.f32 %v11016_v16, %v8183_v2  ;;  %v9491_v52 = vmul.f32 -1.442695, %v16087_v9  ;;  %v16092_v2 = vadd.f32 %v8481_v40, %v15911_v42  ;;  %11023 = vpow2.f32 %v9490_v59 }
 0x9ab   : > { %8504 = vrot.lane.b32.xlu1 %v16031_v25, %s11158_s16  ;;  %8854 = vrot.lane.b32.xlu0 %v16414_v53, %s11158_s16  ;;  %11025 = vpow2.f32 %v9491_v52  ;;  %v9492_v29 = vmul.f32 -1.442695, %v16092_v2 }
 0x9ad   : > { %11027 = vpow2.f32 %v9492_v29 }
 0x9ae   : > { %v8483_v57 = vpop.permute.xlu0 %8482 }
 0x9af   : > { %8856 = vrot.lane.b32.xlu1 %v16415_v38, %s11158_s16  ;;  %8858 = vrot.lane.b32.xlu0 %v16416_v12, %s11158_s16  ;;  %v16095_v13 = vadd.f32 %v8483_v57, %v15938_v30 }
 0x9b0   : > { %v11018_v39 = vpop.eup %11017 }
 0x9b1   : > { %v9493_v17 = vmul.f32 -1.442695, %v16095_v13 }
 0x9b2   : > { %v8485_v28 = vpop.permute.xlu1 %8484 }
 0x9b3   : > { %8860 = vrot.lane.b32.xlu1 %v16417_v58, %s11158_s16  ;;  %8862 = vrot.lane.b32.xlu0 %v16418_v56, %s11158_s16  ;;  %v16100_v22 = vadd.f32 %v8485_v28, %v15947_v33  ;;  %11029 = vpow2.f32 %v9493_v17 }
 0x9b4   : > { %v11020_v46 = vpop.eup %11019 }
 0x9b5   : > { %v9494_v30 = vmul.f32 -1.442695, %v16100_v22  ;;  %v11022_v16 = vpop.eup %11021 }
 0x9b6   : > { %v11024_v56 = vpop.eup %11023 }
 0x9b7   : > { %8864 = vrot.lane.b32.xlu1 %v16419_v8, %s11158_s16  ;;  %8866 = vrot.lane.b32.xlu0 %v16420_v27, %s11158_s16  ;;  %11031 = vpow2.f32 %v9494_v30  ;;  %v8682_v8 = vadd.f32 1.0, %v11022_v16 }
 0x9b8   : > { %v11026_v27 = vpop.eup %11025 }
 0x9bb   : > { %8868 = vrot.lane.b32.xlu1 %v16421_v7, %s11158_s16  ;;  %8870 = vrot.lane.b32.xlu0 %v16422_v37, %s11158_s16 }
 0x9bf   : > { %8872 = vrot.lane.b32.xlu1 %v16423_v24, %s11158_s16  ;;  %8874 = vrot.lane.b32.xlu0 %v16424_v23, %s11158_s16  ;;  %v8683_v24 = vadd.f32 1.0, %v11024_v56 }
 0x9c3   : > { %8876 = vrot.lane.b32.xlu1 %v16425_v1, %s11158_s16  ;;  %8878 = vrot.lane.b32.xlu0 %v16426_v15, %s11158_s16  ;;  %v11028_v1 = vpop.eup %11027 }
 0x9c7   : > { %8880 = vrot.lane.b32.xlu1 %v16427_v20, %s11158_s16  ;;  %8882 = vrot.lane.b32.xlu0 %v16428_v43, %s11158_s16  ;;  %v8487_v3 = vpop.permute.xlu0 %8486  ;;  %v11030_v43 = vpop.eup %11029 }
 0x9c8   : > { %v16103_v50 = vadd.f32 %v8487_v3, %v15970_v54  ;;  %v8680_v54 = vadd.f32 1.0, %v11018_v39  ;;  %v11032_v48 = vpop.eup %11031 }
 0x9c9   : > { %v8687_v60 = vadd.f32 1.0, %v11032_v48 }
 0x9ca   : > { %v9495_v21 = vmul.f32 -1.442695, %v16103_v50 }
 0x9cb   : > { %8884 = vrot.lane.b32.xlu1 %v16429_v45, %s11158_s16  ;;  %8886 = vrot.lane.b32.xlu0 %v16430_v4, %s11158_s16  ;;  %v8489_v61 = vpop.permute.xlu1 %8488  ;;  %v8685_v45 = vadd.f32 1.0, %v11028_v1 }
 0x9cc   : > { %v16107_v41 = vadd.f32 %v8489_v61, %v15976_v49  ;;  %11033 = vpow2.f32 %v9495_v21 }
 0x9cd   : > { %11035 = vrcp.f32 %v8680_v54 }
 0x9ce   : > { %v9496_v53 = vmul.f32 -1.442695, %v16107_v41 }
 0x9cf   : > { %8888 = vrot.lane.b32.xlu1 %v16431_v14, %s11158_s16  ;;  %v8686_v14 = vadd.f32 1.0, %v11030_v43  ;;  %s9511_s16 = sshll.u32 %s11213_s22, 12  ;;  %s16208_s22 = scalar_lea.sflag [#allocation5], %s215_s12 }
 0x9d0   : > { %11037 = vpow2.f32 %v9496_v53  ;;  %s16200_s10 = scalar_lea.hbm %s16253_s5, %s9511_s16 }
 0x9d9   : > { %v11034_v31 = vpop.eup %11033 }
 0x9da   : > { %v8688_v19 = vadd.f32 1.0, %v11034_v31 }
 0x9de   : > { %v8491_v42 = vpop.permute.xlu0 %8490 }
 0x9df   : > { %v16111_v62 = vadd.f32 %v8491_v42, %v15993_v32  ;;  %v8681_v32 = vadd.f32 1.0, %v11020_v46 }
 0x9e1   : > { %v9497_v49 = vmul.f32 -1.442695, %v16111_v62 }
 0x9e2   : > { %v8493_v33 = vpop.permute.xlu1 %8492 }
 0x9e3   : > { %v16115_v38 = vadd.f32 %v8493_v33, %v15997_v44  ;;  %11039 = vpow2.f32 %v9497_v49 }
 0x9e4   : > { %11041 = vrcp.f32 %v8681_v32 }
 0x9e5   : > { %v9498_v7 = vmul.f32 -1.442695, %v16115_v38  ;;  %11043 = vrcp.f32 %v8682_v8 }
 0x9e7   : > { %11045 = vpow2.f32 %v9498_v7 }
 0x9f7   : > { %v8495_v10 = vpop.permute.xlu0 %8494 }
 0x9f8   : > { %v16119_v12 = vadd.f32 %v8495_v10, %v16010_v26  ;;  %v8684_v26 = vadd.f32 1.0, %v11026_v27 }
 0x9fa   : > { %v9499_v44 = vmul.f32 -1.442695, %v16119_v12 }
 0x9fb   : > { %v8497_v58 = vpop.permute.xlu1 %8496 }
 0x9fc   : > { %v16123_v37 = vadd.f32 %v8497_v58, %v16015_v0  ;;  %11047 = vpow2.f32 %v9499_v44 }
 0x9fd   : > { %11049 = vrcp.f32 %v8683_v24 }
 0x9fe   : > { %v9500_v15 = vmul.f32 -1.442695, %v16123_v37  ;;  %11051 = vrcp.f32 %v8684_v26 }
 0xa00   : > { %11053 = vpow2.f32 %v9500_v15 }
 0xa0e   : > { %v8499_v23 = vpop.permute.xlu0 %8498 }
 0xa0f   : > { %v16128_v20 = vadd.f32 %v8499_v23, %v16019_v47  ;;  %v11036_v47 = vpop.eup %11035 }
 0xa10   : > { %v11038_v36 = vpop.eup %11037  ;;  %v8776_v17 = vmul.f32 %v11036_v47, %v16072_v5 }
 0xa11   : > { %v9501_v0 = vmul.f32 -1.442695, %v16128_v20  ;;  %v11040_v6 = vpop.eup %11039  ;;  %v8689_v52 = vadd.f32 1.0, %v11038_v36 }
 0xa12   : > { %v8501_v4 = vpop.permute.xlu1 %8500  ;;  %v11042_v57 = vpop.eup %11041  ;;  %v8690_v3 = vadd.f32 1.0, %v11040_v6 }
 0xa13   : > { %v16132_v63 = vadd.f32 %v8501_v4, %v16023_v11  ;;  %11055 = vpow2.f32 %v9501_v0  ;;  %v11044_v11 = vpop.eup %11043  ;;  %v8777_v46 = vmul.f32 %v11042_v57, %v16075_v51 }
 0xa14   : > { %11057 = vrcp.f32 %v8685_v45  ;;  %v11046_v28 = vpop.eup %11045  ;;  %v8778_v53 = vmul.f32 %v11044_v11, %v16079_v35 }
 0xa15   : > { %v9502_v18 = vmul.f32 -1.442695, %v16132_v63  ;;  %11059 = vrcp.f32 %v8686_v14  ;;  %v11048_v61 = vpop.eup %11047  ;;  %v8691_v10 = vadd.f32 1.0, %v11046_v28 }
 0xa16   : > { %v11050_v30 = vpop.eup %11049  ;;  %v8692_v16 = vadd.f32 1.0, %v11048_v61 }
 0xa17   : > { %11061 = vpow2.f32 %v9502_v18  ;;  %v11052_v33 = vpop.eup %11051  ;;  %v8779_v35 = vmul.f32 %v11050_v30, %v16083_v55 }
 0xa18   : > { %11063 = vrcp.f32 %v8687_v60  ;;  %v11054_v54 = vpop.eup %11053  ;;  %v8780_v44 = vmul.f32 %v11052_v33, %v16087_v9 }
 0xa19   : > { %v8503_v40 = vpop.permute.xlu0 %8502  ;;  %11065 = vrcp.f32 %v8688_v19  ;;  %v8693_v51 = vadd.f32 1.0, %v11054_v54 }
 0xa1a   : > { %v16136_v59 = vadd.f32 %v8503_v40, %v16027_v34 }
 0xa1c   : > { %v9503_v29 = vmul.f32 -1.442695, %v16136_v59 }
 0xa1d   : > { %v8505_v42 = vpop.permute.xlu1 %8504  ;;  %v8855_v39 = vpop.permute.xlu0 %8854 }
 0xa1e   : > { %11067 = vpow2.f32 %v9503_v29  ;;  %v16141_v21 = vadd.f32 %v8505_v42, %v16031_v25  ;;  %v8936_v34 = vadd.f32 %v8855_v39, %v8776_v17 }
 0xa1f   : > { %11069 = vrcp.f32 %v8689_v52 }
 0xa20   : > { %11071 = vrcp.f32 %v8690_v3  ;;  %v9504_v5 = vmul.f32 -1.442695, %v16141_v21  ;;  %8968 = vst.msk [vmem:[%s15823_s26 + $0x70] sm:$0xff] %vm782_vm2, %v8936_v34  ;;  %v11056_v49 = vpop.eup %11055 }
 0xa21   : > { %v8857_v25 = vpop.permute.xlu1 %8856  ;;  %v8859_v58 = vpop.permute.xlu0 %8858  ;;  %v8694_v7 = vadd.f32 1.0, %v11056_v49 }
 0xa22   : > { %11073 = vpow2.f32 %v9504_v5  ;;  %v8937_v32 = vadd.f32 %v8857_v25, %v8777_v46  ;;  %v8938_v56 = vadd.f32 %v8859_v58, %v8778_v53  ;;  %v11058_v8 = vpop.eup %11057 }
 0xa23   : > { %11075 = vrcp.f32 %v8691_v10  ;;  %v11060_v27 = vpop.eup %11059  ;;  %v8781_v45 = vmul.f32 %v11058_v8, %v16092_v2 }
 0xa24   : > { %11077 = vrcp.f32 %v8692_v16  ;;  %8969 = vst.msk [vmem:[%s15823_s26 + $0x78] sm:$0xff] %vm782_vm2, %v8937_v32  ;;  %8970 = vst.msk [vmem:[%s15823_s26 + $0x80] sm:$0xff] %vm782_vm2, %v8938_v56  ;;  %v11062_v24 = vpop.eup %11061  ;;  %v8782_v55 = vmul.f32 %v11060_v27, %v16095_v13 }
 0xa25   : > { %v8861_v26 = vpop.permute.xlu1 %8860  ;;  %v8863_v23 = vpop.permute.xlu0 %8862  ;;  %11079 = vrcp.f32 %v8693_v51  ;;  %v8695_v0 = vadd.f32 1.0, %v11062_v24 }
 0xa26   : > { %v8939_v1 = vadd.f32 %v8861_v26, %v8779_v35  ;;  %v8940_v15 = vadd.f32 %v8863_v23, %v8780_v44  ;;  %v11064_v43 = vpop.eup %11063  ;;  %11081 = vrcp.f32 %v8694_v7 }
 0xa27   : > { %v11066_v9 = vpop.eup %11065  ;;  %11083 = vrcp.f32 %v8695_v0  ;;  %v8783_v36 = vmul.f32 %v11064_v43, %v16100_v22 }
 0xa28   : > { %8971 = vst.msk [vmem:[%s15823_s26 + $0x88] sm:$0xff] %vm782_vm2, %v8939_v1  ;;  %8972 = vst.msk [vmem:[%s15823_s26 + $0x90] sm:$0xff] %vm782_vm2, %v8940_v15  ;;  %v8784_v2 = vmul.f32 %v11066_v9, %v16103_v50 }
 0xa29   : > { %v8865_v4 = vpop.permute.xlu1 %8864  ;;  %v8867_v14 = vpop.permute.xlu0 %8866 }
 0xa2a   : > { %v8941_v48 = vadd.f32 %v8865_v4, %v8781_v45  ;;  %v8942_v31 = vadd.f32 %v8867_v14, %v8782_v55 }
 0xa2b   : > { %v11068_v18 = vpop.eup %11067 }
 0xa2c   : > { %v11070_v47 = vpop.eup %11069  ;;  %v8696_v60 = vadd.f32 1.0, %v11068_v18  ;;  %8973 = vst.msk [vmem:[%s15823_s26 + $0x98] sm:$0xff] %vm782_vm2, %v8941_v48  ;;  %8974 = vst.msk [vmem:[%s15823_s26 + $0xa0] sm:$0xff] %vm782_vm2, %v8942_v31 }
 0xa2d   : > { %v11072_v13 = vpop.eup %11071  ;;  %v8869_v19 = vpop.permute.xlu1 %8868  ;;  %v8785_v3 = vmul.f32 %v11070_v47, %v16107_v41 }
 0xa2e   : > { %v8871_v6 = vpop.permute.xlu0 %8870  ;;  %11085 = vrcp.f32 %v8696_v60  ;;  %v8943_v40 = vadd.f32 %v8869_v19, %v8783_v36  ;;  %v8786_v22 = vmul.f32 %v11072_v13, %v16111_v62 }
 0xa2f   : > { %v8944_v57 = vadd.f32 %v8871_v6, %v8784_v2  ;;  %v11074_v11 = vpop.eup %11073 }
 0xa30   : > { %v11076_v52 = vpop.eup %11075  ;;  %v8697_v28 = vadd.f32 1.0, %v11074_v11  ;;  %8975 = vst.msk [vmem:[%s15823_s26 + $0xa8] sm:$0xff] %vm782_vm2, %v8943_v40 }
 0xa31   : > { %8976 = vst.msk [vmem:[%s15823_s26 + $0xb0] sm:$0xff] %vm782_vm2, %v8944_v57  ;;  %v11078_v50 = vpop.eup %11077  ;;  %v8873_v29 = vpop.permute.xlu1 %8872  ;;  %v8787_v30 = vmul.f32 %v11076_v52, %v16115_v38 }
 0xa32   : > { %v8875_v17 = vpop.permute.xlu0 %8874  ;;  %11087 = vrcp.f32 %v8697_v28  ;;  %v8945_v61 = vadd.f32 %v8873_v29, %v8785_v3  ;;  %v11080_v39 = vpop.eup %11079  ;;  %v8788_v34 = vmul.f32 %v11078_v50, %v16119_v12 }
 0xa33   : > { %v8946_v42 = vadd.f32 %v8875_v17, %v8786_v22  ;;  %v11082_v41 = vpop.eup %11081  ;;  %v8789_v54 = vmul.f32 %v11080_v39, %v16123_v37 }
 0xa34   : > { %8977 = vst.msk [vmem:[%s15823_s26 + $0xb8] sm:$0xff] %vm782_vm2, %v8945_v61  ;;  %v8790_v16 = vmul.f32 %v11082_v41, %v16128_v20  ;;  %v11084_v38 = vpop.eup %11083 }
 0xa35   : > { %8978 = vst.msk [vmem:[%s15823_s26 + $0xc0] sm:$0xff] %vm782_vm2, %v8946_v42  ;;  %v8877_v62 = vpop.permute.xlu1 %8876  ;;  %v8791_v58 = vmul.f32 %v11084_v38, %v16132_v63 }
 0xa36   : > { %v8879_v33 = vpop.permute.xlu0 %8878  ;;  %v8947_v10 = vadd.f32 %v8877_v62, %v8787_v30 }
 0xa37   : > { %v8948_v46 = vadd.f32 %v8879_v33, %v8788_v34 }
 0xa38   : > { %8979 = vst.msk [vmem:[%s15823_s26 + $0xc8] sm:$0xff] %vm782_vm2, %v8947_v10 }
 0xa39   : > { %8980 = vst.msk [vmem:[%s15823_s26 + $0xd0] sm:$0xff] %vm782_vm2, %v8948_v46  ;;  %v8881_v5 = vpop.permute.xlu1 %8880 }
 0xa3a   : > { %v8883_v12 = vpop.permute.xlu0 %8882  ;;  %v8949_v53 = vadd.f32 %v8881_v5, %v8789_v54 }
 0xa3b   : > { %v8950_v49 = vadd.f32 %v8883_v12, %v8790_v16  ;;  %v11086_v25 = vpop.eup %11085 }
 0xa3c   : > { %8981 = vst.msk [vmem:[%s15823_s26 + $0xd8] sm:$0xff] %vm782_vm2, %v8949_v53  ;;  %v8792_v37 = vmul.f32 %v11086_v25, %v16136_v59 }
 0xa3d   : > { %8982 = vst.msk [vmem:[%s15823_s26 + $0xe0] sm:$0xff] %vm782_vm2, %v8950_v49  ;;  %v8885_v20 = vpop.permute.xlu1 %8884 }
 0xa3e   : > { %v8887_v32 = vpop.permute.xlu0 %8886  ;;  %v8951_v56 = vadd.f32 %v8885_v20, %v8791_v58 }
 0xa3f   : > { %v8952_v8 = vadd.f32 %v8887_v32, %v8792_v37  ;;  %v11088_v51 = vpop.eup %11087 }
 0xa40   : > { %8983 = vst.msk [vmem:[%s15823_s26 + $0xe8] sm:$0xff] %vm782_vm2, %v8951_v56  ;;  %v8793_v27 = vmul.f32 %v11088_v51, %v16141_v21 }
 0xa41   : > { %8984 = vst.msk [vmem:[%s15823_s26 + $0xf0] sm:$0xff] %vm782_vm2, %v8952_v8  ;;  %v8889_v7 = vpop.permute.xlu1 %8888 }
 0xa42   : > { %v8953_v63 = vadd.f32 %v8889_v7, %v8793_v27 }
 0xa44   : > { %8985 = vst.msk [vmem:[%s15823_s26 + $0xf8] sm:$0xff] %vm782_vm2, %v8953_v63 }
 0xa45   : > { %11106 = shalt.err (!%p11103_p3)
}
 0xa46   : > { %s11107_s23 = scalar_lea.hbm %s16200_s10, 4096  ;;  %s11111_s13 = scalar_lea.hbm %s16253_s5, 8192 }
 0xa47   : > { %p11108_p4 = scmp.ne.s32.totalorder %s16200_s10, %s11107_s23  ;;  %p11112_p9 = scmp.lt.s32.totalorder %s16200_s10, %s16253_s5 }
 0xa48   : > { %p11113_p10 = scmp.lt.s32.totalorder %s11111_s13, %s11107_s23 }
 0xa49   : > { %p11109_p7 = pnand %p11108_p4, %p11230_p5 }
 0xa4a   : > { %p11114_p11 = por %p11113_p10, %p11112_p9 }
 0xa4b   : > { %p11110_p8 = pneg %p11109_p7 }
 0xa4d   : > { %p11115_p12 = pnand %p11114_p11, %p11110_p8 }
 0xa4f   : > { %11118 = shalt.err (!%p11115_p12)
}
 0xa50   : > { %s11160_s6 = smov 128   ;;  %s11161_s16 = smov 8  }
 0xa51   : > { %10078 = dma.vmem_to_hbm [thread:$0]  (%p11230_p5), %s16202_s7, 4096, %s16200_s10, %s16208_s22, %s11160_s6, %s11160_s6, %s11161_s16  }
 0xa52 PF: > { %p10084_p13 = scmp.ge.s32.totalorder %s11153_s21, 2  ;;  %s9015_s8 = sand.u32 1, %s11141_s18  }
 0xa53   : > { %s9016_s9 = scalar_lea.sflag [#allocation5], %s9015_s8 }
 0xa54   : > { %p10081_p0 = pnand %p10084_p13, %p11234_p6 }
 0xa56   : > { %p10082_p1 = pneg %p10081_p0 }
 0xa58   : > { %11136 = dma.done.wait (%p10082_p1), %s9016_s9, 4096  }
 0xa59   : > { %11138 = vsyncadd (%p10082_p1), %s9016_s9, 4294963200  ;;  %p15_p2 = scmp.ge.s32.totalorder %s11217_s24, 4   ;;  %s16432_s18 = smov %s11145_s19 }
 0xa5a   : > { %s16433_s19 = smov %s11149_s20  ;;  %s16434_s20 = smov %s11228_s27 }
 0xa5b   : > { %s16435_s21 = smov %s11217_s24  ;;  %17 = sbr.rel (!%p15_p2) target bundleno = 3 (0x3), region = 81 }
 0xa60   :  { %9021 = vsyncpa [#allocation5], 1 }
 0xa61   :  { %9023 = vsyncpa [#allocation5 + $0x1], 1 }

</bundles_post_ra>
